<compile_context>
chip_gen: v7x
topology: tpu7x:2x2x1
jax: 0.10.0
libtpu: 0.0.40
codegen_flags: <defaults>
</compile_context>

<pallas_src>
import numpy as np
import jax
import jax.numpy as jnp
from jax.experimental import pallas as pl
from jax.experimental.pallas import tpu as pltpu


# ----------------------------------------------------------------------------
# Config (small, but structurally identical to the PyTorch module's config)
# ----------------------------------------------------------------------------
CONFIG = {
    "model": {
        "num_stacks": 1,
        "dilations": [1, 2, 4],
        "filters": {
            "depths": {"res": 8, "skip": 8, "final": [8, 8]},
            "lengths": {"res": 3, "final": [3, 3]},
        },
        "target_field_length": 5,
        "target_padding": 0,
        "condition_encoding": "binary",
    },
    "dataset": {"num_condition_classes": 4},
}

NUM_STACKS = CONFIG["model"]["num_stacks"]
DILATIONS = CONFIG["model"]["dilations"]
ND = len(DILATIONS)
RES = CONFIG["model"]["filters"]["depths"]["res"]
SKIP = CONFIG["model"]["filters"]["depths"]["skip"]
FINAL0 = CONFIG["model"]["filters"]["depths"]["final"][0]
FINAL1 = CONFIG["model"]["filters"]["depths"]["final"][1]
KRES = CONFIG["model"]["filters"]["lengths"]["res"]          # 3
KFIN0 = CONFIG["model"]["filters"]["lengths"]["final"][0]    # 3
KFIN1 = CONFIG["model"]["filters"]["lengths"]["final"][1]    # 3
TARGET_FIELD_LEN = CONFIG["model"]["target_field_length"]
TARGET_PADDING = CONFIG["model"]["target_padding"]
NUM_COND_CLASSES = CONFIG["dataset"]["num_condition_classes"]
COND_LEN = int(np.ceil(np.log2(NUM_COND_CLASSES)))           # 'binary' encoding -> 2

# util.compute_receptive_field_length(stacks, dilations, filter_len, 1)
_half_filter = (KRES - 1) // 2
RECEPTIVE_FIELD = NUM_STACKS * 2 * sum(d * _half_filter for d in DILATIONS) + 1  # 15
INPUT_LEN = RECEPTIVE_FIELD + (TARGET_FIELD_LEN - 1)                              # 19
PTL = TARGET_FIELD_LEN + 2 * TARGET_PADDING                                       # 5
HALF_TARGET = TARGET_FIELD_LEN // 2
TARGET_SAMPLE_IDX = int(np.floor(INPUT_LEN / 2.0))
SOI_START = TARGET_SAMPLE_IDX - HALF_TARGET - TARGET_PADDING                      # 7
SOI_END = TARGET_SAMPLE_IDX + HALF_TARGET + TARGET_PADDING + 1                    # 12 (excl)

assert SKIP == RES  # the original module's conv2 is declared Conv1d(res, ...) but consumes the skip sum


def _ru8(x):
    return ((x + 7) // 8) * 8


# Per-sample time axis is padded to a multiple of 8 so the flat (B*L_PAD, C) layout
# is sublane-tile aligned; positions t >= INPUT_LEN are "don't care" and are kept
# from leaking into valid positions by the per-tap source masks.
L_PAD = _ru8(INPUT_LEN)                                                            # 24

# ----------------------------------------------------------------------------
# Packed-weight geometry: one (PACK_R, PACK_C) f32 block, 8-row-aligned sub-blocks
# ----------------------------------------------------------------------------
PACK_C = RES + ND * 2 * RES + FINAL0 + FINAL1        # 72 (width of the fused cond matrix)

ROWS_W1 = _ru8(KRES * 1)          # 8   input conv   (K*Cin, RES)
ROWS_WD1 = _ru8(KRES * RES)       # 24  dilated conv (K*RES, 2*RES)   x ND
ROWS_WD2 = _ru8(RES)              # 8   1x1 conv     (RES, RES+SKIP)  x ND
ROWS_W2 = _ru8(KFIN0 * SKIP)      # 24  post conv2   (K*SKIP, FINAL0)
ROWS_W3 = _ru8(KFIN1 * FINAL0)    # 24  post conv3   (K*FINAL0, FINAL1)
ROWS_W4 = _ru8(FINAL1)            # 8   post conv4   (FINAL1, 1)
ROWS_WC = _ru8(COND_LEN)          # 8   fused cond   (COND_LEN, PACK_C)

R_W1 = 0
R_WD1 = R_W1 + ROWS_W1
R_WD2 = R_WD1 + ND * ROWS_WD1
R_W2 = R_WD2 + ND * ROWS_WD2
R_W3 = R_W2 + ROWS_W2
R_W4 = R_W3 + ROWS_W3
R_WC = R_W4 + ROWS_W4
PACK_R = R_WC + ROWS_WC                                                            # 168

# column offsets inside the fused conditioning result (N, PACK_C)
C_FC1 = 0
C_DIL = RES                           # dfc1[i] lives at C_DIL + 2*RES*i
C_FC2 = RES + ND * 2 * RES            # 56
C_FC3 = C_FC2 + FINAL0                # 64

# input tile column layout: [x(t-1), x(t), x(t+1), cond0, cond1, t]
XIN_COLS = KRES + COND_LEN + 1        # 6


# ----------------------------------------------------------------------------
# Pallas kernel: one grid step == one batch tile (B_TILE samples, flat layout)
# ----------------------------------------------------------------------------
def wavenet_kernel(xin_ref, wp_ref, out_ref):
    f32 = jnp.float32
    xin = xin_ref[...]                                   # (NB, 6)
    x = xin[:, 1:2]                                      # raw signal at t
    cond = xin[:, KRES:KRES + COND_LEN]                  # (NB, 2), repeated per time step
    tpos = xin[:, KRES + COND_LEN:KRES + COND_LEN + 1]   # within-sample time index (float)

    def shift(a, off):
        # a shifted so row t holds a[t + off] of the same sample; zero where
        # t + off falls outside the valid range [0, INPUT_LEN) (== conv zero pad).
        if off == 0:
            return a
        rolled = pltpu.roll(a, (-off) % a.shape[0], axis=0)
        ok = jnp.logical_and(tpos + float(off) >= 0.0,
                             tpos + float(off) <= float(INPUT_LEN - 1))
        return jnp.where(ok, rolled, 0.0)

    def conv_same(a, w, dil, k):
        # "same" dilated conv via im2col: one MXU pass (NB, k*Cin) @ (k*Cin, Cout).
        half = (k - 1) // 2
        stack = jnp.concatenate([shift(a, (kk - half) * dil) for kk in range(k)],
                                axis=1)
        return jnp.dot(stack, w, preferred_element_type=f32)

    # ---- all conditioning projections fused into one matmul -----------------
    w_cond = wp_ref[R_WC:R_WC + COND_LEN, 0:PACK_C]                      # (2, 72)
    cond_all = jnp.dot(cond, w_cond, preferred_element_type=f32)          # (NB, 72)

    # ---- input conv (im2col columns prebuilt by the wrapper) -----------------
    w1 = wp_ref[R_W1:R_W1 + KRES, 0:RES]                                  # (3, 8)
    h = jnp.dot(xin[:, 0:KRES], w1, preferred_element_type=f32) \
        + cond_all[:, C_FC1:C_FC1 + RES]

    # ---- dilated residual blocks (layer weights shared across stacks, as in the
    #      PyTorch module: the same ModuleList is iterated num_stacks times) -----
    skip_sum = jnp.zeros((xin.shape[0], SKIP), f32)
    for _ in range(NUM_STACKS):
        for i, d in enumerate(DILATIONS):
            wd1 = wp_ref[R_WD1 + i * ROWS_WD1:
                         R_WD1 + i * ROWS_WD1 + KRES * RES, 0:2 * RES]    # (24, 16)
            wd2 = wp_ref[R_WD2 + i * ROWS_WD2:
                         R_WD2 + i * ROWS_WD2 + RES, 0:RES + SKIP]        # (8, 16)
            orig = h
            dout = conv_same(h, wd1, d, KRES) \
                + cond_all[:, C_DIL + 2 * RES * i:C_DIL + 2 * RES * (i + 1)]
            gated = jnp.tanh(dout[:, :RES]) * jax.nn.sigmoid(dout[:, RES:2 * RES])
            y = jnp.dot(gated, wd2, preferred_element_type=f32)           # (NB, 16)
            h = y[:, :RES] + orig
            skip_sum = skip_sum + y[:, RES:RES + SKIP]

    # ---- post-processing stack ------------------------------------------------
    # The PyTorch model crops the skip sum to the samples-of-interest window before
    # the final convs.  Because conv padding is zero, cropping is equivalent to
    # masking everything outside the window to zero before each conv.
    win = jnp.logical_and(tpos >= float(SOI_START), tpos <= float(SOI_END - 1))

    w2 = wp_ref[R_W2:R_W2 + KFIN0 * SKIP, 0:FINAL0]
    w3 = wp_ref[R_W3:R_W3 + KFIN1 * FINAL0, 0:FINAL1]
    w4 = wp_ref[R_W4:R_W4 + FINAL1, 0:1]

    h2 = jnp.maximum(skip_sum, 0.0)
    h2 = jnp.where(win, h2, 0.0)
    h2 = conv_same(h2, w2, 1, KFIN0) + cond_all[:, C_FC2:C_FC2 + FINAL0]
    h2 = jnp.maximum(h2, 0.0)
    h2 = jnp.where(win, h2, 0.0)
    h2 = conv_same(h2, w3, 1, KFIN1) + cond_all[:, C_FC3:C_FC3 + FINAL1]
    speech = jnp.dot(h2, w4, preferred_element_type=f32)                  # (NB, 1)

    # merged, single output tile: col 0 = speech, col 1 = noise = x - speech
    out_ref[...] = jnp.concatenate([speech, x - speech], axis=1)


# ----------------------------------------------------------------------------
# Host-side weight packing into one VMEM-resident constant block
# ----------------------------------------------------------------------------
def _pack_weights(p):
    f32 = jnp.float32

    def block(a, rows):
        a = jnp.asarray(a, f32)
        return jnp.pad(a, ((0, rows - a.shape[0]), (0, PACK_C - a.shape[1])))

    blocks = [block(p["c1w"].reshape(KRES * 1, RES), ROWS_W1)]
    blocks += [block(p["dc1w"][i].reshape(KRES * RES, 2 * RES), ROWS_WD1)
               for i in range(ND)]
    blocks += [block(p["dc2w"][i], ROWS_WD2) for i in range(ND)]
    blocks += [block(p["c2w"].reshape(KFIN0 * SKIP, FINAL0), ROWS_W2),
               block(p["c3w"].reshape(KFIN1 * FINAL0, FINAL1), ROWS_W3),
               block(p["c4w"], ROWS_W4)]
    w_cond = jnp.concatenate(
        [p["fc1w"]] + [p["dfc1w"][i] for i in range(ND)] + [p["fc2w"], p["fc3w"]],
        axis=1)                                                            # (2, 72)
    blocks.append(block(w_cond, ROWS_WC))
    packed = jnp.concatenate(blocks, axis=0)
    assert packed.shape == (PACK_R, PACK_C)
    return packed


# ----------------------------------------------------------------------------
# Wrapper
# ----------------------------------------------------------------------------
def _choose_batch_tile(batch):
    # Cap at 64 samples/tile (keeps activations comfortably inside the default
    # scoped VMEM even on v7x's 64 MiB); >=2 tiles for large batches lets
    # dimension_semantics=("parallel",) shard across both v7x TensorCores.
    return min(64, max(8, _ru8(batch)))


@jax.jit
def denoising_wavenet_forward(data_input, condition_input, params):
    B = data_input.shape[0]
    bt = _choose_batch_tile(B)
    n_tiles = (B + bt - 1) // bt
    b_pad = n_tiles * bt
    nb = bt * L_PAD                      # flat rows per grid step

    data = data_input.astype(jnp.float32)
    cond = condition_input.astype(jnp.float32)
    data = jnp.pad(data, ((0, b_pad - B), (0, L_PAD - INPUT_LEN)))        # (b_pad, 24)
    cond = jnp.pad(cond, ((0, b_pad - B), (0, 0)))                        # (b_pad, 2)

    # prebuild conv1's im2col columns (C_in = 1): x(t-1), x(t), x(t+1) with zero pad
    x_m1 = jnp.pad(data, ((0, 0), (1, 0)))[:, :L_PAD]
    x_p1 = jnp.pad(data, ((0, 0), (0, 1)))[:, 1:]
    tpos = jnp.broadcast_to(jnp.arange(L_PAD, dtype=jnp.float32)[None, :],
                            (b_pad, L_PAD))
    cond_rep = jnp.broadcast_to(cond[:, None, :], (b_pad, L_PAD, COND_LEN))

    xin = jnp.concatenate(
        [x_m1[:, :, None], data[:, :, None], x_p1[:, :, None],
         cond_rep, tpos[:, :, None]], axis=-1)                            # (b_pad, 24, 6)
    xin = xin.reshape(b_pad * L_PAD, XIN_COLS)

    wpack = _pack_weights(params)                                         # (168, 72)

    out = pl.pallas_call(
        wavenet_kernel,
        grid=(n_tiles,),
        in_specs=[pl.BlockSpec((nb, XIN_COLS), lambda i: (i, 0)),
                  pl.BlockSpec((PACK_R, PACK_C), lambda i: (0, 0))],
        out_specs=pl.BlockSpec((nb, 2), lambda i: (i, 0)),
        out_shape=jax.ShapeDtypeStruct((b_pad * L_PAD, 2), jnp.float32),
        compiler_params=pltpu.CompilerParams(
            dimension_semantics=("parallel",)),
    )(xin, wpack)

    out = out.reshape(b_pad, L_PAD, 2)[:B, SOI_START:SOI_END, :]
    return out[..., 0], out[..., 1]


# ----------------------------------------------------------------------------
# Deterministic parameter init (shapes derived from the PyTorch __init__)
# ----------------------------------------------------------------------------
def init_params(key):
    keys = jax.random.split(key, 16)
    s = 0.1

    def rnd(k, shape):
        return (s * jax.random.normal(k, shape)).astype(jnp.float32)

    params = {
        # Conv1d(1, RES, 3) -> (K, Cin, Cout)
        "c1w": rnd(keys[0], (KRES, 1, RES)),
        # Linear(COND_LEN, RES) -> (in, out)
        "fc1w": rnd(keys[1], (COND_LEN, RES)),
        # per dilated block (one set per dilation; shared across stacks, as in the spec)
        "dc1w": rnd(keys[2], (ND, KRES, RES, 2 * RES)),        # Conv1d(RES, 2*RES, 3, dil)
        "dfc1w": rnd(keys[3], (ND, COND_LEN, 2 * RES)),        # Linear(COND_LEN, 2*RES)
        "dc2w": rnd(keys[4], (ND, RES, RES + SKIP)),           # Conv1d(RES, RES+SKIP, 1)
        # post-processing (conv2 consumes the skip sum; SKIP == RES in this config)
        "c2w": rnd(keys[5], (KFIN0, SKIP, FINAL0)),            # Conv1d(8, FINAL0, 3)
        "fc2w": rnd(keys[6], (COND_LEN, FINAL0)),
        "c3w": rnd(keys[7], (KFIN1, FINAL0, FINAL1)),          # Conv1d(FINAL0, FINAL1, 3)
        "fc3w": rnd(keys[8], (COND_LEN, FINAL1)),
        "c4w": rnd(keys[9], (FINAL1, 1)),                      # Conv1d(FINAL1, 1, 1)
    }
    return params


# ----------------------------------------------------------------------------
# Pure-JAX reference (same semantics as the PyTorch forward) for verification
# ----------------------------------------------------------------------------
def ref_forward(data_input, condition_input, params):
    x = data_input.astype(jnp.float32)[:, :, None]            # (B, L, 1)
    cond = condition_input.astype(jnp.float32)                 # (B, COND_LEN)

    def conv_same(xb, w_kio, dil):
        K = w_kio.shape[0]
        half = (K - 1) // 2
        out = 0.0
        for k in range(K):
            off = (k - half) * dil
            if off > 0:
                xs = jnp.pad(xb[:, off:, :], ((0, 0), (0, off), (0, 0)))
            elif off < 0:
                xs = jnp.pad(xb[:, :off, :], ((0, 0), (-off, 0), (0, 0)))
            else:
                xs = xb
            out = out + jnp.einsum("blc,cd->bld", xs, w_kio[k])
        return out

    h = conv_same(x, params["c1w"], 1) + (cond @ params["fc1w"])[:, None, :]
    skip_sum = jnp.zeros((x.shape[0], PTL, SKIP), jnp.float32)
    for _ in range(NUM_STACKS):
        for i, d in enumerate(DILATIONS):
            orig = h
            dout = conv_same(h, params["dc1w"][i], d) + (cond @ params["dfc1w"][i])[:, None, :]
            gated = jnp.tanh(dout[..., :RES]) * jax.nn.sigmoid(dout[..., RES:2 * RES])
            y = jnp.einsum("blc,cd->bld", gated, params["dc2w"][i])
            h = y[..., :RES] + orig
            skip_sum = skip_sum + y[:, SOI_START:SOI_END, RES:RES + SKIP]

    h2 = jax.nn.relu(skip_sum)
    h2 = conv_same(h2, params["c2w"], 1) + (cond @ params["fc2w"])[:, None, :]
    h2 = jax.nn.relu(h2)
    h2 = conv_same(h2, params["c3w"], 1) + (cond @ params["fc3w"])[:, None, :]
    speech = jnp.einsum("blc,cd->bld", h2, params["c4w"])       # (B, PTL, 1)
    noise = x[:, SOI_START:SOI_END, :] - speech
    return speech[..., 0], noise[..., 0]


# ----------------------------------------------------------------------------
if __name__ == "__main__":
    key = jax.random.PRNGKey(0)
    k_data, k_cond, k_params = jax.random.split(key, 3)

    B = 2
    data_input = jax.random.normal(k_data, (B, INPUT_LEN), dtype=jnp.float32)
    # 'binary' condition encoding of length COND_LEN (values in {0, 1})
    condition_input = jax.random.bernoulli(k_cond, 0.5, (B, COND_LEN)).astype(jnp.float32)
    params = init_params(k_params)

    speech, noise = denoising_wavenet_forward(data_input, condition_input, params)
    speech = jax.block_until_ready(speech)
    noise = jax.block_until_ready(noise)

    ref_speech, ref_noise = ref_forward(data_input, condition_input, params)
    np.testing.assert_allclose(np.asarray(speech), np.asarray(ref_speech),
                               rtol=5e-3, atol=5e-3)
    np.testing.assert_allclose(np.asarray(noise), np.asarray(ref_noise),
                               rtol=5e-3, atol=5e-3)

    assert speech.shape == (B, PTL) and noise.shape == (B, PTL)
    print("KERNEL_OK")
</pallas_src>

<mosaic_0001>
module attributes {stable_mosaic.version = 11 : i64} {
  func.func @wavenet_kernel(%arg0: i32, %arg1: memref<192x6xf32, #tpu.memory_space<vmem>>, %arg2: memref<168x72xf32, #tpu.memory_space<vmem>>, %arg3: memref<192x2xf32, #tpu.memory_space<vmem>>) attributes {dimension_semantics = [#tpu.dimension_semantics<parallel>], iteration_bounds = array<i64: 1>, scalar_prefetch = 0 : i64, scratch_operands = 0 : i64, tpu.core_type = #tpu.core_type<tc>, window_params = [{transform_indices = @transform_0, window_bounds = array<i64: 192, 6>}, {pipeline_mode = #tpu.pipeline_mode<synchronous>, transform_indices = @transform_1, window_bounds = array<i64: 168, 72>}, {transform_indices = @transform_2, window_bounds = array<i64: 192, 2>}]} {
    %c0 = arith.constant 0 : index
    %c0_0 = arith.constant 0 : index
    %0 = vector.load %arg1[%c0, %c0_0] : memref<192x6xf32, #tpu.memory_space<vmem>>, vector<192x6xf32>
    %1 = vector.extract_strided_slice %0 {offsets = [0, 1], sizes = [192, 1], strides = [1, 1]} : vector<192x6xf32> to vector<192x1xf32>
    %2 = vector.extract_strided_slice %0 {offsets = [0, 3], sizes = [192, 2], strides = [1, 1]} : vector<192x6xf32> to vector<192x2xf32>
    %3 = vector.extract_strided_slice %0 {offsets = [0, 5], sizes = [192, 1], strides = [1, 1]} : vector<192x6xf32> to vector<192x1xf32>
    %c160 = arith.constant 160 : index
    %c0_1 = arith.constant 0 : index
    %4 = vector.load %arg2[%c160, %c0_1] : memref<168x72xf32, #tpu.memory_space<vmem>>, vector<2x72xf32>
    %cst = arith.constant dense<0.000000e+00> : vector<192x72xf32>
    %5 = tpu.matmul %2, %4, %cst {dimension_numbers = #tpu.dot_dimension_numbers<[1], [0], [0], [1], [0, 0, 1, 1], [], []>} : vector<192x2xf32>, vector<2x72xf32>, vector<192x72xf32> -> vector<192x72xf32>
    %c0_2 = arith.constant 0 : index
    %c0_3 = arith.constant 0 : index
    %6 = vector.load %arg2[%c0_2, %c0_3] : memref<168x72xf32, #tpu.memory_space<vmem>>, vector<3x8xf32>
    %7 = vector.extract_strided_slice %0 {offsets = [0, 0], sizes = [192, 3], strides = [1, 1]} : vector<192x6xf32> to vector<192x3xf32>
    %cst_4 = arith.constant dense<0.000000e+00> : vector<192x8xf32>
    %8 = tpu.matmul %7, %6, %cst_4 {dimension_numbers = #tpu.dot_dimension_numbers<[1], [0], [0], [1], [0, 0, 1, 1], [], []>} : vector<192x3xf32>, vector<3x8xf32>, vector<192x8xf32> -> vector<192x8xf32>
    %9 = vector.extract_strided_slice %5 {offsets = [0, 0], sizes = [192, 8], strides = [1, 1]} : vector<192x72xf32> to vector<192x8xf32>
    %10 = arith.addf %8, %9 : vector<192x8xf32>
    %cst_5 = arith.constant 0.000000e+00 : f32
    %11 = vector.broadcast %cst_5 : f32 to vector<192x8xf32>
    %c8 = arith.constant 8 : index
    %c0_6 = arith.constant 0 : index
    %12 = vector.load %arg2[%c8, %c0_6] : memref<168x72xf32, #tpu.memory_space<vmem>>, vector<24x16xf32>
    %c80 = arith.constant 80 : index
    %c0_7 = arith.constant 0 : index
    %13 = vector.load %arg2[%c80, %c0_7] : memref<168x72xf32, #tpu.memory_space<vmem>>, vector<8x16xf32>
    %c1_i32 = arith.constant 1 : i32
    %14 = tpu.dynamic_rotate %10 by %c1_i32 dim 0 : vector<192x8xf32>, i32 -> vector<192x8xf32>
    %cst_8 = arith.constant -1.000000e+00 : f32
    %15 = vector.broadcast %cst_8 : f32 to vector<192x1xf32>
    %16 = arith.addf %3, %15 : vector<192x1xf32>
    %cst_9 = arith.constant 0.000000e+00 : f32
    %17 = vector.broadcast %cst_9 : f32 to vector<192x1xf32>
    %18 = arith.cmpf oge, %16, %17 : vector<192x1xf32>
    %cst_10 = arith.constant -1.000000e+00 : f32
    %19 = vector.broadcast %cst_10 : f32 to vector<192x1xf32>
    %20 = arith.addf %3, %19 : vector<192x1xf32>
    %cst_11 = arith.constant 1.800000e+01 : f32
    %21 = vector.broadcast %cst_11 : f32 to vector<192x1xf32>
    %22 = arith.cmpf ole, %20, %21 : vector<192x1xf32>
    %23 = arith.andi %18, %22 : vector<192x1xi1>
    %cst_12 = arith.constant 0.000000e+00 : f32
    %24 = vector.shape_cast %23 : vector<192x1xi1> to vector<192x1xi1>
    %25 = vector.broadcast %24 : vector<192x1xi1> to vector<192x8xi1>
    %26 = vector.broadcast %cst_12 : f32 to vector<192x8xf32>
    %27 = arith.select %25, %14, %26 : vector<192x8xi1>, vector<192x8xf32>
    %c191_i32 = arith.constant 191 : i32
    %28 = tpu.dynamic_rotate %10 by %c191_i32 dim 0 : vector<192x8xf32>, i32 -> vector<192x8xf32>
    %cst_13 = arith.constant 1.000000e+00 : f32
    %29 = vector.broadcast %cst_13 : f32 to vector<192x1xf32>
    %30 = arith.addf %3, %29 : vector<192x1xf32>
    %cst_14 = arith.constant 0.000000e+00 : f32
    %31 = vector.broadcast %cst_14 : f32 to vector<192x1xf32>
    %32 = arith.cmpf oge, %30, %31 : vector<192x1xf32>
    %cst_15 = arith.constant 1.000000e+00 : f32
    %33 = vector.broadcast %cst_15 : f32 to vector<192x1xf32>
    %34 = arith.addf %3, %33 : vector<192x1xf32>
    %cst_16 = arith.constant 1.800000e+01 : f32
    %35 = vector.broadcast %cst_16 : f32 to vector<192x1xf32>
    %36 = arith.cmpf ole, %34, %35 : vector<192x1xf32>
    %37 = arith.andi %32, %36 : vector<192x1xi1>
    %cst_17 = arith.constant 0.000000e+00 : f32
    %38 = vector.shape_cast %37 : vector<192x1xi1> to vector<192x1xi1>
    %39 = vector.broadcast %38 : vector<192x1xi1> to vector<192x8xi1>
    %40 = vector.broadcast %cst_17 : f32 to vector<192x8xf32>
    %41 = arith.select %39, %28, %40 : vector<192x8xi1>, vector<192x8xf32>
    %42 = tpu.concatenate %27, %10, %41 in 1 : vector<192x8xf32>, vector<192x8xf32>, vector<192x8xf32> -> vector<192x24xf32>
    %cst_18 = arith.constant dense<0.000000e+00> : vector<192x16xf32>
    %43 = tpu.matmul %42, %12, %cst_18 {dimension_numbers = #tpu.dot_dimension_numbers<[1], [0], [0], [1], [0, 0, 1, 1], [], []>} : vector<192x24xf32>, vector<24x16xf32>, vector<192x16xf32> -> vector<192x16xf32>
    %44 = vector.extract_strided_slice %5 {offsets = [0, 8], sizes = [192, 16], strides = [1, 1]} : vector<192x72xf32> to vector<192x16xf32>
    %45 = arith.addf %43, %44 : vector<192x16xf32>
    %46 = vector.extract_strided_slice %45 {offsets = [0, 0], sizes = [192, 8], strides = [1, 1]} : vector<192x16xf32> to vector<192x8xf32>
    %47 = math.tanh %46 : vector<192x8xf32>
    %48 = vector.extract_strided_slice %45 {offsets = [0, 8], sizes = [192, 8], strides = [1, 1]} : vector<192x16xf32> to vector<192x8xf32>
    %49 = arith.negf %48 : vector<192x8xf32>
    %50 = math.exp %49 : vector<192x8xf32>
    %cst_19 = arith.constant 1.000000e+00 : f32
    %51 = vector.broadcast %cst_19 : f32 to vector<192x8xf32>
    %52 = arith.addf %51, %50 : vector<192x8xf32>
    %53 = arith.divf %51, %52 : vector<192x8xf32>
    %54 = arith.mulf %47, %53 : vector<192x8xf32>
    %cst_20 = arith.constant dense<0.000000e+00> : vector<192x16xf32>
    %55 = tpu.matmul %54, %13, %cst_20 {dimension_numbers = #tpu.dot_dimension_numbers<[1], [0], [0], [1], [0, 0, 1, 1], [], []>} : vector<192x8xf32>, vector<8x16xf32>, vector<192x16xf32> -> vector<192x16xf32>
    %56 = vector.extract_strided_slice %55 {offsets = [0, 0], sizes = [192, 8], strides = [1, 1]} : vector<192x16xf32> to vector<192x8xf32>
    %57 = arith.addf %56, %10 : vector<192x8xf32>
    %58 = vector.extract_strided_slice %55 {offsets = [0, 8], sizes = [192, 8], strides = [1, 1]} : vector<192x16xf32> to vector<192x8xf32>
    %59 = arith.addf %11, %58 : vector<192x8xf32>
    %c32 = arith.constant 32 : index
    %c0_21 = arith.constant 0 : index
    %60 = vector.load %arg2[%c32, %c0_21] : memref<168x72xf32, #tpu.memory_space<vmem>>, vector<24x16xf32>
    %c88 = arith.constant 88 : index
    %c0_22 = arith.constant 0 : index
    %61 = vector.load %arg2[%c88, %c0_22] : memref<168x72xf32, #tpu.memory_space<vmem>>, vector<8x16xf32>
    %c2_i32 = arith.constant 2 : i32
    %62 = tpu.dynamic_rotate %57 by %c2_i32 dim 0 : vector<192x8xf32>, i32 -> vector<192x8xf32>
    %cst_23 = arith.constant -2.000000e+00 : f32
    %63 = vector.broadcast %cst_23 : f32 to vector<192x1xf32>
    %64 = arith.addf %3, %63 : vector<192x1xf32>
    %cst_24 = arith.constant 0.000000e+00 : f32
    %65 = vector.broadcast %cst_24 : f32 to vector<192x1xf32>
    %66 = arith.cmpf oge, %64, %65 : vector<192x1xf32>
    %cst_25 = arith.constant -2.000000e+00 : f32
    %67 = vector.broadcast %cst_25 : f32 to vector<192x1xf32>
    %68 = arith.addf %3, %67 : vector<192x1xf32>
    %cst_26 = arith.constant 1.800000e+01 : f32
    %69 = vector.broadcast %cst_26 : f32 to vector<192x1xf32>
    %70 = arith.cmpf ole, %68, %69 : vector<192x1xf32>
    %71 = arith.andi %66, %70 : vector<192x1xi1>
    %cst_27 = arith.constant 0.000000e+00 : f32
    %72 = vector.shape_cast %71 : vector<192x1xi1> to vector<192x1xi1>
    %73 = vector.broadcast %72 : vector<192x1xi1> to vector<192x8xi1>
    %74 = vector.broadcast %cst_27 : f32 to vector<192x8xf32>
    %75 = arith.select %73, %62, %74 : vector<192x8xi1>, vector<192x8xf32>
    %c190_i32 = arith.constant 190 : i32
    %76 = tpu.dynamic_rotate %57 by %c190_i32 dim 0 : vector<192x8xf32>, i32 -> vector<192x8xf32>
    %cst_28 = arith.constant 2.000000e+00 : f32
    %77 = vector.broadcast %cst_28 : f32 to vector<192x1xf32>
    %78 = arith.addf %3, %77 : vector<192x1xf32>
    %cst_29 = arith.constant 0.000000e+00 : f32
    %79 = vector.broadcast %cst_29 : f32 to vector<192x1xf32>
    %80 = arith.cmpf oge, %78, %79 : vector<192x1xf32>
    %cst_30 = arith.constant 2.000000e+00 : f32
    %81 = vector.broadcast %cst_30 : f32 to vector<192x1xf32>
    %82 = arith.addf %3, %81 : vector<192x1xf32>
    %cst_31 = arith.constant 1.800000e+01 : f32
    %83 = vector.broadcast %cst_31 : f32 to vector<192x1xf32>
    %84 = arith.cmpf ole, %82, %83 : vector<192x1xf32>
    %85 = arith.andi %80, %84 : vector<192x1xi1>
    %cst_32 = arith.constant 0.000000e+00 : f32
    %86 = vector.shape_cast %85 : vector<192x1xi1> to vector<192x1xi1>
    %87 = vector.broadcast %86 : vector<192x1xi1> to vector<192x8xi1>
    %88 = vector.broadcast %cst_32 : f32 to vector<192x8xf32>
    %89 = arith.select %87, %76, %88 : vector<192x8xi1>, vector<192x8xf32>
    %90 = tpu.concatenate %75, %57, %89 in 1 : vector<192x8xf32>, vector<192x8xf32>, vector<192x8xf32> -> vector<192x24xf32>
    %cst_33 = arith.constant dense<0.000000e+00> : vector<192x16xf32>
    %91 = tpu.matmul %90, %60, %cst_33 {dimension_numbers = #tpu.dot_dimension_numbers<[1], [0], [0], [1], [0, 0, 1, 1], [], []>} : vector<192x24xf32>, vector<24x16xf32>, vector<192x16xf32> -> vector<192x16xf32>
    %92 = vector.extract_strided_slice %5 {offsets = [0, 24], sizes = [192, 16], strides = [1, 1]} : vector<192x72xf32> to vector<192x16xf32>
    %93 = arith.addf %91, %92 : vector<192x16xf32>
    %94 = vector.extract_strided_slice %93 {offsets = [0, 0], sizes = [192, 8], strides = [1, 1]} : vector<192x16xf32> to vector<192x8xf32>
    %95 = math.tanh %94 : vector<192x8xf32>
    %96 = vector.extract_strided_slice %93 {offsets = [0, 8], sizes = [192, 8], strides = [1, 1]} : vector<192x16xf32> to vector<192x8xf32>
    %97 = arith.negf %96 : vector<192x8xf32>
    %98 = math.exp %97 : vector<192x8xf32>
    %cst_34 = arith.constant 1.000000e+00 : f32
    %99 = vector.broadcast %cst_34 : f32 to vector<192x8xf32>
    %100 = arith.addf %99, %98 : vector<192x8xf32>
    %101 = arith.divf %99, %100 : vector<192x8xf32>
    %102 = arith.mulf %95, %101 : vector<192x8xf32>
    %cst_35 = arith.constant dense<0.000000e+00> : vector<192x16xf32>
    %103 = tpu.matmul %102, %61, %cst_35 {dimension_numbers = #tpu.dot_dimension_numbers<[1], [0], [0], [1], [0, 0, 1, 1], [], []>} : vector<192x8xf32>, vector<8x16xf32>, vector<192x16xf32> -> vector<192x16xf32>
    %104 = vector.extract_strided_slice %103 {offsets = [0, 0], sizes = [192, 8], strides = [1, 1]} : vector<192x16xf32> to vector<192x8xf32>
    %105 = arith.addf %104, %57 : vector<192x8xf32>
    %106 = vector.extract_strided_slice %103 {offsets = [0, 8], sizes = [192, 8], strides = [1, 1]} : vector<192x16xf32> to vector<192x8xf32>
    %107 = arith.addf %59, %106 : vector<192x8xf32>
    %c56 = arith.constant 56 : index
    %c0_36 = arith.constant 0 : index
    %108 = vector.load %arg2[%c56, %c0_36] : memref<168x72xf32, #tpu.memory_space<vmem>>, vector<24x16xf32>
    %c96 = arith.constant 96 : index
    %c0_37 = arith.constant 0 : index
    %109 = vector.load %arg2[%c96, %c0_37] : memref<168x72xf32, #tpu.memory_space<vmem>>, vector<8x16xf32>
    %c4_i32 = arith.constant 4 : i32
    %110 = tpu.dynamic_rotate %105 by %c4_i32 dim 0 : vector<192x8xf32>, i32 -> vector<192x8xf32>
    %cst_38 = arith.constant -4.000000e+00 : f32
    %111 = vector.broadcast %cst_38 : f32 to vector<192x1xf32>
    %112 = arith.addf %3, %111 : vector<192x1xf32>
    %cst_39 = arith.constant 0.000000e+00 : f32
    %113 = vector.broadcast %cst_39 : f32 to vector<192x1xf32>
    %114 = arith.cmpf oge, %112, %113 : vector<192x1xf32>
    %cst_40 = arith.constant -4.000000e+00 : f32
    %115 = vector.broadcast %cst_40 : f32 to vector<192x1xf32>
    %116 = arith.addf %3, %115 : vector<192x1xf32>
    %cst_41 = arith.constant 1.800000e+01 : f32
    %117 = vector.broadcast %cst_41 : f32 to vector<192x1xf32>
    %118 = arith.cmpf ole, %116, %117 : vector<192x1xf32>
    %119 = arith.andi %114, %118 : vector<192x1xi1>
    %cst_42 = arith.constant 0.000000e+00 : f32
    %120 = vector.shape_cast %119 : vector<192x1xi1> to vector<192x1xi1>
    %121 = vector.broadcast %120 : vector<192x1xi1> to vector<192x8xi1>
    %122 = vector.broadcast %cst_42 : f32 to vector<192x8xf32>
    %123 = arith.select %121, %110, %122 : vector<192x8xi1>, vector<192x8xf32>
    %c188_i32 = arith.constant 188 : i32
    %124 = tpu.dynamic_rotate %105 by %c188_i32 dim 0 : vector<192x8xf32>, i32 -> vector<192x8xf32>
    %cst_43 = arith.constant 4.000000e+00 : f32
    %125 = vector.broadcast %cst_43 : f32 to vector<192x1xf32>
    %126 = arith.addf %3, %125 : vector<192x1xf32>
    %cst_44 = arith.constant 0.000000e+00 : f32
    %127 = vector.broadcast %cst_44 : f32 to vector<192x1xf32>
    %128 = arith.cmpf oge, %126, %127 : vector<192x1xf32>
    %cst_45 = arith.constant 4.000000e+00 : f32
    %129 = vector.broadcast %cst_45 : f32 to vector<192x1xf32>
    %130 = arith.addf %3, %129 : vector<192x1xf32>
    %cst_46 = arith.constant 1.800000e+01 : f32
    %131 = vector.broadcast %cst_46 : f32 to vector<192x1xf32>
    %132 = arith.cmpf ole, %130, %131 : vector<192x1xf32>
    %133 = arith.andi %128, %132 : vector<192x1xi1>
    %cst_47 = arith.constant 0.000000e+00 : f32
    %134 = vector.shape_cast %133 : vector<192x1xi1> to vector<192x1xi1>
    %135 = vector.broadcast %134 : vector<192x1xi1> to vector<192x8xi1>
    %136 = vector.broadcast %cst_47 : f32 to vector<192x8xf32>
    %137 = arith.select %135, %124, %136 : vector<192x8xi1>, vector<192x8xf32>
    %138 = tpu.concatenate %123, %105, %137 in 1 : vector<192x8xf32>, vector<192x8xf32>, vector<192x8xf32> -> vector<192x24xf32>
    %cst_48 = arith.constant dense<0.000000e+00> : vector<192x16xf32>
    %139 = tpu.matmul %138, %108, %cst_48 {dimension_numbers = #tpu.dot_dimension_numbers<[1], [0], [0], [1], [0, 0, 1, 1], [], []>} : vector<192x24xf32>, vector<24x16xf32>, vector<192x16xf32> -> vector<192x16xf32>
    %140 = vector.extract_strided_slice %5 {offsets = [0, 40], sizes = [192, 16], strides = [1, 1]} : vector<192x72xf32> to vector<192x16xf32>
    %141 = arith.addf %139, %140 : vector<192x16xf32>
    %142 = vector.extract_strided_slice %141 {offsets = [0, 0], sizes = [192, 8], strides = [1, 1]} : vector<192x16xf32> to vector<192x8xf32>
    %143 = math.tanh %142 : vector<192x8xf32>
    %144 = vector.extract_strided_slice %141 {offsets = [0, 8], sizes = [192, 8], strides = [1, 1]} : vector<192x16xf32> to vector<192x8xf32>
    %145 = arith.negf %144 : vector<192x8xf32>
    %146 = math.exp %145 : vector<192x8xf32>
    %cst_49 = arith.constant 1.000000e+00 : f32
    %147 = vector.broadcast %cst_49 : f32 to vector<192x8xf32>
    %148 = arith.addf %147, %146 : vector<192x8xf32>
    %149 = arith.divf %147, %148 : vector<192x8xf32>
    %150 = arith.mulf %143, %149 : vector<192x8xf32>
    %cst_50 = arith.constant dense<0.000000e+00> : vector<192x16xf32>
    %151 = tpu.matmul %150, %109, %cst_50 {dimension_numbers = #tpu.dot_dimension_numbers<[1], [0], [0], [1], [0, 0, 1, 1], [], []>} : vector<192x8xf32>, vector<8x16xf32>, vector<192x16xf32> -> vector<192x16xf32>
    %152 = vector.extract_strided_slice %151 {offsets = [0, 8], sizes = [192, 8], strides = [1, 1]} : vector<192x16xf32> to vector<192x8xf32>
    %153 = arith.addf %107, %152 : vector<192x8xf32>
    %cst_51 = arith.constant 7.000000e+00 : f32
    %154 = vector.broadcast %cst_51 : f32 to vector<192x1xf32>
    %155 = arith.cmpf oge, %3, %154 : vector<192x1xf32>
    %cst_52 = arith.constant 1.100000e+01 : f32
    %156 = vector.broadcast %cst_52 : f32 to vector<192x1xf32>
    %157 = arith.cmpf ole, %3, %156 : vector<192x1xf32>
    %158 = arith.andi %155, %157 : vector<192x1xi1>
    %c104 = arith.constant 104 : index
    %c0_53 = arith.constant 0 : index
    %159 = vector.load %arg2[%c104, %c0_53] : memref<168x72xf32, #tpu.memory_space<vmem>>, vector<24x8xf32>
    %c128 = arith.constant 128 : index
    %c0_54 = arith.constant 0 : index
    %160 = vector.load %arg2[%c128, %c0_54] : memref<168x72xf32, #tpu.memory_space<vmem>>, vector<24x8xf32>
    %c152 = arith.constant 152 : index
    %c0_55 = arith.constant 0 : index
    %161 = vector.load %arg2[%c152, %c0_55] : memref<168x72xf32, #tpu.memory_space<vmem>>, vector<8x1xf32>
    %cst_56 = arith.constant 0.000000e+00 : f32
    %162 = vector.broadcast %cst_56 : f32 to vector<192x8xf32>
    %163 = arith.maximumf %153, %162 : vector<192x8xf32>
    %cst_57 = arith.constant 0.000000e+00 : f32
    %164 = vector.shape_cast %158 : vector<192x1xi1> to vector<192x1xi1>
    %165 = vector.broadcast %164 : vector<192x1xi1> to vector<192x8xi1>
    %166 = vector.broadcast %cst_57 : f32 to vector<192x8xf32>
    %167 = arith.select %165, %163, %166 : vector<192x8xi1>, vector<192x8xf32>
    %c1_i32_58 = arith.constant 1 : i32
    %168 = tpu.dynamic_rotate %167 by %c1_i32_58 dim 0 : vector<192x8xf32>, i32 -> vector<192x8xf32>
    %cst_59 = arith.constant -1.000000e+00 : f32
    %169 = vector.broadcast %cst_59 : f32 to vector<192x1xf32>
    %170 = arith.addf %3, %169 : vector<192x1xf32>
    %cst_60 = arith.constant 0.000000e+00 : f32
    %171 = vector.broadcast %cst_60 : f32 to vector<192x1xf32>
    %172 = arith.cmpf oge, %170, %171 : vector<192x1xf32>
    %cst_61 = arith.constant -1.000000e+00 : f32
    %173 = vector.broadcast %cst_61 : f32 to vector<192x1xf32>
    %174 = arith.addf %3, %173 : vector<192x1xf32>
    %cst_62 = arith.constant 1.800000e+01 : f32
    %175 = vector.broadcast %cst_62 : f32 to vector<192x1xf32>
    %176 = arith.cmpf ole, %174, %175 : vector<192x1xf32>
    %177 = arith.andi %172, %176 : vector<192x1xi1>
    %cst_63 = arith.constant 0.000000e+00 : f32
    %178 = vector.shape_cast %177 : vector<192x1xi1> to vector<192x1xi1>
    %179 = vector.broadcast %178 : vector<192x1xi1> to vector<192x8xi1>
    %180 = vector.broadcast %cst_63 : f32 to vector<192x8xf32>
    %181 = arith.select %179, %168, %180 : vector<192x8xi1>, vector<192x8xf32>
    %c191_i32_64 = arith.constant 191 : i32
    %182 = tpu.dynamic_rotate %167 by %c191_i32_64 dim 0 : vector<192x8xf32>, i32 -> vector<192x8xf32>
    %cst_65 = arith.constant 1.000000e+00 : f32
    %183 = vector.broadcast %cst_65 : f32 to vector<192x1xf32>
    %184 = arith.addf %3, %183 : vector<192x1xf32>
    %cst_66 = arith.constant 0.000000e+00 : f32
    %185 = vector.broadcast %cst_66 : f32 to vector<192x1xf32>
    %186 = arith.cmpf oge, %184, %185 : vector<192x1xf32>
    %cst_67 = arith.constant 1.000000e+00 : f32
    %187 = vector.broadcast %cst_67 : f32 to vector<192x1xf32>
    %188 = arith.addf %3, %187 : vector<192x1xf32>
    %cst_68 = arith.constant 1.800000e+01 : f32
    %189 = vector.broadcast %cst_68 : f32 to vector<192x1xf32>
    %190 = arith.cmpf ole, %188, %189 : vector<192x1xf32>
    %191 = arith.andi %186, %190 : vector<192x1xi1>
    %cst_69 = arith.constant 0.000000e+00 : f32
    %192 = vector.shape_cast %191 : vector<192x1xi1> to vector<192x1xi1>
    %193 = vector.broadcast %192 : vector<192x1xi1> to vector<192x8xi1>
    %194 = vector.broadcast %cst_69 : f32 to vector<192x8xf32>
    %195 = arith.select %193, %182, %194 : vector<192x8xi1>, vector<192x8xf32>
    %196 = tpu.concatenate %181, %167, %195 in 1 : vector<192x8xf32>, vector<192x8xf32>, vector<192x8xf32> -> vector<192x24xf32>
    %cst_70 = arith.constant dense<0.000000e+00> : vector<192x8xf32>
    %197 = tpu.matmul %196, %159, %cst_70 {dimension_numbers = #tpu.dot_dimension_numbers<[1], [0], [0], [1], [0, 0, 1, 1], [], []>} : vector<192x24xf32>, vector<24x8xf32>, vector<192x8xf32> -> vector<192x8xf32>
    %198 = vector.extract_strided_slice %5 {offsets = [0, 56], sizes = [192, 8], strides = [1, 1]} : vector<192x72xf32> to vector<192x8xf32>
    %199 = arith.addf %197, %198 : vector<192x8xf32>
    %cst_71 = arith.constant 0.000000e+00 : f32
    %200 = vector.broadcast %cst_71 : f32 to vector<192x8xf32>
    %201 = arith.maximumf %199, %200 : vector<192x8xf32>
    %cst_72 = arith.constant 0.000000e+00 : f32
    %202 = vector.shape_cast %158 : vector<192x1xi1> to vector<192x1xi1>
    %203 = vector.broadcast %202 : vector<192x1xi1> to vector<192x8xi1>
    %204 = vector.broadcast %cst_72 : f32 to vector<192x8xf32>
    %205 = arith.select %203, %201, %204 : vector<192x8xi1>, vector<192x8xf32>
    %c1_i32_73 = arith.constant 1 : i32
    %206 = tpu.dynamic_rotate %205 by %c1_i32_73 dim 0 : vector<192x8xf32>, i32 -> vector<192x8xf32>
    %cst_74 = arith.constant -1.000000e+00 : f32
    %207 = vector.broadcast %cst_74 : f32 to vector<192x1xf32>
    %208 = arith.addf %3, %207 : vector<192x1xf32>
    %cst_75 = arith.constant 0.000000e+00 : f32
    %209 = vector.broadcast %cst_75 : f32 to vector<192x1xf32>
    %210 = arith.cmpf oge, %208, %209 : vector<192x1xf32>
    %cst_76 = arith.constant -1.000000e+00 : f32
    %211 = vector.broadcast %cst_76 : f32 to vector<192x1xf32>
    %212 = arith.addf %3, %211 : vector<192x1xf32>
    %cst_77 = arith.constant 1.800000e+01 : f32
    %213 = vector.broadcast %cst_77 : f32 to vector<192x1xf32>
    %214 = arith.cmpf ole, %212, %213 : vector<192x1xf32>
    %215 = arith.andi %210, %214 : vector<192x1xi1>
    %cst_78 = arith.constant 0.000000e+00 : f32
    %216 = vector.shape_cast %215 : vector<192x1xi1> to vector<192x1xi1>
    %217 = vector.broadcast %216 : vector<192x1xi1> to vector<192x8xi1>
    %218 = vector.broadcast %cst_78 : f32 to vector<192x8xf32>
    %219 = arith.select %217, %206, %218 : vector<192x8xi1>, vector<192x8xf32>
    %c191_i32_79 = arith.constant 191 : i32
    %220 = tpu.dynamic_rotate %205 by %c191_i32_79 dim 0 : vector<192x8xf32>, i32 -> vector<192x8xf32>
    %cst_80 = arith.constant 1.000000e+00 : f32
    %221 = vector.broadcast %cst_80 : f32 to vector<192x1xf32>
    %222 = arith.addf %3, %221 : vector<192x1xf32>
    %cst_81 = arith.constant 0.000000e+00 : f32
    %223 = vector.broadcast %cst_81 : f32 to vector<192x1xf32>
    %224 = arith.cmpf oge, %222, %223 : vector<192x1xf32>
    %cst_82 = arith.constant 1.000000e+00 : f32
    %225 = vector.broadcast %cst_82 : f32 to vector<192x1xf32>
    %226 = arith.addf %3, %225 : vector<192x1xf32>
    %cst_83 = arith.constant 1.800000e+01 : f32
    %227 = vector.broadcast %cst_83 : f32 to vector<192x1xf32>
    %228 = arith.cmpf ole, %226, %227 : vector<192x1xf32>
    %229 = arith.andi %224, %228 : vector<192x1xi1>
    %cst_84 = arith.constant 0.000000e+00 : f32
    %230 = vector.shape_cast %229 : vector<192x1xi1> to vector<192x1xi1>
    %231 = vector.broadcast %230 : vector<192x1xi1> to vector<192x8xi1>
    %232 = vector.broadcast %cst_84 : f32 to vector<192x8xf32>
    %233 = arith.select %231, %220, %232 : vector<192x8xi1>, vector<192x8xf32>
    %234 = tpu.concatenate %219, %205, %233 in 1 : vector<192x8xf32>, vector<192x8xf32>, vector<192x8xf32> -> vector<192x24xf32>
    %cst_85 = arith.constant dense<0.000000e+00> : vector<192x8xf32>
    %235 = tpu.matmul %234, %160, %cst_85 {dimension_numbers = #tpu.dot_dimension_numbers<[1], [0], [0], [1], [0, 0, 1, 1], [], []>} : vector<192x24xf32>, vector<24x8xf32>, vector<192x8xf32> -> vector<192x8xf32>
    %236 = vector.extract_strided_slice %5 {offsets = [0, 64], sizes = [192, 8], strides = [1, 1]} : vector<192x72xf32> to vector<192x8xf32>
    %237 = arith.addf %235, %236 : vector<192x8xf32>
    %cst_86 = arith.constant dense<0.000000e+00> : vector<192x1xf32>
    %238 = tpu.matmul %237, %161, %cst_86 {dimension_numbers = #tpu.dot_dimension_numbers<[1], [0], [0], [1], [0, 0, 1, 1], [], []>} : vector<192x8xf32>, vector<8x1xf32>, vector<192x1xf32> -> vector<192x1xf32>
    %239 = arith.subf %1, %238 : vector<192x1xf32>
    %240 = tpu.concatenate %238, %239 in 1 : vector<192x1xf32>, vector<192x1xf32> -> vector<192x2xf32>
    %c0_87 = arith.constant 0 : index
    %c0_88 = arith.constant 0 : index
    %241 = vector.load %arg3[%c0_87, %c0_88] : memref<192x2xf32, #tpu.memory_space<vmem>>, vector<192x2xf32>
    tpu.vector_store %arg3[%c0_87, %c0_88], %240 {strides = array<i32>} : memref<192x2xf32, #tpu.memory_space<vmem>>, vector<192x2xf32>,
    return
  }
  func.func @transform_0(%arg0: i32) -> (i32, i32) {
    %c0_i32 = arith.constant 0 : i32
    %c0_i32_0 = arith.constant 0 : i32
    return %arg0, %c0_i32 : i32, i32
  }
  func.func @transform_1(%arg0: i32) -> (i32, i32) {
    %c0_i32 = arith.constant 0 : i32
    %c0_i32_0 = arith.constant 0 : i32
    %c0_i32_1 = arith.constant 0 : i32
    return %c0_i32, %c0_i32_0 : i32, i32
  }
  func.func @transform_2(%arg0: i32) -> (i32, i32) {
    %c0_i32 = arith.constant 0 : i32
    %c0_i32_0 = arith.constant 0 : i32
    return %arg0, %c0_i32 : i32, i32
  }
}

</mosaic_0001>

<bundles_post_ra>
// kernel: denoising_wavenet_forward.1
= control target key start
LH: loop header
LB: loop body
LE: loop exit
PB: predicated region body
PF: predicated region fallthrough
CT: control target
= control target key end

     0   :  { %s9548_s13 = smov 125   ;;  %vm157_vm0 = vcmask 1041408   ;;  %vm396_vm1 = vcmask 1042432   ;;  %v9549_v14 = vmov 5   ;;  %v14387_v33 = vmov 0   ;;  %s9551_s12 = smov 8   ;;  %s14384_s0 = inlined_call_operand.vmem [shape: f32[192,6], index: 0, kind: input, shape index: {}]   ;;  %s14385_s1 = inlined_call_operand.vmem [shape: f32[168,72], index: 1, kind: input, shape index: {}]   ;;  %s14386_s2 = inlined_call_operand.vmem [shape: f32[192,2], index: 2, kind: output, shape index: {}]  }
   0x1   :  { %v9577_v0 = vld [vmem:[%s14384_s0 + $0x60] sm:$0xff]  ;;  %v9582_v1 = vld [vmem:[%s14384_s0 + $0x70] sm:$0xff]  ;;  %v9591_v2 = vld [vmem:[%s14384_s0 + $0x68] sm:$0xff]  ;;  %9018 = vset.pattern.permute.xlu0 %v9549_v14  ;;  %9019 = vset.pattern.permute.xlu1 %v9549_v14  ;;  %s9552_s14 = smov 16   ;;  %s9553_s15 = smov 120  }
   0x2   :  { %84 = vrot.lane.b32.xlu0 %v9577_v0, %s9548_s13  ;;  %88 = vrot.lane.b32.xlu1 %v9582_v1, %s9548_s13  ;;  %v9596_v3 = vld [vmem:[%s14384_s0 + $0x78] sm:$0xff]  ;;  %v9605_v4 = vld [vmem:[%s14384_s0 + $0x80] sm:$0xff]  ;;  %v942_v48 = vadd.f32 1.0, %v9591_v2  ;;  %v941_v49 = vadd.f32 1.0, %v9577_v0  ;;  %v943_v53 = vadd.f32 1.0, %v9582_v1  ;;  %s9554_s22 = smov 104  }
   0x3   :  { %v9610_v5 = vld [vmem:[%s14384_s0 + $0x88] sm:$0xff]  ;;  %v35_v6 = vld [vmem:[%s14385_s1 + $0xa0] sm:$0x3]  ;;  %v9627_v8 = vld [vmem:[%s14384_s0 + $0x90] sm:$0xff]  ;;  %v944_v52 = vadd.f32 1.0, %v9596_v3  ;;  %v945_v57 = vadd.f32 1.0, %v9605_v4 }
   0x4   :  { %v9622_v7 = vld [vmem:[%s14385_s1] sm:$0x7]  ;;  %v9632_v9 = vld [vmem:[%s14384_s0 + $0x98] sm:$0xff]  ;;  %9005 = vmatprep.subr.msk.mxu1 %vm157_vm0, %v35_v6  ;;  %8547 = vmatprep.subr.msk.mxu0 %vm157_vm0, %v35_v6  ;;  %v9648_v11 = vld [vmem:[%s14384_s0 + $0xa8] sm:$0xff]  ;;  %v946_v56 = vadd.f32 1.0, %v9610_v5  ;;  %v947_v61 = vadd.f32 1.0, %v9627_v8 }
   0x5   :  { %9006 = vmatpush3.msk.msra.mxu1 %vm157_vm0, %v35_v6  ;;  %8548 = vmatpush3.msk.msra.mxu0 %vm157_vm0, %v35_v6  ;;  %v9643_v10 = vld [vmem:[%s14384_s0 + $0xa0] sm:$0xff]  ;;  %v9657_v12 = vld [vmem:[%s14384_s0 + $0xb0] sm:$0xff]  ;;  %v9662_v13 = vld [vmem:[%s14384_s0 + $0xb8] sm:$0xff]  ;;  %v948_v60 = vadd.f32 1.0, %v9632_v9  ;;  %v950_v6 = vadd.f32 1.0, %v9648_v11  ;;  %s9555_s29 = smov 88  }
   0x6   :  { %86 = vrot.lane.b32.xlu0 %v9591_v2, %s9548_s13  ;;  %90 = vrot.lane.b32.xlu1 %v9596_v3, %s9548_s13  ;;  %v9671_v15 = vld [vmem:[%s14384_s0] sm:$0xff]  ;;  %v9676_v16 = vld [vmem:[%s14384_s0 + $0x8] sm:$0xff]  ;;  %v949_v14 = vadd.f32 1.0, %v9643_v10 }
   0x7   :  { %8585 = vmatprep.subr.msk.mxu1 %vm396_vm1, %v9622_v7  ;;  %v9685_v17 = vld [vmem:[%s14384_s0 + $0x10] sm:$0xff]  ;;  %v9690_v18 = vld [vmem:[%s14384_s0 + $0x18] sm:$0xff]  ;;  %v9699_v19 = vld [vmem:[%s14384_s0 + $0x20] sm:$0xff]  ;;  %v929_v23 = vadd.f32 1.0, %v9671_v15  ;;  %v930_v24 = vadd.f32 1.0, %v9676_v16 }
   0x8   :  { %v9704_v20 = vld [vmem:[%s14384_s0 + $0x28] sm:$0xff]  ;;  %v9713_v21 = vld [vmem:[%s14384_s0 + $0x30] sm:$0xff]  ;;  %v9718_v22 = vld [vmem:[%s14384_s0 + $0x38] sm:$0xff]  ;;  %v932_v27 = vadd.f32 1.0, %v9690_v18  ;;  %v931_v28 = vadd.f32 1.0, %v9685_v17  ;;  %v933_v32 = vadd.f32 1.0, %v9699_v19 }
   0x9   :  { %v9729_v25 = vld [vmem:[%s14384_s0 + $0x40] sm:$0xff]  ;;  %v9734_v26 = vld [vmem:[%s14384_s0 + $0x48] sm:$0xff]  ;;  %vm953_vm2 = vcmp.ge.f32.partialorder %v929_v23, 0.0  ;;  %vm977_vm3 = vcmp.le.f32.partialorder %v929_v23, 18.0  ;;  %vm954_vm4 = vcmp.ge.f32.partialorder %v930_v24, 0.0  ;;  %vm978_vm5 = vcmp.le.f32.partialorder %v930_v24, 18.0 }
   0xa   :  { %92 = vrot.lane.b32.xlu0 %v9605_v4, %s9548_s13  ;;  %94 = vrot.lane.b32.xlu1 %v9610_v5, %s9548_s13  ;;  %v9745_v29 = vld [vmem:[%s14384_s0 + $0x50] sm:$0xff]  ;;  %v9750_v30 = vld [vmem:[%s14384_s0 + $0x58] sm:$0xff]  ;;  %vm1001_vm6 = vmand %vm953_vm2, %vm977_vm3  ;;  %vm956_vm8 = vcmp.ge.f32.partialorder %v932_v27, 0.0  ;;  %vm980_vm9 = vcmp.le.f32.partialorder %v932_v27, 18.0  ;;  %v934_v31 = vadd.f32 1.0, %v9704_v20  ;;  %vm955_vm10 = vcmp.ge.f32.partialorder %v931_v28, 0.0 }
   0xb   :  { %vm1002_vm7 = vmand %vm954_vm4, %vm978_vm5  ;;  %vm979_vm11 = vcmp.le.f32.partialorder %v931_v28, 18.0  ;;  %v1025_v34 = vsel %vm1001_vm6, 1, %v14387_v33  ;;  %v936_v36 = vadd.f32 1.0, %v9718_v22  ;;  %vm957_vm0 = vcmp.ge.f32.partialorder %v933_v32, 0.0 }
   0xc   :  { %v1026_v35 = vsel %vm1002_vm7, 1, %v14387_v33  ;;  %vm1004_vm12 = vmand %vm956_vm8, %vm980_vm9  ;;  %vm958_vm14 = vcmp.ge.f32.partialorder %v934_v31, 0.0  ;;  %vm982_vm15 = vcmp.le.f32.partialorder %v934_v31, 18.0  ;;  %vm981_vm2 = vcmp.le.f32.partialorder %v933_v32, 18.0 }
   0xd   :  { %vm1003_vm13 = vmand %vm955_vm10, %vm979_vm11  ;;  %v935_v37 = vadd.f32 1.0, %v9713_v21  ;;  %v1028_v38 = vsel %vm1004_vm12, 1, %v14387_v33  ;;  %vm960_vm5 = vcmp.ge.f32.partialorder %v936_v36, 0.0  ;;  %vm984_vm6 = vcmp.le.f32.partialorder %v936_v36, 18.0 }
   0xe   :  { %96 = vrot.lane.b32.xlu0 %v9627_v8, %s9548_s13  ;;  %98 = vrot.lane.b32.xlu1 %v9632_v9, %s9548_s13  ;;  %v1027_v39 = vsel %vm1003_vm13, 1, %v14387_v33  ;;  %vm1006_vm3 = vmand %vm958_vm14, %vm982_vm15  ;;  %v938_v40 = vadd.f32 1.0, %v9734_v26  ;;  %v937_v41 = vadd.f32 1.0, %v9729_v25  ;;  %v940_v44 = vadd.f32 1.0, %v9750_v30 }
   0xf   :  { %vm1005_vm4 = vmand %vm957_vm0, %vm981_vm2  ;;  %vm959_vm7 = vcmp.ge.f32.partialorder %v935_v37, 0.0  ;;  %vm983_vm8 = vcmp.le.f32.partialorder %v935_v37, 18.0  ;;  %v1030_v42 = vsel %vm1006_vm3, 1, %v14387_v33  ;;  %v939_v45 = vadd.f32 1.0, %v9745_v29 }
  0x10   :  { %v1029_v43 = vsel %vm1005_vm4, 1, %v14387_v33  ;;  %vm1008_vm9 = vmand %vm960_vm5, %vm984_vm6  ;;  %vm962_vm11 = vcmp.ge.f32.partialorder %v938_v40, 0.0  ;;  %vm986_vm12 = vcmp.le.f32.partialorder %v938_v40, 18.0  ;;  %vm961_vm13 = vcmp.ge.f32.partialorder %v937_v41, 0.0 }
  0x11   :  { %vm1007_vm10 = vmand %vm959_vm7, %vm983_vm8  ;;  %vm985_vm14 = vcmp.le.f32.partialorder %v937_v41, 18.0  ;;  %v1032_v46 = vsel %vm1008_vm9, 1, %v14387_v33  ;;  %vm964_vm2 = vcmp.ge.f32.partialorder %v940_v44, 0.0  ;;  %vm988_vm3 = vcmp.le.f32.partialorder %v940_v44, 18.0 }
  0x12   :  { %100 = vrot.lane.b32.xlu0 %v9643_v10, %s9548_s13  ;;  %102 = vrot.lane.b32.xlu1 %v9648_v11, %s9548_s13  ;;  %v1031_v47 = vsel %vm1007_vm10, 1, %v14387_v33  ;;  %vm1010_vm15 = vmand %vm962_vm11, %vm986_vm12  ;;  %vm963_vm4 = vcmp.ge.f32.partialorder %v939_v45, 0.0  ;;  %vm987_vm5 = vcmp.le.f32.partialorder %v939_v45, 18.0  ;;  %vm966_vm8 = vcmp.ge.f32.partialorder %v942_v48, 0.0 }
  0x13   :  { %vm1009_vm0 = vmand %vm961_vm13, %vm985_vm14  ;;  %v1034_v50 = vsel %vm1010_vm15, 1, %v14387_v33  ;;  %vm990_vm9 = vcmp.le.f32.partialorder %v942_v48, 18.0  ;;  %vm965_vm10 = vcmp.ge.f32.partialorder %v941_v49, 0.0  ;;  %vm989_vm11 = vcmp.le.f32.partialorder %v941_v49, 18.0 }
  0x14   :  { %v1033_v51 = vsel %vm1009_vm0, 1, %v14387_v33  ;;  %vm1012_vm6 = vmand %vm964_vm2, %vm988_vm3  ;;  %vm968_vm14 = vcmp.ge.f32.partialorder %v944_v52, 0.0  ;;  %vm992_vm15 = vcmp.le.f32.partialorder %v944_v52, 18.0  ;;  %vm967_vm0 = vcmp.ge.f32.partialorder %v943_v53, 0.0 }
  0x15   :  { %vm1011_vm7 = vmand %vm963_vm4, %vm987_vm5  ;;  %v1036_v54 = vsel %vm1012_vm6, 1, %v14387_v33  ;;  %vm991_vm2 = vcmp.le.f32.partialorder %v943_v53, 18.0  ;;  %vm970_vm5 = vcmp.ge.f32.partialorder %v946_v56, 0.0  ;;  %vm994_vm6 = vcmp.le.f32.partialorder %v946_v56, 18.0 }
  0x16   :  { %104 = vrot.lane.b32.xlu0 %v9657_v12, %s9548_s13  ;;  %106 = vrot.lane.b32.xlu1 %v9662_v13, %s9548_s13  ;;  %v1035_v55 = vsel %vm1011_vm7, 1, %v14387_v33  ;;  %vm1014_vm12 = vmand %vm966_vm8, %vm990_vm9  ;;  %vm969_vm7 = vcmp.ge.f32.partialorder %v945_v57, 0.0  ;;  %vm993_vm8 = vcmp.le.f32.partialorder %v945_v57, 18.0  ;;  %v952_v27 = vadd.f32 1.0, %v9662_v13 }
  0x17   :  { %vm1013_vm13 = vmand %vm965_vm10, %vm989_vm11  ;;  %v1038_v58 = vsel %vm1014_vm12, 1, %v14387_v33  ;;  %vm972_vm11 = vcmp.ge.f32.partialorder %v948_v60, 0.0  ;;  %vm996_vm12 = vcmp.le.f32.partialorder %v948_v60, 18.0  ;;  %v951_v28 = vadd.f32 1.0, %v9657_v12 }
  0x18   :  { %v1037_v59 = vsel %vm1013_vm13, 1, %v14387_v33  ;;  %vm1016_vm3 = vmand %vm968_vm14, %vm992_vm15  ;;  %vm971_vm13 = vcmp.ge.f32.partialorder %v947_v61, 0.0  ;;  %vm995_vm14 = vcmp.le.f32.partialorder %v947_v61, 18.0 }
  0x19   :  { %vm1015_vm4 = vmand %vm967_vm0, %vm991_vm2  ;;  %v1040_v62 = vsel %vm1016_vm3, 1, %v14387_v33  ;;  %vm974_vm2 = vcmp.ge.f32.partialorder %v950_v6, 0.0  ;;  %vm998_vm3 = vcmp.le.f32.partialorder %v950_v6, 18.0 }
  0x1a   :  { %60 = vrot.lane.b32.xlu0 %v9671_v15, %s9548_s13  ;;  %62 = vrot.lane.b32.xlu1 %v9676_v16, %s9548_s13  ;;  %v1039_v63 = vsel %vm1015_vm4, 1, %v14387_v33  ;;  %vm1018_vm9 = vmand %vm970_vm5, %vm994_vm6  ;;  %vm973_vm4 = vcmp.ge.f32.partialorder %v949_v14, 0.0  ;;  %vm997_vm5 = vcmp.le.f32.partialorder %v949_v14, 18.0 }
  0x1b   :  { %vm1017_vm10 = vmand %vm969_vm7, %vm993_vm8  ;;  %v1042_v23 = vsel %vm1018_vm9, 1, %v14387_v33  ;;  %vm976_vm8 = vcmp.ge.f32.partialorder %v952_v27, 0.0  ;;  %vm1000_vm9 = vcmp.le.f32.partialorder %v952_v27, 18.0  ;;  %v657_v27 = vadd.f32 -1.0, %v9610_v5 }
  0x1c   :  { %v1041_v24 = vsel %vm1017_vm10, 1, %v14387_v33  ;;  %vm1020_vm15 = vmand %vm972_vm11, %vm996_vm12  ;;  %vm975_vm10 = vcmp.ge.f32.partialorder %v951_v28, 0.0  ;;  %vm999_vm11 = vcmp.le.f32.partialorder %v951_v28, 18.0  ;;  %v656_v28 = vadd.f32 -1.0, %v9605_v4 }
  0x1d   :  { %vm1019_vm0 = vmand %vm971_vm13, %vm995_vm14  ;;  %v1044_v31 = vsel %vm1020_vm15, 1, %v14387_v33 }
  0x1e   :  { %64 = vrot.lane.b32.xlu0 %v9685_v17, %s9548_s13  ;;  %66 = vrot.lane.b32.xlu1 %v9690_v18, %s9548_s13  ;;  %v1043_v32 = vsel %vm1019_vm0, 1, %v14387_v33  ;;  %vm1022_vm6 = vmand %vm974_vm2, %vm998_vm3 }
  0x1f   :  { %vm1021_vm7 = vmand %vm973_vm4, %vm997_vm5  ;;  %v1046_v36 = vsel %vm1022_vm6, 1, %v14387_v33 }
  0x20   :  { %v1045_v37 = vsel %vm1021_vm7, 1, %v14387_v33  ;;  %vm1024_vm12 = vmand %vm976_vm8, %vm1000_vm9 }
  0x21   :  { %vm1023_vm13 = vmand %vm975_vm10, %vm999_vm11  ;;  %v1048_v40 = vsel %vm1024_vm12, 1, %v14387_v33 }
  0x22   :  { %68 = vrot.lane.b32.xlu0 %v9699_v19, %s9548_s13  ;;  %70 = vrot.lane.b32.xlu1 %v9704_v20, %s9548_s13  ;;  %v1047_v41 = vsel %vm1023_vm13, 1, %v14387_v33 }
  0x26   :  { %72 = vrot.lane.b32.xlu0 %v9713_v21, %s9548_s13  ;;  %74 = vrot.lane.b32.xlu1 %v9718_v22, %s9548_s13 }
  0x2a   :  { %76 = vrot.lane.b32.xlu0 %v9729_v25, %s9548_s13  ;;  %78 = vrot.lane.b32.xlu1 %v9734_v26, %s9548_s13 }
  0x2e   :  { %80 = vrot.lane.b32.xlu0 %v9745_v29, %s9548_s13  ;;  %82 = vrot.lane.b32.xlu1 %v9750_v30, %s9548_s13 }
  0x32   :  { %1050 = vperm.xlu0 %9018, %v1025_v34   ;;  %1053 = vperm.xlu1 %9019, %v1026_v35   ;;  %v641_v34 = vadd.f32 -1.0, %v9676_v16  ;;  %v640_v35 = vadd.f32 -1.0, %v9671_v15 }
  0x34   :  { %vm665_vm14 = vcmp.ge.f32.partialorder %v641_v34, 0.0  ;;  %vm689_vm15 = vcmp.le.f32.partialorder %v641_v34, 18.0  ;;  %vm664_vm0 = vcmp.ge.f32.partialorder %v640_v35, 0.0  ;;  %vm688_vm2 = vcmp.le.f32.partialorder %v640_v35, 18.0 }
  0x35   :  { %vm713_vm3 = vmand %vm665_vm14, %vm689_vm15 }
  0x36   :  { %1059 = vperm.xlu0 %9018, %v1028_v38   ;;  %1056 = vperm.xlu1 %9019, %v1027_v39   ;;  %v643_v38 = vadd.f32 -1.0, %v9690_v18  ;;  %v642_v39 = vadd.f32 -1.0, %v9685_v17  ;;  %vm712_vm4 = vmand %vm664_vm0, %vm688_vm2  ;;  %v737_v44 = vsel %vm713_vm3, 1, %v14387_v33 }
  0x37   :  { %v736_v45 = vsel %vm712_vm4, 1, %v14387_v33 }
  0x38   :  { %vm667_vm5 = vcmp.ge.f32.partialorder %v643_v38, 0.0  ;;  %vm691_vm6 = vcmp.le.f32.partialorder %v643_v38, 18.0  ;;  %vm666_vm7 = vcmp.ge.f32.partialorder %v642_v39, 0.0  ;;  %vm690_vm8 = vcmp.le.f32.partialorder %v642_v39, 18.0 }
  0x39   :  { %vm715_vm9 = vmand %vm667_vm5, %vm691_vm6 }
  0x3a   :  { %1065 = vperm.xlu0 %9018, %v1030_v42   ;;  %1062 = vperm.xlu1 %9019, %v1029_v43   ;;  %v645_v42 = vadd.f32 -1.0, %v9704_v20  ;;  %v644_v43 = vadd.f32 -1.0, %v9699_v19  ;;  %vm714_vm10 = vmand %vm666_vm7, %vm690_vm8  ;;  %v739_v48 = vsel %vm715_vm9, 1, %v14387_v33 }
  0x3b   :  { %v738_v49 = vsel %vm714_vm10, 1, %v14387_v33 }
  0x3c   :  { %vm669_vm11 = vcmp.ge.f32.partialorder %v645_v42, 0.0  ;;  %vm693_vm12 = vcmp.le.f32.partialorder %v645_v42, 18.0  ;;  %vm668_vm13 = vcmp.ge.f32.partialorder %v644_v43, 0.0  ;;  %vm692_vm14 = vcmp.le.f32.partialorder %v644_v43, 18.0 }
  0x3d   :  { %vm717_vm15 = vmand %vm669_vm11, %vm693_vm12  ;;  %v660_v42 = vadd.f32 -1.0, %v9643_v10 }
  0x3e   :  { %1071 = vperm.xlu0 %9018, %v1032_v46   ;;  %1068 = vperm.xlu1 %9019, %v1031_v47   ;;  %v647_v46 = vadd.f32 -1.0, %v9718_v22  ;;  %v646_v47 = vadd.f32 -1.0, %v9713_v21  ;;  %vm716_vm0 = vmand %vm668_vm13, %vm692_vm14  ;;  %v741_v52 = vsel %vm717_vm15, 1, %v14387_v33 }
  0x3f   :  { %v740_v53 = vsel %vm716_vm0, 1, %v14387_v33 }
  0x40   :  { %vm671_vm2 = vcmp.ge.f32.partialorder %v647_v46, 0.0  ;;  %vm695_vm3 = vcmp.le.f32.partialorder %v647_v46, 18.0  ;;  %vm670_vm4 = vcmp.ge.f32.partialorder %v646_v47, 0.0  ;;  %vm694_vm5 = vcmp.le.f32.partialorder %v646_v47, 18.0 }
  0x41   :  { %vm719_vm6 = vmand %vm671_vm2, %vm695_vm3  ;;  %v663_v47 = vadd.f32 -1.0, %v9662_v13 }
  0x42   :  { %1077 = vperm.xlu0 %9018, %v1034_v50   ;;  %1074 = vperm.xlu1 %9019, %v1033_v51   ;;  %v649_v50 = vadd.f32 -1.0, %v9734_v26  ;;  %v648_v51 = vadd.f32 -1.0, %v9729_v25  ;;  %vm718_vm7 = vmand %vm670_vm4, %vm694_vm5  ;;  %v743_v56 = vsel %vm719_vm6, 1, %v14387_v33 }
  0x43   :  { %v742_v57 = vsel %vm718_vm7, 1, %v14387_v33  ;;  %vm14434_vm7 = vcmask 15360  }
  0x44   :  { %vm673_vm8 = vcmp.ge.f32.partialorder %v649_v50, 0.0  ;;  %vm697_vm9 = vcmp.le.f32.partialorder %v649_v50, 18.0  ;;  %vm672_vm10 = vcmp.ge.f32.partialorder %v648_v51, 0.0  ;;  %vm696_vm11 = vcmp.le.f32.partialorder %v648_v51, 18.0 }
  0x45   :  { %vm721_vm12 = vmand %vm673_vm8, %vm697_vm9 }
  0x46   :  { %1083 = vperm.xlu0 %9018, %v1036_v54   ;;  %1080 = vperm.xlu1 %9019, %v1035_v55   ;;  %v651_v54 = vadd.f32 -1.0, %v9750_v30  ;;  %v650_v55 = vadd.f32 -1.0, %v9745_v29  ;;  %vm720_vm13 = vmand %vm672_vm10, %vm696_vm11  ;;  %v745_v60 = vsel %vm721_vm12, 1, %v14387_v33 }
  0x47   :  { %v744_v61 = vsel %vm720_vm13, 1, %v14387_v33 }
  0x48   :  { %vm675_vm14 = vcmp.ge.f32.partialorder %v651_v54, 0.0  ;;  %vm699_vm15 = vcmp.le.f32.partialorder %v651_v54, 18.0  ;;  %vm674_vm0 = vcmp.ge.f32.partialorder %v650_v55, 0.0  ;;  %vm698_vm2 = vcmp.le.f32.partialorder %v650_v55, 18.0 }
  0x49   :  { %vm723_vm3 = vmand %vm675_vm14, %vm699_vm15 }
  0x4a   :  { %1089 = vperm.xlu0 %9018, %v1038_v58   ;;  %1086 = vperm.xlu1 %9019, %v1037_v59   ;;  %v653_v58 = vadd.f32 -1.0, %v9591_v2  ;;  %v652_v59 = vadd.f32 -1.0, %v9577_v0  ;;  %vm722_vm4 = vmand %vm674_vm0, %vm698_vm2  ;;  %v747_v6 = vsel %vm723_vm3, 1, %v14387_v33  ;;  %vm681_vm3 = vcmp.ge.f32.partialorder %v657_v27, 0.0 }
  0x4b   :  { %v746_v14 = vsel %vm722_vm4, 1, %v14387_v33  ;;  %vm705_vm4 = vcmp.le.f32.partialorder %v657_v27, 18.0  ;;  %v613_v27 = vlaneseq }
  0x4c   :  { %vm677_vm5 = vcmp.ge.f32.partialorder %v653_v58, 0.0  ;;  %vm701_vm6 = vcmp.le.f32.partialorder %v653_v58, 18.0  ;;  %vm676_vm8 = vcmp.ge.f32.partialorder %v652_v59, 0.0  ;;  %vm700_vm9 = vcmp.le.f32.partialorder %v652_v59, 18.0 }
  0x4d   :  { %vm725_vm10 = vmand %vm677_vm5, %vm701_vm6  ;;  %vm680_vm5 = vcmp.ge.f32.partialorder %v656_v28, 0.0  ;;  %vm704_vm6 = vcmp.le.f32.partialorder %v656_v28, 18.0 }
  0x4e   :  { %1095 = vperm.xlu0 %9018, %v1040_v62   ;;  %1092 = vperm.xlu1 %9019, %v1039_v63   ;;  %v655_v62 = vadd.f32 -1.0, %v9596_v3  ;;  %v654_v63 = vadd.f32 -1.0, %v9582_v1  ;;  %vm724_vm11 = vmand %vm676_vm8, %vm700_vm9  ;;  %v749_v34 = vsel %vm725_vm10, 1, %v14387_v33 }
  0x4f   :  { %v748_v35 = vsel %vm724_vm11, 1, %v14387_v33  ;;  %vm729_vm8 = vmand %vm681_vm3, %vm705_vm4  ;;  %vm708_vm3 = vcmp.le.f32.partialorder %v660_v42, 18.0 }
  0x50   :  { %vm679_vm12 = vcmp.ge.f32.partialorder %v655_v62, 0.0  ;;  %vm703_vm13 = vcmp.le.f32.partialorder %v655_v62, 18.0  ;;  %vm678_vm14 = vcmp.ge.f32.partialorder %v654_v63, 0.0  ;;  %vm702_vm15 = vcmp.le.f32.partialorder %v654_v63, 18.0  ;;  %vm728_vm9 = vmand %vm680_vm5, %vm704_vm6 }
  0x51   :  { %vm727_vm0 = vmand %vm679_vm12, %vm703_vm13  ;;  %v752_v46 = vsel %vm728_vm9, 1, %v14387_v33  ;;  %vm687_vm6 = vcmp.ge.f32.partialorder %v663_v47, 0.0 }
  0x52   :  { %1101 = vperm.xlu0 %9018, %v1042_v23   ;;  %1098 = vperm.xlu1 %9019, %v1041_v24   ;;  %vm726_vm2 = vmand %vm678_vm14, %vm702_vm15 }
  0x56   :  { %1107 = vperm.xlu0 %9018, %v1044_v31   ;;  %1104 = vperm.xlu1 %9019, %v1043_v32  }
  0x5a   :  { %1113 = vperm.xlu0 %9018, %v1046_v36   ;;  %1110 = vperm.xlu1 %9019, %v1045_v37   ;;  %v659_v36 = vadd.f32 -1.0, %v9632_v9  ;;  %v658_v37 = vadd.f32 -1.0, %v9627_v8 }
  0x5c   :  { %vm683_vm10 = vcmp.ge.f32.partialorder %v659_v36, 0.0  ;;  %vm682_vm11 = vcmp.ge.f32.partialorder %v658_v37, 0.0  ;;  %vm706_vm12 = vcmp.le.f32.partialorder %v658_v37, 18.0  ;;  %v9977_v37 = vshrl.u32 %v613_v27, 7 }
  0x5d   :  { %vm730_vm14 = vmand %vm682_vm11, %vm706_vm12  ;;  %vm347_vm12 = vcmask 23552  }
  0x5e   :  { %1119 = vperm.xlu0 %9018, %v1048_v40   ;;  %1116 = vperm.xlu1 %9019, %v1047_v41   ;;  %v751_v40 = vsel %vm727_vm0, 1, %v14387_v33  ;;  %v750_v41 = vsel %vm726_vm2, 1, %v14387_v33  ;;  %vm684_vm2 = vcmp.ge.f32.partialorder %v660_v42, 0.0  ;;  %14739 = vst [vmem:[#allocation25_spill] sm:$0xff] %v9977_v37 }
  0x5f   :  { %vm732_vm5 = vmand %vm684_vm2, %vm708_vm3 }
  0x62   :  { %764 = vperm.xlu0 %9018, %v737_v44   ;;  %761 = vperm.xlu1 %9019, %v736_v45   ;;  %v753_v45 = vsel %vm729_vm8, 1, %v14387_v33  ;;  %vm711_vm8 = vcmp.le.f32.partialorder %v663_v47, 18.0 }
  0x66   :  { %770 = vperm.xlu0 %9018, %v739_v48   ;;  %767 = vperm.xlu1 %9019, %v738_v49   ;;  %v662_v48 = vadd.f32 -1.0, %v9657_v12 }
  0x68   :  { %vm686_vm9 = vcmp.ge.f32.partialorder %v662_v48, 0.0 }
  0x6a   :  { %776 = vperm.xlu0 %9018, %v741_v52   ;;  %773 = vperm.xlu1 %9019, %v740_v53   ;;  %v754_v52 = vsel %vm730_vm14, 1, %v14387_v33 }
  0x6e   :  { %782 = vperm.xlu0 %9018, %v743_v56   ;;  %779 = vperm.xlu1 %9019, %v742_v57   ;;  %v756_v56 = vsel %vm732_vm5, 1, %v14387_v33 }
  0x72   :  { %788 = vperm.xlu0 %9018, %v745_v60   ;;  %785 = vperm.xlu1 %9019, %v744_v61  }
  0x74   :  { %v85_v23 = vpop.permute.xlu0 %84  ;;  %v89_v24 = vpop.permute.xlu1 %88 }
  0x75   :  { %8567 = vmatprep.mubr.msk.f32.mxu1 %vm14434_vm7, %v85_v23 }
  0x76   :  { %794 = vperm.xlu0 %9018, %v747_v6   ;;  %791 = vperm.xlu1 %9019, %v746_v14  }
  0x78   :  { %v87_v31 = vpop.permute.xlu0 %86  ;;  %v91_v32 = vpop.permute.xlu1 %90 }
  0x79   :  { %8568 = vmatmul.mubr.msk.f32.vlgmr.msra.gmra.mrb[0].mxu1 %vm14434_vm7, %v87_v31 }
  0x7a   :  { %8586 = vmatpush3.msk.msra.mxu1 %vm396_vm1, %v9622_v7  ;;  %8570 = vmatprep.mubr.msk.f32.mxu1 %vm14434_vm7, %v89_v24  ;;  %vm707_vm1 = vcmp.le.f32.partialorder %v659_v36, 18.0  ;;  %v661_v7 = vadd.f32 -1.0, %v9648_v11  ;;  %v587_v36 = vld [vmem:[%s14385_s1 + $0x18] sm:$0xff] }
  0x7b   :  { %800 = vperm.xlu0 %9018, %v749_v34   ;;  %797 = vperm.xlu1 %9019, %v748_v35   ;;  %vm731_vm13 = vmand %vm683_vm10, %vm707_vm1  ;;  %vm710_vm10 = vcmp.le.f32.partialorder %v662_v48, 18.0 }
  0x7c   :  { %v93_v38 = vpop.permute.xlu0 %92  ;;  %v95_v39 = vpop.permute.xlu1 %94  ;;  %vm685_vm15 = vcmp.ge.f32.partialorder %v661_v7, 0.0  ;;  %vm709_vm0 = vcmp.le.f32.partialorder %v661_v7, 18.0  ;;  %v755_v51 = vsel %vm731_vm13, 1, %v14387_v33  ;;  %vm735_vm1 = vmand %vm687_vm6, %vm711_vm8  ;;  %vm904_vm13 = vcmp.lt.s32.totalorder %v9977_v37, 7 }
  0x7d   :  { %8571 = vmatmul.mubr.msk.f32.gmra.mrb[2].mxu1 %vm14434_vm7, %v91_v32  ;;  %vm733_vm4 = vmand %vm685_vm15, %vm709_vm0  ;;  %v759_v59 = vsel %vm735_vm1, 1, %v14387_v33 }
  0x7e   :  { %8573 = vmatprep.mubr.msk.f32.mxu1 %vm14434_vm7, %v93_v38  ;;  %v757_v55 = vsel %vm733_vm4, 1, %v14387_v33  ;;  %vm734_vm11 = vmand %vm686_vm9, %vm710_vm10 }
  0x7f   :  { %806 = vperm.xlu0 %9018, %v751_v40   ;;  %803 = vperm.xlu1 %9019, %v750_v41   ;;  %v758_v60 = vsel %vm734_vm11, 1, %v14387_v33 }
  0x80   :  { %v97_v43 = vpop.permute.xlu0 %96  ;;  %v99_v44 = vpop.permute.xlu1 %98 }
  0x81   :  { %8574 = vmatmul.mubr.msk.f32.gmra.mrb[4].mxu1 %vm14434_vm7, %v95_v39 }
  0x82   :  { %8576 = vmatprep.mubr.msk.f32.mxu1 %vm14434_vm7, %v97_v43 }
  0x83   :  { %812 = vperm.xlu0 %9018, %v753_v45   ;;  %809 = vperm.xlu1 %9019, %v752_v46  }
  0x84   :  { %v101_v49 = vpop.permute.xlu0 %100  ;;  %v103_v50 = vpop.permute.xlu1 %102 }
  0x85   :  { %8577 = vmatmul.mubr.msk.f32.gmra.mrb[6].mxu1 %vm14434_vm7, %v99_v44 }
  0x86   :  { %8579 = vmatprep.mubr.msk.f32.mxu1 %vm14434_vm7, %v101_v49 }
  0x87   :  { %818 = vperm.xlu0 %9018, %v755_v51   ;;  %815 = vperm.xlu1 %9019, %v754_v52  }
  0x88   :  { %v105_v53 = vpop.permute.xlu0 %104  ;;  %v107_v54 = vpop.permute.xlu1 %106 }
  0x89   :  { %8580 = vmatmul.mubr.msk.f32.gmra.mrb[8].mxu1 %vm14434_vm7, %v103_v50 }
  0x8a   :  { %8582 = vmatprep.mubr.msk.f32.mxu1 %vm14434_vm7, %v105_v53 }
  0x8b   :  { %824 = vperm.xlu0 %9018, %v757_v55   ;;  %821 = vperm.xlu1 %9019, %v756_v56  }
  0x8c   :  { %v61_v57 = vpop.permute.xlu0 %60  ;;  %v63_v58 = vpop.permute.xlu1 %62 }
  0x8d   :  { %8583 = vmatmul.mubr.msk.f32.gmra.mrb[10].mxu1 %vm14434_vm7, %v107_v54  ;;  %8549 = vmatprep.mubr.msk.f32.mxu0 %vm14434_vm7, %v61_v57 }
  0x8e   :  { %8550 = vmatmul.mubr.msk.f32.vlgmr.msra.gmra.mrb[0].mxu0 %vm14434_vm7, %v63_v58  ;;  %8587 = vmatprep.mubr.msk.f32.mxu1 %vm347_vm12, %v9671_v15 }
  0x8f   :  { %830 = vperm.xlu0 %9018, %v759_v59   ;;  %827 = vperm.xlu1 %9019, %v758_v60  }
  0x90   :  { %v65_v61 = vpop.permute.xlu0 %64  ;;  %v67_v62 = vpop.permute.xlu1 %66 }
  0x91   :  { %8588 = vmatmul.mubr.msk.f32.vlgmr.msra.gmra.mrb[12].mxu1 %vm347_vm12, %v9676_v16  ;;  %8552 = vmatprep.mubr.msk.f32.mxu0 %vm14434_vm7, %v65_v61 }
  0x92   :  { %8553 = vmatmul.mubr.msk.f32.gmra.mrb[2].mxu0 %vm14434_vm7, %v67_v62  ;;  %8590 = vmatprep.mubr.msk.f32.mxu1 %vm347_vm12, %v9685_v17 }
  0x94   :  { %v69_v63 = vpop.permute.xlu0 %68  ;;  %v71_v6 = vpop.permute.xlu1 %70 }
  0x95   :  { %8591 = vmatmul.mubr.msk.f32.gmra.mrb[14].mxu1 %vm347_vm12, %v9690_v18  ;;  %8555 = vmatprep.mubr.msk.f32.mxu0 %vm14434_vm7, %v69_v63 }
  0x96   :  { %8556 = vmatmul.mubr.msk.f32.gmra.mrb[4].mxu0 %vm14434_vm7, %v71_v6  ;;  %8593 = vmatprep.mubr.msk.f32.mxu1 %vm347_vm12, %v9699_v19 }
  0x98   :  { %v73_v15 = vpop.permute.xlu0 %72  ;;  %v75_v16 = vpop.permute.xlu1 %74 }
  0x99   :  { %8594 = vmatmul.mubr.msk.f32.gmra.mrb[16].mxu1 %vm347_vm12, %v9704_v20  ;;  %8558 = vmatprep.mubr.msk.f32.mxu0 %vm14434_vm7, %v73_v15 }
  0x9a   :  { %8596 = vmatprep.mubr.msk.f32.mxu1 %vm347_vm12, %v9713_v21  ;;  %8559 = vmatmul.mubr.msk.f32.gmra.mrb[6].mxu0 %vm14434_vm7, %v75_v16 }
  0x9c   :  { %v77_v17 = vpop.permute.xlu0 %76  ;;  %v79_v18 = vpop.permute.xlu1 %78 }
  0x9d   :  { %8597 = vmatmul.mubr.msk.f32.gmra.mrb[18].mxu1 %vm347_vm12, %v9718_v22  ;;  %8561 = vmatprep.mubr.msk.f32.mxu0 %vm14434_vm7, %v77_v17 }
  0x9e   :  { %8599 = vmatprep.mubr.msk.f32.mxu1 %vm347_vm12, %v9729_v25  ;;  %8562 = vmatmul.mubr.msk.f32.gmra.mrb[8].mxu0 %vm14434_vm7, %v79_v18 }
  0xa0   :  { %v81_v19 = vpop.permute.xlu0 %80  ;;  %v83_v20 = vpop.permute.xlu1 %82 }
  0xa1   :  { %8600 = vmatmul.mubr.msk.f32.gmra.mrb[20].mxu1 %vm347_vm12, %v9734_v26  ;;  %8564 = vmatprep.mubr.msk.f32.mxu0 %vm14434_vm7, %v81_v19 }
  0xa2   :  { %8602 = vmatprep.mubr.msk.f32.mxu1 %vm347_vm12, %v9745_v29  ;;  %8565 = vmatmul.mubr.msk.f32.gmra.mrb[10].mxu0 %vm14434_vm7, %v83_v20 }
  0xa5   :  { %8603 = vmatmul.mubr.msk.f32.gmra.mrb[22].mxu1 %vm347_vm12, %v9750_v30 }
  0xa6   :  { %8605 = vmatprep.mubr.msk.f32.mxu1 %vm347_vm12, %v9577_v0 }
  0xa9   :  { %8606 = vmatmul.mubr.msk.f32.gmra.mrb[24].mxu1 %vm347_vm12, %v9591_v2 }
  0xaa   :  { %8608 = vmatprep.mubr.msk.f32.mxu1 %vm347_vm12, %v9582_v1 }
  0xad   :  { %8609 = vmatmul.mubr.msk.f32.gmra.mrb[26].mxu1 %vm347_vm12, %v9596_v3 }
  0xae   :  { %8611 = vmatprep.mubr.msk.f32.mxu1 %vm347_vm12, %v9605_v4 }
  0xb1   :  { %8612 = vmatmul.mubr.msk.f32.gmra.mrb[28].mxu1 %vm347_vm12, %v9610_v5  ;;  %v9922_v0 = vpop.permute.xlu0 %1050  ;;  %v9924_v1 = vpop.permute.xlu1 %1053 }
  0xb2   :  { %8614 = vmatprep.mubr.msk.f32.mxu1 %vm347_vm12, %v9627_v8  ;;  %14716 = vst [vmem:[#allocation2_spill] sm:$0xff] %v9922_v0  ;;  %14717 = vst [vmem:[#allocation3_spill] sm:$0xff] %v9924_v1  ;;  %vm14612_vm14 = vcmp.eq.s32.totalorder %v9922_v0, 1  ;;  %vm14603_vm15 = vcmp.eq.s32.totalorder %v9924_v1, 1 }
  0xb5   :  { %8615 = vmatmul.mubr.msk.f32.gmra.mrb[30].mxu1 %vm347_vm12, %v9632_v9  ;;  %v9930_v4 = vpop.permute.xlu0 %1059  ;;  %v9936_v9 = vpop.permute.xlu1 %1056 }
  0xb6   :  { %8617 = vmatprep.mubr.msk.f32.mxu1 %vm347_vm12, %v9643_v10  ;;  %14720 = vst [vmem:[#allocation6_spill] sm:$0xff] %v9930_v4  ;;  %14723 = vst [vmem:[#allocation9_spill] sm:$0xff] %v9936_v9  ;;  %vm14602_vm0 = vcmp.eq.s32.totalorder %v9936_v9, 1  ;;  %vm14601_vm3 = vcmp.eq.s32.totalorder %v9930_v4, 1 }
  0xb9   :  { %8618 = vmatmul.mubr.msk.f32.gmra.mrb[32].mxu1 %vm347_vm12, %v9648_v11  ;;  %v585_v11 = vld [vmem:[%s14385_s1 + $0x8] sm:$0xff]  ;;  %v9948_v22 = vpop.permute.xlu0 %1065  ;;  %v9950_v25 = vpop.permute.xlu1 %1062 }
  0xba   :  { %8620 = vmatprep.mubr.msk.f32.mxu1 %vm347_vm12, %v9657_v12  ;;  %v586_v12 = vld [vmem:[%s14385_s1 + $0x10] sm:$0xff]  ;;  %14726 = vst [vmem:[#allocation12_spill] sm:$0xff] %v9948_v22  ;;  %14727 = vst [vmem:[#allocation13_spill] sm:$0xff] %v9950_v25  ;;  %vm14600_vm2 = vcmp.eq.s32.totalorder %v9950_v25, 1  ;;  %vm14599_vm4 = vcmp.eq.s32.totalorder %v9948_v22, 1 }
  0xbb   :  { %v8985_v21 = vpack.c.bf16 %v586_v12, %v585_v11 }
  0xbd   :  { %8621 = vmatmul.mubr.msk.f32.gmra.mrb[34].mxu1 %vm347_vm12, %v9662_v13  ;;  %8986 = vmatprep.subr.bf16.mxu0 %v8985_v21  ;;  %v9956_v30 = vpop.permute.xlu0 %1071  ;;  %v9962_v24 = vpop.permute.xlu1 %1068 }
  0xbe   :  { %8988 = vmatpush3.bf16.msra.mxu0 %v8985_v21  ;;  %14730 = vst [vmem:[#allocation16_spill] sm:$0xff] %v9956_v30  ;;  %14733 = vst [vmem:[#allocation19_spill] sm:$0xff] %v9962_v24  ;;  %vm14598_vm5 = vcmp.eq.s32.totalorder %v9962_v24, 1  ;;  %vm14597_vm6 = vcmp.eq.s32.totalorder %v9956_v30, 1 }
  0xbf   :  { %8627 = vmatprep.subr.mxu0 %v587_v36 }
  0xc1   :  { %v9970_v34 = vpop.permute.xlu0 %1077  ;;  %v9979_v38 = vpop.permute.xlu1 %1074 }
  0xc2   :  { %14737 = vst [vmem:[#allocation23_spill] sm:$0xff] %v9970_v34  ;;  %14740 = vst [vmem:[#allocation26_spill] sm:$0xff] %v9979_v38  ;;  %8628 = vmatpush3.msra.mxu0 %v587_v36  ;;  %vm14552_vm8 = vcmp.eq.s32.totalorder %v9979_v38, 1  ;;  %vm14494_vm9 = vcmp.eq.s32.totalorder %v9970_v34, 1 }
  0xc5   :  { %v9996_v45 = vpop.permute.xlu0 %1083  ;;  %v10006_v51 = vpop.permute.xlu1 %1080 }
  0xc6   :  { %14743 = vst [vmem:[#allocation29_spill] sm:$0xff] %v9996_v45  ;;  %14745 = vst [vmem:[#allocation31_spill] sm:$0xff] %v10006_v51  ;;  %vm14486_vm10 = vcmp.eq.s32.totalorder %v10006_v51, 1  ;;  %vm14479_vm1 = vcmp.eq.s32.totalorder %v9996_v45, 1 }
  0xc9   :  { %v10029_v62 = vpop.permute.xlu0 %1089  ;;  %v10042_v16 = vpop.permute.xlu1 %1086 }
  0xca   :  { %14749 = vst [vmem:[#allocation35_spill] sm:$0xff] %v10029_v62  ;;  %14752 = vst [vmem:[#allocation38_spill] sm:$0xff] %v10042_v16  ;;  %vm14461_vm11 = vcmp.eq.s32.totalorder %v10042_v16, 1  ;;  %vm14440_vm12 = vcmp.eq.s32.totalorder %v10029_v62, 1 }
 0x14c   :  { %v9926_v2 = vpop.f32.mrb[0].mxu1 }
 0x14d   :  { %14718 = vst [vmem:[#allocation4_spill] sm:$0xff] %v9926_v2  ;;  %v9928_v3 = vpop.f32.mrb[1].mxu1 }
 0x14e   :  { %14719 = vst [vmem:[#allocation5_spill] sm:$0xff] %v9928_v3 }
 0x150   :  { %v9932_v5 = vpop.f32.mrb[2].mxu1 }
 0x151   :  { %14721 = vst [vmem:[#allocation7_spill] sm:$0xff] %v9932_v5  ;;  %v9934_v8 = vpop.f32.mrb[3].mxu1 }
 0x152   :  { %14722 = vst [vmem:[#allocation8_spill] sm:$0xff] %v9934_v8 }
 0x154   :  { %v9938_v10 = vpop.f32.mrb[4].mxu1 }
 0x155   :  { %14724 = vst [vmem:[#allocation10_spill] sm:$0xff] %v9938_v10  ;;  %v9946_v13 = vpop.f32.mrb[5].mxu1 }
 0x156   :  { %14725 = vst [vmem:[#allocation11_spill] sm:$0xff] %v9946_v13 }
 0x158   :  { %v9952_v26 = vpop.f32.mrb[6].mxu1 }
 0x159   :  { %14728 = vst [vmem:[#allocation14_spill] sm:$0xff] %v9952_v26  ;;  %v9954_v29 = vpop.f32.mrb[7].mxu1 }
 0x15a   :  { %14729 = vst [vmem:[#allocation15_spill] sm:$0xff] %v9954_v29 }
 0x15c   :  { %v9958_v14 = vpop.f32.mrb[8].mxu1 }
 0x15d   :  { %14731 = vst [vmem:[#allocation17_spill] sm:$0xff] %v9958_v14  ;;  %v9960_v23 = vpop.f32.mrb[9].mxu1 }
 0x15e   :  { %14732 = vst [vmem:[#allocation18_spill] sm:$0xff] %v9960_v23 }
 0x160   :  { %v9964_v28 = vpop.f32.mrb[10].mxu1 }
 0x161   :  { %14734 = vst [vmem:[#allocation20_spill] sm:$0xff] %v9964_v28  ;;  %v9966_v31 = vpop.f32.mrb[11].mxu1  ;;  %v9968_v32 = vpop.f32.mrb[0].mxu0 }
 0x162   :  { %14735 = vst [vmem:[#allocation21_spill] sm:$0xff] %v9966_v31  ;;  %14736 = vst [vmem:[#allocation22_spill] sm:$0xff] %v9968_v32  ;;  %v9972_v35 = vpop.f32.mrb[1].mxu0 }
 0x163   :  { %14738 = vst [vmem:[#allocation24_spill] sm:$0xff] %v9972_v35 }
 0x164   :  { %v8589_v39 = vpop.f32.mrb[12].mxu1 }
 0x165   :  { %v9982_v40 = vadd.f32 %v8589_v39, %v9968_v32  ;;  %v466_v41 = vpop.f32.mrb[13].mxu1  ;;  %v9984_v7 = vpop.f32.mrb[2].mxu0 }
 0x166   :  { %14741 = vst [vmem:[#allocation27_spill] sm:$0xff] %v9984_v7  ;;  %v9987_v42 = vadd.f32 %v466_v41, %v9972_v35  ;;  %v9989_v43 = vpop.f32.mrb[3].mxu0  ;;  %v10064_v41 = vpop.permute.xlu0 %1095 }
 0x167   :  { %14742 = vst [vmem:[#allocation28_spill] sm:$0xff] %v9989_v43  ;;  %1195 = vrot.lane.b32.xlu0 %v9982_v40, %s9551_s12  ;;  %v881_v44 = vrot.slane %v9982_v40, 1  ;;  %14757 = vst [vmem:[#allocation43_spill] sm:$0xff] %v10064_v41 }
 0x168   :  { %v8592_v46 = vpop.f32.mrb[14].mxu1  ;;  %1193 = vrot.lane.b32.xlu1 %v9987_v42, %s9551_s12  ;;  %v14389_v47 = vrot.slane %v9987_v42, 1 }
 0x169   :  { %v10002_v48 = vadd.f32 %v8592_v46, %v9984_v7  ;;  %v476_v49 = vpop.f32.mrb[15].mxu1  ;;  %v10004_v50 = vpop.f32.mrb[4].mxu0 }
 0x16a   :  { %14744 = vst [vmem:[#allocation30_spill] sm:$0xff] %v10004_v50  ;;  %v10009_v52 = vadd.f32 %v476_v49, %v9989_v43  ;;  %v10011_v53 = vpop.f32.mrb[5].mxu0  ;;  %v927_v54 = vsel %vm904_vm13, %v14389_v47, %v881_v44 }
 0x16b   :  { %14746 = vst [vmem:[#allocation32_spill] sm:$0xff] %v10011_v53  ;;  %1199 = vrot.lane.b32.xlu0 %v10002_v48, %s9551_s12  ;;  %v1145_v55 = vsel %vm14612_vm14, %v927_v54, 0.0  ;;  %v883_v58 = vrot.slane %v10002_v48, 1 }
 0x16c   :  { %v8595_v56 = vpop.f32.mrb[16].mxu1  ;;  %1289 = vrot.lane.b32.xlu1 %v1145_v55, %s9552_s14  ;;  %v882_v57 = vrot.slane %v10009_v52, 1 }
 0x16d   :  { %v10025_v59 = vadd.f32 %v8595_v56, %v10004_v50  ;;  %v486_v60 = vpop.f32.mrb[17].mxu1  ;;  %v10027_v61 = vpop.f32.mrb[6].mxu0 }
 0x16e   :  { %14748 = vst [vmem:[#allocation34_spill] sm:$0xff] %v10027_v61  ;;  %v10032_v63 = vadd.f32 %v486_v60, %v10011_v53  ;;  %v10034_v6 = vpop.f32.mrb[7].mxu0  ;;  %v926_v15 = vsel %vm904_vm13, %v881_v44, %v882_v57  ;;  %v925_v18 = vsel %vm904_vm13, %v882_v57, %v883_v58  ;;  %v10073_v56 = vpop.permute.xlu1 %1092 }
 0x16f   :  { %14747 = vst [vmem:[#allocation33_spill] sm:$0xff] %v10025_v59  ;;  %14751 = vst [vmem:[#allocation37_spill] sm:$0xff] %v10034_v6  ;;  %1203 = vrot.lane.b32.xlu0 %v10025_v59, %s9551_s12  ;;  %v1146_v21 = vsel %vm14603_vm15, %v926_v15, 0.0  ;;  %v1147_v36 = vsel %vm14602_vm0, %v925_v18, 0.0  ;;  %v885_v46 = vrot.slane %v10025_v59, 1  ;;  %vm14439_vm7 = vcmp.eq.s32.totalorder %v10073_v56, 1 }
 0x170   :  { %14750 = vst [vmem:[#allocation36_spill] sm:$0xff] %v10032_v63  ;;  %v8598_v17 = vpop.f32.mrb[18].mxu1  ;;  %1197 = vrot.lane.b32.xlu1 %v10009_v52, %s9551_s12  ;;  %v884_v39 = vrot.slane %v10032_v63, 1  ;;  %14760 = vst [vmem:[#allocation46_spill] sm:$0xff] %v10073_v56 }
 0x171   :  { %v10049_v19 = vadd.f32 %v8598_v17, %v10027_v61  ;;  %v496_v20 = vpop.f32.mrb[19].mxu1  ;;  %v10051_v11 = vpop.f32.mrb[8].mxu0 }
 0x172   :  { %14754 = vst [vmem:[#allocation40_spill] sm:$0xff] %v10051_v11  ;;  %v10054_v12 = vadd.f32 %v496_v20, %v10034_v6  ;;  %v10058_v27 = vpop.f32.mrb[9].mxu0  ;;  %v924_v15 = vsel %vm904_vm13, %v883_v58, %v884_v39  ;;  %v923_v18 = vsel %vm904_vm13, %v884_v39, %v885_v46  ;;  %v10104_v33 = vpop.permute.xlu1 %1098 }
 0x173   :  { %14753 = vst [vmem:[#allocation39_spill] sm:$0xff] %v10049_v19  ;;  %14756 = vst [vmem:[#allocation42_spill] sm:$0xff] %v10058_v27  ;;  %1291 = vrot.lane.b32.xlu0 %v1146_v21, %s9552_s14  ;;  %v1148_v58 = vsel %vm14601_vm3, %v924_v15, 0.0 }
 0x174   :  { %14755 = vst [vmem:[#allocation41_spill] sm:$0xff] %v10054_v12  ;;  %v8601_v44 = vpop.f32.mrb[20].mxu1  ;;  %1293 = vrot.lane.b32.xlu1 %v1147_v36, %s9552_s14  ;;  %v886_v39 = vrot.slane %v10054_v12, 1  ;;  %14766 = vst [vmem:[#allocation52_spill] sm:$0xff] %v10104_v33 }
 0x175   :  { %v10069_v49 = vadd.f32 %v8601_v44, %v10051_v11  ;;  %v506_v54 = vpop.f32.mrb[21].mxu1  ;;  %v10071_v55 = vpop.f32.mrb[10].mxu0 }
 0x176   :  { %14759 = vst [vmem:[#allocation45_spill] sm:$0xff] %v10071_v55  ;;  %v10076_v57 = vadd.f32 %v506_v54, %v10058_v27  ;;  %v10078_v60 = vpop.f32.mrb[11].mxu0  ;;  %v10098_v44 = vpop.permute.xlu0 %1101  ;;  %v1149_v54 = vsel %vm14600_vm2, %v923_v18, 0.0  ;;  %v922_v18 = vsel %vm904_vm13, %v885_v46, %v886_v39 }
 0x177   :  { %14758 = vst [vmem:[#allocation44_spill] sm:$0xff] %v10069_v49  ;;  %14762 = vst [vmem:[#allocation48_spill] sm:$0xff] %v10078_v60  ;;  %1207 = vrot.lane.b32.xlu0 %v10049_v19, %s9551_s12  ;;  %v10129_v9 = vpop.permute.xlu1 %1104  ;;  %v1150_v1 = vsel %vm14599_vm4, %v922_v18, 0.0 }
 0x178   :  { %14761 = vst [vmem:[#allocation47_spill] sm:$0xff] %v10076_v57  ;;  %v8604_v17 = vpop.f32.mrb[22].mxu1  ;;  %1201 = vrot.lane.b32.xlu1 %v10032_v63, %s9551_s12  ;;  %14765 = vst [vmem:[#allocation51_spill] sm:$0xff] %v10098_v44  ;;  %v888_v0 = vrot.slane %v10076_v57, 1 }
 0x179   :  { %v10091_v20 = vadd.f32 %v8604_v17, %v10071_v55  ;;  %v516_v21 = vpop.f32.mrb[23].mxu1  ;;  %14771 = vst [vmem:[#allocation57_spill] sm:$0xff] %v10129_v9 }
 0x17a   :  { %v10094_v36 = vadd.f32 %v516_v21, %v10078_v60  ;;  %v887_v21 = vrot.slane %v10049_v19, 1  ;;  %v889_v19 = vrot.slane %v10069_v49, 1 }
 0x17b   :  { %14763 = vst [vmem:[#allocation49_spill] sm:$0xff] %v10091_v20  ;;  %1295 = vrot.lane.b32.xlu0 %v1148_v58, %s9552_s14 }
 0x17c   :  { %14764 = vst [vmem:[#allocation50_spill] sm:$0xff] %v10094_v36  ;;  %v8607_v17 = vpop.f32.mrb[24].mxu1  ;;  %1297 = vrot.lane.b32.xlu1 %v1149_v54, %s9552_s14  ;;  %v921_v54 = vsel %vm904_vm13, %v886_v39, %v887_v21 }
 0x17d   :  { %v10109_v47 = vadd.f32 %v8607_v17, %v9926_v2  ;;  %v526_v15 = vpop.f32.mrb[25].mxu1  ;;  %v10123_v17 = vpop.permute.xlu0 %1107  ;;  %v1151_v39 = vsel %vm14598_vm5, %v921_v54, 0.0 }
 0x17e   :  { %v10112_v4 = vadd.f32 %v526_v15, %v9928_v3  ;;  %14769 = vst [vmem:[#allocation55_spill] sm:$0xff] %v10123_v17  ;;  %v10154_v54 = vpop.permute.xlu1 %1110 }
 0x17f   :  { %14767 = vst [vmem:[#allocation53_spill] sm:$0xff] %v10109_v47  ;;  %1211 = vrot.lane.b32.xlu0 %v10069_v49, %s9551_s12  ;;  %14776 = vst [vmem:[#allocation62_spill] sm:$0xff] %v10154_v54 }
 0x180   :  { %14768 = vst [vmem:[#allocation54_spill] sm:$0xff] %v10112_v4  ;;  %v8610_v58 = vpop.f32.mrb[26].mxu1  ;;  %1205 = vrot.lane.b32.xlu1 %v10054_v12, %s9551_s12 }
 0x181   :  { %v10126_v15 = vadd.f32 %v8610_v58, %v9932_v5  ;;  %v536_v25 = vpop.f32.mrb[27].mxu1  ;;  %v10148_v18 = vpop.permute.xlu0 %1113 }
 0x182   :  { %v10132_v46 = vadd.f32 %v536_v25, %v9934_v8  ;;  %14775 = vst [vmem:[#allocation61_spill] sm:$0xff] %v10148_v18  ;;  %v10181_v30 = vpop.permute.xlu1 %1116 }
 0x183   :  { %14770 = vst [vmem:[#allocation56_spill] sm:$0xff] %v10126_v15  ;;  %1299 = vrot.lane.b32.xlu0 %v1150_v1, %s9552_s14  ;;  %v920_v1 = vsel %vm904_vm13, %v887_v21, %v888_v0  ;;  %14781 = vst [vmem:[#allocation67_spill] sm:$0xff] %v10181_v30 }
 0x184   :  { %14772 = vst [vmem:[#allocation58_spill] sm:$0xff] %v10132_v46  ;;  %v8613_v58 = vpop.f32.mrb[28].mxu1  ;;  %1301 = vrot.lane.b32.xlu1 %v1151_v39, %s9552_s14  ;;  %v1152_v21 = vsel %vm14597_vm6, %v920_v1, 0.0  ;;  %v894_v51 = vrot.slane %v10132_v46, 1 }
 0x185   :  { %v10143_v12 = vadd.f32 %v8613_v58, %v9938_v10  ;;  %v546_v25 = vpop.f32.mrb[29].mxu1  ;;  %v919_v58 = vsel %vm904_vm13, %v888_v0, %v889_v19  ;;  %v890_v0 = vrot.slane %v10094_v36, 1 }
 0x186   :  { %v10146_v59 = vadd.f32 %v546_v25, %v9946_v13  ;;  %v1153_v49 = vsel %vm14552_vm8, %v919_v58, 0.0 }
 0x187   :  { %14773 = vst [vmem:[#allocation59_spill] sm:$0xff] %v10143_v12  ;;  %1215 = vrot.lane.b32.xlu0 %v10091_v20, %s9551_s12  ;;  %v918_v58 = vsel %vm904_vm13, %v889_v19, %v890_v0  ;;  %v897_v16 = vrot.slane %v10143_v12, 1 }
 0x188   :  { %14774 = vst [vmem:[#allocation60_spill] sm:$0xff] %v10146_v59  ;;  %v8616_v39 = vpop.f32.mrb[30].mxu1  ;;  %1209 = vrot.lane.b32.xlu1 %v10076_v57, %s9551_s12  ;;  %v1154_v19 = vsel %vm14494_vm9, %v918_v58, 0.0 }
 0x189   :  { %v10162_v25 = vadd.f32 %v8616_v39, %v9952_v26  ;;  %v556_v24 = vpop.f32.mrb[31].mxu1  ;;  %v891_v39 = vrot.slane %v10091_v20, 1  ;;  %v10176_v26 = vpop.permute.xlu0 %1119 }
 0x18a   :  { %v10166_v22 = vadd.f32 %v556_v24, %v9954_v29  ;;  %14779 = vst [vmem:[#allocation65_spill] sm:$0xff] %v10176_v26 }
 0x18b   :  { %14777 = vst [vmem:[#allocation63_spill] sm:$0xff] %v10162_v25  ;;  %1303 = vrot.lane.b32.xlu0 %v1152_v21, %s9552_s14 }
 0x18c   :  { %14778 = vst [vmem:[#allocation64_spill] sm:$0xff] %v10166_v22  ;;  %v8619_v57 = vpop.f32.mrb[32].mxu1  ;;  %1305 = vrot.lane.b32.xlu1 %v1153_v49, %s9552_s14  ;;  %v898_v56 = vrot.slane %v10166_v22, 1 }
 0x18d   :  { %v10179_v24 = vadd.f32 %v8619_v57, %v9958_v14  ;;  %v566_v29 = vpop.f32.mrb[33].mxu1  ;;  %v917_v57 = vsel %vm904_vm13, %v890_v0, %v891_v39  ;;  %v10204_v20 = vpop.permute.xlu0 %764 }
 0x18e   :  { %v10184_v1 = vadd.f32 %v566_v29, %v9960_v23  ;;  %14785 = vst [vmem:[#allocation71_spill] sm:$0xff] %v10204_v20  ;;  %v1155_v0 = vsel %vm14486_vm10, %v917_v57, 0.0  ;;  %vm1507_vm10 = vcmask 195584   ;;  %vm14507_vm9 = vcmp.eq.s32.totalorder %v10204_v20, 1 }
 0x18f   :  { %14780 = vst [vmem:[#allocation66_spill] sm:$0xff] %v10179_v24  ;;  %1219 = vrot.lane.b32.xlu0 %v10109_v47, %s9551_s12 }
 0x190   :  { %14782 = vst [vmem:[#allocation68_spill] sm:$0xff] %v10184_v1  ;;  %v8622_v49 = vpop.f32.mrb[34].mxu1  ;;  %1213 = vrot.lane.b32.xlu1 %v10094_v36, %s9551_s12  ;;  %v892_v36 = vrot.slane %v10112_v4, 1 }
 0x191   :  { %v10196_v21 = vadd.f32 %v8622_v49, %v9964_v28  ;;  %v576_v29 = vpop.f32.mrb[35].mxu1  ;;  %v10210_v49 = vpop.permute.xlu1 %761  ;;  %v893_v28 = vrot.slane %v10109_v47, 1 }
 0x192   :  { %v10200_v38 = vadd.f32 %v576_v29, %v9966_v31  ;;  %14786 = vst [vmem:[#allocation72_spill] sm:$0xff] %v10210_v49  ;;  %v916_v58 = vsel %vm904_vm13, %v891_v39, %v892_v36  ;;  %v10223_v57 = vpop.permute.xlu0 %770 }
 0x193   :  { %14783 = vst [vmem:[#allocation69_spill] sm:$0xff] %v10196_v21  ;;  %1307 = vrot.lane.b32.xlu0 %v1154_v19, %s9552_s14  ;;  %v915_v29 = vsel %vm904_vm13, %v892_v36, %v893_v28  ;;  %14787 = vst [vmem:[#allocation73_spill] sm:$0xff] %v10223_v57  ;;  %v895_v36 = vrot.slane %v10126_v15, 1  ;;  %v914_v45 = vsel %vm904_vm13, %v893_v28, %v894_v51 }
 0x194   :  { %14784 = vst [vmem:[#allocation70_spill] sm:$0xff] %v10200_v38  ;;  %1309 = vrot.lane.b32.xlu1 %v1155_v0, %s9552_s14  ;;  %v1156_v0 = vsel %vm14479_vm1, %v916_v58, 0.0  ;;  %v1157_v39 = vsel %vm14461_vm11, %v915_v29, 0.0  ;;  %vm14478_vm11 = vcmp.eq.s32.totalorder %v10148_v18, 1  ;;  %vm1386_vm1 = vcmask 130048  }
 0x195   :  { %v10226_v19 = vpop.permute.xlu1 %767  ;;  %v913_v29 = vsel %vm904_vm13, %v894_v51, %v895_v36 }
 0x196   :  { %14788 = vst [vmem:[#allocation74_spill] sm:$0xff] %v10226_v19  ;;  %v10236_v34 = vpop.permute.xlu0 %776  ;;  %v1159_v28 = vsel %vm14439_vm7, %v913_v29, 0.0  ;;  %vm14446_vm7 = vcmp.eq.s32.totalorder %v10064_v41, 1  ;;  %v900_v41 = vrot.slane %v10184_v1, 1 }
 0x197   :  { %1223 = vrot.lane.b32.xlu0 %v10126_v15, %s9551_s12  ;;  %14789 = vst [vmem:[#allocation75_spill] sm:$0xff] %v10236_v34 }
 0x198   :  { %1217 = vrot.lane.b32.xlu1 %v10112_v4, %s9551_s12 }
 0x199   :  { %v10242_v58 = vpop.permute.xlu1 %773 }
 0x19a   :  { %14790 = vst [vmem:[#allocation76_spill] sm:$0xff] %v10242_v58  ;;  %v10258_v15 = vpop.permute.xlu0 %782 }
 0x19b   :  { %1311 = vrot.lane.b32.xlu0 %v1156_v0, %s9552_s14  ;;  %v1158_v0 = vsel %vm14440_vm12, %v914_v45, 0.0  ;;  %14791 = vst [vmem:[#allocation77_spill] sm:$0xff] %v10258_v15  ;;  %vm14445_vm12 = vcmp.eq.s32.totalorder %v10104_v33, 1 }
 0x19c   :  { %1313 = vrot.lane.b32.xlu1 %v1157_v39, %s9552_s14  ;;  %v896_v39 = vrot.slane %v10146_v59, 1 }
 0x19d   :  { %v10260_v51 = vpop.permute.xlu1 %779 }
 0x19e   :  { %14792 = vst [vmem:[#allocation78_spill] sm:$0xff] %v10260_v51  ;;  %v912_v45 = vsel %vm904_vm13, %v895_v36, %v896_v39  ;;  %v911_v29 = vsel %vm904_vm13, %v896_v39, %v897_v16  ;;  %v899_v39 = vrot.slane %v10162_v25, 1 }
 0x19f   :  { %1227 = vrot.lane.b32.xlu0 %v10143_v12, %s9551_s12  ;;  %v1161_v36 = vsel %vm14445_vm12, %v911_v29, 0.0  ;;  %vm14458_vm12 = vcmp.eq.s32.totalorder %v10098_v44, 1 }
 0x1a0   :  { %1221 = vrot.lane.b32.xlu1 %v10132_v46, %s9551_s12 }
 0x1a1   :  { %v10280_v62 = vpop.permute.xlu1 %785 }
 0x1a2   :  { %14794 = vst [vmem:[#allocation80_spill] sm:$0xff] %v10280_v62 }
 0x1a3   :  { %1315 = vrot.lane.b32.xlu0 %v1158_v0, %s9552_s14  ;;  %v1160_v0 = vsel %vm14446_vm7, %v912_v45, 0.0  ;;  %v910_v45 = vsel %vm904_vm13, %v897_v16, %v898_v56  ;;  %vm14457_vm7 = vcmp.eq.s32.totalorder %v10129_v9, 1 }
 0x1a4   :  { %1317 = vrot.lane.b32.xlu1 %v1159_v28, %s9552_s14  ;;  %v10274_v28 = vpop.permute.xlu0 %788 }
 0x1a5   :  { %14793 = vst [vmem:[#allocation79_spill] sm:$0xff] %v10274_v28  ;;  %v10296_v33 = vpop.permute.xlu1 %791 }
 0x1a6   :  { %14796 = vst [vmem:[#allocation82_spill] sm:$0xff] %v10296_v33 }
 0x1a7   :  { %1231 = vrot.lane.b32.xlu0 %v10162_v25, %s9551_s12 }
 0x1a8   :  { %1225 = vrot.lane.b32.xlu1 %v10146_v59, %s9551_s12  ;;  %v10293_v29 = vpop.permute.xlu0 %794 }
 0x1a9   :  { %14795 = vst [vmem:[#allocation81_spill] sm:$0xff] %v10293_v29  ;;  %v10313_v44 = vpop.permute.xlu1 %797 }
 0x1aa   :  { %14798 = vst [vmem:[#allocation84_spill] sm:$0xff] %v10313_v44 }
 0x1ab   :  { %1319 = vrot.lane.b32.xlu0 %v1160_v0, %s9552_s14  ;;  %v909_v0 = vsel %vm904_vm13, %v898_v56, %v899_v39  ;;  %v901_v56 = vrot.slane %v10179_v24, 1 }
 0x1ac   :  { %1321 = vrot.lane.b32.xlu1 %v1161_v36, %s9552_s14  ;;  %v1162_v36 = vsel %vm14458_vm12, %v910_v45, 0.0  ;;  %v1163_v16 = vsel %vm14457_vm7, %v909_v0, 0.0  ;;  %v10306_v25 = vpop.permute.xlu0 %800  ;;  %v908_v45 = vsel %vm904_vm13, %v899_v39, %v900_v41  ;;  %vm14465_vm7 = vcmp.eq.s32.totalorder %v10123_v17, 1 }
 0x1ad   :  { %14797 = vst [vmem:[#allocation83_spill] sm:$0xff] %v10306_v25  ;;  %v907_v0 = vsel %vm904_vm13, %v900_v41, %v901_v56  ;;  %vm14464_vm12 = vcmp.eq.s32.totalorder %v10154_v54, 1 }
 0x1ae   :  { %v1165_v39 = vsel %vm14464_vm12, %v907_v0, 0.0  ;;  %vm14470_vm12 = vcmp.eq.s32.totalorder %v10176_v26, 1  ;;  %v14489_v26 = vrot.slane %v10196_v21, 7 }
 0x1af   :  { %1235 = vrot.lane.b32.xlu0 %v10179_v24, %s9551_s12  ;;  %v10333_v24 = vpop.permute.xlu1 %803 }
 0x1b0   :  { %1229 = vrot.lane.b32.xlu1 %v10166_v22, %s9551_s12  ;;  %v902_v22 = vrot.slane %v10200_v38, 1  ;;  %v10331_v41 = vpop.permute.xlu0 %806  ;;  %14800 = vst [vmem:[#allocation86_spill] sm:$0xff] %v10333_v24 }
 0x1b1   :  { %14799 = vst [vmem:[#allocation85_spill] sm:$0xff] %v10331_v41 }
 0x1b2   :  { %v906_v9 = vsel %vm904_vm13, %v901_v56, %v902_v22 }
 0x1b3   :  { %1323 = vrot.lane.b32.xlu0 %v1162_v36, %s9552_s14  ;;  %v1164_v36 = vsel %vm14465_vm7, %v908_v45, 0.0  ;;  %v1166_v45 = vsel %vm14478_vm11, %v906_v9, 0.0  ;;  %vm14477_vm7 = vcmp.eq.s32.totalorder %v10181_v30, 1  ;;  %v589_v30 = vrot.slane %v9987_v42, 7 }
 0x1b4   :  { %1325 = vrot.lane.b32.xlu1 %v1163_v16, %s9552_s14  ;;  %v903_v16 = vrot.slane %v10196_v21, 1  ;;  %vm14497_vm11 = vcmp.eq.s32.totalorder %v10210_v49, 1 }
 0x1b6   :  { %v905_v56 = vsel %vm904_vm13, %v902_v22, %v903_v16 }
 0x1b7   :  { %1239 = vrot.lane.b32.xlu0 %v10196_v21, %s9551_s12 }
 0x1b8   :  { %1233 = vrot.lane.b32.xlu1 %v10184_v1, %s9551_s12 }
 0x1bb   :  { %1327 = vrot.lane.b32.xlu0 %v1164_v36, %s9552_s14  ;;  %v14801_v36 = vrot.slane %v9987_v42, 1 }
 0x1bc   :  { %1329 = vrot.lane.b32.xlu1 %v1165_v39, %s9552_s14  ;;  %v10350_v39 = vpop.permute.xlu0 %812 }
 0x1bd   :  { %v928_v0 = vsel %vm904_vm13, %v903_v16, %v14801_v36  ;;  %14802 = vst [vmem:[#allocation87_spill] sm:$0xff] %v10350_v39  ;;  %v10355_v36 = vpop.permute.xlu1 %809 }
 0x1be   :  { %v1168_v9 = vsel %vm14470_vm12, %v928_v0, 0.0  ;;  %14803 = vst [vmem:[#allocation88_spill] sm:$0xff] %v10355_v36  ;;  %vm14596_vm12 = vcmp.lt.s32.totalorder %v9977_v37, 1 }
 0x1bf   :  { %1331 = vrot.lane.b32.xlu0 %v1166_v45, %s9552_s14  ;;  %v1167_v45 = vsel %vm14477_vm7, %v905_v56, 0.0  ;;  %v639_v17 = vsel %vm14596_vm12, %v14489_v26, %v589_v30  ;;  %vm1361_vm7 = vcmask 64512  }
 0x1c0   :  { %1237 = vrot.lane.b32.xlu1 %v10200_v38, %s9551_s12  ;;  %v10362_v22 = vpop.permute.xlu0 %818 }
 0x1c1   :  { %14804 = vst [vmem:[#allocation89_spill] sm:$0xff] %v10362_v22  ;;  %v10364_v16 = vpop.permute.xlu1 %815 }
 0x1c2   :  { %14805 = vst [vmem:[#allocation90_spill] sm:$0xff] %v10364_v16 }
 0x1c3   :  { %1335 = vrot.lane.b32.xlu0 %v1168_v9, %s9552_s14 }
 0x1c4   :  { %1333 = vrot.lane.b32.xlu1 %v1167_v45, %s9552_s14  ;;  %v10370_v0 = vpop.permute.xlu0 %824 }
 0x1c5   :  { %14806 = vst [vmem:[#allocation91_spill] sm:$0xff] %v10370_v0  ;;  %v10374_v56 = vpop.permute.xlu1 %821  ;;  %vm14553_vm8 = vcmp.eq.s32.totalorder %v10370_v0, 1 }
 0x1c6   :  { %14807 = vst [vmem:[#allocation92_spill] sm:$0xff] %v10374_v56 }
 0x1c7   :  { %1437 = vrot.lane.b32.xlu0 %v9968_v32, %s9553_s15 }
 0x1c8   :  { %1435 = vrot.lane.b32.xlu1 %v9972_v35, %s9553_s15  ;;  %v10382_v9 = vpop.permute.xlu0 %830 }
 0x1c9   :  { %14808 = vst [vmem:[#allocation93_spill] sm:$0xff] %v10382_v9  ;;  %v10384_v45 = vpop.permute.xlu1 %827 }
 0x1ca   :  { %14809 = vst [vmem:[#allocation94_spill] sm:$0xff] %v10384_v45 }
 0x1cb   :  { %1441 = vrot.lane.b32.xlu0 %v9984_v7, %s9553_s15 }
 0x1cc   :  { %1439 = vrot.lane.b32.xlu1 %v9989_v43, %s9553_s15 }
 0x1cf   :  { %1445 = vrot.lane.b32.xlu0 %v10004_v50, %s9553_s15  ;;  %v591_v50 = vrot.slane %v10009_v52, 7 }
 0x1d0   :  { %1443 = vrot.lane.b32.xlu1 %v10011_v53, %s9553_s15 }
 0x1d3   :  { %1449 = vrot.lane.b32.xlu0 %v10027_v61, %s9553_s15  ;;  %v856_v61 = vsel %vm14497_vm11, %v639_v17, 0.0  ;;  %vm14506_vm11 = vcmp.eq.s32.totalorder %v10226_v19, 1  ;;  %v14813_v19 = vld [vmem:[#allocation41_spill] sm:$0xff] }
 0x1d4   :  { %1447 = vrot.lane.b32.xlu1 %v10034_v6, %s9553_s15 }
 0x1d7   :  { %1453 = vrot.lane.b32.xlu0 %v10051_v11, %s9553_s15  ;;  %v590_v11 = vrot.slane %v9982_v40, 7 }
 0x1d8   :  { %1451 = vrot.lane.b32.xlu1 %v10058_v27, %s9553_s15 }
 0x1d9   :  { %v1196_v18 = vpop.permute.xlu0 %1195  ;;  %v638_v17 = vsel %vm14596_vm12, %v589_v30, %v590_v11 }
 0x1da   :  { %v1194_v54 = vpop.permute.xlu1 %1193 }
 0x1db   :  { %1457 = vrot.lane.b32.xlu0 %v10071_v55, %s9553_s15  ;;  %v1362_v26 = vsel %vm1361_vm7, %v856_v61, %v1194_v54  ;;  %v637_v61 = vsel %vm14596_vm12, %v590_v11, %v591_v50  ;;  %v593_v11 = vrot.slane %v10032_v63, 7  ;;  %v10903_v63 = vld [vmem:[%s14384_s0 + $0xb8] sm:$0xff] }
 0x1dc   :  { %1455 = vrot.lane.b32.xlu1 %v10078_v60, %s9553_s15  ;;  %v858_v54 = vsel %vm14506_vm11, %v637_v61, 0.0  ;;  %vm14515_vm11 = vcmp.eq.s32.totalorder %v10223_v57, 1 }
 0x1dd   :  { %v1200_v27 = vpop.permute.xlu0 %1199 }
 0x1de   :  { %v1290_v6 = vpop.permute.xlu1 %1289 }
 0x1df   :  { %v1387_v55 = vsel %vm1386_vm1, %v1362_v26, %v1290_v6  ;;  %1461 = vrot.lane.b32.xlu0 %v9926_v2, %s9553_s15  ;;  %v857_v6 = vsel %vm14507_vm9, %v638_v17, 0.0  ;;  %vm14514_vm9 = vcmp.eq.s32.totalorder %v10242_v58, 1 }
 0x1e0   :  { %1459 = vrot.lane.b32.xlu1 %v9928_v3, %s9553_s15  ;;  %8629 = vmatprep.mubr.msk.f32.mxu0 %vm1507_vm10, %v1387_v55  ;;  %v592_v55 = vrot.slane %v10002_v48, 7  ;;  %v1363_v30 = vsel %vm1361_vm7, %v857_v6, %v1196_v18  ;;  %v14812_v6 = vld [vmem:[#allocation33_spill] sm:$0xff] }
 0x1e1   :  { %v1204_v49 = vpop.permute.xlu0 %1203 }
 0x1e2   :  { %v1198_v26 = vpop.permute.xlu1 %1197  ;;  %v636_v18 = vsel %vm14596_vm12, %v591_v50, %v592_v55 }
 0x1e3   :  { %1465 = vrot.lane.b32.xlu0 %v9932_v5, %s9553_s15  ;;  %v1364_v3 = vsel %vm1361_vm7, %v858_v54, %v1198_v26  ;;  %v14811_v26 = vld [vmem:[#allocation15_spill] sm:$0xff] }
 0x1e4   :  { %1463 = vrot.lane.b32.xlu1 %v9934_v8, %s9553_s15 }
 0x1e5   :  { %v1292_v2 = vpop.permute.xlu0 %1291 }
 0x1e6   :  { %v1388_v5 = vsel %vm1386_vm1, %v1363_v30, %v1292_v2  ;;  %v1294_v60 = vpop.permute.xlu1 %1293  ;;  %v635_v2 = vsel %vm14596_vm12, %v592_v55, %v593_v11  ;;  %v594_v30 = vrot.slane %v14812_v6, 7  ;;  %v595_v55 = vrot.slane %v14813_v19, 7 }
 0x1e7   :  { %v1389_v17 = vsel %vm1386_vm1, %v1364_v3, %v1294_v60  ;;  %1469 = vrot.lane.b32.xlu0 %v9938_v10, %s9553_s15  ;;  %8630 = vmatmul.mubr.msk.f32.vlgmr.msra.gmra.mrb[12].mxu0 %vm1507_vm10, %v1388_v5  ;;  %v14810_v60 = vld [vmem:[#allocation14_spill] sm:$0xff]  ;;  %v859_v5 = vsel %vm14515_vm11, %v636_v18, 0.0  ;;  %v860_v54 = vsel %vm14514_vm9, %v635_v2, 0.0  ;;  %vm14523_vm9 = vcmp.eq.s32.totalorder %v10236_v34, 1 }
 0x1e8   :  { %1467 = vrot.lane.b32.xlu1 %v9946_v13, %s9553_s15  ;;  %8632 = vmatprep.mubr.msk.f32.mxu0 %vm1507_vm10, %v1389_v17  ;;  %v1365_v50 = vsel %vm1361_vm7, %v859_v5, %v1200_v27  ;;  %v634_v27 = vsel %vm14596_vm12, %v593_v11, %v594_v30  ;;  %vm14522_vm11 = vcmp.eq.s32.totalorder %v10260_v51, 1 }
 0x1e9   :  { %v1208_v61 = vpop.permute.xlu0 %1207 }
 0x1ea   :  { %v1202_v3 = vpop.permute.xlu1 %1201 }
 0x1eb   :  { %1473 = vrot.lane.b32.xlu0 %v14810_v60, %s9553_s15  ;;  %v1366_v20 = vsel %vm1361_vm7, %v860_v54, %v1202_v3  ;;  %v633_v3 = vsel %vm14596_vm12, %v594_v30, %v595_v55 }
 0x1ec   :  { %1471 = vrot.lane.b32.xlu1 %v14811_v26, %s9553_s15  ;;  %v862_v30 = vsel %vm14522_vm11, %v633_v3, 0.0  ;;  %vm14529_vm11 = vcmp.eq.s32.totalorder %v10258_v15, 1 }
 0x1ed   :  { %v1296_v17 = vpop.permute.xlu0 %1295 }
 0x1ee   :  { %v1390_v60 = vsel %vm1386_vm1, %v1365_v50, %v1296_v17  ;;  %v1298_v10 = vpop.permute.xlu1 %1297  ;;  %v14816_v17 = vld [vmem:[#allocation47_spill] sm:$0xff] }
 0x1ef   :  { %v1391_v18 = vsel %vm1386_vm1, %v1366_v20, %v1298_v10  ;;  %1477 = vrot.lane.b32.xlu0 %v9958_v14, %s9553_s15  ;;  %8633 = vmatmul.mubr.msk.f32.gmra.mrb[14].mxu0 %vm1507_vm10, %v1390_v60  ;;  %v14814_v10 = vld [vmem:[#allocation20_spill] sm:$0xff]  ;;  %v861_v20 = vsel %vm14523_vm9, %v634_v27, 0.0  ;;  %v14815_v60 = vld [vmem:[#allocation39_spill] sm:$0xff]  ;;  %vm14528_vm9 = vcmp.eq.s32.totalorder %v10280_v62, 1 }
 0x1f0   :  { %1475 = vrot.lane.b32.xlu1 %v9960_v23, %s9553_s15  ;;  %8635 = vmatprep.mubr.msk.f32.mxu0 %vm1507_vm10, %v1391_v18  ;;  %v596_v11 = vrot.slane %v14815_v60, 7  ;;  %v1367_v50 = vsel %vm1361_vm7, %v861_v20, %v1204_v49  ;;  %v597_v18 = vrot.slane %v14816_v17, 7 }
 0x1f1   :  { %v1212_v2 = vpop.permute.xlu0 %1211 }
 0x1f2   :  { %v1206_v5 = vpop.permute.xlu1 %1205  ;;  %v632_v49 = vsel %vm14596_vm12, %v595_v55, %v596_v11  ;;  %v631_v3 = vsel %vm14596_vm12, %v596_v11, %v597_v18 }
 0x1f3   :  { %1481 = vrot.lane.b32.xlu0 %v14814_v10, %s9553_s15  ;;  %v1368_v58 = vsel %vm1361_vm7, %v862_v30, %v1206_v5  ;;  %v863_v5 = vsel %vm14529_vm11, %v632_v49, 0.0  ;;  %v14818_v30 = vld [vmem:[#allocation50_spill] sm:$0xff]  ;;  %vm14532_vm11 = vcmp.eq.s32.totalorder %v10296_v33, 1 }
 0x1f4   :  { %1479 = vrot.lane.b32.xlu1 %v9966_v31, %s9553_s15 }
 0x1f5   :  { %v1300_v54 = vpop.permute.xlu0 %1299 }
 0x1f6   :  { %v1392_v57 = vsel %vm1386_vm1, %v1367_v50, %v1300_v54  ;;  %v1302_v10 = vpop.permute.xlu1 %1301  ;;  %v864_v50 = vsel %vm14528_vm9, %v631_v3, 0.0  ;;  %v599_v54 = vrot.slane %v14818_v30, 7  ;;  %vm14533_vm9 = vcmp.eq.s32.totalorder %v10274_v28, 1 }
 0x1f7   :  { %v1393_v27 = vsel %vm1386_vm1, %v1368_v58, %v1302_v10  ;;  %8636 = vmatmul.mubr.msk.f32.gmra.mrb[16].mxu0 %vm1507_vm10, %v1392_v57  ;;  %v14817_v58 = vld [vmem:[#allocation44_spill] sm:$0xff]  ;;  %v1369_v57 = vsel %vm1361_vm7, %v863_v5, %v1208_v61 }
 0x1f8   :  { %8638 = vmatprep.mubr.msk.f32.mxu0 %vm1507_vm10, %v1393_v27  ;;  %v598_v10 = vrot.slane %v14817_v58, 7 }
 0x1f9   :  { %v1216_v20 = vpop.permute.xlu0 %1215 }
 0x1fa   :  { %v1210_v51 = vpop.permute.xlu1 %1209  ;;  %v630_v61 = vsel %vm14596_vm12, %v597_v18, %v598_v10  ;;  %v629_v3 = vsel %vm14596_vm12, %v598_v10, %v599_v54 }
 0x1fb   :  { %v1370_v11 = vsel %vm1361_vm7, %v864_v50, %v1210_v51  ;;  %v865_v51 = vsel %vm14533_vm9, %v630_v61, 0.0  ;;  %vm14534_vm9 = vcmp.eq.s32.totalorder %v10313_v44, 1 }
 0x1fc   :  { %v1371_v50 = vsel %vm1361_vm7, %v865_v51, %v1212_v2 }
 0x1fd   :  { %v1304_v55 = vpop.permute.xlu0 %1303 }
 0x1fe   :  { %v1394_v27 = vsel %vm1386_vm1, %v1369_v57, %v1304_v55  ;;  %v1306_v34 = vpop.permute.xlu1 %1305  ;;  %v601_v55 = vrot.slane %v10112_v4, 7 }
 0x1ff   :  { %v1395_v14 = vsel %vm1386_vm1, %v1370_v11, %v1306_v34  ;;  %8639 = vmatmul.mubr.msk.f32.gmra.mrb[18].mxu0 %vm1507_vm10, %v1394_v27  ;;  %v14819_v34 = vld [vmem:[#allocation49_spill] sm:$0xff] }
 0x200   :  { %8641 = vmatprep.mubr.msk.f32.mxu0 %vm1507_vm10, %v1395_v14  ;;  %v600_v57 = vrot.slane %v14819_v34, 7  ;;  %v866_v14 = vsel %vm14532_vm11, %v629_v3, 0.0  ;;  %vm14535_vm11 = vcmp.eq.s32.totalorder %v10293_v29, 1 }
 0x201   :  { %v1220_v49 = vpop.permute.xlu0 %1219 }
 0x202   :  { %v1214_v5 = vpop.permute.xlu1 %1213  ;;  %v628_v2 = vsel %vm14596_vm12, %v599_v54, %v600_v57  ;;  %v627_v3 = vsel %vm14596_vm12, %v600_v57, %v601_v55 }
 0x203   :  { %v1372_v10 = vsel %vm1361_vm7, %v866_v14, %v1214_v5  ;;  %v867_v5 = vsel %vm14535_vm11, %v628_v2, 0.0  ;;  %vm14538_vm11 = vcmp.eq.s32.totalorder %v10333_v24, 1 }
 0x204   :  { %v1373_v14 = vsel %vm1361_vm7, %v867_v5, %v1216_v20 }
 0x205   :  { %v1308_v18 = vpop.permute.xlu0 %1307 }
 0x206   :  { %v1396_v11 = vsel %vm1386_vm1, %v1371_v50, %v1308_v18  ;;  %v1310_v27 = vpop.permute.xlu1 %1309  ;;  %v602_v50 = vrot.slane %v10109_v47, 7  ;;  %v603_v18 = vrot.slane %v10132_v46, 7 }
 0x207   :  { %v1397_v62 = vsel %vm1386_vm1, %v1372_v10, %v1310_v27  ;;  %8642 = vmatmul.mubr.msk.f32.gmra.mrb[20].mxu0 %vm1507_vm10, %v1396_v11 }
 0x208   :  { %8644 = vmatprep.mubr.msk.f32.mxu0 %vm1507_vm10, %v1397_v62  ;;  %v868_v62 = vsel %vm14534_vm9, %v627_v3, 0.0  ;;  %v626_v20 = vsel %vm14596_vm12, %v601_v55, %v602_v50  ;;  %v625_v3 = vsel %vm14596_vm12, %v602_v50, %v603_v18  ;;  %vm14539_vm9 = vcmp.eq.s32.totalorder %v10306_v25, 1 }
 0x209   :  { %v1224_v61 = vpop.permute.xlu0 %1223 }
 0x20a   :  { %v1218_v51 = vpop.permute.xlu1 %1217 }
 0x20b   :  { %v1374_v57 = vsel %vm1361_vm7, %v868_v62, %v1218_v51  ;;  %v869_v51 = vsel %vm14539_vm9, %v626_v20, 0.0  ;;  %vm14542_vm9 = vcmp.eq.s32.totalorder %v10355_v36, 1 }
 0x20d   :  { %v1312_v54 = vpop.permute.xlu0 %1311 }
 0x20e   :  { %v1398_v10 = vsel %vm1386_vm1, %v1373_v14, %v1312_v54  ;;  %v1314_v11 = vpop.permute.xlu1 %1313  ;;  %v14820_v14 = vld [vmem:[#allocation56_spill] sm:$0xff]  ;;  %v1375_v54 = vsel %vm1361_vm7, %v869_v51, %v1220_v49 }
 0x20f   :  { %v1399_v27 = vsel %vm1386_vm1, %v1374_v57, %v1314_v11  ;;  %8645 = vmatmul.mubr.msk.f32.gmra.mrb[22].mxu0 %vm1507_vm10, %v1398_v10  ;;  %v604_v62 = vrot.slane %v14820_v14, 7  ;;  %v870_v57 = vsel %vm14538_vm11, %v625_v3, 0.0  ;;  %v605_v10 = vrot.slane %v10146_v59, 7 }
 0x210   :  { %8647 = vmatprep.mubr.msk.f32.mxu0 %vm1507_vm10, %v1399_v27  ;;  %vm14543_vm11 = vcmp.eq.s32.totalorder %v10331_v41, 1 }
 0x211   :  { %v1228_v2 = vpop.permute.xlu0 %1227  ;;  %v624_v49 = vsel %vm14596_vm12, %v603_v18, %v604_v62  ;;  %v623_v3 = vsel %vm14596_vm12, %v604_v62, %v605_v10 }
 0x212   :  { %v1222_v5 = vpop.permute.xlu1 %1221 }
 0x213   :  { %v1376_v50 = vsel %vm1361_vm7, %v870_v57, %v1222_v5  ;;  %v871_v5 = vsel %vm14543_vm11, %v624_v49, 0.0  ;;  %vm14550_vm11 = vcmp.eq.s32.totalorder %v10364_v16, 1 }
 0x214   :  { %v1377_v57 = vsel %vm1361_vm7, %v871_v5, %v1224_v61 }
 0x215   :  { %v1316_v55 = vpop.permute.xlu0 %1315 }
 0x216   :  { %v1400_v11 = vsel %vm1386_vm1, %v1375_v54, %v1316_v55  ;;  %v1318_v27 = vpop.permute.xlu1 %1317  ;;  %v606_v54 = vrot.slane %v10143_v12, 7  ;;  %v14821_v55 = vld [vmem:[#allocation64_spill] sm:$0xff] }
 0x217   :  { %v1401_v44 = vsel %vm1386_vm1, %v1376_v50, %v1318_v27  ;;  %8648 = vmatmul.mubr.msk.f32.gmra.mrb[24].mxu0 %vm1507_vm10, %v1400_v11  ;;  %v607_v50 = vrot.slane %v14821_v55, 7 }
 0x218   :  { %8650 = vmatprep.mubr.msk.f32.mxu0 %vm1507_vm10, %v1401_v44  ;;  %v872_v44 = vsel %vm14542_vm9, %v623_v3, 0.0  ;;  %v622_v61 = vsel %vm14596_vm12, %v605_v10, %v606_v54  ;;  %vm14551_vm9 = vcmp.eq.s32.totalorder %v10350_v39, 1 }
 0x219   :  { %v1232_v20 = vpop.permute.xlu0 %1231  ;;  %v621_v3 = vsel %vm14596_vm12, %v606_v54, %v607_v50 }
 0x21a   :  { %v1226_v51 = vpop.permute.xlu1 %1225 }
 0x21b   :  { %v1378_v62 = vsel %vm1361_vm7, %v872_v44, %v1226_v51  ;;  %v873_v51 = vsel %vm14551_vm9, %v622_v61, 0.0  ;;  %v14823_v61 = vld [vmem:[#allocation66_spill] sm:$0xff]  ;;  %vm14554_vm9 = vcmp.eq.s32.totalorder %v10374_v56, 1 }
 0x21c   :  { %v610_v39 = vrot.slane %v14823_v61, 7 }
 0x21d   :  { %v1320_v18 = vpop.permute.xlu0 %1319 }
 0x21e   :  { %v1402_v11 = vsel %vm1386_vm1, %v1377_v57, %v1320_v18  ;;  %v1322_v27 = vpop.permute.xlu1 %1321  ;;  %v14822_v57 = vld [vmem:[#allocation63_spill] sm:$0xff]  ;;  %v1379_v18 = vsel %vm1361_vm7, %v873_v51, %v1228_v2 }
 0x21f   :  { %v1403_v24 = vsel %vm1386_vm1, %v1378_v62, %v1322_v27  ;;  %8651 = vmatmul.mubr.msk.f32.gmra.mrb[26].mxu0 %vm1507_vm10, %v1402_v11  ;;  %v608_v44 = vrot.slane %v14822_v57, 7  ;;  %v609_v62 = vrot.slane %v10184_v1, 7 }
 0x220   :  { %8653 = vmatprep.mubr.msk.f32.mxu0 %vm1507_vm10, %v1403_v24  ;;  %v874_v24 = vsel %vm14550_vm11, %v621_v3, 0.0  ;;  %vm14595_vm11 = vcmp.eq.s32.totalorder %v10362_v22, 1 }
 0x221   :  { %v1236_v49 = vpop.permute.xlu0 %1235  ;;  %v620_v2 = vsel %vm14596_vm12, %v607_v50, %v608_v44  ;;  %v619_v51 = vsel %vm14596_vm12, %v608_v44, %v609_v62 }
 0x222   :  { %v1230_v5 = vpop.permute.xlu1 %1229  ;;  %v876_v50 = vsel %vm14554_vm9, %v619_v51, 0.0  ;;  %vm14593_vm9 = vcmp.eq.s32.totalorder %v10382_v9, 1 }
 0x223   :  { %v1380_v54 = vsel %vm1361_vm7, %v874_v24, %v1230_v5  ;;  %v875_v5 = vsel %vm14595_vm11, %v620_v2, 0.0 }
 0x225   :  { %v1324_v10 = vpop.permute.xlu0 %1323 }
 0x226   :  { %v1404_v11 = vsel %vm1386_vm1, %v1379_v18, %v1324_v10  ;;  %v1326_v27 = vpop.permute.xlu1 %1325  ;;  %v1381_v18 = vsel %vm1361_vm7, %v875_v5, %v1232_v20  ;;  %v611_v10 = vrot.slane %v10200_v38, 7 }
 0x227   :  { %v1405_v36 = vsel %vm1386_vm1, %v1380_v54, %v1326_v27  ;;  %8654 = vmatmul.mubr.msk.f32.gmra.mrb[28].mxu0 %vm1507_vm10, %v1404_v11 }
 0x228   :  { %8656 = vmatprep.mubr.msk.f32.mxu0 %vm1507_vm10, %v1405_v36  ;;  %v618_v36 = vsel %vm14596_vm12, %v609_v62, %v610_v39 }
 0x229   :  { %v1240_v3 = vpop.permute.xlu0 %1239  ;;  %v877_v20 = vsel %vm14553_vm8, %v618_v36, 0.0  ;;  %vm14594_vm8 = vcmp.eq.s32.totalorder %v10384_v45, 1 }
 0x22a   :  { %v1234_v16 = vpop.permute.xlu1 %1233  ;;  %v1383_v62 = vsel %vm1361_vm7, %v877_v20, %v1236_v49 }
 0x22b   :  { %v1382_v44 = vsel %vm1361_vm7, %v876_v50, %v1234_v16  ;;  %v617_v16 = vsel %vm14596_vm12, %v610_v39, %v611_v10 }
 0x22c   :  { %v878_v49 = vsel %vm14594_vm8, %v617_v16, 0.0 }
 0x22d   :  { %v1328_v24 = vpop.permute.xlu0 %1327 }
 0x22e   :  { %v1406_v54 = vsel %vm1386_vm1, %v1381_v18, %v1328_v24  ;;  %v1330_v11 = vpop.permute.xlu1 %1329  ;;  %v14824_v18 = vrot.slane %v10196_v21, 7 }
 0x22f   :  { %v1407_v27 = vsel %vm1386_vm1, %v1382_v44, %v1330_v11  ;;  %8657 = vmatmul.mubr.msk.f32.gmra.mrb[30].mxu0 %vm1507_vm10, %v1406_v54 }
 0x230   :  { %8659 = vmatprep.mubr.msk.f32.mxu0 %vm1507_vm10, %v1407_v27  ;;  %v616_v50 = vsel %vm14596_vm12, %v611_v10, %v14824_v18  ;;  %v588_v27 = vld [vmem:[%s14385_s1 + $0x50] sm:$0xff] }
 0x231   :  { %v1332_v2 = vpop.permute.xlu0 %1331  ;;  %v879_v24 = vsel %vm14593_vm9, %v616_v50, 0.0  ;;  %8665 = vmatprep.subr.mxu1 %v588_v27 }
 0x232   :  { %v1408_v51 = vsel %vm1386_vm1, %v1383_v62, %v1332_v2  ;;  %v1238_v5 = vpop.permute.xlu1 %1237  ;;  %v1385_v54 = vsel %vm1361_vm7, %v879_v24, %v1240_v3  ;;  %8666 = vmatpush3.msra.mxu1 %v588_v27 }
 0x233   :  { %8660 = vmatmul.mubr.msk.f32.gmra.mrb[32].mxu0 %vm1507_vm10, %v1408_v51  ;;  %v1384_v39 = vsel %vm1361_vm7, %v878_v49, %v1238_v5 }
 0x235   :  { %v1336_v36 = vpop.permute.xlu0 %1335 }
 0x236   :  { %v1334_v44 = vpop.permute.xlu1 %1333  ;;  %v1410_v11 = vsel %vm1386_vm1, %v1385_v54, %v1336_v36 }
 0x237   :  { %v1409_v10 = vsel %vm1386_vm1, %v1384_v39, %v1334_v44 }
 0x238   :  { %8662 = vmatprep.mubr.msk.f32.mxu0 %vm1507_vm10, %v1409_v10 }
 0x239   :  { %8663 = vmatmul.mubr.msk.f32.gmra.mrb[34].mxu0 %vm1507_vm10, %v1410_v11  ;;  %v1438_v20 = vpop.permute.xlu0 %1437 }
 0x23a   :  { %v1436_v2 = vpop.permute.xlu1 %1435 }
 0x23d   :  { %v1442_v50 = vpop.permute.xlu0 %1441 }
 0x23e   :  { %v1440_v36 = vpop.permute.xlu1 %1439 }
 0x2ba   :  { %v8631_v62 = vpop.f32.mrb[12].mxu0 }
 0x2bb   :  { %v10642_v51 = vadd.f32 %v8631_v62, %v1438_v20  ;;  %v1646_v3 = vpop.f32.mrb[13].mxu0  ;;  %v1446_v20 = vpop.permute.xlu0 %1445 }
 0x2bc   :  { %v10644_v16 = vadd.f32 %v1646_v3, %v1436_v2  ;;  %v1444_v3 = vpop.permute.xlu1 %1443 }
 0x2bd   :  { %v7999_v5 = vmul.f32 -1.442695, %v10642_v51 }
 0x2be   :  { %v7998_v18 = vmul.f32 -1.442695, %v10644_v16 }
 0x2bf   :  { %9020 = vpow2.f32 %v7999_v5  ;;  %v1450_v9 = vpop.permute.xlu0 %1449 }
 0x2c0   :  { %9022 = vpow2.f32 %v7998_v18  ;;  %v1448_v0 = vpop.permute.xlu1 %1447 }
 0x2c2   :  { %v8634_v49 = vpop.f32.mrb[14].mxu0 }
 0x2c3   :  { %v10648_v24 = vadd.f32 %v8634_v49, %v1442_v50  ;;  %v1656_v39 = vpop.f32.mrb[15].mxu0 }
 0x2c4   :  { %v10650_v44 = vadd.f32 %v1656_v39, %v1440_v36 }
 0x2c5   :  { %v8001_v54 = vmul.f32 -1.442695, %v10648_v24 }
 0x2c6   :  { %v8000_v10 = vmul.f32 -1.442695, %v10650_v44 }
 0x2c7   :  { %9024 = vpow2.f32 %v8001_v54 }
 0x2c8   :  { %9026 = vpow2.f32 %v8000_v10 }
 0x2c9   :  { %v9021_v11 = vpop.eup %9020 }
 0x2ca   :  { %v9023_v27 = vpop.eup %9022  ;;  %v1862_v62 = vadd.f32 1.0, %v9021_v11  ;;  %v8637_v2 = vpop.f32.mrb[16].mxu0 }
 0x2cb   :  { %v1861_v5 = vadd.f32 1.0, %v9023_v27  ;;  %v10654_v18 = vadd.f32 %v8637_v2, %v1446_v20  ;;  %v1666_v50 = vpop.f32.mrb[17].mxu0 }
 0x2cc   :  { %9028 = vrcp.f32 %v1862_v62  ;;  %v10656_v49 = vadd.f32 %v1666_v50, %v1444_v3 }
 0x2cd   :  { %9030 = vrcp.f32 %v1861_v5  ;;  %v8003_v36 = vmul.f32 -1.442695, %v10654_v18 }
 0x2ce   :  { %v8002_v39 = vmul.f32 -1.442695, %v10656_v49 }
 0x2cf   :  { %9032 = vpow2.f32 %v8003_v36 }
 0x2d0   :  { %9034 = vpow2.f32 %v8002_v39 }
 0x2d1   :  { %v9025_v54 = vpop.eup %9024 }
 0x2d2   :  { %v9027_v10 = vpop.eup %9026  ;;  %v1864_v11 = vadd.f32 1.0, %v9025_v54  ;;  %v8640_v45 = vpop.f32.mrb[18].mxu0 }
 0x2d3   :  { %v1863_v27 = vadd.f32 1.0, %v9027_v10  ;;  %v10660_v20 = vadd.f32 %v8640_v45, %v1450_v9  ;;  %v1676_v2 = vpop.f32.mrb[19].mxu0  ;;  %v1454_v9 = vpop.permute.xlu0 %1453 }
 0x2d4   :  { %9036 = vrcp.f32 %v1864_v11  ;;  %v10662_v62 = vadd.f32 %v1676_v2, %v1448_v0  ;;  %v1452_v0 = vpop.permute.xlu1 %1451 }
 0x2d5   :  { %9038 = vrcp.f32 %v1863_v27  ;;  %v8005_v3 = vmul.f32 -1.442695, %v10660_v20 }
 0x2d6   :  { %v9029_v5 = vpop.eup %9028  ;;  %v8004_v50 = vmul.f32 -1.442695, %v10662_v62 }
 0x2d7   :  { %v9031_v36 = vpop.eup %9030  ;;  %9040 = vpow2.f32 %v8005_v3  ;;  %1959 = vrot.lane.b32.xlu0 %v9029_v5, %s9553_s15 }
 0x2d8   :  { %1957 = vrot.lane.b32.xlu1 %v9031_v36, %s9553_s15  ;;  %9042 = vpow2.f32 %v8004_v50 }
 0x2d9   :  { %v9033_v39 = vpop.eup %9032 }
 0x2da   :  { %v1866_v45 = vadd.f32 1.0, %v9033_v39  ;;  %v8643_v54 = vpop.f32.mrb[20].mxu0  ;;  %v9035_v10 = vpop.eup %9034 }
 0x2db   :  { %v10668_v11 = vadd.f32 %v8643_v54, %v1454_v9  ;;  %v1686_v27 = vpop.f32.mrb[21].mxu0  ;;  %v1865_v2 = vadd.f32 1.0, %v9035_v10  ;;  %v1458_v39 = vpop.permute.xlu0 %1457 }
 0x2dc   :  { %9044 = vrcp.f32 %v1866_v45  ;;  %v10670_v56 = vadd.f32 %v1686_v27, %v1452_v0  ;;  %v1456_v10 = vpop.permute.xlu1 %1455 }
 0x2dd   :  { %v8007_v3 = vmul.f32 -1.442695, %v10668_v11  ;;  %9046 = vrcp.f32 %v1865_v2 }
 0x2de   :  { %v9037_v22 = vpop.eup %9036  ;;  %v8006_v5 = vmul.f32 -1.442695, %v10670_v56 }
 0x2df   :  { %v9039_v36 = vpop.eup %9038  ;;  %9048 = vpow2.f32 %v8007_v3  ;;  %1963 = vrot.lane.b32.xlu0 %v9037_v22, %s9553_s15 }
 0x2e0   :  { %1961 = vrot.lane.b32.xlu1 %v9039_v36, %s9553_s15  ;;  %9050 = vpow2.f32 %v8006_v5 }
 0x2e1   :  { %v9041_v50 = vpop.eup %9040 }
 0x2e2   :  { %v1868_v9 = vadd.f32 1.0, %v9041_v50  ;;  %v8646_v45 = vpop.f32.mrb[22].mxu0  ;;  %v9043_v54 = vpop.eup %9042 }
 0x2e3   :  { %v10676_v0 = vadd.f32 %v8646_v45, %v1458_v39  ;;  %v1696_v27 = vpop.f32.mrb[23].mxu0  ;;  %v1867_v2 = vadd.f32 1.0, %v9043_v54  ;;  %v1462_v50 = vpop.permute.xlu0 %1461 }
 0x2e4   :  { %9052 = vrcp.f32 %v1868_v9  ;;  %v10678_v41 = vadd.f32 %v1696_v27, %v1456_v10  ;;  %v1460_v54 = vpop.permute.xlu1 %1459 }
 0x2e5   :  { %v8009_v3 = vmul.f32 -1.442695, %v10676_v0  ;;  %9054 = vrcp.f32 %v1867_v2 }
 0x2e6   :  { %v9045_v25 = vpop.eup %9044  ;;  %v8008_v22 = vmul.f32 -1.442695, %v10678_v41 }
 0x2e7   :  { %9056 = vpow2.f32 %v8009_v3  ;;  %1967 = vrot.lane.b32.xlu0 %v9045_v25, %s9553_s15  ;;  %v9047_v5 = vpop.eup %9046 }
 0x2e8   :  { %9058 = vpow2.f32 %v8008_v22  ;;  %1965 = vrot.lane.b32.xlu1 %v9047_v5, %s9553_s15 }
 0x2e9   :  { %v9049_v36 = vpop.eup %9048 }
 0x2ea   :  { %v1870_v39 = vadd.f32 1.0, %v9049_v36  ;;  %v8649_v9 = vpop.f32.mrb[24].mxu0  ;;  %v9051_v45 = vpop.eup %9050 }
 0x2eb   :  { %v10684_v10 = vadd.f32 %v8649_v9, %v1462_v50  ;;  %v1706_v27 = vpop.f32.mrb[25].mxu0  ;;  %v1869_v2 = vadd.f32 1.0, %v9051_v45  ;;  %v1466_v50 = vpop.permute.xlu0 %1465 }
 0x2ec   :  { %9060 = vrcp.f32 %v1870_v39  ;;  %v10686_v29 = vadd.f32 %v1706_v27, %v1460_v54  ;;  %v1464_v54 = vpop.permute.xlu1 %1463 }
 0x2ed   :  { %v8011_v3 = vmul.f32 -1.442695, %v10684_v10  ;;  %9062 = vrcp.f32 %v1869_v2 }
 0x2ee   :  { %v9053_v25 = vpop.eup %9052  ;;  %v8010_v22 = vmul.f32 -1.442695, %v10686_v29 }
 0x2ef   :  { %9064 = vpow2.f32 %v8011_v3  ;;  %1971 = vrot.lane.b32.xlu0 %v9053_v25, %s9553_s15  ;;  %v9055_v5 = vpop.eup %9054 }
 0x2f0   :  { %9066 = vpow2.f32 %v8010_v22  ;;  %1969 = vrot.lane.b32.xlu1 %v9055_v5, %s9553_s15 }
 0x2f1   :  { %v9057_v36 = vpop.eup %9056 }
 0x2f2   :  { %v1872_v9 = vadd.f32 1.0, %v9057_v36  ;;  %v8652_v39 = vpop.f32.mrb[26].mxu0  ;;  %v9059_v45 = vpop.eup %9058 }
 0x2f3   :  { %v10692_v27 = vadd.f32 %v8652_v39, %v1466_v50  ;;  %v1716_v33 = vpop.f32.mrb[27].mxu0  ;;  %v1871_v2 = vadd.f32 1.0, %v9059_v45  ;;  %v1470_v50 = vpop.permute.xlu0 %1469 }
 0x2f4   :  { %9068 = vrcp.f32 %v1872_v9  ;;  %v10694_v28 = vadd.f32 %v1716_v33, %v1464_v54  ;;  %v1468_v33 = vpop.permute.xlu1 %1467 }
 0x2f5   :  { %v8013_v3 = vmul.f32 -1.442695, %v10692_v27  ;;  %9070 = vrcp.f32 %v1871_v2 }
 0x2f6   :  { %v9061_v25 = vpop.eup %9060  ;;  %v8012_v22 = vmul.f32 -1.442695, %v10694_v28 }
 0x2f7   :  { %9072 = vpow2.f32 %v8013_v3  ;;  %1975 = vrot.lane.b32.xlu0 %v9061_v25, %s9553_s15  ;;  %v9063_v5 = vpop.eup %9062 }
 0x2f8   :  { %9074 = vpow2.f32 %v8012_v22  ;;  %1973 = vrot.lane.b32.xlu1 %v9063_v5, %s9553_s15  ;;  %v1472_v26 = vpop.permute.xlu1 %1471 }
 0x2f9   :  { %v9065_v36 = vpop.eup %9064 }
 0x2fa   :  { %v1874_v39 = vadd.f32 1.0, %v9065_v36  ;;  %v8655_v9 = vpop.f32.mrb[28].mxu0  ;;  %v9067_v45 = vpop.eup %9066 }
 0x2fb   :  { %v10700_v54 = vadd.f32 %v8655_v9, %v1470_v50  ;;  %v1726_v15 = vpop.f32.mrb[29].mxu0  ;;  %v1873_v2 = vadd.f32 1.0, %v9067_v45  ;;  %v1474_v36 = vpop.permute.xlu0 %1473 }
 0x2fc   :  { %9076 = vrcp.f32 %v1874_v39  ;;  %v10702_v31 = vadd.f32 %v1726_v15, %v1468_v33  ;;  %v1476_v7 = vpop.permute.xlu1 %1475 }
 0x2fd   :  { %v8015_v3 = vmul.f32 -1.442695, %v10700_v54  ;;  %9078 = vrcp.f32 %v1873_v2 }
 0x2fe   :  { %v9069_v25 = vpop.eup %9068  ;;  %v8014_v22 = vmul.f32 -1.442695, %v10702_v31 }
 0x2ff   :  { %9080 = vpow2.f32 %v8015_v3  ;;  %1979 = vrot.lane.b32.xlu0 %v9069_v25, %s9553_s15  ;;  %v9071_v5 = vpop.eup %9070  ;;  %v1478_v13 = vpop.permute.xlu0 %1477 }
 0x300   :  { %9082 = vpow2.f32 %v8014_v22  ;;  %1977 = vrot.lane.b32.xlu1 %v9071_v5, %s9553_s15 }
 0x301   :  { %v9073_v23 = vpop.eup %9072 }
 0x302   :  { %v1876_v50 = vadd.f32 1.0, %v9073_v23  ;;  %v8658_v39 = vpop.f32.mrb[30].mxu0  ;;  %v9075_v15 = vpop.eup %9074 }
 0x303   :  { %v10708_v9 = vadd.f32 %v8658_v39, %v1474_v36  ;;  %v1736_v45 = vpop.f32.mrb[31].mxu0  ;;  %v1875_v33 = vadd.f32 1.0, %v9075_v15 }
 0x304   :  { %9084 = vrcp.f32 %v1876_v50  ;;  %v10710_v2 = vadd.f32 %v1736_v45, %v1472_v26 }
 0x305   :  { %v8017_v3 = vmul.f32 -1.442695, %v10708_v9  ;;  %9086 = vrcp.f32 %v1875_v33 }
 0x306   :  { %v9077_v25 = vpop.eup %9076  ;;  %v8016_v8 = vmul.f32 -1.442695, %v10710_v2  ;;  %v8661_v22 = vpop.f32.mrb[32].mxu0 }
 0x307   :  { %9088 = vpow2.f32 %v8017_v3  ;;  %v10714_v23 = vadd.f32 %v8661_v22, %v1478_v13  ;;  %1983 = vrot.lane.b32.xlu0 %v9077_v25, %s9553_s15  ;;  %v1746_v5 = vpop.f32.mrb[33].mxu0  ;;  %v9079_v36 = vpop.eup %9078 }
 0x308   :  { %v10717_v50 = vadd.f32 %v1746_v5, %v1476_v7  ;;  %9090 = vpow2.f32 %v8016_v8  ;;  %1981 = vrot.lane.b32.xlu1 %v9079_v36, %s9553_s15  ;;  %v1482_v3 = vpop.permute.xlu0 %1481  ;;  %v1480_v25 = vpop.permute.xlu1 %1479 }
 0x309   :  { %v9081_v26 = vpop.eup %9080  ;;  %v8019_v39 = vmul.f32 -1.442695, %v10714_v23 }
 0x30a   :  { %v1878_v15 = vadd.f32 1.0, %v9081_v26  ;;  %v9083_v45 = vpop.eup %9082  ;;  %v8018_v33 = vmul.f32 -1.442695, %v10717_v50 }
 0x30b   :  { %9092 = vpow2.f32 %v8019_v39  ;;  %v1877_v13 = vadd.f32 1.0, %v9083_v45 }
 0x30c   :  { %9094 = vrcp.f32 %v1878_v15  ;;  %v8664_v22 = vpop.f32.mrb[34].mxu0 }
 0x30d   :  { %v10722_v53 = vadd.f32 %v8664_v22, %v1482_v3  ;;  %v1756_v7 = vpop.f32.mrb[35].mxu0  ;;  %9096 = vrcp.f32 %v1877_v13 }
 0x30e   :  { %v9085_v5 = vpop.eup %9084  ;;  %v10724_v8 = vadd.f32 %v1756_v7, %v1480_v25  ;;  %9098 = vpow2.f32 %v8018_v33 }
 0x30f   :  { %v8021_v36 = vmul.f32 -1.442695, %v10722_v53  ;;  %1987 = vrot.lane.b32.xlu0 %v9085_v5, %s9553_s15  ;;  %v9087_v26 = vpop.eup %9086 }
 0x310   :  { %v8020_v39 = vmul.f32 -1.442695, %v10724_v8  ;;  %1985 = vrot.lane.b32.xlu1 %v9087_v26, %s9553_s15 }
 0x311   :  { %v9089_v32 = vpop.eup %9088  ;;  %9100 = vpow2.f32 %v8021_v36 }
 0x312   :  { %v1880_v15 = vadd.f32 1.0, %v9089_v32  ;;  %v9091_v45 = vpop.eup %9090  ;;  %9102 = vpow2.f32 %v8020_v39 }
 0x313   :  { %v1879_v3 = vadd.f32 1.0, %v9091_v45  ;;  %v10736_v45 = vld [vmem:[%s14384_s0 + $0x8] sm:$0xff] }
 0x314   :  { %9104 = vrcp.f32 %v1880_v15 }
 0x315   :  { %v9093_v13 = vpop.eup %9092  ;;  %9106 = vrcp.f32 %v1879_v3  ;;  %v2701_v3 = vadd.f32 2.0, %v10736_v45 }
 0x316   :  { %v9095_v22 = vpop.eup %9094  ;;  %v1882_v33 = vadd.f32 1.0, %v9093_v13 }
 0x317   :  { %1991 = vrot.lane.b32.xlu0 %v9095_v22, %s9553_s15  ;;  %v9097_v25 = vpop.eup %9096  ;;  %v10743_v22 = vld [vmem:[%s14384_s0] sm:$0xff]  ;;  %vm2725_vm9 = vcmp.ge.f32.partialorder %v2701_v3, 0.0  ;;  %vm2749_vm8 = vcmp.le.f32.partialorder %v2701_v3, 18.0  ;;  %v14825_v3 = vmov 0  }
 0x318   :  { %9108 = vrcp.f32 %v1882_v33  ;;  %v9099_v7 = vpop.eup %9098  ;;  %1989 = vrot.lane.b32.xlu1 %v9097_v25, %s9553_s15  ;;  %v2700_v33 = vadd.f32 2.0, %v10743_v22  ;;  %vm2773_vm6 = vmand %vm2725_vm9, %vm2749_vm8 }
 0x319   :  { %v1881_v5 = vadd.f32 1.0, %v9099_v7 }
 0x31a   :  { %vm2724_vm11 = vcmp.ge.f32.partialorder %v2700_v33, 0.0  ;;  %vm2748_vm12 = vcmp.le.f32.partialorder %v2700_v33, 18.0  ;;  %v10771_v33 = vld [vmem:[%s14384_s0 + $0x20] sm:$0xff] }
 0x31b   :  { %v9101_v36 = vpop.eup %9100  ;;  %9110 = vrcp.f32 %v1881_v5  ;;  %v10756_v5 = vld [vmem:[%s14384_s0 + $0x10] sm:$0xff]  ;;  %vm2772_vm2 = vmand %vm2724_vm11, %vm2748_vm12 }
 0x31c   :  { %v1884_v26 = vadd.f32 1.0, %v9101_v36  ;;  %v9103_v32 = vpop.eup %9102  ;;  %v2702_v36 = vadd.f32 2.0, %v10756_v5 }
 0x31d   :  { %v1883_v39 = vadd.f32 1.0, %v9103_v32  ;;  %v10763_v32 = vld [vmem:[%s14384_s0 + $0x28] sm:$0xff] }
 0x31e   :  { %v9105_v43 = vpop.eup %9104  ;;  %9112 = vrcp.f32 %v1884_v26  ;;  %vm2726_vm3 = vcmp.ge.f32.partialorder %v2702_v36, 0.0  ;;  %vm2750_vm0 = vcmp.le.f32.partialorder %v2702_v36, 18.0 }
 0x31f   :  { %1995 = vrot.lane.b32.xlu0 %v9105_v43, %s9553_s15  ;;  %v9107_v15 = vpop.eup %9106  ;;  %9114 = vrcp.f32 %v1883_v39  ;;  %v10750_v43 = vld [vmem:[%s14384_s0 + $0x18] sm:$0xff]  ;;  %v2705_v39 = vadd.f32 2.0, %v10763_v32 }
 0x320   :  { %1993 = vrot.lane.b32.xlu1 %v9107_v15, %s9553_s15  ;;  %v2703_v25 = vadd.f32 2.0, %v10750_v43  ;;  %9116 = vtanh.f32 %v10644_v16 }
 0x321   :  { %vm2729_vm9 = vcmp.ge.f32.partialorder %v2705_v39, 0.0  ;;  %vm2753_vm15 = vcmp.le.f32.partialorder %v2705_v39, 18.0  ;;  %9118 = vtanh.f32 %v10642_v51 }
 0x322   :  { %v9109_v13 = vpop.eup %9108  ;;  %vm2727_vm5 = vcmp.ge.f32.partialorder %v2703_v25, 0.0  ;;  %vm2751_vm4 = vcmp.le.f32.partialorder %v2703_v25, 18.0  ;;  %v2704_v25 = vadd.f32 2.0, %v10771_v33  ;;  %9120 = vtanh.f32 %v10650_v44  ;;  %v10891_v44 = vld [vmem:[%s14384_s0 + $0xa0] sm:$0xff] }
 0x323   :  { %1999 = vrot.lane.b32.xlu0 %v9109_v13, %s9553_s15  ;;  %v2797_v13 = vsel %vm2773_vm6, 1, %v14825_v3  ;;  %vm2775_vm8 = vmand %vm2727_vm5, %vm2751_vm4  ;;  %9122 = vtanh.f32 %v10648_v24  ;;  %v2720_v34 = vadd.f32 2.0, %v10891_v44 }
 0x324   :  { %vm2774_vm6 = vmand %vm2726_vm3, %vm2750_vm0  ;;  %v2799_v35 = vsel %vm2775_vm8, 1, %v14825_v3  ;;  %vm2728_vm11 = vcmp.ge.f32.partialorder %v2704_v25, 0.0  ;;  %vm2752_vm12 = vcmp.le.f32.partialorder %v2704_v25, 18.0  ;;  %9124 = vtanh.f32 %v10656_v49 }
 0x325   :  { %v9111_v7 = vpop.eup %9110  ;;  %v2798_v38 = vsel %vm2774_vm6, 1, %v14825_v3  ;;  %vm2776_vm0 = vmand %vm2728_vm11, %vm2752_vm12  ;;  %9126 = vtanh.f32 %v10654_v18  ;;  %v2414_v18 = vadd.f32 -2.0, %v10750_v43  ;;  %v2416_v43 = vadd.f32 -2.0, %v10763_v32 }
 0x326   :  { %1997 = vrot.lane.b32.xlu1 %v9111_v7, %s9553_s15  ;;  %v2796_v7 = vsel %vm2772_vm2, 1, %v14825_v3  ;;  %vm2777_vm2 = vmand %vm2729_vm9, %vm2753_vm15  ;;  %v2800_v1 = vsel %vm2776_vm0, 1, %v14825_v3  ;;  %9128 = vtanh.f32 %v10662_v62 }
 0x327   :  { %v2801_v21 = vsel %vm2777_vm2, 1, %v14825_v3  ;;  %9130 = vtanh.f32 %v10660_v20 }
 0x328   :  { %v9113_v26 = vpop.eup %9112  ;;  %9132 = vtanh.f32 %v10670_v56 }
 0x329   :  { %2003 = vrot.lane.b32.xlu0 %v9113_v26, %s9553_s15  ;;  %v9115_v15 = vpop.eup %9114  ;;  %v10779_v26 = vld [vmem:[%s14384_s0 + $0x38] sm:$0xff]  ;;  %9134 = vtanh.f32 %v10668_v11 }
 0x32a   :  { %2001 = vrot.lane.b32.xlu1 %v9115_v15, %s9553_s15  ;;  %v2707_v36 = vadd.f32 2.0, %v10779_v26  ;;  %v10786_v15 = vld [vmem:[%s14384_s0 + $0x30] sm:$0xff]  ;;  %v9117_v30 = vpop.eup %9116  ;;  %v2418_v62 = vadd.f32 -2.0, %v10779_v26  ;;  %9136 = vtanh.f32 %v10678_v41 }
 0x32b   :  { %v2706_v39 = vadd.f32 2.0, %v10786_v15  ;;  %v9119_v19 = vpop.eup %9118  ;;  %9138 = vtanh.f32 %v10676_v0 }
 0x32c   :  { %vm2731_vm4 = vcmp.ge.f32.partialorder %v2707_v36, 0.0  ;;  %vm2755_vm5 = vcmp.le.f32.partialorder %v2707_v36, 18.0  ;;  %9140 = vtanh.f32 %v10686_v29 }
 0x32d   :  { %2824 = vperm.xlu0 %9018, %v2797_v13   ;;  %v10793_v13 = vld [vmem:[%s14384_s0 + $0x48] sm:$0xff]  ;;  %vm2730_vm3 = vcmp.ge.f32.partialorder %v2706_v39, 0.0  ;;  %vm2754_vm8 = vcmp.le.f32.partialorder %v2706_v39, 18.0  ;;  %vm2779_vm15 = vmand %vm2731_vm4, %vm2755_vm5  ;;  %9142 = vtanh.f32 %v10684_v10 }
 0x32e   :  { %2821 = vperm.xlu1 %9019, %v2796_v7   ;;  %v2709_v25 = vadd.f32 2.0, %v10793_v13  ;;  %v10800_v7 = vld [vmem:[%s14384_s0 + $0x40] sm:$0xff]  ;;  %vm2778_vm11 = vmand %vm2730_vm3, %vm2754_vm8  ;;  %v2803_v61 = vsel %vm2779_vm15, 1, %v14825_v3  ;;  %v2420_v26 = vadd.f32 -2.0, %v10793_v13  ;;  %9144 = vtanh.f32 %v10692_v27 }
 0x32f   :  { %v2708_v36 = vadd.f32 2.0, %v10800_v7  ;;  %v2802_v55 = vsel %vm2778_vm11, 1, %v14825_v3  ;;  %9146 = vtanh.f32 %v10694_v28  ;;  %v2431_v27 = vadd.f32 -2.0, %v10891_v44 }
 0x330   :  { %vm2733_vm9 = vcmp.ge.f32.partialorder %v2709_v25, 0.0  ;;  %vm2757_vm6 = vcmp.le.f32.partialorder %v2709_v25, 18.0  ;;  %v2434_v28 = vadd.f32 -2.0, %v10903_v63  ;;  %9148 = vtanh.f32 %v10702_v31 }
 0x331   :  { %2830 = vperm.xlu0 %9018, %v2799_v35   ;;  %v10807_v35 = vld [vmem:[%s14384_s0 + $0x58] sm:$0xff]  ;;  %vm2732_vm12 = vcmp.ge.f32.partialorder %v2708_v36, 0.0  ;;  %vm2756_vm2 = vcmp.le.f32.partialorder %v2708_v36, 18.0  ;;  %vm2781_vm4 = vmand %vm2733_vm9, %vm2757_vm6  ;;  %9150 = vtanh.f32 %v10700_v54 }
 0x332   :  { %2827 = vperm.xlu1 %9019, %v2798_v38   ;;  %v2711_v39 = vadd.f32 2.0, %v10807_v35  ;;  %v10814_v38 = vld [vmem:[%s14384_s0 + $0x50] sm:$0xff]  ;;  %vm2780_vm3 = vmand %vm2732_vm12, %vm2756_vm2  ;;  %v2805_v57 = vsel %vm2781_vm4, 1, %v14825_v3  ;;  %v2422_v56 = vadd.f32 -2.0, %v10807_v35 }
 0x333   :  { %v2710_v25 = vadd.f32 2.0, %v10814_v38  ;;  %v2804_v59 = vsel %vm2780_vm3, 1, %v14825_v3 }
 0x334   :  { %vm2735_vm5 = vcmp.ge.f32.partialorder %v2711_v39, 0.0  ;;  %vm2759_vm0 = vcmp.le.f32.partialorder %v2711_v39, 18.0 }
 0x335   :  { %2836 = vperm.xlu0 %9018, %v2801_v21   ;;  %v10821_v21 = vld [vmem:[%s14384_s0 + $0x68] sm:$0xff]  ;;  %vm2734_vm8 = vcmp.ge.f32.partialorder %v2710_v25, 0.0  ;;  %vm2758_vm15 = vcmp.le.f32.partialorder %v2710_v25, 18.0  ;;  %vm2783_vm9 = vmand %vm2735_vm5, %vm2759_vm0 }
 0x336   :  { %2833 = vperm.xlu1 %9019, %v2800_v1   ;;  %v2713_v36 = vadd.f32 2.0, %v10821_v21  ;;  %v10828_v1 = vld [vmem:[%s14384_s0 + $0x60] sm:$0xff]  ;;  %vm2782_vm12 = vmand %vm2734_vm8, %vm2758_vm15  ;;  %v2807_v12 = vsel %vm2783_vm9, 1, %v14825_v3  ;;  %v2424_v35 = vadd.f32 -2.0, %v10821_v21 }
 0x337   :  { %v2712_v39 = vadd.f32 2.0, %v10828_v1  ;;  %v2806_v46 = vsel %vm2782_vm12, 1, %v14825_v3 }
 0x338   :  { %vm2737_vm6 = vcmp.ge.f32.partialorder %v2713_v36, 0.0  ;;  %vm2761_vm11 = vcmp.le.f32.partialorder %v2713_v36, 18.0 }
 0x339   :  { %2842 = vperm.xlu0 %9018, %v2803_v61   ;;  %v10835_v61 = vld [vmem:[%s14384_s0 + $0x78] sm:$0xff]  ;;  %vm2736_vm2 = vcmp.ge.f32.partialorder %v2712_v39, 0.0  ;;  %vm2760_vm4 = vcmp.le.f32.partialorder %v2712_v39, 18.0  ;;  %vm2785_vm5 = vmand %vm2737_vm6, %vm2761_vm11 }
 0x33a   :  { %2839 = vperm.xlu1 %9019, %v2802_v55   ;;  %v2715_v25 = vadd.f32 2.0, %v10835_v61  ;;  %v10842_v55 = vld [vmem:[%s14384_s0 + $0x70] sm:$0xff]  ;;  %vm2784_vm8 = vmand %vm2736_vm2, %vm2760_vm4  ;;  %v2426_v41 = vadd.f32 -2.0, %v10835_v61 }
 0x33b   :  { %v2714_v36 = vadd.f32 2.0, %v10842_v55  ;;  %v2808_v14 = vsel %vm2784_vm8, 1, %v14825_v3 }
 0x33c   :  { %vm2739_vm0 = vcmp.ge.f32.partialorder %v2715_v25, 0.0  ;;  %vm2763_vm3 = vcmp.le.f32.partialorder %v2715_v25, 18.0  ;;  %v2809_v25 = vsel %vm2785_vm5, 1, %v14825_v3 }
 0x33d   :  { %2848 = vperm.xlu0 %9018, %v2805_v57   ;;  %v10850_v57 = vld [vmem:[%s14384_s0 + $0x88] sm:$0xff]  ;;  %vm2738_vm15 = vcmp.ge.f32.partialorder %v2714_v36, 0.0  ;;  %vm2762_vm9 = vcmp.le.f32.partialorder %v2714_v36, 18.0  ;;  %vm2787_vm6 = vmand %vm2739_vm0, %vm2763_vm3 }
 0x33e   :  { %2845 = vperm.xlu1 %9019, %v2804_v59   ;;  %v2717_v39 = vadd.f32 2.0, %v10850_v57  ;;  %v10857_v59 = vld [vmem:[%s14384_s0 + $0x80] sm:$0xff]  ;;  %vm2786_vm2 = vmand %vm2738_vm15, %vm2762_vm9  ;;  %v2811_v4 = vsel %vm2787_vm6, 1, %v14825_v3  ;;  %v2428_v61 = vadd.f32 -2.0, %v10850_v57 }
 0x33f   :  { %v2716_v16 = vadd.f32 2.0, %v10857_v59 }
 0x340   :  { %vm2741_vm11 = vcmp.ge.f32.partialorder %v2717_v39, 0.0  ;;  %vm2765_vm12 = vcmp.le.f32.partialorder %v2717_v39, 18.0  ;;  %v2810_v39 = vsel %vm2786_vm2, 1, %v14825_v3  ;;  %vm2744_vm2 = vcmp.ge.f32.partialorder %v2720_v34, 0.0 }
 0x341   :  { %2854 = vperm.xlu0 %9018, %v2807_v12   ;;  %v10865_v12 = vld [vmem:[%s14384_s0 + $0x98] sm:$0xff]  ;;  %vm2740_vm4 = vcmp.ge.f32.partialorder %v2716_v16, 0.0  ;;  %vm2764_vm14 = vcmp.le.f32.partialorder %v2716_v16, 18.0  ;;  %vm2789_vm5 = vmand %vm2741_vm11, %vm2765_vm12  ;;  %v10884_v16 = vld [vmem:[%s14384_s0 + $0xa8] sm:$0xff] }
 0x342   :  { %2851 = vperm.xlu1 %9019, %v2806_v46   ;;  %v2719_v51 = vadd.f32 2.0, %v10865_v12  ;;  %v10872_v46 = vld [vmem:[%s14384_s0 + $0x90] sm:$0xff]  ;;  %vm10877_vm0 = vmand %vm2740_vm4, %vm2764_vm14  ;;  %v2721_v47 = vadd.f32 2.0, %v10884_v16  ;;  %v2813_v58 = vsel %vm2789_vm5, 1, %v14825_v3  ;;  %vm2768_vm4 = vcmp.le.f32.partialorder %v2720_v34, 18.0  ;;  %v9121_v34 = vpop.eup %9120 }
 0x343   :  { %v2718_v36 = vadd.f32 2.0, %v10872_v46  ;;  %v2812_v24 = vsel %vm10877_vm0, 1, %v14825_v3  ;;  %vm10916_vm0 = vmand %vm2744_vm2, %vm2768_vm4  ;;  %v2430_v29 = vadd.f32 -2.0, %v10865_v12  ;;  %v2432_v12 = vadd.f32 -2.0, %v10884_v16 }
 0x344   :  { %vm2743_vm3 = vcmp.ge.f32.partialorder %v2719_v51, 0.0  ;;  %vm2767_vm8 = vcmp.le.f32.partialorder %v2719_v51, 18.0  ;;  %vm2745_vm6 = vcmp.ge.f32.partialorder %v2721_v47, 0.0  ;;  %vm2769_vm11 = vcmp.le.f32.partialorder %v2721_v47, 18.0  ;;  %v10912_v47 = vld [vmem:[%s14384_s0 + $0xb0] sm:$0xff] }
 0x345   :  { %2860 = vperm.xlu0 %9018, %v2809_v25   ;;  %vm2742_vm14 = vcmp.ge.f32.partialorder %v2718_v36, 0.0  ;;  %vm2766_vm15 = vcmp.le.f32.partialorder %v2718_v36, 18.0  ;;  %vm2791_vm9 = vmand %vm2743_vm3, %vm2767_vm8  ;;  %v2723_v36 = vadd.f32 2.0, %v10903_v63  ;;  %9152 = vtanh.f32 %v10710_v2 }
 0x346   :  { %2857 = vperm.xlu1 %9019, %v2808_v14   ;;  %vm2790_vm12 = vmand %vm2742_vm14, %vm2766_vm15 }
 0x347   :  { %vm2793_vm5 = vmand %vm2745_vm6, %vm2769_vm11  ;;  %vm2747_vm3 = vcmp.ge.f32.partialorder %v2723_v36, 0.0  ;;  %vm2771_vm8 = vcmp.le.f32.partialorder %v2723_v36, 18.0 }
 0x349   :  { %v1960_v14 = vpop.permute.xlu0 %1959  ;;  %2866 = vperm.xlu0 %9018, %v2811_v4  }
 0x34a   :  { %v1958_v17 = vpop.permute.xlu1 %1957  ;;  %2863 = vperm.xlu1 %9019, %v2810_v39   ;;  %v2030_v4 = vmul.f32 %v9119_v19, %v1960_v14  ;;  %v2722_v19 = vadd.f32 2.0, %v10912_v47  ;;  %v2411_v39 = vadd.f32 -2.0, %v10743_v22  ;;  %v2817_v14 = vsel %vm2793_vm5, 1, %v14825_v3 }
 0x34b   :  { %v2029_v60 = vmul.f32 %v9117_v30, %v1958_v17  ;;  %v2815_v17 = vsel %vm2791_vm9, 1, %v14825_v3  ;;  %v2412_v30 = vadd.f32 -2.0, %v10736_v45  ;;  %v2816_v45 = vsel %vm10916_vm0, 1, %v14825_v3  ;;  %vm2795_vm9 = vmand %vm2747_vm3, %vm2771_vm8 }
 0x34c   :  { %vm2746_vm14 = vcmp.ge.f32.partialorder %v2722_v19, 0.0  ;;  %vm2770_vm15 = vcmp.le.f32.partialorder %v2722_v19, 18.0  ;;  %vm2435_vm2 = vcmp.ge.f32.partialorder %v2411_v39, 0.0  ;;  %vm2459_vm4 = vcmp.le.f32.partialorder %v2411_v39, 18.0 }
 0x34d   :  { %2872 = vperm.xlu0 %9018, %v2813_v58   ;;  %8667 = vmatprep.mubr.msk.f32.mxu1 %vm1361_vm7, %v2029_v60  ;;  %v2814_v58 = vsel %vm2790_vm12, 1, %v14825_v3  ;;  %vm2436_vm6 = vcmp.ge.f32.partialorder %v2412_v30, 0.0  ;;  %vm2460_vm11 = vcmp.le.f32.partialorder %v2412_v30, 18.0  ;;  %vm2794_vm12 = vmand %vm2746_vm14, %vm2770_vm15  ;;  %v2819_v22 = vsel %vm2795_vm9, 1, %v14825_v3 }
 0x34e   :  { %8668 = vmatmul.mubr.msk.f32.vlgmr.msra.gmra.mrb[36].mxu1 %vm1361_vm7, %v2030_v4  ;;  %2869 = vperm.xlu1 %9019, %v2812_v24   ;;  %v9123_v24 = vpop.eup %9122  ;;  %vm2484_vm5 = vmand %vm2436_vm6, %vm2460_vm11  ;;  %v2818_v36 = vsel %vm2794_vm12, 1, %v14825_v3  ;;  %vm2438_vm3 = vcmp.ge.f32.partialorder %v2414_v18, 0.0  ;;  %vm2462_vm8 = vcmp.le.f32.partialorder %v2414_v18, 18.0  ;;  %v2415_v19 = vadd.f32 -2.0, %v10771_v33 }
 0x34f   :  { %vm2483_vm0 = vmand %vm2435_vm2, %vm2459_vm4  ;;  %v2508_v60 = vsel %vm2484_vm5, 1, %v14825_v3  ;;  %vm2440_vm6 = vcmp.ge.f32.partialorder %v2416_v43, 0.0  ;;  %vm2464_vm11 = vcmp.le.f32.partialorder %v2416_v43, 18.0  ;;  %v2417_v39 = vadd.f32 -2.0, %v10786_v15 }
 0x350   :  { %vm2486_vm9 = vmand %vm2438_vm3, %vm2462_vm8  ;;  %vm2439_vm2 = vcmp.ge.f32.partialorder %v2415_v19, 0.0  ;;  %vm2463_vm4 = vcmp.le.f32.partialorder %v2415_v19, 18.0  ;;  %vm2442_vm3 = vcmp.ge.f32.partialorder %v2418_v62, 0.0  ;;  %vm2466_vm8 = vcmp.le.f32.partialorder %v2418_v62, 18.0 }
 0x351   :  { %v1964_v51 = vpop.permute.xlu0 %1963  ;;  %2878 = vperm.xlu0 %9018, %v2815_v17   ;;  %v2413_v17 = vadd.f32 -2.0, %v10756_v5  ;;  %v9125_v5 = vpop.eup %9124  ;;  %v2510_v20 = vsel %vm2486_vm9, 1, %v14825_v3  ;;  %vm2488_vm5 = vmand %vm2440_vm6, %vm2464_vm11  ;;  %vm2444_vm6 = vcmp.ge.f32.partialorder %v2420_v26, 0.0  ;;  %vm2468_vm11 = vcmp.le.f32.partialorder %v2420_v26, 18.0 }
 0x352   :  { %v1962_v25 = vpop.permute.xlu1 %1961  ;;  %2875 = vperm.xlu1 %9019, %v2814_v58   ;;  %v2032_v49 = vmul.f32 %v9123_v24, %v1964_v51  ;;  %v9127_v32 = vpop.eup %9126  ;;  %v2512_v15 = vsel %vm2488_vm5, 1, %v14825_v3  ;;  %vm2490_vm9 = vmand %vm2442_vm3, %vm2466_vm8  ;;  %vm2446_vm3 = vcmp.ge.f32.partialorder %v2422_v56, 0.0  ;;  %vm2470_vm8 = vcmp.le.f32.partialorder %v2422_v56, 18.0 }
 0x353   :  { %v2031_v4 = vmul.f32 %v9121_v34, %v1962_v25  ;;  %vm2437_vm14 = vcmp.ge.f32.partialorder %v2413_v17, 0.0  ;;  %vm2461_vm15 = vcmp.le.f32.partialorder %v2413_v17, 18.0  ;;  %v2507_v34 = vsel %vm2483_vm0, 1, %v14825_v3  ;;  %vm2487_vm0 = vmand %vm2439_vm2, %vm2463_vm4 }
 0x354   :  { %vm2485_vm12 = vmand %vm2437_vm14, %vm2461_vm15  ;;  %vm2441_vm14 = vcmp.ge.f32.partialorder %v2417_v39, 0.0  ;;  %vm2465_vm15 = vcmp.le.f32.partialorder %v2417_v39, 18.0  ;;  %v2514_v11 = vsel %vm2490_vm9, 1, %v14825_v3  ;;  %9154 = vtanh.f32 %v10708_v9 }
 0x355   :  { %2884 = vperm.xlu0 %9018, %v2817_v14   ;;  %8670 = vmatprep.mubr.msk.f32.mxu1 %vm1361_vm7, %v2031_v4  ;;  %v2509_v25 = vsel %vm2485_vm12, 1, %v14825_v3  ;;  %v2419_v14 = vadd.f32 -2.0, %v10800_v7  ;;  %v9129_v4 = vpop.eup %9128  ;;  %vm2489_vm12 = vmand %vm2441_vm14, %vm2465_vm15  ;;  %9156 = vtanh.f32 %v10717_v50 }
 0x356   :  { %8671 = vmatmul.mubr.msk.f32.gmra.mrb[38].mxu1 %vm1361_vm7, %v2032_v49  ;;  %2881 = vperm.xlu1 %9019, %v2816_v45   ;;  %v2511_v49 = vsel %vm2487_vm0, 1, %v14825_v3  ;;  %v9131_v13 = vpop.eup %9130  ;;  %vm2492_vm5 = vmand %vm2444_vm6, %vm2468_vm11  ;;  %v2513_v17 = vsel %vm2489_vm12, 1, %v14825_v3  ;;  %vm2448_vm6 = vcmp.ge.f32.partialorder %v2424_v35, 0.0  ;;  %vm2472_vm11 = vcmp.le.f32.partialorder %v2424_v35, 18.0 }
 0x357   :  { %vm2443_vm2 = vcmp.ge.f32.partialorder %v2419_v14, 0.0  ;;  %vm2467_vm4 = vcmp.le.f32.partialorder %v2419_v14, 18.0  ;;  %v9133_v19 = vpop.eup %9132  ;;  %vm2494_vm9 = vmand %vm2446_vm3, %vm2470_vm8  ;;  %vm2450_vm3 = vcmp.ge.f32.partialorder %v2426_v41, 0.0  ;;  %vm2474_vm8 = vcmp.le.f32.partialorder %v2426_v41, 18.0 }
 0x358   :  { %vm2491_vm0 = vmand %vm2443_vm2, %vm2467_vm4  ;;  %v9135_v21 = vpop.eup %9134  ;;  %v2518_v0 = vsel %vm2494_vm9, 1, %v14825_v3  ;;  %9158 = vtanh.f32 %v10714_v23 }
 0x359   :  { %2890 = vperm.xlu0 %9018, %v2819_v22   ;;  %v1968_v58 = vpop.permute.xlu0 %1967  ;;  %v2421_v22 = vadd.f32 -2.0, %v10814_v38  ;;  %v2516_v38 = vsel %vm2492_vm5, 1, %v14825_v3  ;;  %vm2496_vm5 = vmand %vm2448_vm6, %vm2472_vm11  ;;  %v9137_v62 = vpop.eup %9136  ;;  %vm2452_vm6 = vcmp.ge.f32.partialorder %v2428_v61, 0.0  ;;  %vm2476_vm11 = vcmp.le.f32.partialorder %v2428_v61, 18.0 }
 0x35a   :  { %2887 = vperm.xlu1 %9019, %v2818_v36   ;;  %v1966_v30 = vpop.permute.xlu1 %1965  ;;  %v2034_v33 = vmul.f32 %v9127_v32, %v1968_v58  ;;  %v2423_v36 = vadd.f32 -2.0, %v10828_v1  ;;  %v2427_v32 = vadd.f32 -2.0, %v10857_v59  ;;  %vm2498_vm9 = vmand %vm2450_vm3, %vm2474_vm8  ;;  %v9139_v57 = vpop.eup %9138  ;;  %vm2454_vm3 = vcmp.ge.f32.partialorder %v2430_v29, 0.0 }
 0x35b   :  { %v2033_v51 = vmul.f32 %v9125_v5, %v1966_v30  ;;  %vm2445_vm14 = vcmp.ge.f32.partialorder %v2421_v22, 0.0  ;;  %vm2469_vm15 = vcmp.le.f32.partialorder %v2421_v22, 18.0  ;;  %v2425_v30 = vadd.f32 -2.0, %v10842_v55 }
 0x35c   :  { %vm2493_vm12 = vmand %vm2445_vm14, %vm2469_vm15  ;;  %vm2447_vm2 = vcmp.ge.f32.partialorder %v2423_v36, 0.0  ;;  %vm2471_vm4 = vcmp.le.f32.partialorder %v2423_v36, 18.0  ;;  %v2520_v55 = vsel %vm2496_vm5, 1, %v14825_v3  ;;  %v2522_v10 = vsel %vm2498_vm9, 1, %v14825_v3 }
 0x35d   :  { %2535 = vperm.xlu0 %9018, %v2508_v60   ;;  %8673 = vmatprep.mubr.msk.f32.mxu1 %vm1361_vm7, %v2033_v51  ;;  %v2515_v60 = vsel %vm2491_vm0, 1, %v14825_v3  ;;  %vm2495_vm0 = vmand %vm2447_vm2, %vm2471_vm4  ;;  %vm2449_vm14 = vcmp.ge.f32.partialorder %v2425_v30, 0.0  ;;  %vm2473_vm15 = vcmp.le.f32.partialorder %v2425_v30, 18.0  ;;  %vm2451_vm2 = vcmp.ge.f32.partialorder %v2427_v32, 0.0 }
 0x35e   :  { %2532 = vperm.xlu1 %9019, %v2507_v34   ;;  %8674 = vmatmul.mubr.msk.f32.gmra.mrb[40].mxu1 %vm1361_vm7, %v2034_v33  ;;  %v2517_v34 = vsel %vm2493_vm12, 1, %v14825_v3  ;;  %vm2497_vm12 = vmand %vm2449_vm14, %vm2473_vm15  ;;  %vm2475_vm4 = vcmp.le.f32.partialorder %v2427_v32, 18.0  ;;  %vm2478_vm8 = vcmp.le.f32.partialorder %v2430_v29, 18.0  ;;  %9160 = vtanh.f32 %v10724_v8 }
 0x35f   :  { %vm2500_vm5 = vmand %vm2452_vm6, %vm2476_vm11  ;;  %v2521_v26 = vsel %vm2497_vm12, 1, %v14825_v3  ;;  %vm2456_vm6 = vcmp.ge.f32.partialorder %v2432_v12, 0.0  ;;  %vm2480_vm11 = vcmp.le.f32.partialorder %v2432_v12, 18.0  ;;  %9162 = vtanh.f32 %v10722_v53 }
 0x360   :  { %vm2502_vm9 = vmand %vm2454_vm3, %vm2478_vm8  ;;  %vm2482_vm3 = vcmp.le.f32.partialorder %v2434_v28, 18.0 }
 0x361   :  { %2541 = vperm.xlu0 %9018, %v2510_v20   ;;  %v1972_v24 = vpop.permute.xlu0 %1971  ;;  %v2519_v20 = vsel %vm2495_vm0, 1, %v14825_v3  ;;  %vm2499_vm0 = vmand %vm2451_vm2, %vm2475_vm4  ;;  %v2526_v44 = vsel %vm2502_vm9, 1, %v14825_v3  ;;  %vm2455_vm2 = vcmp.ge.f32.partialorder %v2431_v27, 0.0  ;;  %vm2479_vm4 = vcmp.le.f32.partialorder %v2431_v27, 18.0 }
 0x362   :  { %2538 = vperm.xlu1 %9019, %v2509_v25   ;;  %v1970_v45 = vpop.permute.xlu1 %1969  ;;  %v2036_v7 = vmul.f32 %v9131_v13, %v1972_v24  ;;  %v2429_v25 = vadd.f32 -2.0, %v10872_v46  ;;  %v2524_v24 = vsel %vm2500_vm5, 1, %v14825_v3  ;;  %v9141_v46 = vpop.eup %9140  ;;  %v2433_v13 = vadd.f32 -2.0, %v10912_v47  ;;  %vm2504_vm5 = vmand %vm2456_vm6, %vm2480_vm11 }
 0x363   :  { %v2035_v18 = vmul.f32 %v9129_v4, %v1970_v45  ;;  %v2523_v4 = vsel %vm2499_vm0, 1, %v14825_v3  ;;  %v9143_v45 = vpop.eup %9142  ;;  %vm2458_vm0 = vcmp.ge.f32.partialorder %v2434_v28, 0.0  ;;  %vm2503_vm8 = vmand %vm2455_vm2, %vm2479_vm4  ;;  %vm2675_vm11 = vcmp.lt.s32.totalorder %v9977_v37, 6 }
 0x364   :  { %vm2453_vm14 = vcmp.ge.f32.partialorder %v2429_v25, 0.0  ;;  %vm2477_vm15 = vcmp.le.f32.partialorder %v2429_v25, 18.0  ;;  %v9145_v63 = vpop.eup %9144  ;;  %vm2506_vm9 = vmand %vm2458_vm0, %vm2482_vm3 }
 0x365   :  { %2547 = vperm.xlu0 %9018, %v2512_v15   ;;  %8676 = vmatprep.mubr.msk.f32.mxu1 %vm1361_vm7, %v2035_v18  ;;  %vm2501_vm12 = vmand %vm2453_vm14, %vm2477_vm15  ;;  %vm2457_vm14 = vcmp.ge.f32.partialorder %v2433_v13, 0.0  ;;  %vm2481_vm15 = vcmp.le.f32.partialorder %v2433_v13, 18.0  ;;  %v9147_v47 = vpop.eup %9146  ;;  %v2530_v31 = vsel %vm2506_vm9, 1, %v14825_v3 }
 0x366   :  { %2544 = vperm.xlu1 %9019, %v2511_v49   ;;  %8677 = vmatmul.mubr.msk.f32.gmra.mrb[42].mxu1 %vm1361_vm7, %v2036_v7  ;;  %v2525_v18 = vsel %vm2501_vm12, 1, %v14825_v3  ;;  %v2528_v7 = vsel %vm2504_vm5, 1, %v14825_v3  ;;  %vm2505_vm6 = vmand %vm2457_vm14, %vm2481_vm15 }
 0x367   :  { %v2529_v54 = vsel %vm2505_vm6, 1, %v14825_v3 }
 0x369   :  { %2553 = vperm.xlu0 %9018, %v2514_v11   ;;  %v1976_v43 = vpop.permute.xlu0 %1975 }
 0x36a   :  { %2550 = vperm.xlu1 %9019, %v2513_v17   ;;  %v1974_v58 = vpop.permute.xlu1 %1973  ;;  %v2038_v1 = vmul.f32 %v9135_v21, %v1976_v43  ;;  %v2527_v17 = vsel %vm2503_vm8, 1, %v14825_v3  ;;  %v9149_v43 = vpop.eup %9148 }
 0x36b   :  { %v2037_v5 = vmul.f32 %v9133_v19, %v1974_v58  ;;  %v9151_v19 = vpop.eup %9150 }
 0x36c   :  { %v9153_v2 = vpop.eup %9152 }
 0x36d   :  { %2559 = vperm.xlu0 %9018, %v2516_v38   ;;  %8679 = vmatprep.mubr.msk.f32.mxu1 %vm1361_vm7, %v2037_v5  ;;  %v9155_v5 = vpop.eup %9154 }
 0x36e   :  { %2556 = vperm.xlu1 %9019, %v2515_v60   ;;  %8680 = vmatmul.mubr.msk.f32.gmra.mrb[44].mxu1 %vm1361_vm7, %v2038_v1  ;;  %v9157_v50 = vpop.eup %9156 }
 0x371   :  { %2565 = vperm.xlu0 %9018, %v2518_v0   ;;  %v1980_v51 = vpop.permute.xlu0 %1979 }
 0x372   :  { %2562 = vperm.xlu1 %9019, %v2517_v34   ;;  %v1978_v33 = vpop.permute.xlu1 %1977  ;;  %v2040_v59 = vmul.f32 %v9139_v57, %v1980_v51  ;;  %v9159_v34 = vpop.eup %9158 }
 0x373   :  { %v2039_v39 = vmul.f32 %v9137_v62, %v1978_v33  ;;  %v9161_v8 = vpop.eup %9160  ;;  %v2358_v33 = vld [vmem:[%s14385_s1 + $0x20] sm:$0xff] }
 0x374   :  { %v9163_v53 = vpop.eup %9162 }
 0x375   :  { %2571 = vperm.xlu0 %9018, %v2520_v55   ;;  %8682 = vmatprep.mubr.msk.f32.mxu1 %vm1361_vm7, %v2039_v39 }
 0x376   :  { %2568 = vperm.xlu1 %9019, %v2519_v20   ;;  %8683 = vmatmul.mubr.msk.f32.gmra.mrb[46].mxu1 %vm1361_vm7, %v2040_v59  ;;  %v2359_v20 = vld [vmem:[%s14385_s1 + $0x28] sm:$0xff] }
 0x377   :  { %v8989_v57 = vpack.c.bf16 %v2359_v20, %v2358_v33  ;;  %v14845_v20 = vld [vmem:[#allocation44_spill] sm:$0xff] }
 0x379   :  { %2577 = vperm.xlu0 %9018, %v2522_v10   ;;  %v1984_v14 = vpop.permute.xlu0 %1983  ;;  %8990 = vmatprep.subr.bf16.mxu0 %v8989_v57 }
 0x37a   :  { %2574 = vperm.xlu1 %9019, %v2521_v26   ;;  %v1982_v15 = vpop.permute.xlu1 %1981  ;;  %v2042_v16 = vmul.f32 %v9143_v45, %v1984_v14  ;;  %8992 = vmatpush3.bf16.msra.mxu0 %v8989_v57  ;;  %v2360_v26 = vld [vmem:[%s14385_s1 + $0x30] sm:$0xff] }
 0x37b   :  { %v2041_v49 = vmul.f32 %v9141_v46, %v1982_v15  ;;  %8707 = vmatprep.subr.mxu0 %v2360_v26 }
 0x37d   :  { %2583 = vperm.xlu0 %9018, %v2524_v24   ;;  %8685 = vmatprep.mubr.msk.f32.mxu1 %vm1361_vm7, %v2041_v49 }
 0x37e   :  { %2580 = vperm.xlu1 %9019, %v2523_v4   ;;  %8686 = vmatmul.mubr.msk.f32.gmra.mrb[48].mxu1 %vm1361_vm7, %v2042_v16 }
 0x37f   :  { %8708 = vmatpush3.msra.mxu0 %v2360_v26 }
 0x381   :  { %2589 = vperm.xlu0 %9018, %v2526_v44   ;;  %v1988_v56 = vpop.permute.xlu0 %1987 }
 0x382   :  { %2586 = vperm.xlu1 %9019, %v2525_v18   ;;  %v1986_v11 = vpop.permute.xlu1 %1985  ;;  %v2044_v35 = vmul.f32 %v9145_v63, %v1988_v56 }
 0x383   :  { %v2043_v22 = vmul.f32 %v9147_v47, %v1986_v11 }
 0x385   :  { %2595 = vperm.xlu0 %9018, %v2528_v7   ;;  %8688 = vmatprep.mubr.msk.f32.mxu1 %vm1361_vm7, %v2043_v22 }
 0x386   :  { %2592 = vperm.xlu1 %9019, %v2527_v17   ;;  %8689 = vmatmul.mubr.msk.f32.gmra.mrb[50].mxu1 %vm1361_vm7, %v2044_v35 }
 0x389   :  { %2601 = vperm.xlu0 %9018, %v2530_v31   ;;  %v1992_v36 = vpop.permute.xlu0 %1991 }
 0x38a   :  { %2598 = vperm.xlu1 %9019, %v2529_v54   ;;  %v1990_v38 = vpop.permute.xlu1 %1989  ;;  %v2046_v60 = vmul.f32 %v9151_v19, %v1992_v36  ;;  %v14839_v36 = vld [vmem:[#allocation36_spill] sm:$0xff] }
 0x38b   :  { %v2045_v58 = vmul.f32 %v9149_v43, %v1990_v38 }
 0x38d   :  { %8691 = vmatprep.mubr.msk.f32.mxu1 %vm1361_vm7, %v2045_v58 }
 0x38e   :  { %8692 = vmatmul.mubr.msk.f32.gmra.mrb[52].mxu1 %vm1361_vm7, %v2046_v60 }
 0x391   :  { %v1996_v21 = vpop.permute.xlu0 %1995 }
 0x392   :  { %v1994_v9 = vpop.permute.xlu1 %1993  ;;  %v2048_v1 = vmul.f32 %v9155_v5, %v1996_v21 }
 0x393   :  { %v2047_v41 = vmul.f32 %v9153_v2, %v1994_v9 }
 0x395   :  { %8694 = vmatprep.mubr.msk.f32.mxu1 %vm1361_vm7, %v2047_v41  ;;  %v2000_v0 = vpop.permute.xlu0 %1999 }
 0x396   :  { %8695 = vmatmul.mubr.msk.f32.gmra.mrb[54].mxu1 %vm1361_vm7, %v2048_v1  ;;  %v2050_v23 = vmul.f32 %v9159_v34, %v2000_v0  ;;  %v14841_v1 = vld [vmem:[#allocation39_spill] sm:$0xff] }
 0x398   :  { %v1998_v30 = vpop.permute.xlu1 %1997 }
 0x399   :  { %v2049_v61 = vmul.f32 %v9157_v50, %v1998_v30  ;;  %v14843_v30 = vld [vmem:[#allocation41_spill] sm:$0xff] }
 0x39b   :  { %8697 = vmatprep.mubr.msk.f32.mxu1 %vm1361_vm7, %v2049_v61  ;;  %v2004_v32 = vpop.permute.xlu0 %2003 }
 0x39c   :  { %8698 = vmatmul.mubr.msk.f32.gmra.mrb[56].mxu1 %vm1361_vm7, %v2050_v23  ;;  %v2002_v51 = vpop.permute.xlu1 %2001  ;;  %v2052_v62 = vmul.f32 %v9163_v53, %v2004_v32 }
 0x39d   :  { %v2051_v55 = vmul.f32 %v9161_v8, %v2002_v51 }
 0x39f   :  { %8700 = vmatprep.mubr.msk.f32.mxu1 %vm1361_vm7, %v2051_v55 }
 0x3a0   :  { %8701 = vmatmul.mubr.msk.f32.gmra.mrb[58].mxu1 %vm1361_vm7, %v2052_v62 }
 0x3ac   :  { %v2825_v59 = vpop.permute.xlu0 %2824 }
 0x3ad   :  { %v2822_v39 = vpop.permute.xlu1 %2821  ;;  %vm2893_vm4 = vcmp.eq.s32.totalorder %v2825_v59, 1 }
 0x3ae   :  { %vm2892_vm12 = vcmp.eq.s32.totalorder %v2822_v39, 1 }
 0x3b0   :  { %v11029_v25 = vpop.permute.xlu0 %2830 }
 0x3b1   :  { %v2828_v29 = vpop.permute.xlu1 %2827  ;;  %vm2895_vm0 = vcmp.eq.s32.totalorder %v11029_v25, 1 }
 0x3b2   :  { %vm2894_vm2 = vcmp.eq.s32.totalorder %v2828_v29, 1  ;;  %v14848_v29 = vld [vmem:[#allocation47_spill] sm:$0xff] }
 0x3b4   :  { %v11036_v14 = vpop.permute.xlu0 %2836 }
 0x3b5   :  { %v2834_v10 = vpop.permute.xlu1 %2833  ;;  %vm2897_vm8 = vcmp.eq.s32.totalorder %v11036_v14, 1 }
 0x3b6   :  { %vm2896_vm5 = vcmp.eq.s32.totalorder %v2834_v10, 1 }
 0x3b8   :  { %v11048_v4 = vpop.permute.xlu0 %2842 }
 0x3b9   :  { %v11034_v12 = vpop.permute.xlu1 %2839  ;;  %vm2899_vm15 = vcmp.eq.s32.totalorder %v11048_v4, 1 }
 0x3ba   :  { %vm2898_vm3 = vcmp.eq.s32.totalorder %v11034_v12, 1 }
 0x3bc   :  { %v11067_v44 = vpop.permute.xlu0 %2848 }
 0x3bd   :  { %v11038_v24 = vpop.permute.xlu1 %2845  ;;  %vm2901_vm6 = vcmp.eq.s32.totalorder %v11067_v44, 1 }
 0x3be   :  { %vm2900_vm14 = vcmp.eq.s32.totalorder %v11038_v24, 1  ;;  %v14854_v24 = vld [vmem:[#allocation50_spill] sm:$0xff] }
 0x3c1   :  { %v11061_v28 = vpop.permute.xlu1 %2851 }
 0x3c2   :  { %vm2902_vm9 = vcmp.eq.s32.totalorder %v11061_v28, 1 }
 0x3c5   :  { %v11085_v47 = vpop.permute.xlu1 %2857 }
 0x3c9   :  { %v11097_v35 = vpop.permute.xlu1 %2863 }
 0x3cd   :  { %v11121_v2 = vpop.permute.xlu1 %2869 }
 0x3d1   :  { %v11148_v8 = vpop.permute.xlu1 %2875 }
 0x3d5   :  { %v11169_v10 = vpop.permute.xlu1 %2881 }
 0x421   :  { %v11040_v27 = vpop.f32.mrb[36].mxu1 }
 0x422   :  { %14830 = vst [vmem:[#allocation33_spill] sm:$0xff] %v11040_v27  ;;  %v11044_v46 = vadd.f32 %v11040_v27, %v9982_v40  ;;  %v11046_v15 = vpop.f32.mrb[37].mxu1 }
 0x423   :  { %14832 = vst [vmem:[#allocation96_spill] sm:$0xff] %v11046_v15  ;;  %v11052_v45 = vadd.f32 %v11046_v15, %v9987_v42  ;;  %v14909_v15 = vld [vmem:[#allocation7_spill] sm:$0xff] }
 0x424   :  { %14831 = vst [vmem:[#allocation95_spill] sm:$0xff] %v11044_v46  ;;  %2966 = vrot.lane.b32.xlu0 %v11044_v46, %s9551_s12  ;;  %v2652_v49 = vrot.slane %v11044_v46, 2 }
 0x425   :  { %14833 = vst [vmem:[#allocation97_spill] sm:$0xff] %v11052_v45  ;;  %2964 = vrot.lane.b32.xlu1 %v11052_v45, %s9551_s12  ;;  %v14616_v40 = vrot.slane %v11052_v45, 2 }
 0x427   :  { %v2698_v42 = vsel %vm2675_vm11, %v14616_v40, %v2652_v49 }
 0x428   :  { %v2916_v16 = vsel %vm2892_vm12, %v2698_v42, 0.0  ;;  %vm2904_vm12 = vcmp.eq.s32.totalorder %v11085_v47, 1  ;;  %v14866_v47 = vld [vmem:[#allocation58_spill] sm:$0xff] }
 0x429   :  { %3060 = vrot.lane.b32.xlu1 %v2916_v16, %s9552_s14  ;;  %v11070_v13 = vpop.f32.mrb[38].mxu1 }
 0x42a   :  { %14834 = vst [vmem:[#allocation98_spill] sm:$0xff] %v11070_v13  ;;  %v11074_v18 = vadd.f32 %v11070_v13, %v10002_v48  ;;  %v11076_v63 = vpop.f32.mrb[39].mxu1  ;;  %v11090_v48 = vpop.permute.xlu0 %2854 }
 0x42b   :  { %14835 = vst [vmem:[#allocation99_spill] sm:$0xff] %v11076_v63  ;;  %v11080_v56 = vadd.f32 %v11076_v63, %v10009_v52  ;;  %v14903_v63 = vld [vmem:[#allocation40_spill] sm:$0xff] }
 0x42c   :  { %2970 = vrot.lane.b32.xlu0 %v11074_v18, %s9551_s12  ;;  %v2654_v7 = vrot.slane %v11074_v18, 2 }
 0x42d   :  { %14836 = vst [vmem:[#allocation100_spill] sm:$0xff] %v11080_v56  ;;  %2968 = vrot.lane.b32.xlu1 %v11080_v56, %s9551_s12  ;;  %v2653_v11 = vrot.slane %v11080_v56, 2 }
 0x42e   :  { %v11109_v38 = vpop.permute.xlu0 %2860 }
 0x42f   :  { %v2696_v22 = vsel %vm2675_vm11, %v2653_v11, %v2654_v7  ;;  %v2697_v19 = vsel %vm2675_vm11, %v2652_v49, %v2653_v11 }
 0x430   :  { %v2918_v52 = vsel %vm2894_vm2, %v2696_v22, 0.0  ;;  %v2917_v60 = vsel %vm2893_vm4, %v2697_v19, 0.0  ;;  %v11189_v22 = vpop.permute.xlu1 %2887  ;;  %vm2903_vm2 = vcmp.eq.s32.totalorder %v11090_v48, 1  ;;  %vm2906_vm4 = vcmp.eq.s32.totalorder %v11097_v35, 1  ;;  %v14872_v35 = vld [vmem:[#allocation60_spill] sm:$0xff] }
 0x431   :  { %3064 = vrot.lane.b32.xlu1 %v2918_v52, %s9552_s14  ;;  %v11095_v17 = vpop.f32.mrb[40].mxu1  ;;  %v14851_v52 = vld [vmem:[#allocation49_spill] sm:$0xff] }
 0x432   :  { %14837 = vst [vmem:[#allocation101_spill] sm:$0xff] %v11095_v17  ;;  %v11101_v31 = vadd.f32 %v11095_v17, %v14812_v6  ;;  %v11103_v54 = vpop.f32.mrb[41].mxu1  ;;  %v11127_v41 = vpop.permute.xlu0 %2866 }
 0x433   :  { %14838 = vst [vmem:[#allocation102_spill] sm:$0xff] %v11103_v54  ;;  %v11107_v43 = vadd.f32 %v11103_v54, %v14839_v36 }
 0x434   :  { %2974 = vrot.lane.b32.xlu0 %v11101_v31, %s9551_s12  ;;  %v2656_v58 = vrot.slane %v11101_v31, 2 }
 0x435   :  { %2972 = vrot.lane.b32.xlu1 %v11107_v43, %s9551_s12  ;;  %v2655_v6 = vrot.slane %v11107_v43, 2 }
 0x436   :  { %v11153_v55 = vpop.permute.xlu0 %2872 }
 0x437   :  { %v2694_v21 = vsel %vm2675_vm11, %v2655_v6, %v2656_v58  ;;  %v2695_v61 = vsel %vm2675_vm11, %v2654_v7, %v2655_v6 }
 0x438   :  { %3062 = vrot.lane.b32.xlu0 %v2917_v60, %s9552_s14  ;;  %v2920_v9 = vsel %vm2896_vm5, %v2694_v21, 0.0  ;;  %v2919_v51 = vsel %vm2895_vm0, %v2695_v61, 0.0  ;;  %vm2905_vm5 = vcmp.eq.s32.totalorder %v11109_v38, 1  ;;  %vm2908_vm0 = vcmp.eq.s32.totalorder %v11121_v2, 1 }
 0x439   :  { %3068 = vrot.lane.b32.xlu1 %v2920_v9, %s9552_s14  ;;  %v11125_v5 = vpop.f32.mrb[42].mxu1 }
 0x43a   :  { %14840 = vst [vmem:[#allocation36_spill] sm:$0xff] %v11125_v5  ;;  %v11131_v0 = vadd.f32 %v11125_v5, %v14841_v1  ;;  %v11133_v50 = vpop.f32.mrb[43].mxu1  ;;  %v11180_v49 = vpop.permute.xlu0 %2878 }
 0x43b   :  { %14842 = vst [vmem:[#allocation39_spill] sm:$0xff] %v11133_v50  ;;  %v11137_v34 = vadd.f32 %v11133_v50, %v14843_v30  ;;  %v11215_v30 = vpop.permute.xlu1 %2532 }
 0x43c   :  { %2978 = vrot.lane.b32.xlu0 %v11131_v0, %s9551_s12  ;;  %v2658_v23 = vrot.slane %v11131_v0, 2 }
 0x43d   :  { %2976 = vrot.lane.b32.xlu1 %v11137_v34, %s9551_s12  ;;  %v2657_v32 = vrot.slane %v11137_v34, 2 }
 0x43f   :  { %v2692_v53 = vsel %vm2675_vm11, %v2657_v32, %v2658_v23  ;;  %v2693_v25 = vsel %vm2675_vm11, %v2656_v58, %v2657_v32  ;;  %v11201_v58 = vpop.permute.xlu0 %2884 }
 0x440   :  { %3066 = vrot.lane.b32.xlu0 %v2919_v51, %s9552_s14  ;;  %v2922_v62 = vsel %vm2898_vm3, %v2692_v53, 0.0  ;;  %v2921_v42 = vsel %vm2897_vm8, %v2693_v25, 0.0  ;;  %v14857_v51 = vld [vmem:[#allocation53_spill] sm:$0xff]  ;;  %v14860_v53 = vld [vmem:[#allocation54_spill] sm:$0xff]  ;;  %vm2907_vm3 = vcmp.eq.s32.totalorder %v11127_v41, 1  ;;  %vm2910_vm8 = vcmp.eq.s32.totalorder %v11148_v8, 1 }
 0x441   :  { %3072 = vrot.lane.b32.xlu1 %v2922_v62, %s9552_s14  ;;  %v11157_v33 = vpop.f32.mrb[44].mxu1 }
 0x442   :  { %14844 = vst [vmem:[#allocation41_spill] sm:$0xff] %v11157_v33  ;;  %v11161_v57 = vadd.f32 %v11157_v33, %v14845_v20  ;;  %v11163_v39 = vpop.f32.mrb[45].mxu1 }
 0x443   :  { %14847 = vst [vmem:[#allocation103_spill] sm:$0xff] %v11163_v39  ;;  %v11167_v59 = vadd.f32 %v11163_v39, %v14848_v29  ;;  %v11221_v32 = vpop.permute.xlu0 %2890 }
 0x444   :  { %14846 = vst [vmem:[#allocation44_spill] sm:$0xff] %v11161_v57  ;;  %2982 = vrot.lane.b32.xlu0 %v11161_v57, %s9551_s12  ;;  %v2660_v26 = vrot.slane %v11161_v57, 2 }
 0x445   :  { %14849 = vst [vmem:[#allocation47_spill] sm:$0xff] %v11167_v59  ;;  %2980 = vrot.lane.b32.xlu1 %v11167_v59, %s9551_s12  ;;  %v2659_v12 = vrot.slane %v11167_v59, 2 }
 0x447   :  { %v2690_v16 = vsel %vm2675_vm11, %v2659_v12, %v2660_v26  ;;  %v2691_v6 = vsel %vm2675_vm11, %v2658_v23, %v2659_v12  ;;  %v11242_v12 = vpop.permute.xlu1 %2538 }
 0x448   :  { %3070 = vrot.lane.b32.xlu0 %v2921_v42, %s9552_s14  ;;  %v2924_v7 = vsel %vm2900_vm14, %v2690_v16, 0.0  ;;  %v2923_v9 = vsel %vm2899_vm15, %v2691_v6, 0.0  ;;  %vm2909_vm14 = vcmp.eq.s32.totalorder %v11153_v55, 1  ;;  %vm2912_vm15 = vcmp.eq.s32.totalorder %v11169_v10, 1 }
 0x449   :  { %3076 = vrot.lane.b32.xlu1 %v2924_v7, %s9552_s14  ;;  %v11187_v11 = vpop.f32.mrb[46].mxu1  ;;  %v11247_v7 = vpop.permute.xlu0 %2535 }
 0x44a   :  { %14850 = vst [vmem:[#allocation104_spill] sm:$0xff] %v11187_v11  ;;  %v11193_v14 = vadd.f32 %v11187_v11, %v14851_v52  ;;  %v11195_v36 = vpop.f32.mrb[47].mxu1 }
 0x44b   :  { %14853 = vst [vmem:[#allocation105_spill] sm:$0xff] %v11195_v36  ;;  %v11199_v19 = vadd.f32 %v11195_v36, %v14854_v24  ;;  %v14863_v24 = vld [vmem:[#allocation56_spill] sm:$0xff] }
 0x44c   :  { %14852 = vst [vmem:[#allocation49_spill] sm:$0xff] %v11193_v14  ;;  %2986 = vrot.lane.b32.xlu0 %v11193_v14, %s9551_s12  ;;  %v2662_v60 = vrot.slane %v11193_v14, 2 }
 0x44d   :  { %14855 = vst [vmem:[#allocation50_spill] sm:$0xff] %v11199_v19  ;;  %2984 = vrot.lane.b32.xlu1 %v11199_v19, %s9551_s12  ;;  %v2661_v21 = vrot.slane %v11199_v19, 2 }
 0x44f   :  { %v2688_v1 = vsel %vm2675_vm11, %v2661_v21, %v2662_v60  ;;  %v2689_v20 = vsel %vm2675_vm11, %v2660_v26, %v2661_v21 }
 0x450   :  { %3074 = vrot.lane.b32.xlu0 %v2923_v9, %s9552_s14  ;;  %v2926_v61 = vsel %vm2902_vm9, %v2688_v1, 0.0  ;;  %v2925_v42 = vsel %vm2901_vm6, %v2689_v20, 0.0  ;;  %v11263_v9 = vpop.permute.xlu1 %2544  ;;  %vm2911_vm9 = vcmp.eq.s32.totalorder %v11180_v49, 1  ;;  %vm2914_vm6 = vcmp.eq.s32.totalorder %v11189_v22, 1 }
 0x451   :  { %3080 = vrot.lane.b32.xlu1 %v2926_v61, %s9552_s14  ;;  %v11219_v23 = vpop.f32.mrb[48].mxu1  ;;  %v14892_v49 = vrot.slane %v11052_v45, 2 }
 0x452   :  { %14856 = vst [vmem:[#allocation106_spill] sm:$0xff] %v11219_v23  ;;  %v11225_v4 = vadd.f32 %v11219_v23, %v14857_v51  ;;  %v11227_v28 = vpop.f32.mrb[49].mxu1  ;;  %v14884_v23 = vld [vmem:[#allocation68_spill] sm:$0xff] }
 0x453   :  { %14859 = vst [vmem:[#allocation107_spill] sm:$0xff] %v11227_v28  ;;  %v11231_v62 = vadd.f32 %v11227_v28, %v14860_v53  ;;  %v11274_v53 = vpop.permute.xlu0 %2541 }
 0x454   :  { %14858 = vst [vmem:[#allocation53_spill] sm:$0xff] %v11225_v4  ;;  %2990 = vrot.lane.b32.xlu0 %v11225_v4, %s9551_s12  ;;  %v2664_v29 = vrot.slane %v11225_v4, 2 }
 0x455   :  { %14861 = vst [vmem:[#allocation54_spill] sm:$0xff] %v11231_v62  ;;  %2988 = vrot.lane.b32.xlu1 %v11231_v62, %s9551_s12  ;;  %v2663_v25 = vrot.slane %v11231_v62, 2 }
 0x457   :  { %v2686_v16 = vsel %vm2675_vm11, %v2663_v25, %v2664_v29  ;;  %v2687_v1 = vsel %vm2675_vm11, %v2662_v60, %v2663_v25 }
 0x458   :  { %3078 = vrot.lane.b32.xlu0 %v2925_v42, %s9552_s14  ;;  %v2928_v26 = vsel %vm2904_vm12, %v2686_v16, 0.0  ;;  %v2927_v20 = vsel %vm2903_vm2, %v2687_v1, 0.0  ;;  %v11283_v16 = vpop.permute.xlu1 %2550  ;;  %v11295_v1 = vpop.permute.xlu0 %2547  ;;  %vm2913_vm12 = vcmp.eq.s32.totalorder %v11201_v58, 1  ;;  %vm2915_vm2 = vcmp.eq.s32.totalorder %v11221_v32, 1  ;;  %v14897_v32 = vld [vmem:[#allocation27_spill] sm:$0xff] }
 0x459   :  { %3084 = vrot.lane.b32.xlu1 %v2928_v26, %s9552_s14  ;;  %v11251_v52 = vpop.f32.mrb[50].mxu1  ;;  %v14869_v26 = vld [vmem:[#allocation59_spill] sm:$0xff] }
 0x45a   :  { %14862 = vst [vmem:[#allocation108_spill] sm:$0xff] %v11251_v52  ;;  %v11255_v44 = vadd.f32 %v11251_v52, %v14863_v24  ;;  %v11257_v6 = vpop.f32.mrb[51].mxu1 }
 0x45b   :  { %14865 = vst [vmem:[#allocation109_spill] sm:$0xff] %v11257_v6  ;;  %v11261_v21 = vadd.f32 %v11257_v6, %v14866_v47 }
 0x45c   :  { %14864 = vst [vmem:[#allocation56_spill] sm:$0xff] %v11255_v44  ;;  %2994 = vrot.lane.b32.xlu0 %v11255_v44, %s9551_s12  ;;  %v2666_v61 = vrot.slane %v11255_v44, 2  ;;  %v11309_v40 = vpop.permute.xlu1 %2556 }
 0x45d   :  { %14867 = vst [vmem:[#allocation58_spill] sm:$0xff] %v11261_v21  ;;  %2992 = vrot.lane.b32.xlu1 %v11261_v21, %s9551_s12  ;;  %v2665_v51 = vrot.slane %v11261_v21, 2 }
 0x45f   :  { %v2684_v42 = vsel %vm2675_vm11, %v2665_v51, %v2666_v61 }
 0x460   :  { %3082 = vrot.lane.b32.xlu0 %v2927_v20, %s9552_s14  ;;  %v2930_v60 = vsel %vm2906_vm4, %v2684_v42, 0.0  ;;  %v2685_v20 = vsel %vm2675_vm11, %v2664_v29, %v2665_v51  ;;  %vm2603_vm4 = vcmp.eq.s32.totalorder %v11215_v30, 1  ;;  %v14904_v30 = vld [vmem:[#allocation5_spill] sm:$0xff] }
 0x461   :  { %3088 = vrot.lane.b32.xlu1 %v2930_v60, %s9552_s14  ;;  %v11281_v25 = vpop.f32.mrb[52].mxu1 }
 0x462   :  { %14868 = vst [vmem:[#allocation110_spill] sm:$0xff] %v11281_v25  ;;  %v11287_v48 = vadd.f32 %v11281_v25, %v14869_v26  ;;  %v11289_v24 = vpop.f32.mrb[53].mxu1  ;;  %v2929_v26 = vsel %vm2905_vm5, %v2685_v20, 0.0  ;;  %v14875_v25 = vld [vmem:[#allocation63_spill] sm:$0xff]  ;;  %v14878_v20 = vld [vmem:[#allocation64_spill] sm:$0xff]  ;;  %vm2604_vm5 = vcmp.eq.s32.totalorder %v11247_v7, 1 }
 0x463   :  { %14871 = vst [vmem:[#allocation111_spill] sm:$0xff] %v11289_v24  ;;  %v11293_v47 = vadd.f32 %v11289_v24, %v14872_v35  ;;  %v11315_v24 = vpop.permute.xlu0 %2553 }
 0x464   :  { %14870 = vst [vmem:[#allocation59_spill] sm:$0xff] %v11287_v48  ;;  %2998 = vrot.lane.b32.xlu0 %v11287_v48, %s9551_s12  ;;  %v2668_v42 = vrot.slane %v11287_v48, 2 }
 0x465   :  { %14873 = vst [vmem:[#allocation60_spill] sm:$0xff] %v11293_v47  ;;  %2996 = vrot.lane.b32.xlu1 %v11293_v47, %s9551_s12  ;;  %v2667_v60 = vrot.slane %v11293_v47, 2 }
 0x467   :  { %v2682_v35 = vsel %vm2675_vm11, %v2667_v60, %v2668_v42 }
 0x468   :  { %3086 = vrot.lane.b32.xlu0 %v2929_v26, %s9552_s14  ;;  %v2932_v29 = vsel %vm2908_vm0, %v2682_v35, 0.0  ;;  %v2683_v26 = vsel %vm2675_vm11, %v2666_v61, %v2667_v60  ;;  %v11343_v61 = vpop.permute.xlu0 %2559  ;;  %v14881_v60 = vld [vmem:[#allocation66_spill] sm:$0xff]  ;;  %vm2605_vm0 = vcmp.eq.s32.totalorder %v11242_v12, 1 }
 0x469   :  { %3092 = vrot.lane.b32.xlu1 %v2932_v29, %s9552_s14  ;;  %v11313_v51 = vpop.f32.mrb[54].mxu1  ;;  %v11336_v29 = vpop.permute.xlu1 %2562  ;;  %v14911_v12 = vld [vmem:[#allocation10_spill] sm:$0xff] }
 0x46a   :  { %14874 = vst [vmem:[#allocation112_spill] sm:$0xff] %v11313_v51  ;;  %v11319_v38 = vadd.f32 %v11313_v51, %v14875_v25  ;;  %v11321_v2 = vpop.f32.mrb[55].mxu1 }
 0x46b   :  { %14877 = vst [vmem:[#allocation113_spill] sm:$0xff] %v11321_v2  ;;  %v11325_v6 = vadd.f32 %v11321_v2, %v14878_v20  ;;  %v2931_v2 = vsel %vm2907_vm3, %v2683_v26, 0.0  ;;  %vm2606_vm3 = vcmp.eq.s32.totalorder %v11274_v53, 1 }
 0x46c   :  { %14876 = vst [vmem:[#allocation63_spill] sm:$0xff] %v11319_v38  ;;  %3002 = vrot.lane.b32.xlu0 %v11319_v38, %s9551_s12  ;;  %v2670_v35 = vrot.slane %v11319_v38, 2  ;;  %v11382_v33 = vpop.permute.xlu0 %2565 }
 0x46d   :  { %14879 = vst [vmem:[#allocation64_spill] sm:$0xff] %v11325_v6  ;;  %3000 = vrot.lane.b32.xlu1 %v11325_v6, %s9551_s12  ;;  %v2669_v25 = vrot.slane %v11325_v6, 2  ;;  %v11361_v39 = vpop.permute.xlu1 %2568 }
 0x46f   :  { %v11339_v20 = vpop.f32.mrb[56].mxu1  ;;  %v2680_v51 = vsel %vm2675_vm11, %v2669_v25, %v2670_v35 }
 0x470   :  { %14880 = vst [vmem:[#allocation114_spill] sm:$0xff] %v11339_v20  ;;  %v11347_v52 = vadd.f32 %v11339_v20, %v14881_v60  ;;  %v11349_v28 = vpop.f32.mrb[57].mxu1  ;;  %3090 = vrot.lane.b32.xlu0 %v2931_v2, %s9552_s14  ;;  %v2934_v41 = vsel %vm2910_vm8, %v2680_v51, 0.0  ;;  %v2681_v51 = vsel %vm2675_vm11, %v2668_v42, %v2669_v25  ;;  %vm2607_vm8 = vcmp.eq.s32.totalorder %v11263_v9, 1  ;;  %v14915_v9 = vld [vmem:[#allocation17_spill] sm:$0xff] }
 0x471   :  { %14883 = vst [vmem:[#allocation115_spill] sm:$0xff] %v11349_v28  ;;  %v11354_v8 = vadd.f32 %v11349_v28, %v14884_v23  ;;  %3096 = vrot.lane.b32.xlu1 %v2934_v41, %s9552_s14  ;;  %v14888_v23 = vld [vmem:[#allocation69_spill] sm:$0xff]  ;;  %v14890_v41 = vld [vmem:[#allocation70_spill] sm:$0xff]  ;;  %v2933_v42 = vsel %vm2909_vm14, %v2681_v51, 0.0  ;;  %vm2608_vm14 = vcmp.eq.s32.totalorder %v11295_v1, 1 }
 0x472   :  { %14882 = vst [vmem:[#allocation66_spill] sm:$0xff] %v11347_v52  ;;  %v2672_v26 = vrot.slane %v11347_v52, 2 }
 0x473   :  { %14885 = vst [vmem:[#allocation68_spill] sm:$0xff] %v11354_v8  ;;  %v11358_v36 = vpop.f32.mrb[58].mxu1  ;;  %v2671_v11 = vrot.slane %v11354_v8, 2 }
 0x474   :  { %14886 = vst [vmem:[#allocation116_spill] sm:$0xff] %v11358_v36  ;;  %3006 = vrot.lane.b32.xlu0 %v11347_v52, %s9551_s12  ;;  %v11365_v60 = vpop.f32.mrb[59].mxu1  ;;  %v11371_v2 = vadd.f32 %v11358_v36, %v14888_v23  ;;  %v11391_v36 = vpop.permute.xlu0 %2571 }
 0x475   :  { %14887 = vst [vmem:[#allocation117_spill] sm:$0xff] %v11365_v60  ;;  %v11375_v28 = vadd.f32 %v11365_v60, %v14890_v41  ;;  %3004 = vrot.lane.b32.xlu1 %v11354_v8, %s9551_s12  ;;  %v2678_v20 = vsel %vm2675_vm11, %v2671_v11, %v2672_v26  ;;  %v11389_v60 = vpop.permute.xlu1 %2574  ;;  %v2679_v55 = vsel %vm2675_vm11, %v2670_v35, %v2671_v11 }
 0x476   :  { %14889 = vst [vmem:[#allocation69_spill] sm:$0xff] %v11371_v2  ;;  %v2936_v25 = vsel %vm2912_vm15, %v2678_v20, 0.0  ;;  %v2674_v41 = vrot.slane %v11371_v2, 2  ;;  %v2935_v20 = vsel %vm2911_vm9, %v2679_v55, 0.0  ;;  %v14893_v55 = vld [vmem:[#allocation24_spill] sm:$0xff]  ;;  %vm2609_vm15 = vcmp.eq.s32.totalorder %v11283_v16, 1 }
 0x477   :  { %14891 = vst [vmem:[#allocation70_spill] sm:$0xff] %v11375_v28  ;;  %v2673_v23 = vrot.slane %v11375_v28, 2  ;;  %vm2610_vm9 = vcmp.eq.s32.totalorder %v11315_v24, 1 }
 0x478   :  { %3094 = vrot.lane.b32.xlu0 %v2933_v42, %s9552_s14  ;;  %v11410_v11 = vpop.permute.xlu0 %2577  ;;  %v2699_v22 = vsel %vm2675_vm11, %v2674_v41, %v14892_v49 }
 0x479   :  { %3100 = vrot.lane.b32.xlu1 %v2936_v25, %s9552_s14  ;;  %v2676_v10 = vsel %vm2675_vm11, %v2673_v23, %v2674_v41  ;;  %v11403_v51 = vpop.permute.xlu1 %2580  ;;  %v2677_v25 = vsel %vm2675_vm11, %v2672_v26, %v2673_v23  ;;  %v2939_v23 = vsel %vm2915_vm2, %v2699_v22, 0.0  ;;  %v14895_v41 = vld [vmem:[#allocation22_spill] sm:$0xff]  ;;  %v14638_v22 = vrot.slane %v11371_v2, 6 }
 0x47a   :  { %v2938_v42 = vsel %vm2914_vm6, %v2676_v10, 0.0  ;;  %v2937_v35 = vsel %vm2913_vm12, %v2677_v25, 0.0  ;;  %v14894_v10 = vld [vmem:[#allocation28_spill] sm:$0xff]  ;;  %vm2386_vm11 = vcmp.lt.s32.totalorder %v9977_v37, 2  ;;  %vm2611_vm6 = vcmp.eq.s32.totalorder %v11309_v40, 1 }
 0x47b   :  { %vm2612_vm12 = vcmp.eq.s32.totalorder %v11343_v61, 1  ;;  %vm2613_vm2 = vcmp.eq.s32.totalorder %v11336_v29, 1 }
 0x47c   :  { %3010 = vrot.lane.b32.xlu0 %v11371_v2, %s9551_s12  ;;  %v11422_v58 = vpop.permute.xlu0 %2583 }
 0x47d   :  { %3008 = vrot.lane.b32.xlu1 %v11375_v28, %s9551_s12  ;;  %v11420_v26 = vpop.permute.xlu1 %2586 }
 0x480   :  { %3098 = vrot.lane.b32.xlu0 %v2935_v20, %s9552_s14  ;;  %v11433_v25 = vpop.permute.xlu0 %2589 }
 0x481   :  { %3104 = vrot.lane.b32.xlu1 %v2938_v42, %s9552_s14  ;;  %v11427_v20 = vpop.permute.xlu1 %2592  ;;  %v14896_v42 = vld [vmem:[#allocation32_spill] sm:$0xff] }
 0x484   :  { %3102 = vrot.lane.b32.xlu0 %v2937_v35, %s9552_s14  ;;  %v14898_v35 = vld [vmem:[#allocation37_spill] sm:$0xff] }
 0x485   :  { %3180 = vrot.lane.b32.xlu1 %v14893_v55, %s9554_s22  ;;  %v11439_v49 = vpop.permute.xlu1 %2598  ;;  %v14901_v55 = vld [vmem:[#allocation34_spill] sm:$0xff] }
 0x488   :  { %3106 = vrot.lane.b32.xlu0 %v2939_v23, %s9552_s14  ;;  %v11442_v23 = vpop.permute.xlu0 %2595 }
 0x489   :  { %3184 = vrot.lane.b32.xlu1 %v14894_v10, %s9554_s22  ;;  %v14899_v10 = vld [vmem:[#allocation30_spill] sm:$0xff] }
 0x48c   :  { %3182 = vrot.lane.b32.xlu0 %v14895_v41, %s9554_s22  ;;  %v2362_v41 = vrot.slane %v11052_v45, 6  ;;  %v11459_v5 = vpop.permute.xlu0 %2601 }
 0x48d   :  { %3188 = vrot.lane.b32.xlu1 %v14896_v42, %s9554_s22  ;;  %v14900_v42 = vld [vmem:[#allocation42_spill] sm:$0xff] }
 0x490   :  { %3186 = vrot.lane.b32.xlu0 %v14897_v32, %s9554_s22 }
 0x491   :  { %3192 = vrot.lane.b32.xlu1 %v14898_v35, %s9554_s22  ;;  %v2410_v35 = vsel %vm2386_vm11, %v14638_v22, %v2362_v41 }
 0x492   :  { %v2627_v50 = vsel %vm2603_vm4, %v2410_v35, 0.0  ;;  %vm2614_vm4 = vcmp.eq.s32.totalorder %v11382_v33, 1 }
 0x494   :  { %3190 = vrot.lane.b32.xlu0 %v14899_v10, %s9554_s22  ;;  %v14902_v10 = vld [vmem:[#allocation48_spill] sm:$0xff] }
 0x495   :  { %3196 = vrot.lane.b32.xlu1 %v14900_v42, %s9554_s22 }
 0x496   :  { %v2967_v22 = vpop.permute.xlu0 %2966 }
 0x497   :  { %v2965_v32 = vpop.permute.xlu1 %2964 }
 0x498   :  { %3194 = vrot.lane.b32.xlu0 %v14901_v55, %s9554_s22  ;;  %v3132_v42 = vsel %vm1361_vm7, %v2627_v50, %v2965_v32  ;;  %v14905_v55 = vld [vmem:[#allocation45_spill] sm:$0xff]  ;;  %v2363_v50 = vrot.slane %v11044_v46, 6  ;;  %v2366_v46 = vrot.slane %v11107_v43, 6 }
 0x499   :  { %3200 = vrot.lane.b32.xlu1 %v14902_v10, %s9554_s22  ;;  %v14906_v10 = vld [vmem:[#allocation8_spill] sm:$0xff] }
 0x49b   :  { %v3061_v54 = vpop.permute.xlu1 %3060 }
 0x49c   :  { %v3156_v17 = vsel %vm1386_vm1, %v3132_v42, %v3061_v54  ;;  %3198 = vrot.lane.b32.xlu0 %v14903_v63, %s9554_s22  ;;  %v2364_v42 = vrot.slane %v11080_v56, 6  ;;  %v14907_v63 = vld [vmem:[#allocation4_spill] sm:$0xff] }
 0x49d   :  { %8709 = vmatprep.mubr.msk.f32.mxu0 %vm1507_vm10, %v3156_v17  ;;  %3204 = vrot.lane.b32.xlu1 %v14904_v30, %s9554_s22  ;;  %v14908_v17 = vld [vmem:[#allocation11_spill] sm:$0xff]  ;;  %v2409_v30 = vsel %vm2386_vm11, %v2362_v41, %v2363_v50  ;;  %v2365_v41 = vrot.slane %v11074_v18, 6 }
 0x49e   :  { %v2971_v32 = vpop.permute.xlu0 %2970  ;;  %v2628_v56 = vsel %vm2604_vm5, %v2409_v30, 0.0  ;;  %v14913_v30 = vld [vmem:[#allocation14_spill] sm:$0xff]  ;;  %vm2615_vm5 = vcmp.eq.s32.totalorder %v11361_v39, 1 }
 0x49f   :  { %v2969_v35 = vpop.permute.xlu1 %2968 }
 0x4a0   :  { %3202 = vrot.lane.b32.xlu0 %v14905_v55, %s9554_s22  ;;  %v2408_v55 = vsel %vm2386_vm11, %v2363_v50, %v2364_v42 }
 0x4a1   :  { %3208 = vrot.lane.b32.xlu1 %v14906_v10, %s9554_s22  ;;  %v2629_v45 = vsel %vm2605_vm0, %v2408_v55, 0.0  ;;  %vm2616_vm0 = vcmp.eq.s32.totalorder %v11391_v36, 1 }
 0x4a2   :  { %v3134_v50 = vsel %vm1361_vm7, %v2629_v45, %v2969_v35  ;;  %v2407_v45 = vsel %vm2386_vm11, %v2364_v42, %v2365_v41  ;;  %v2367_v42 = vrot.slane %v11101_v31, 6 }
 0x4a3   :  { %v3065_v54 = vpop.permute.xlu1 %3064  ;;  %v2630_v35 = vsel %vm2606_vm3, %v2407_v45, 0.0  ;;  %vm2617_vm3 = vcmp.eq.s32.totalorder %v11389_v60, 1 }
 0x4a4   :  { %3206 = vrot.lane.b32.xlu0 %v14907_v63, %s9554_s22  ;;  %v14910_v63 = vld [vmem:[#allocation15_spill] sm:$0xff] }
 0x4a5   :  { %3212 = vrot.lane.b32.xlu1 %v14908_v17, %s9554_s22  ;;  %v3133_v17 = vsel %vm1361_vm7, %v2628_v56, %v2967_v22  ;;  %v14912_v56 = vld [vmem:[#allocation18_spill] sm:$0xff] }
 0x4a6   :  { %v2975_v13 = vpop.permute.xlu0 %2974 }
 0x4a7   :  { %v2973_v10 = vpop.permute.xlu1 %2972 }
 0x4a8   :  { %3210 = vrot.lane.b32.xlu0 %v14909_v15, %s9554_s22  ;;  %v3158_v15 = vsel %vm1386_vm1, %v3134_v50, %v3065_v54  ;;  %v3135_v54 = vsel %vm1361_vm7, %v2630_v35, %v2971_v32  ;;  %v2405_v32 = vsel %vm2386_vm11, %v2366_v46, %v2367_v42  ;;  %v14916_v35 = vld [vmem:[#allocation20_spill] sm:$0xff] }
 0x4a9   :  { %3216 = vrot.lane.b32.xlu1 %v14910_v63, %s9554_s22 }
 0x4aa   :  { %v3063_v27 = vpop.permute.xlu0 %3062 }
 0x4ab   :  { %v3157_v7 = vsel %vm1386_vm1, %v3133_v17, %v3063_v27  ;;  %v3069_v3 = vpop.permute.xlu1 %3068  ;;  %v2406_v27 = vsel %vm2386_vm11, %v2365_v41, %v2366_v46 }
 0x4ac   :  { %8710 = vmatmul.mubr.msk.f32.vlgmr.msra.gmra.mrb[36].mxu0 %vm1507_vm10, %v3157_v7  ;;  %3214 = vrot.lane.b32.xlu0 %v14911_v12, %s9554_s22  ;;  %v2631_v17 = vsel %vm2607_vm8, %v2406_v27, 0.0  ;;  %v2368_v7 = vrot.slane %v11137_v34, 6  ;;  %vm2618_vm8 = vcmp.eq.s32.totalorder %v11410_v11, 1 }
 0x4ad   :  { %8712 = vmatprep.mubr.msk.f32.mxu0 %vm1507_vm10, %v3158_v15  ;;  %3220 = vrot.lane.b32.xlu1 %v14912_v56, %s9554_s22  ;;  %v14914_v15 = vld [vmem:[#allocation21_spill] sm:$0xff]  ;;  %v3136_v41 = vsel %vm1361_vm7, %v2631_v17, %v2973_v10 }
 0x4ae   :  { %v2979_v55 = vpop.permute.xlu0 %2978  ;;  %v2404_v10 = vsel %vm2386_vm11, %v2367_v42, %v2368_v7 }
 0x4af   :  { %v2977_v22 = vpop.permute.xlu1 %2976  ;;  %v2633_v17 = vsel %vm2609_vm15, %v2404_v10, 0.0  ;;  %vm2620_vm15 = vcmp.eq.s32.totalorder %v11422_v58, 1  ;;  %v2383_v58 = vrot.slane %v11347_v52, 6 }
 0x4b0   :  { %3218 = vrot.lane.b32.xlu0 %v14913_v30, %s9554_s22  ;;  %v3160_v30 = vsel %vm1386_vm1, %v3136_v41, %v3069_v3  ;;  %v2632_v3 = vsel %vm2608_vm14, %v2405_v32, 0.0  ;;  %v3138_v46 = vsel %vm1361_vm7, %v2633_v17, %v2977_v22  ;;  %v2370_v41 = vrot.slane %v11167_v59, 6 }
 0x4b1   :  { %3224 = vrot.lane.b32.xlu1 %v14914_v15, %s9554_s22  ;;  %vm2619_vm14 = vcmp.eq.s32.totalorder %v11403_v51, 1 }
 0x4b2   :  { %v3067_v50 = vpop.permute.xlu0 %3066 }
 0x4b3   :  { %v3159_v53 = vsel %vm1386_vm1, %v3135_v54, %v3067_v50  ;;  %v3073_v56 = vpop.permute.xlu1 %3072  ;;  %v3137_v54 = vsel %vm1361_vm7, %v2632_v3, %v2975_v13 }
 0x4b4   :  { %8713 = vmatmul.mubr.msk.f32.gmra.mrb[38].mxu0 %vm1507_vm10, %v3159_v53  ;;  %3222 = vrot.lane.b32.xlu0 %v14915_v9, %s9554_s22  ;;  %v3162_v1 = vsel %vm1386_vm1, %v3138_v46, %v3073_v56  ;;  %v2371_v56 = vrot.slane %v11161_v57, 6  ;;  %v11918_v57 = vld [vmem:[%s14384_s0 + $0xb8] sm:$0xff] }
 0x4b5   :  { %8715 = vmatprep.mubr.msk.f32.mxu0 %vm1507_vm10, %v3160_v30  ;;  %v2369_v30 = vrot.slane %v11131_v0, 6 }
 0x4b6   :  { %v2983_v45 = vpop.permute.xlu0 %2982  ;;  %v2401_v40 = vsel %vm2386_vm11, %v2370_v41, %v2371_v56 }
 0x4b7   :  { %v2981_v27 = vpop.permute.xlu1 %2980  ;;  %v2403_v13 = vsel %vm2386_vm11, %v2368_v7, %v2369_v30  ;;  %v2402_v32 = vsel %vm2386_vm11, %v2369_v30, %v2370_v41  ;;  %v2372_v7 = vrot.slane %v11199_v19, 6  ;;  %v2374_v41 = vrot.slane %v11231_v62, 6 }
 0x4b8   :  { %3226 = vrot.lane.b32.xlu0 %v14916_v35, %s9554_s22  ;;  %v2634_v22 = vsel %vm2610_vm9, %v2403_v13, 0.0  ;;  %vm2621_vm9 = vcmp.eq.s32.totalorder %v11420_v26, 1 }
 0x4b9   :  { %v3139_v3 = vsel %vm1361_vm7, %v2634_v22, %v2979_v55  ;;  %v2400_v55 = vsel %vm2386_vm11, %v2371_v56, %v2372_v7 }
 0x4ba   :  { %v3071_v50 = vpop.permute.xlu0 %3070 }
 0x4bb   :  { %v3161_v42 = vsel %vm1386_vm1, %v3137_v54, %v3071_v50  ;;  %v3077_v53 = vpop.permute.xlu1 %3076  ;;  %v2635_v54 = vsel %vm2611_vm6, %v2402_v32, 0.0  ;;  %v2637_v32 = vsel %vm2613_vm2, %v2400_v55, 0.0  ;;  %vm2622_vm6 = vcmp.eq.s32.totalorder %v11433_v25, 1 }
 0x4bc   :  { %8716 = vmatmul.mubr.msk.f32.gmra.mrb[40].mxu0 %vm1507_vm10, %v3161_v42  ;;  %v3140_v50 = vsel %vm1361_vm7, %v2635_v54, %v2981_v27  ;;  %v2636_v27 = vsel %vm2612_vm12, %v2401_v40, 0.0  ;;  %vm2623_vm12 = vcmp.eq.s32.totalorder %v11427_v20, 1  ;;  %vm2624_vm2 = vcmp.eq.s32.totalorder %v11442_v23, 1 }
 0x4bd   :  { %8718 = vmatprep.mubr.msk.f32.mxu0 %vm1507_vm10, %v3162_v1  ;;  %v3164_v30 = vsel %vm1386_vm1, %v3140_v50, %v3077_v53  ;;  %v3141_v13 = vsel %vm1361_vm7, %v2636_v27, %v2983_v45  ;;  %v2373_v53 = vrot.slane %v11193_v14, 6 }
 0x4be   :  { %v2987_v16 = vpop.permute.xlu0 %2986 }
 0x4bf   :  { %v2985_v10 = vpop.permute.xlu1 %2984  ;;  %v2399_v29 = vsel %vm2386_vm11, %v2372_v7, %v2373_v53  ;;  %v2398_v45 = vsel %vm2386_vm11, %v2373_v53, %v2374_v41  ;;  %v2376_v7 = vrot.slane %v11261_v21, 6 }
 0x4c2   :  { %v3075_v17 = vpop.permute.xlu0 %3074 }
 0x4c3   :  { %v3163_v46 = vsel %vm1386_vm1, %v3139_v3, %v3075_v17  ;;  %v3081_v42 = vpop.permute.xlu1 %3080  ;;  %v3142_v3 = vsel %vm1361_vm7, %v2637_v32, %v2985_v10  ;;  %v2638_v10 = vsel %vm2614_vm4, %v2399_v29, 0.0  ;;  %vm2625_vm4 = vcmp.eq.s32.totalorder %v11439_v49, 1 }
 0x4c4   :  { %8719 = vmatmul.mubr.msk.f32.gmra.mrb[42].mxu0 %vm1507_vm10, %v3163_v46  ;;  %v3166_v56 = vsel %vm1386_vm1, %v3142_v3, %v3081_v42  ;;  %v3143_v46 = vsel %vm1361_vm7, %v2638_v10, %v2987_v16  ;;  %v2375_v42 = vrot.slane %v11225_v4, 6  ;;  %v2377_v3 = vrot.slane %v11255_v44, 6 }
 0x4c5   :  { %8721 = vmatprep.mubr.msk.f32.mxu0 %vm1507_vm10, %v3164_v30  ;;  %v2639_v30 = vsel %vm2615_vm5, %v2398_v45, 0.0  ;;  %vm2626_vm5 = vcmp.eq.s32.totalorder %v11459_v5, 1 }
 0x4c6   :  { %v2991_v24 = vpop.permute.xlu0 %2990  ;;  %v2397_v33 = vsel %vm2386_vm11, %v2374_v41, %v2375_v42  ;;  %v2396_v16 = vsel %vm2386_vm11, %v2375_v42, %v2376_v7  ;;  %v2378_v41 = vrot.slane %v11293_v47, 6  ;;  %v2395_v36 = vsel %vm2386_vm11, %v2376_v7, %v2377_v3 }
 0x4c7   :  { %v2989_v1 = vpop.permute.xlu1 %2988  ;;  %v2380_v7 = vrot.slane %v11325_v6, 6 }
 0x4c8   :  { %v3144_v55 = vsel %vm1361_vm7, %v2639_v30, %v2989_v1  ;;  %v2640_v1 = vsel %vm2616_vm0, %v2397_v33, 0.0  ;;  %v2379_v30 = vrot.slane %v11287_v48, 6 }
 0x4ca   :  { %v3079_v22 = vpop.permute.xlu0 %3078  ;;  %v2393_v51 = vsel %vm2386_vm11, %v2378_v41, %v2379_v30 }
 0x4cb   :  { %v3165_v54 = vsel %vm1386_vm1, %v3141_v13, %v3079_v22  ;;  %v3085_v17 = vpop.permute.xlu1 %3084  ;;  %v3145_v22 = vsel %vm1361_vm7, %v2640_v1, %v2991_v24  ;;  %v2394_v24 = vsel %vm2386_vm11, %v2377_v3, %v2378_v41 }
 0x4cc   :  { %8722 = vmatmul.mubr.msk.f32.gmra.mrb[44].mxu0 %vm1507_vm10, %v3165_v54  ;;  %v3168_v53 = vsel %vm1386_vm1, %v3144_v55, %v3085_v17  ;;  %v2641_v54 = vsel %vm2617_vm3, %v2396_v16, 0.0 }
 0x4cd   :  { %8724 = vmatprep.mubr.msk.f32.mxu0 %vm1507_vm10, %v3166_v56 }
 0x4ce   :  { %v2995_v61 = vpop.permute.xlu0 %2994 }
 0x4cf   :  { %v2993_v50 = vpop.permute.xlu1 %2992 }
 0x4d0   :  { %v3146_v56 = vsel %vm1361_vm7, %v2641_v54, %v2993_v50  ;;  %v2642_v50 = vsel %vm2618_vm8, %v2395_v36, 0.0  ;;  %v2384_v36 = vrot.slane %v11375_v28, 6 }
 0x4d1   :  { %v3147_v42 = vsel %vm1361_vm7, %v2642_v50, %v2995_v61  ;;  %v2392_v61 = vsel %vm2386_vm11, %v2379_v30, %v2380_v7 }
 0x4d2   :  { %v3083_v40 = vpop.permute.xlu0 %3082  ;;  %v2645_v3 = vsel %vm2621_vm9, %v2392_v61, 0.0 }
 0x4d3   :  { %v3167_v27 = vsel %vm1386_vm1, %v3143_v46, %v3083_v40  ;;  %v3089_v13 = vpop.permute.xlu1 %3088  ;;  %v2643_v40 = vsel %vm2619_vm14, %v2394_v24, 0.0 }
 0x4d4   :  { %8725 = vmatmul.mubr.msk.f32.gmra.mrb[46].mxu0 %vm1507_vm10, %v3167_v27  ;;  %v3170_v10 = vsel %vm1386_vm1, %v3146_v56, %v3089_v13  ;;  %v2382_v56 = vrot.slane %v11354_v8, 6 }
 0x4d5   :  { %8727 = vmatprep.mubr.msk.f32.mxu0 %vm1507_vm10, %v3168_v53 }
 0x4d6   :  { %v2999_v39 = vpop.permute.xlu0 %2998 }
 0x4d7   :  { %v2997_v32 = vpop.permute.xlu1 %2996 }
 0x4d8   :  { %v3148_v27 = vsel %vm1361_vm7, %v2643_v40, %v2997_v32  ;;  %v2644_v32 = vsel %vm2620_vm15, %v2393_v51, 0.0 }
 0x4d9   :  { %v3149_v1 = vsel %vm1361_vm7, %v2644_v32, %v2999_v39 }
 0x4da   :  { %v3087_v17 = vpop.permute.xlu0 %3086 }
 0x4db   :  { %v3169_v29 = vsel %vm1386_vm1, %v3145_v22, %v3087_v17  ;;  %v3093_v45 = vpop.permute.xlu1 %3092  ;;  %v2381_v22 = vrot.slane %v11319_v38, 6 }
 0x4dc   :  { %8728 = vmatmul.mubr.msk.f32.gmra.mrb[48].mxu0 %vm1507_vm10, %v3169_v29  ;;  %v3172_v33 = vsel %vm1386_vm1, %v3148_v27, %v3093_v45  ;;  %v2388_v27 = vsel %vm2386_vm11, %v2383_v58, %v2384_v36 }
 0x4dd   :  { %8730 = vmatprep.mubr.msk.f32.mxu0 %vm1507_vm10, %v3170_v10  ;;  %v2391_v26 = vsel %vm2386_vm11, %v2380_v7, %v2381_v22  ;;  %v2390_v10 = vsel %vm2386_vm11, %v2381_v22, %v2382_v56  ;;  %v2649_v51 = vsel %vm2625_vm4, %v2388_v27, 0.0 }
 0x4de   :  { %v3003_v60 = vpop.permute.xlu0 %3002  ;;  %v2647_v30 = vsel %vm2623_vm12, %v2390_v10, 0.0 }
 0x4df   :  { %v3001_v46 = vpop.permute.xlu1 %3000 }
 0x4e0   :  { %v3150_v17 = vsel %vm1361_vm7, %v2645_v3, %v3001_v46  ;;  %v2646_v46 = vsel %vm2622_vm6, %v2391_v26, 0.0  ;;  %v2361_v3 = vld [vmem:[%s14385_s1 + $0x58] sm:$0xff] }
 0x4e1   :  { %v3151_v50 = vsel %vm1361_vm7, %v2646_v46, %v3003_v60  ;;  %8745 = vmatprep.subr.mxu1 %v2361_v3 }
 0x4e2   :  { %v3091_v55 = vpop.permute.xlu0 %3090  ;;  %8746 = vmatpush3.msra.mxu1 %v2361_v3 }
 0x4e3   :  { %v3171_v13 = vsel %vm1386_vm1, %v3147_v42, %v3091_v55  ;;  %v3097_v53 = vpop.permute.xlu1 %3096  ;;  %v2389_v42 = vsel %vm2386_vm11, %v2382_v56, %v2383_v58 }
 0x4e4   :  { %8731 = vmatmul.mubr.msk.f32.gmra.mrb[50].mxu0 %vm1507_vm10, %v3171_v13  ;;  %v3174_v45 = vsel %vm1386_vm1, %v3150_v17, %v3097_v53  ;;  %v2648_v20 = vsel %vm2624_vm2, %v2389_v42, 0.0  ;;  %v14917_v53 = vrot.slane %v11371_v2, 6 }
 0x4e5   :  { %8733 = vmatprep.mubr.msk.f32.mxu0 %vm1507_vm10, %v3172_v33 }
 0x4e6   :  { %v3007_v11 = vpop.permute.xlu0 %3006  ;;  %v2387_v33 = vsel %vm2386_vm11, %v2384_v36, %v14917_v53 }
 0x4e7   :  { %v3005_v16 = vpop.permute.xlu1 %3004  ;;  %v3153_v13 = vsel %vm1361_vm7, %v2648_v20, %v3007_v11  ;;  %v2650_v32 = vsel %vm2626_vm5, %v2387_v33, 0.0 }
 0x4e8   :  { %v3152_v55 = vsel %vm1361_vm7, %v2647_v30, %v3005_v16 }
 0x4ea   :  { %v3095_v54 = vpop.permute.xlu0 %3094 }
 0x4eb   :  { %v3173_v41 = vsel %vm1386_vm1, %v3149_v1, %v3095_v54  ;;  %v3101_v29 = vpop.permute.xlu1 %3100 }
 0x4ec   :  { %8734 = vmatmul.mubr.msk.f32.gmra.mrb[52].mxu0 %vm1507_vm10, %v3173_v41  ;;  %v3176_v25 = vsel %vm1386_vm1, %v3152_v55, %v3101_v29 }
 0x4ed   :  { %8736 = vmatprep.mubr.msk.f32.mxu0 %vm1507_vm10, %v3174_v45 }
 0x4ee   :  { %v3011_v39 = vpop.permute.xlu0 %3010 }
 0x4ef   :  { %v3009_v24 = vpop.permute.xlu1 %3008  ;;  %v3155_v11 = vsel %vm1361_vm7, %v2650_v32, %v3011_v39 }
 0x4f0   :  { %v3154_v23 = vsel %vm1361_vm7, %v2649_v51, %v3009_v24 }
 0x4f2   :  { %v3099_v40 = vpop.permute.xlu0 %3098 }
 0x4f3   :  { %v3175_v7 = vsel %vm1386_vm1, %v3151_v50, %v3099_v40  ;;  %v3105_v60 = vpop.permute.xlu1 %3104 }
 0x4f4   :  { %8737 = vmatmul.mubr.msk.f32.gmra.mrb[54].mxu0 %vm1507_vm10, %v3175_v7  ;;  %v3178_v49 = vsel %vm1386_vm1, %v3154_v23, %v3105_v60 }
 0x4f5   :  { %8739 = vmatprep.mubr.msk.f32.mxu0 %vm1507_vm10, %v3176_v25 }
 0x4f6   :  { %v3103_v61 = vpop.permute.xlu0 %3102 }
 0x4f7   :  { %v3177_v16 = vsel %vm1386_vm1, %v3153_v13, %v3103_v61  ;;  %v3181_v17 = vpop.permute.xlu1 %3180 }
 0x4f8   :  { %8740 = vmatmul.mubr.msk.f32.gmra.mrb[56].mxu0 %vm1507_vm10, %v3177_v16 }
 0x4f9   :  { %8742 = vmatprep.mubr.msk.f32.mxu0 %vm1507_vm10, %v3178_v49 }
 0x4fa   :  { %v3107_v1 = vpop.permute.xlu0 %3106 }
 0x4fb   :  { %v3179_v22 = vsel %vm1386_vm1, %v3155_v11, %v3107_v1  ;;  %v3185_v10 = vpop.permute.xlu1 %3184 }
 0x4fc   :  { %8743 = vmatmul.mubr.msk.f32.gmra.mrb[58].mxu0 %vm1507_vm10, %v3179_v22 }
 0x4fe   :  { %v3183_v5 = vpop.permute.xlu0 %3182 }
 0x4ff   :  { %v3189_v25 = vpop.permute.xlu1 %3188 }
 0x502   :  { %v3187_v58 = vpop.permute.xlu0 %3186 }
 0x503   :  { %v3193_v11 = vpop.permute.xlu1 %3192 }
 0x506   :  { %v3191_v55 = vpop.permute.xlu0 %3190 }
 0x50a   :  { %v3195_v16 = vpop.permute.xlu0 %3194 }
 0x57f   :  { %v8711_v54 = vpop.f32.mrb[36].mxu0 }
 0x580   :  { %v11657_v56 = vadd.f32 %v8711_v54, %v3183_v5  ;;  %v3390_v41 = vpop.f32.mrb[37].mxu0 }
 0x581   :  { %v11659_v29 = vadd.f32 %v3390_v41, %v3181_v17 }
 0x582   :  { %v8071_v45 = vmul.f32 -1.442695, %v11657_v56 }
 0x583   :  { %v8070_v26 = vmul.f32 -1.442695, %v11659_v29 }
 0x584   :  { %9164 = vpow2.f32 %v8071_v45 }
 0x585   :  { %9166 = vpow2.f32 %v8070_v26 }
 0x587   :  { %v8714_v39 = vpop.f32.mrb[38].mxu0 }
 0x588   :  { %v11663_v36 = vadd.f32 %v8714_v39, %v3187_v58  ;;  %v3400_v24 = vpop.f32.mrb[39].mxu0  ;;  %v3199_v58 = vpop.permute.xlu0 %3198 }
 0x589   :  { %v11665_v46 = vadd.f32 %v3400_v24, %v3185_v10 }
 0x58a   :  { %v8073_v50 = vmul.f32 -1.442695, %v11663_v36 }
 0x58b   :  { %v8072_v42 = vmul.f32 -1.442695, %v11665_v46 }
 0x58c   :  { %9168 = vpow2.f32 %v8073_v50  ;;  %v3197_v50 = vpop.permute.xlu1 %3196 }
 0x58d   :  { %9170 = vpow2.f32 %v8072_v42 }
 0x58e   :  { %v9165_v30 = vpop.eup %9164 }
 0x58f   :  { %v9167_v40 = vpop.eup %9166  ;;  %v3606_v27 = vadd.f32 1.0, %v9165_v30  ;;  %v8717_v7 = vpop.f32.mrb[40].mxu0 }
 0x590   :  { %v3605_v20 = vadd.f32 1.0, %v9167_v40  ;;  %v11669_v60 = vadd.f32 %v8717_v7, %v3191_v55  ;;  %v3410_v13 = vpop.f32.mrb[41].mxu0 }
 0x591   :  { %9172 = vrcp.f32 %v3606_v27  ;;  %v11671_v53 = vadd.f32 %v3410_v13, %v3189_v25 }
 0x592   :  { %9174 = vrcp.f32 %v3605_v20  ;;  %v8075_v33 = vmul.f32 -1.442695, %v11669_v60 }
 0x593   :  { %v8074_v51 = vmul.f32 -1.442695, %v11671_v53 }
 0x594   :  { %9176 = vpow2.f32 %v8075_v33  ;;  %v3203_v33 = vpop.permute.xlu0 %3202 }
 0x595   :  { %9178 = vpow2.f32 %v8074_v51 }
 0x596   :  { %v9169_v61 = vpop.eup %9168 }
 0x597   :  { %v9171_v23 = vpop.eup %9170  ;;  %v3608_v49 = vadd.f32 1.0, %v9169_v61  ;;  %v8720_v32 = vpop.f32.mrb[42].mxu0 }
 0x598   :  { %v3607_v1 = vadd.f32 1.0, %v9171_v23  ;;  %v11675_v22 = vadd.f32 %v8720_v32, %v3195_v16  ;;  %v3420_v3 = vpop.f32.mrb[43].mxu0  ;;  %v3201_v16 = vpop.permute.xlu1 %3200 }
 0x599   :  { %9180 = vrcp.f32 %v3608_v49  ;;  %v11677_v5 = vadd.f32 %v3420_v3, %v3193_v11 }
 0x59a   :  { %9182 = vrcp.f32 %v3607_v1  ;;  %v8077_v54 = vmul.f32 -1.442695, %v11675_v22 }
 0x59b   :  { %v9173_v17 = vpop.eup %9172  ;;  %v8076_v41 = vmul.f32 -1.442695, %v11677_v5 }
 0x59c   :  { %v9175_v45 = vpop.eup %9174  ;;  %9184 = vpow2.f32 %v8077_v54  ;;  %3703 = vrot.lane.b32.xlu0 %v9173_v17, %s9553_s15 }
 0x59d   :  { %3701 = vrot.lane.b32.xlu1 %v9175_v45, %s9553_s15  ;;  %9186 = vpow2.f32 %v8076_v41 }
 0x59e   :  { %v9177_v26 = vpop.eup %9176 }
 0x59f   :  { %v3610_v39 = vadd.f32 1.0, %v9177_v26  ;;  %v8723_v10 = vpop.f32.mrb[44].mxu0  ;;  %v9179_v24 = vpop.eup %9178 }
 0x5a0   :  { %v11683_v42 = vadd.f32 %v8723_v10, %v3199_v58  ;;  %v3430_v30 = vpop.f32.mrb[45].mxu0  ;;  %v3609_v40 = vadd.f32 1.0, %v9179_v24  ;;  %v3207_v26 = vpop.permute.xlu0 %3206 }
 0x5a1   :  { %9188 = vrcp.f32 %v3610_v39  ;;  %v11685_v55 = vadd.f32 %v3430_v30, %v3197_v50  ;;  %v3205_v24 = vpop.permute.xlu1 %3204 }
 0x5a2   :  { %v8079_v27 = vmul.f32 -1.442695, %v11683_v42  ;;  %9190 = vrcp.f32 %v3609_v40 }
 0x5a3   :  { %v9181_v7 = vpop.eup %9180  ;;  %v8078_v25 = vmul.f32 -1.442695, %v11685_v55 }
 0x5a4   :  { %v9183_v20 = vpop.eup %9182  ;;  %9192 = vpow2.f32 %v8079_v27  ;;  %3707 = vrot.lane.b32.xlu0 %v9181_v7, %s9553_s15 }
 0x5a5   :  { %3705 = vrot.lane.b32.xlu1 %v9183_v20, %s9553_s15  ;;  %9194 = vpow2.f32 %v8078_v25 }
 0x5a6   :  { %v9185_v13 = vpop.eup %9184 }
 0x5a7   :  { %v3612_v51 = vadd.f32 1.0, %v9185_v13  ;;  %v8726_v61 = vpop.f32.mrb[46].mxu0  ;;  %v9187_v23 = vpop.eup %9186 }
 0x5a8   :  { %v11691_v49 = vadd.f32 %v8726_v61, %v3203_v33  ;;  %v3440_v32 = vpop.f32.mrb[47].mxu0  ;;  %v3611_v11 = vadd.f32 1.0, %v9187_v23 }
 0x5a9   :  { %9196 = vrcp.f32 %v3612_v51  ;;  %v11693_v1 = vadd.f32 %v3440_v32, %v3201_v16  ;;  %v3211_v51 = vpop.permute.xlu0 %3210  ;;  %v3209_v32 = vpop.permute.xlu1 %3208 }
 0x5aa   :  { %v8081_v3 = vmul.f32 -1.442695, %v11691_v49  ;;  %9198 = vrcp.f32 %v3611_v11 }
 0x5ab   :  { %v9189_v54 = vpop.eup %9188  ;;  %v8080_v17 = vmul.f32 -1.442695, %v11693_v1 }
 0x5ac   :  { %9200 = vpow2.f32 %v8081_v3  ;;  %3711 = vrot.lane.b32.xlu0 %v9189_v54, %s9553_s15  ;;  %v9191_v41 = vpop.eup %9190 }
 0x5ad   :  { %9202 = vpow2.f32 %v8080_v17  ;;  %3709 = vrot.lane.b32.xlu1 %v9191_v41, %s9553_s15 }
 0x5ae   :  { %v9193_v45 = vpop.eup %9192 }
 0x5af   :  { %v3614_v58 = vadd.f32 1.0, %v9193_v45  ;;  %v8729_v39 = vpop.f32.mrb[48].mxu0  ;;  %v9195_v10 = vpop.eup %9194 }
 0x5b0   :  { %v11699_v50 = vadd.f32 %v8729_v39, %v3207_v26  ;;  %v3450_v30 = vpop.f32.mrb[49].mxu0  ;;  %v3613_v40 = vadd.f32 1.0, %v9195_v10  ;;  %v3215_v39 = vpop.permute.xlu0 %3214 }
 0x5b1   :  { %9204 = vrcp.f32 %v3614_v58  ;;  %v11701_v27 = vadd.f32 %v3450_v30, %v3205_v24  ;;  %v3213_v24 = vpop.permute.xlu1 %3212 }
 0x5b2   :  { %v8083_v7 = vmul.f32 -1.442695, %v11699_v50  ;;  %9206 = vrcp.f32 %v3613_v40 }
 0x5b3   :  { %v9197_v25 = vpop.eup %9196  ;;  %v8082_v20 = vmul.f32 -1.442695, %v11701_v27 }
 0x5b4   :  { %9208 = vpow2.f32 %v8083_v7  ;;  %3715 = vrot.lane.b32.xlu0 %v9197_v25, %s9553_s15  ;;  %v9199_v13 = vpop.eup %9198 }
 0x5b5   :  { %9210 = vpow2.f32 %v8082_v20  ;;  %3713 = vrot.lane.b32.xlu1 %v9199_v13, %s9553_s15 }
 0x5b6   :  { %v9201_v33 = vpop.eup %9200 }
 0x5b7   :  { %v3616_v61 = vadd.f32 1.0, %v9201_v33  ;;  %v8732_v23 = vpop.f32.mrb[50].mxu0  ;;  %v9203_v16 = vpop.eup %9202 }
 0x5b8   :  { %v11707_v11 = vadd.f32 %v8732_v23, %v3211_v51  ;;  %v3460_v3 = vpop.f32.mrb[51].mxu0  ;;  %v3615_v54 = vadd.f32 1.0, %v9203_v16  ;;  %v3219_v23 = vpop.permute.xlu0 %3218 }
 0x5b9   :  { %9212 = vrcp.f32 %v3616_v61  ;;  %v11709_v17 = vadd.f32 %v3460_v3, %v3209_v32  ;;  %v3217_v32 = vpop.permute.xlu1 %3216 }
 0x5ba   :  { %v8085_v41 = vmul.f32 -1.442695, %v11707_v11  ;;  %9214 = vrcp.f32 %v3615_v54 }
 0x5bb   :  { %v9205_v45 = vpop.eup %9204  ;;  %v8084_v26 = vmul.f32 -1.442695, %v11709_v17 }
 0x5bc   :  { %9216 = vpow2.f32 %v8085_v41  ;;  %3719 = vrot.lane.b32.xlu0 %v9205_v45, %s9553_s15  ;;  %v9207_v58 = vpop.eup %9206 }
 0x5bd   :  { %9218 = vpow2.f32 %v8084_v26  ;;  %3717 = vrot.lane.b32.xlu1 %v9207_v58, %s9553_s15 }
 0x5be   :  { %v9209_v10 = vpop.eup %9208 }
 0x5bf   :  { %v3618_v30 = vadd.f32 1.0, %v9209_v10  ;;  %v8735_v40 = vpop.f32.mrb[52].mxu0  ;;  %v9211_v7 = vpop.eup %9210 }
 0x5c0   :  { %v11715_v25 = vadd.f32 %v8735_v40, %v3215_v39  ;;  %v3470_v20 = vpop.f32.mrb[53].mxu0  ;;  %v3617_v13 = vadd.f32 1.0, %v9211_v7  ;;  %v3223_v10 = vpop.permute.xlu0 %3222 }
 0x5c1   :  { %9220 = vrcp.f32 %v3618_v30  ;;  %v11717_v33 = vadd.f32 %v3470_v20, %v3213_v24  ;;  %v3221_v40 = vpop.permute.xlu1 %3220 }
 0x5c2   :  { %v8087_v51 = vmul.f32 -1.442695, %v11715_v25  ;;  %9222 = vrcp.f32 %v3617_v13 }
 0x5c3   :  { %v9213_v61 = vpop.eup %9212  ;;  %v8086_v16 = vmul.f32 -1.442695, %v11717_v33 }
 0x5c4   :  { %9224 = vpow2.f32 %v8087_v51  ;;  %3723 = vrot.lane.b32.xlu0 %v9213_v61, %s9553_s15  ;;  %v9215_v3 = vpop.eup %9214 }
 0x5c5   :  { %9226 = vpow2.f32 %v8086_v16  ;;  %3721 = vrot.lane.b32.xlu1 %v9215_v3, %s9553_s15 }
 0x5c6   :  { %v9217_v54 = vpop.eup %9216 }
 0x5c7   :  { %v3620_v41 = vadd.f32 1.0, %v9217_v54  ;;  %v8738_v45 = vpop.f32.mrb[54].mxu0  ;;  %v9219_v26 = vpop.eup %9218 }
 0x5c8   :  { %v11723_v58 = vadd.f32 %v8738_v45, %v3219_v23  ;;  %v3480_v39 = vpop.f32.mrb[55].mxu0  ;;  %v3619_v24 = vadd.f32 1.0, %v9219_v26 }
 0x5c9   :  { %9228 = vrcp.f32 %v3620_v41  ;;  %v11725_v30 = vadd.f32 %v3480_v39, %v3217_v32  ;;  %v3227_v41 = vpop.permute.xlu0 %3226 }
 0x5ca   :  { %v8089_v7 = vmul.f32 -1.442695, %v11723_v58  ;;  %9230 = vrcp.f32 %v3619_v24  ;;  %v3225_v24 = vpop.permute.xlu1 %3224 }
 0x5cb   :  { %v9221_v20 = vpop.eup %9220  ;;  %v8088_v13 = vmul.f32 -1.442695, %v11725_v30  ;;  %v8741_v51 = vpop.f32.mrb[56].mxu0 }
 0x5cc   :  { %9232 = vpow2.f32 %v8089_v7  ;;  %v11729_v61 = vadd.f32 %v8741_v51, %v3223_v10  ;;  %v3490_v16 = vpop.f32.mrb[57].mxu0  ;;  %3727 = vrot.lane.b32.xlu0 %v9221_v20, %s9553_s15  ;;  %v9223_v23 = vpop.eup %9222 }
 0x5cd   :  { %v11732_v3 = vadd.f32 %v3490_v16, %v3221_v40  ;;  %9234 = vpow2.f32 %v8088_v13  ;;  %3725 = vrot.lane.b32.xlu1 %v9223_v23, %s9553_s15 }
 0x5ce   :  { %v9225_v54 = vpop.eup %9224  ;;  %v8091_v32 = vmul.f32 -1.442695, %v11729_v61 }
 0x5cf   :  { %v3622_v45 = vadd.f32 1.0, %v9225_v54  ;;  %v8744_v26 = vpop.f32.mrb[58].mxu0  ;;  %v9227_v39 = vpop.eup %9226  ;;  %v8090_v10 = vmul.f32 -1.442695, %v11732_v3 }
 0x5d0   :  { %9236 = vpow2.f32 %v8091_v32  ;;  %v11737_v7 = vadd.f32 %v8744_v26, %v3227_v41  ;;  %v3500_v20 = vpop.f32.mrb[59].mxu0  ;;  %v3621_v40 = vadd.f32 1.0, %v9227_v39 }
 0x5d1   :  { %9238 = vrcp.f32 %v3622_v45  ;;  %v11739_v51 = vadd.f32 %v3500_v20, %v3225_v24 }
 0x5d2   :  { %v8093_v13 = vmul.f32 -1.442695, %v11737_v7  ;;  %9240 = vrcp.f32 %v3621_v40 }
 0x5d3   :  { %v9229_v16 = vpop.eup %9228  ;;  %9242 = vpow2.f32 %v8090_v10  ;;  %v8092_v23 = vmul.f32 -1.442695, %v11739_v51 }
 0x5d4   :  { %3731 = vrot.lane.b32.xlu0 %v9229_v16, %s9553_s15  ;;  %v9231_v54 = vpop.eup %9230  ;;  %9244 = vpow2.f32 %v8093_v13 }
 0x5d5   :  { %3729 = vrot.lane.b32.xlu1 %v9231_v54, %s9553_s15  ;;  %9246 = vpow2.f32 %v8092_v23 }
 0x5d6   :  { %v9233_v32 = vpop.eup %9232 }
 0x5d7   :  { %v3624_v41 = vadd.f32 1.0, %v9233_v32  ;;  %v9235_v26 = vpop.eup %9234 }
 0x5d8   :  { %v3623_v45 = vadd.f32 1.0, %v9235_v26  ;;  %v11751_v26 = vld [vmem:[%s14384_s0 + $0x8] sm:$0xff] }
 0x5d9   :  { %9248 = vrcp.f32 %v3624_v41 }
 0x5da   :  { %v9237_v39 = vpop.eup %9236  ;;  %9250 = vrcp.f32 %v3623_v45  ;;  %v4396_v45 = vadd.f32 4.0, %v11751_v26 }
 0x5db   :  { %v9239_v24 = vpop.eup %9238  ;;  %v3626_v20 = vadd.f32 1.0, %v9237_v39 }
 0x5dc   :  { %3735 = vrot.lane.b32.xlu0 %v9239_v24, %s9553_s15  ;;  %v9241_v10 = vpop.eup %9240  ;;  %v11758_v24 = vld [vmem:[%s14384_s0] sm:$0xff]  ;;  %vm4420_vm11 = vcmp.ge.f32.partialorder %v4396_v45, 0.0  ;;  %vm4444_vm0 = vcmp.le.f32.partialorder %v4396_v45, 18.0  ;;  %v14918_v45 = vmov 0  }
 0x5dd   :  { %9252 = vrcp.f32 %v3626_v20  ;;  %v9243_v40 = vpop.eup %9242  ;;  %3733 = vrot.lane.b32.xlu1 %v9241_v10, %s9553_s15  ;;  %v4395_v20 = vadd.f32 4.0, %v11758_v24  ;;  %vm4468_vm14 = vmand %vm4420_vm11, %vm4444_vm0 }
 0x5de   :  { %v3625_v16 = vadd.f32 1.0, %v9243_v40  ;;  %v9245_v13 = vpop.eup %9244 }
 0x5df   :  { %v3628_v54 = vadd.f32 1.0, %v9245_v13  ;;  %v9247_v32 = vpop.eup %9246  ;;  %vm4419_vm3 = vcmp.ge.f32.partialorder %v4395_v20, 0.0  ;;  %vm4443_vm8 = vcmp.le.f32.partialorder %v4395_v20, 18.0  ;;  %v11786_v20 = vld [vmem:[%s14384_s0 + $0x20] sm:$0xff] }
 0x5e0   :  { %9254 = vrcp.f32 %v3625_v16  ;;  %v3627_v23 = vadd.f32 1.0, %v9247_v32  ;;  %v11771_v16 = vld [vmem:[%s14384_s0 + $0x10] sm:$0xff]  ;;  %v11778_v32 = vld [vmem:[%s14384_s0 + $0x28] sm:$0xff]  ;;  %vm4467_vm6 = vmand %vm4419_vm3, %vm4443_vm8 }
 0x5e1   :  { %9256 = vrcp.f32 %v3628_v54  ;;  %v4397_v13 = vadd.f32 4.0, %v11771_v16 }
 0x5e2   :  { %9258 = vrcp.f32 %v3627_v23  ;;  %v4400_v23 = vadd.f32 4.0, %v11778_v32 }
 0x5e3   :  { %v9249_v35 = vpop.eup %9248  ;;  %vm4421_vm12 = vcmp.ge.f32.partialorder %v4397_v13, 0.0  ;;  %vm4445_vm2 = vcmp.le.f32.partialorder %v4397_v13, 18.0  ;;  %9260 = vtanh.f32 %v11659_v29 }
 0x5e4   :  { %3739 = vrot.lane.b32.xlu0 %v9249_v35, %s9553_s15  ;;  %v9251_v41 = vpop.eup %9250  ;;  %v11765_v35 = vld [vmem:[%s14384_s0 + $0x18] sm:$0xff]  ;;  %vm4424_vm5 = vcmp.ge.f32.partialorder %v4400_v23, 0.0  ;;  %vm4448_vm11 = vcmp.le.f32.partialorder %v4400_v23, 18.0  ;;  %vm4469_vm0 = vmand %vm4421_vm12, %vm4445_vm2  ;;  %9262 = vtanh.f32 %v11657_v56 }
 0x5e5   :  { %3737 = vrot.lane.b32.xlu1 %v9251_v41, %s9553_s15  ;;  %v4398_v10 = vadd.f32 4.0, %v11765_v35  ;;  %v4493_v15 = vsel %vm4469_vm0, 1, %v14918_v45  ;;  %9264 = vtanh.f32 %v11665_v46  ;;  %v11906_v46 = vld [vmem:[%s14384_s0 + $0xa0] sm:$0xff] }
 0x5e6   :  { %9266 = vtanh.f32 %v11663_v36  ;;  %v4415_v62 = vadd.f32 4.0, %v11906_v46 }
 0x5e7   :  { %v9253_v39 = vpop.eup %9252  ;;  %vm4422_vm15 = vcmp.ge.f32.partialorder %v4398_v10, 0.0  ;;  %vm4446_vm9 = vcmp.le.f32.partialorder %v4398_v10, 18.0  ;;  %v4399_v10 = vadd.f32 4.0, %v11786_v20  ;;  %9268 = vtanh.f32 %v11671_v53 }
 0x5e8   :  { %3743 = vrot.lane.b32.xlu0 %v9253_v39, %s9553_s15  ;;  %v4492_v39 = vsel %vm4468_vm14, 1, %v14918_v45  ;;  %vm4470_vm4 = vmand %vm4422_vm15, %vm4446_vm9  ;;  %9270 = vtanh.f32 %v11669_v60  ;;  %v4158_v60 = vadd.f32 -4.0, %v11765_v35  ;;  %v4160_v35 = vadd.f32 -4.0, %v11778_v32 }
 0x5e9   :  { %v4494_v9 = vsel %vm4470_vm4, 1, %v14918_v45  ;;  %vm4423_vm3 = vcmp.ge.f32.partialorder %v4399_v10, 0.0  ;;  %vm4447_vm8 = vcmp.le.f32.partialorder %v4399_v10, 18.0  ;;  %vm4472_vm14 = vmand %vm4424_vm5, %vm4448_vm11  ;;  %9272 = vtanh.f32 %v11677_v5 }
 0x5ea   :  { %v9255_v40 = vpop.eup %9254  ;;  %v4496_v12 = vsel %vm4472_vm14, 1, %v14918_v45  ;;  %9274 = vtanh.f32 %v11675_v22 }
 0x5eb   :  { %3741 = vrot.lane.b32.xlu1 %v9255_v40, %s9553_s15  ;;  %v9257_v54 = vpop.eup %9256  ;;  %v4491_v40 = vsel %vm4467_vm6, 1, %v14918_v45  ;;  %vm4471_vm6 = vmand %vm4423_vm3, %vm4447_vm8  ;;  %9276 = vtanh.f32 %v11685_v55 }
 0x5ec   :  { %3747 = vrot.lane.b32.xlu0 %v9257_v54, %s9553_s15  ;;  %v9259_v41 = vpop.eup %9258  ;;  %v11794_v54 = vld [vmem:[%s14384_s0 + $0x38] sm:$0xff]  ;;  %v4495_v63 = vsel %vm4471_vm6, 1, %v14918_v45  ;;  %9278 = vtanh.f32 %v11683_v42 }
 0x5ed   :  { %v4402_v13 = vadd.f32 4.0, %v11794_v54  ;;  %v9261_v44 = vpop.eup %9260  ;;  %v4162_v5 = vadd.f32 -4.0, %v11794_v54  ;;  %9280 = vtanh.f32 %v11693_v1 }
 0x5ee   :  { %v9263_v14 = vpop.eup %9262  ;;  %9282 = vtanh.f32 %v11691_v49 }
 0x5ef   :  { %3745 = vrot.lane.b32.xlu1 %v9259_v41, %s9553_s15  ;;  %v11801_v41 = vld [vmem:[%s14384_s0 + $0x30] sm:$0xff]  ;;  %vm4426_vm15 = vcmp.ge.f32.partialorder %v4402_v13, 0.0  ;;  %vm4450_vm9 = vcmp.le.f32.partialorder %v4402_v13, 18.0  ;;  %9284 = vtanh.f32 %v11701_v27 }
 0x5f0   :  { %4519 = vperm.xlu0 %9018, %v4492_v39   ;;  %v4401_v23 = vadd.f32 4.0, %v11801_v41  ;;  %v11808_v39 = vld [vmem:[%s14384_s0 + $0x48] sm:$0xff]  ;;  %vm4474_vm4 = vmand %vm4426_vm15, %vm4450_vm9  ;;  %9286 = vtanh.f32 %v11699_v50 }
 0x5f1   :  { %v4404_v10 = vadd.f32 4.0, %v11808_v39  ;;  %v4498_v28 = vsel %vm4474_vm4, 1, %v14918_v45  ;;  %v4164_v54 = vadd.f32 -4.0, %v11808_v39  ;;  %9288 = vtanh.f32 %v11707_v11 }
 0x5f2   :  { %vm4425_vm12 = vcmp.ge.f32.partialorder %v4401_v23, 0.0  ;;  %vm4449_vm2 = vcmp.le.f32.partialorder %v4401_v23, 18.0  ;;  %9290 = vtanh.f32 %v11709_v17  ;;  %v4175_v11 = vadd.f32 -4.0, %v11906_v46 }
 0x5f3   :  { %4516 = vperm.xlu1 %9019, %v4491_v40   ;;  %v11815_v40 = vld [vmem:[%s14384_s0 + $0x40] sm:$0xff]  ;;  %vm4428_vm5 = vcmp.ge.f32.partialorder %v4404_v10, 0.0  ;;  %vm4452_vm11 = vcmp.le.f32.partialorder %v4404_v10, 18.0  ;;  %vm4473_vm0 = vmand %vm4425_vm12, %vm4449_vm2  ;;  %v4178_v17 = vadd.f32 -4.0, %v11918_v57  ;;  %9292 = vtanh.f32 %v11717_v33 }
 0x5f4   :  { %4525 = vperm.xlu0 %9018, %v4494_v9   ;;  %v4403_v13 = vadd.f32 4.0, %v11815_v40  ;;  %v11822_v9 = vld [vmem:[%s14384_s0 + $0x58] sm:$0xff]  ;;  %vm4476_vm14 = vmand %vm4428_vm5, %vm4452_vm11  ;;  %v4497_v2 = vsel %vm4473_vm0, 1, %v14918_v45  ;;  %9294 = vtanh.f32 %v11715_v25 }
 0x5f5   :  { %v4406_v23 = vadd.f32 4.0, %v11822_v9  ;;  %v4500_v8 = vsel %vm4476_vm14, 1, %v14918_v45  ;;  %v4166_v55 = vadd.f32 -4.0, %v11822_v9 }
 0x5f6   :  { %vm4427_vm3 = vcmp.ge.f32.partialorder %v4403_v13, 0.0  ;;  %vm4451_vm8 = vcmp.le.f32.partialorder %v4403_v13, 18.0 }
 0x5f7   :  { %4522 = vperm.xlu1 %9019, %v4493_v15   ;;  %v11829_v15 = vld [vmem:[%s14384_s0 + $0x50] sm:$0xff]  ;;  %vm4430_vm15 = vcmp.ge.f32.partialorder %v4406_v23, 0.0  ;;  %vm4454_vm9 = vcmp.le.f32.partialorder %v4406_v23, 18.0  ;;  %vm4475_vm6 = vmand %vm4427_vm3, %vm4451_vm8 }
 0x5f8   :  { %4531 = vperm.xlu0 %9018, %v4496_v12   ;;  %v4405_v10 = vadd.f32 4.0, %v11829_v15  ;;  %v11836_v12 = vld [vmem:[%s14384_s0 + $0x68] sm:$0xff]  ;;  %vm4478_vm4 = vmand %vm4430_vm15, %vm4454_vm9  ;;  %v4499_v52 = vsel %vm4475_vm6, 1, %v14918_v45 }
 0x5f9   :  { %v4408_v13 = vadd.f32 4.0, %v11836_v12  ;;  %v4502_v6 = vsel %vm4478_vm4, 1, %v14918_v45  ;;  %v4168_v9 = vadd.f32 -4.0, %v11836_v12 }
 0x5fa   :  { %vm4429_vm12 = vcmp.ge.f32.partialorder %v4405_v10, 0.0  ;;  %vm4453_vm2 = vcmp.le.f32.partialorder %v4405_v10, 18.0 }
 0x5fb   :  { %4528 = vperm.xlu1 %9019, %v4495_v63   ;;  %v11843_v63 = vld [vmem:[%s14384_s0 + $0x60] sm:$0xff]  ;;  %vm4432_vm5 = vcmp.ge.f32.partialorder %v4408_v13, 0.0  ;;  %vm4456_vm11 = vcmp.le.f32.partialorder %v4408_v13, 18.0  ;;  %vm4477_vm0 = vmand %vm4429_vm12, %vm4453_vm2 }
 0x5fc   :  { %4537 = vperm.xlu0 %9018, %v4498_v28   ;;  %v4407_v23 = vadd.f32 4.0, %v11843_v63  ;;  %v11850_v28 = vld [vmem:[%s14384_s0 + $0x78] sm:$0xff]  ;;  %vm4480_vm14 = vmand %vm4432_vm5, %vm4456_vm11  ;;  %v4501_v38 = vsel %vm4477_vm0, 1, %v14918_v45 }
 0x5fd   :  { %v4410_v10 = vadd.f32 4.0, %v11850_v28  ;;  %v4170_v1 = vadd.f32 -4.0, %v11850_v28 }
 0x5fe   :  { %vm4431_vm3 = vcmp.ge.f32.partialorder %v4407_v23, 0.0  ;;  %vm4455_vm8 = vcmp.le.f32.partialorder %v4407_v23, 18.0 }
 0x5ff   :  { %4534 = vperm.xlu1 %9019, %v4497_v2   ;;  %v11857_v2 = vld [vmem:[%s14384_s0 + $0x70] sm:$0xff]  ;;  %vm4434_vm15 = vcmp.ge.f32.partialorder %v4410_v10, 0.0  ;;  %vm4458_vm9 = vcmp.le.f32.partialorder %v4410_v10, 18.0  ;;  %vm4479_vm6 = vmand %vm4431_vm3, %vm4455_vm8  ;;  %v4504_v10 = vsel %vm4480_vm14, 1, %v14918_v45 }
 0x600   :  { %4543 = vperm.xlu0 %9018, %v4500_v8   ;;  %v4409_v13 = vadd.f32 4.0, %v11857_v2  ;;  %v11865_v8 = vld [vmem:[%s14384_s0 + $0x88] sm:$0xff]  ;;  %vm4482_vm4 = vmand %vm4434_vm15, %vm4458_vm9  ;;  %v4503_v47 = vsel %vm4479_vm6, 1, %v14918_v45 }
 0x601   :  { %v4412_v23 = vadd.f32 4.0, %v11865_v8  ;;  %v4506_v48 = vsel %vm4482_vm4, 1, %v14918_v45  ;;  %v4172_v28 = vadd.f32 -4.0, %v11865_v8 }
 0x602   :  { %vm4433_vm12 = vcmp.ge.f32.partialorder %v4409_v13, 0.0  ;;  %vm4457_vm2 = vcmp.le.f32.partialorder %v4409_v13, 18.0 }
 0x603   :  { %4540 = vperm.xlu1 %9019, %v4499_v52   ;;  %v11872_v52 = vld [vmem:[%s14384_s0 + $0x80] sm:$0xff]  ;;  %vm4436_vm5 = vcmp.ge.f32.partialorder %v4412_v23, 0.0  ;;  %vm4460_vm11 = vcmp.le.f32.partialorder %v4412_v23, 18.0  ;;  %vm4481_vm0 = vmand %vm4433_vm12, %vm4457_vm2 }
 0x604   :  { %4549 = vperm.xlu0 %9018, %v4502_v6   ;;  %v4411_v29 = vadd.f32 4.0, %v11872_v52  ;;  %v11880_v6 = vld [vmem:[%s14384_s0 + $0x98] sm:$0xff]  ;;  %vm4484_vm14 = vmand %vm4436_vm5, %vm4460_vm11  ;;  %v4505_v23 = vsel %vm4481_vm0, 1, %v14918_v45 }
 0x605   :  { %v4414_v56 = vadd.f32 4.0, %v11880_v6  ;;  %v4508_v19 = vsel %vm4484_vm14, 1, %v14918_v45  ;;  %v4174_v27 = vadd.f32 -4.0, %v11880_v6 }
 0x606   :  { %vm4435_vm3 = vcmp.ge.f32.partialorder %v4411_v29, 0.0  ;;  %vm4459_vm8 = vcmp.le.f32.partialorder %v4411_v29, 18.0  ;;  %v11899_v29 = vld [vmem:[%s14384_s0 + $0xa8] sm:$0xff] }
 0x607   :  { %4546 = vperm.xlu1 %9019, %v4501_v38   ;;  %v11887_v38 = vld [vmem:[%s14384_s0 + $0x90] sm:$0xff]  ;;  %vm11892_vm15 = vmand %vm4435_vm3, %vm4459_vm8  ;;  %vm4438_vm9 = vcmp.ge.f32.partialorder %v4414_v56, 0.0  ;;  %vm4462_vm6 = vcmp.le.f32.partialorder %v4414_v56, 18.0  ;;  %v4416_v21 = vadd.f32 4.0, %v11899_v29  ;;  %vm4439_vm3 = vcmp.ge.f32.partialorder %v4415_v62, 0.0 }
 0x608   :  { %4555 = vperm.xlu0 %9018, %v4504_v10   ;;  %v4413_v13 = vadd.f32 4.0, %v11887_v38  ;;  %vm4486_vm4 = vmand %vm4438_vm9, %vm4462_vm6  ;;  %vm4463_vm8 = vcmp.le.f32.partialorder %v4415_v62, 18.0  ;;  %v4156_v62 = vadd.f32 -4.0, %v11751_v26  ;;  %v4176_v6 = vadd.f32 -4.0, %v11899_v29 }
 0x609   :  { %vm4440_vm5 = vcmp.ge.f32.partialorder %v4416_v21, 0.0  ;;  %vm4464_vm11 = vcmp.le.f32.partialorder %v4416_v21, 18.0  ;;  %v9265_v21 = vpop.eup %9264  ;;  %9296 = vtanh.f32 %v11725_v30 }
 0x60a   :  { %vm4437_vm12 = vcmp.ge.f32.partialorder %v4413_v13, 0.0  ;;  %vm4461_vm2 = vcmp.le.f32.partialorder %v4413_v13, 18.0  ;;  %v4418_v13 = vadd.f32 4.0, %v11918_v57  ;;  %vm4488_vm14 = vmand %vm4440_vm5, %vm4464_vm11  ;;  %vm4180_vm5 = vcmp.ge.f32.partialorder %v4156_v62, 0.0 }
 0x60b   :  { %4552 = vperm.xlu1 %9019, %v4503_v47   ;;  %vm4485_vm0 = vmand %vm4437_vm12, %vm4461_vm2  ;;  %vm4204_vm11 = vcmp.le.f32.partialorder %v4156_v62, 18.0 }
 0x60c   :  { %4561 = vperm.xlu0 %9018, %v4506_v48   ;;  %v4507_v48 = vsel %vm11892_vm15, 1, %v14918_v45  ;;  %vm11931_vm15 = vmand %vm4439_vm3, %vm4463_vm8  ;;  %vm4442_vm9 = vcmp.ge.f32.partialorder %v4418_v13, 0.0  ;;  %vm4466_vm6 = vcmp.le.f32.partialorder %v4418_v13, 18.0 }
 0x60d   :  { %v4511_v26 = vsel %vm11931_vm15, 1, %v14918_v45 }
 0x60e   :  { %v3704_v47 = vpop.permute.xlu0 %3703 }
 0x60f   :  { %v3702_v4 = vpop.permute.xlu1 %3701  ;;  %4558 = vperm.xlu1 %9019, %v4505_v23   ;;  %v3774_v36 = vmul.f32 %v9263_v14, %v3704_v47  ;;  %v11927_v14 = vld [vmem:[%s14384_s0 + $0xb0] sm:$0xff]  ;;  %v4155_v23 = vadd.f32 -4.0, %v11758_v24  ;;  %v4512_v47 = vsel %vm4488_vm14, 1, %v14918_v45  ;;  %vm4228_vm14 = vmand %vm4180_vm5, %vm4204_vm11  ;;  %vm4184_vm5 = vcmp.ge.f32.partialorder %v4160_v35, 0.0 }
 0x610   :  { %v3773_v59 = vmul.f32 %v9261_v44, %v3702_v4  ;;  %4567 = vperm.xlu0 %9018, %v4508_v19   ;;  %v4510_v4 = vsel %vm4486_vm4, 1, %v14918_v45  ;;  %v4417_v44 = vadd.f32 4.0, %v11927_v14  ;;  %v4509_v19 = vsel %vm4485_vm0, 1, %v14918_v45  ;;  %vm4490_vm4 = vmand %vm4442_vm9, %vm4466_vm6 }
 0x611   :  { %vm4179_vm3 = vcmp.ge.f32.partialorder %v4155_v23, 0.0  ;;  %vm4203_vm8 = vcmp.le.f32.partialorder %v4155_v23, 18.0  ;;  %v4514_v24 = vsel %vm4490_vm4, 1, %v14918_v45  ;;  %vm4182_vm9 = vcmp.ge.f32.partialorder %v4158_v60, 0.0 }
 0x612   :  { %8747 = vmatprep.mubr.msk.f32.mxu1 %vm1361_vm7, %v3773_v59  ;;  %vm4441_vm12 = vcmp.ge.f32.partialorder %v4417_v44, 0.0  ;;  %vm4465_vm2 = vcmp.le.f32.partialorder %v4417_v44, 18.0  ;;  %vm4227_vm15 = vmand %vm4179_vm3, %vm4203_vm8  ;;  %vm4206_vm6 = vcmp.le.f32.partialorder %v4158_v60, 18.0  ;;  %v4159_v44 = vadd.f32 -4.0, %v11786_v20 }
 0x613   :  { %8748 = vmatmul.mubr.msk.f32.vlgmr.msra.gmra.mrb[60].mxu1 %vm1361_vm7, %v3774_v36  ;;  %4564 = vperm.xlu1 %9019, %v4507_v48   ;;  %v9267_v48 = vpop.eup %9266  ;;  %vm4489_vm0 = vmand %vm4441_vm12, %vm4465_vm2  ;;  %v4252_v59 = vsel %vm4228_vm14, 1, %v14918_v45  ;;  %vm4208_vm11 = vcmp.le.f32.partialorder %v4160_v35, 18.0  ;;  %v4161_v23 = vadd.f32 -4.0, %v11801_v41  ;;  %9298 = vtanh.f32 %v11723_v58 }
 0x614   :  { %4573 = vperm.xlu0 %9018, %v4510_v4   ;;  %v4157_v4 = vadd.f32 -4.0, %v11771_v16  ;;  %v4513_v13 = vsel %vm4489_vm0, 1, %v14918_v45  ;;  %v9269_v16 = vpop.eup %9268  ;;  %vm4230_vm4 = vmand %vm4182_vm9, %vm4206_vm6  ;;  %vm4183_vm3 = vcmp.ge.f32.partialorder %v4159_v44, 0.0  ;;  %vm4207_vm8 = vcmp.le.f32.partialorder %v4159_v44, 18.0 }
 0x615   :  { %v9271_v32 = vpop.eup %9270  ;;  %v4254_v22 = vsel %vm4230_vm4, 1, %v14918_v45  ;;  %vm4232_vm14 = vmand %vm4184_vm5, %vm4208_vm11  ;;  %vm4186_vm9 = vcmp.ge.f32.partialorder %v4162_v5, 0.0  ;;  %vm4210_vm6 = vcmp.le.f32.partialorder %v4162_v5, 18.0  ;;  %vm4188_vm5 = vcmp.ge.f32.partialorder %v4164_v54, 0.0 }
 0x616   :  { %v3708_v56 = vpop.permute.xlu0 %3707  ;;  %vm4181_vm12 = vcmp.ge.f32.partialorder %v4157_v4, 0.0  ;;  %vm4205_vm2 = vcmp.le.f32.partialorder %v4157_v4, 18.0  ;;  %v4256_v41 = vsel %vm4232_vm14, 1, %v14918_v45  ;;  %vm4234_vm4 = vmand %vm4186_vm9, %vm4210_vm6  ;;  %vm4212_vm11 = vcmp.le.f32.partialorder %v4164_v54, 18.0 }
 0x617   :  { %v3706_v10 = vpop.permute.xlu1 %3705  ;;  %4570 = vperm.xlu1 %9019, %v4509_v19   ;;  %v3776_v53 = vmul.f32 %v9267_v48, %v3708_v56  ;;  %vm4229_vm0 = vmand %vm4181_vm12, %vm4205_vm2  ;;  %vm4185_vm12 = vcmp.ge.f32.partialorder %v4161_v23, 0.0  ;;  %vm4209_vm2 = vcmp.le.f32.partialorder %v4161_v23, 18.0  ;;  %v4258_v42 = vsel %vm4234_vm4, 1, %v14918_v45 }
 0x618   :  { %v3775_v36 = vmul.f32 %v9265_v21, %v3706_v10  ;;  %4579 = vperm.xlu0 %9018, %v4512_v47   ;;  %v4251_v21 = vsel %vm4227_vm15, 1, %v14918_v45  ;;  %v4253_v10 = vsel %vm4229_vm0, 1, %v14918_v45  ;;  %vm4231_vm15 = vmand %vm4183_vm3, %vm4207_vm8  ;;  %v4163_v47 = vadd.f32 -4.0, %v11815_v40 }
 0x619   :  { %vm4233_vm0 = vmand %vm4185_vm12, %vm4209_vm2  ;;  %vm4190_vm9 = vcmp.ge.f32.partialorder %v4166_v55, 0.0  ;;  %vm4214_vm6 = vcmp.le.f32.partialorder %v4166_v55, 18.0  ;;  %9300 = vtanh.f32 %v11732_v3 }
 0x61a   :  { %8750 = vmatprep.mubr.msk.f32.mxu1 %vm1361_vm7, %v3775_v36  ;;  %v9273_v36 = vpop.eup %9272  ;;  %vm4187_vm3 = vcmp.ge.f32.partialorder %v4163_v47, 0.0  ;;  %vm4211_vm8 = vcmp.le.f32.partialorder %v4163_v47, 18.0  ;;  %vm4236_vm14 = vmand %vm4188_vm5, %vm4212_vm11  ;;  %v4257_v4 = vsel %vm4233_vm0, 1, %v14918_v45  ;;  %vm4192_vm5 = vcmp.ge.f32.partialorder %v4168_v9, 0.0 }
 0x61b   :  { %8751 = vmatmul.mubr.msk.f32.gmra.mrb[62].mxu1 %vm1361_vm7, %v3776_v53  ;;  %4576 = vperm.xlu1 %9019, %v4511_v26   ;;  %v4255_v53 = vsel %vm4231_vm15, 1, %v14918_v45  ;;  %v9275_v39 = vpop.eup %9274  ;;  %vm4235_vm15 = vmand %vm4187_vm3, %vm4211_vm8  ;;  %vm4216_vm11 = vcmp.le.f32.partialorder %v4168_v9, 18.0  ;;  %9302 = vtanh.f32 %v11729_v61 }
 0x61c   :  { %4585 = vperm.xlu0 %9018, %v4514_v24   ;;  %v4165_v24 = vadd.f32 -4.0, %v11829_v15  ;;  %v4260_v15 = vsel %vm4236_vm14, 1, %v14918_v45  ;;  %v9277_v44 = vpop.eup %9276  ;;  %vm4238_vm4 = vmand %vm4190_vm9, %vm4214_vm6  ;;  %vm4194_vm9 = vcmp.ge.f32.partialorder %v4170_v1, 0.0  ;;  %vm4218_vm6 = vcmp.le.f32.partialorder %v4170_v1, 18.0 }
 0x61d   :  { %v9279_v12 = vpop.eup %9278  ;;  %v4262_v49 = vsel %vm4238_vm4, 1, %v14918_v45  ;;  %vm4240_vm14 = vmand %vm4192_vm5, %vm4216_vm11  ;;  %vm4196_vm5 = vcmp.ge.f32.partialorder %v4172_v28, 0.0  ;;  %vm4220_vm11 = vcmp.le.f32.partialorder %v4172_v28, 18.0  ;;  %9304 = vtanh.f32 %v11739_v51 }
 0x61e   :  { %v3712_v19 = vpop.permute.xlu0 %3711  ;;  %vm4189_vm12 = vcmp.ge.f32.partialorder %v4165_v24, 0.0  ;;  %vm4213_vm2 = vcmp.le.f32.partialorder %v4165_v24, 18.0  ;;  %v9281_v5 = vpop.eup %9280  ;;  %vm4242_vm4 = vmand %vm4194_vm9, %vm4218_vm6  ;;  %vm4198_vm9 = vcmp.ge.f32.partialorder %v4174_v27, 0.0  ;;  %vm4222_vm6 = vcmp.le.f32.partialorder %v4174_v27, 18.0 }
 0x61f   :  { %4582 = vperm.xlu1 %9019, %v4513_v13   ;;  %v3710_v62 = vpop.permute.xlu1 %3709  ;;  %v3778_v20 = vmul.f32 %v9271_v32, %v3712_v19  ;;  %v4167_v13 = vadd.f32 -4.0, %v11843_v63  ;;  %vm4237_vm0 = vmand %vm4189_vm12, %vm4213_vm2  ;;  %v4171_v32 = vadd.f32 -4.0, %v11872_v52  ;;  %v9283_v8 = vpop.eup %9282  ;;  %v4266_v50 = vsel %vm4242_vm4, 1, %v14918_v45 }
 0x620   :  { %v3777_v56 = vmul.f32 %v9269_v16, %v3710_v62  ;;  %4279 = vperm.xlu0 %9018, %v4252_v59   ;;  %v4259_v59 = vsel %vm4235_vm15, 1, %v14918_v45  ;;  %v4169_v62 = vadd.f32 -4.0, %v11857_v2  ;;  %v4264_v2 = vsel %vm4240_vm14, 1, %v14918_v45  ;;  %vm4244_vm14 = vmand %vm4196_vm5, %vm4220_vm11 }
 0x621   :  { %vm4191_vm3 = vcmp.ge.f32.partialorder %v4167_v13, 0.0  ;;  %vm4215_vm8 = vcmp.le.f32.partialorder %v4167_v13, 18.0  ;;  %vm4246_vm4 = vmand %vm4198_vm9, %vm4222_vm6  ;;  %vm4200_vm5 = vcmp.ge.f32.partialorder %v4176_v6, 0.0  ;;  %vm4224_vm11 = vcmp.le.f32.partialorder %v4176_v6, 18.0 }
 0x622   :  { %8753 = vmatprep.mubr.msk.f32.mxu1 %vm1361_vm7, %v3777_v56  ;;  %vm4239_vm15 = vmand %vm4191_vm3, %vm4215_vm8  ;;  %vm4193_vm12 = vcmp.ge.f32.partialorder %v4169_v62, 0.0  ;;  %vm4217_vm2 = vcmp.le.f32.partialorder %v4169_v62, 18.0  ;;  %vm4195_vm3 = vcmp.ge.f32.partialorder %v4171_v32, 0.0  ;;  %vm4219_vm8 = vcmp.le.f32.partialorder %v4171_v32, 18.0 }
 0x623   :  { %4276 = vperm.xlu1 %9019, %v4251_v21   ;;  %8754 = vmatmul.mubr.msk.f32.gmra.mrb[64].mxu1 %vm1361_vm7, %v3778_v20  ;;  %v4261_v21 = vsel %vm4237_vm0, 1, %v14918_v45  ;;  %vm4241_vm0 = vmand %vm4193_vm12, %vm4217_vm2  ;;  %v4270_v46 = vsel %vm4246_vm4, 1, %v14918_v45  ;;  %vm4226_vm9 = vcmp.le.f32.partialorder %v4178_v17, 18.0  ;;  %9306 = vtanh.f32 %v11737_v7 }
 0x624   :  { %4285 = vperm.xlu0 %9018, %v4254_v22   ;;  %v4263_v22 = vsel %vm4239_vm15, 1, %v14918_v45  ;;  %v4265_v54 = vsel %vm4241_vm0, 1, %v14918_v45  ;;  %vm4243_vm15 = vmand %vm4195_vm3, %vm4219_vm8  ;;  %vm4199_vm3 = vcmp.ge.f32.partialorder %v4175_v11, 0.0  ;;  %vm4223_vm8 = vcmp.le.f32.partialorder %v4175_v11, 18.0 }
 0x625   :  { %vm4247_vm6 = vmand %vm4199_vm3, %vm4223_vm8 }
 0x626   :  { %v3716_v48 = vpop.permute.xlu0 %3715 }
 0x627   :  { %4282 = vperm.xlu1 %9019, %v4253_v10   ;;  %v3714_v26 = vpop.permute.xlu1 %3713  ;;  %v3780_v40 = vmul.f32 %v9275_v39, %v3716_v48  ;;  %v4173_v10 = vadd.f32 -4.0, %v11887_v38  ;;  %v4268_v48 = vsel %vm4244_vm14, 1, %v14918_v45  ;;  %v9285_v38 = vpop.eup %9284  ;;  %v4177_v39 = vadd.f32 -4.0, %v11927_v14  ;;  %vm4248_vm14 = vmand %vm4200_vm5, %vm4224_vm11 }
 0x628   :  { %v3779_v60 = vmul.f32 %v9273_v36, %v3714_v26  ;;  %4291 = vperm.xlu0 %9018, %v4256_v41   ;;  %v4267_v36 = vsel %vm4243_vm15, 1, %v14918_v45  ;;  %v9287_v26 = vpop.eup %9286  ;;  %vm4202_vm15 = vcmp.ge.f32.partialorder %v4178_v17, 0.0  ;;  %vm4130_vm11 = vcmp.lt.s32.totalorder %v9977_v37, 4  ;;  %v14998_v37 = vld [vmem:[#allocation48_spill] sm:$0xff] }
 0x629   :  { %vm4197_vm12 = vcmp.ge.f32.partialorder %v4173_v10, 0.0  ;;  %vm4221_vm2 = vcmp.le.f32.partialorder %v4173_v10, 18.0  ;;  %v9289_v57 = vpop.eup %9288  ;;  %vm4250_vm4 = vmand %vm4202_vm15, %vm4226_vm9 }
 0x62a   :  { %8756 = vmatprep.mubr.msk.f32.mxu1 %vm1361_vm7, %v3779_v60  ;;  %vm4245_vm0 = vmand %vm4197_vm12, %vm4221_vm2  ;;  %vm4201_vm12 = vcmp.ge.f32.partialorder %v4177_v39, 0.0  ;;  %vm4225_vm2 = vcmp.le.f32.partialorder %v4177_v39, 18.0  ;;  %v9291_v14 = vpop.eup %9290  ;;  %v4274_v33 = vsel %vm4250_vm4, 1, %v14918_v45  ;;  %v14926_v39 = vld [vmem:[#allocation96_spill] sm:$0xff] }
 0x62b   :  { %4288 = vperm.xlu1 %9019, %v4255_v53   ;;  %8757 = vmatmul.mubr.msk.f32.gmra.mrb[66].mxu1 %vm1361_vm7, %v3780_v40  ;;  %v4269_v60 = vsel %vm4245_vm0, 1, %v14918_v45  ;;  %v4272_v40 = vsel %vm4248_vm14, 1, %v14918_v45  ;;  %vm4249_vm5 = vmand %vm4201_vm12, %vm4225_vm2 }
 0x62c   :  { %4297 = vperm.xlu0 %9018, %v4258_v42   ;;  %v4273_v25 = vsel %vm4249_vm5, 1, %v14918_v45 }
 0x62e   :  { %v3720_v35 = vpop.permute.xlu0 %3719 }
 0x62f   :  { %4294 = vperm.xlu1 %9019, %v4257_v4   ;;  %v3718_v19 = vpop.permute.xlu1 %3717  ;;  %v3782_v63 = vmul.f32 %v9279_v12, %v3720_v35  ;;  %v4271_v4 = vsel %vm4247_vm6, 1, %v14918_v45  ;;  %v9293_v35 = vpop.eup %9292 }
 0x630   :  { %v3781_v16 = vmul.f32 %v9277_v44, %v3718_v19  ;;  %4303 = vperm.xlu0 %9018, %v4260_v15   ;;  %v9295_v44 = vpop.eup %9294 }
 0x631   :  { %v9297_v30 = vpop.eup %9296 }
 0x632   :  { %8759 = vmatprep.mubr.msk.f32.mxu1 %vm1361_vm7, %v3781_v16  ;;  %v9299_v16 = vpop.eup %9298 }
 0x633   :  { %4300 = vperm.xlu1 %9019, %v4259_v59   ;;  %8760 = vmatmul.mubr.msk.f32.gmra.mrb[68].mxu1 %vm1361_vm7, %v3782_v63  ;;  %v9301_v3 = vpop.eup %9300 }
 0x634   :  { %4309 = vperm.xlu0 %9018, %v4262_v49  }
 0x636   :  { %v3724_v56 = vpop.permute.xlu0 %3723 }
 0x637   :  { %4306 = vperm.xlu1 %9019, %v4261_v21   ;;  %v3722_v20 = vpop.permute.xlu1 %3721  ;;  %v3784_v52 = vmul.f32 %v9283_v8, %v3724_v56  ;;  %v9303_v21 = vpop.eup %9302 }
 0x638   :  { %v3783_v23 = vmul.f32 %v9281_v5, %v3722_v20  ;;  %4315 = vperm.xlu0 %9018, %v4264_v2   ;;  %v9305_v51 = vpop.eup %9304  ;;  %v4102_v20 = vld [vmem:[%s14385_s1 + $0x38] sm:$0xff] }
 0x639   :  { %v9307_v7 = vpop.eup %9306 }
 0x63a   :  { %8762 = vmatprep.mubr.msk.f32.mxu1 %vm1361_vm7, %v3783_v23 }
 0x63b   :  { %4312 = vperm.xlu1 %9019, %v4263_v22   ;;  %8763 = vmatmul.mubr.msk.f32.gmra.mrb[70].mxu1 %vm1361_vm7, %v3784_v52  ;;  %v4103_v22 = vld [vmem:[%s14385_s1 + $0x40] sm:$0xff] }
 0x63c   :  { %4321 = vperm.xlu0 %9018, %v4266_v50   ;;  %v8993_v8 = vpack.c.bf16 %v4103_v22, %v4102_v20 }
 0x63e   :  { %v3728_v47 = vpop.permute.xlu0 %3727  ;;  %8994 = vmatprep.subr.bf16.mxu0 %v8993_v8 }
 0x63f   :  { %4318 = vperm.xlu1 %9019, %v4265_v54   ;;  %v3726_v41 = vpop.permute.xlu1 %3725  ;;  %v3786_v29 = vmul.f32 %v9287_v26, %v3728_v47  ;;  %8996 = vmatpush3.bf16.msra.mxu0 %v8993_v8  ;;  %v4104_v47 = vld [vmem:[%s14385_s1 + $0x48] sm:$0xff] }
 0x640   :  { %v3785_v53 = vmul.f32 %v9285_v38, %v3726_v41  ;;  %4327 = vperm.xlu0 %9018, %v4268_v48   ;;  %8787 = vmatprep.subr.mxu0 %v4104_v47  ;;  %v14923_v38 = vld [vmem:[#allocation95_spill] sm:$0xff] }
 0x642   :  { %8765 = vmatprep.mubr.msk.f32.mxu1 %vm1361_vm7, %v3785_v53 }
 0x643   :  { %4324 = vperm.xlu1 %9019, %v4267_v36   ;;  %8766 = vmatmul.mubr.msk.f32.gmra.mrb[72].mxu1 %vm1361_vm7, %v3786_v29  ;;  %v14924_v36 = vld [vmem:[#allocation33_spill] sm:$0xff] }
 0x644   :  { %4333 = vperm.xlu0 %9018, %v4270_v46   ;;  %8788 = vmatpush3.msra.mxu0 %v4104_v47  ;;  %v14925_v29 = vld [vmem:[#allocation97_spill] sm:$0xff] }
 0x646   :  { %v3732_v55 = vpop.permute.xlu0 %3731 }
 0x647   :  { %4330 = vperm.xlu1 %9019, %v4269_v60   ;;  %v3730_v42 = vpop.permute.xlu1 %3729  ;;  %v3788_v9 = vmul.f32 %v9289_v57, %v3732_v55 }
 0x648   :  { %v3787_v24 = vmul.f32 %v9291_v14, %v3730_v42  ;;  %4339 = vperm.xlu0 %9018, %v4272_v40  }
 0x64a   :  { %8768 = vmatprep.mubr.msk.f32.mxu1 %vm1361_vm7, %v3787_v24 }
 0x64b   :  { %4336 = vperm.xlu1 %9019, %v4271_v4   ;;  %8769 = vmatmul.mubr.msk.f32.gmra.mrb[74].mxu1 %vm1361_vm7, %v3788_v9 }
 0x64c   :  { %4345 = vperm.xlu0 %9018, %v4274_v33   ;;  %v14927_v33 = vld [vmem:[#allocation98_spill] sm:$0xff] }
 0x64e   :  { %v3736_v13 = vpop.permute.xlu0 %3735 }
 0x64f   :  { %4342 = vperm.xlu1 %9019, %v4273_v25   ;;  %v3734_v15 = vpop.permute.xlu1 %3733  ;;  %v3790_v59 = vmul.f32 %v9295_v44, %v3736_v13  ;;  %v14930_v44 = vld [vmem:[#allocation99_spill] sm:$0xff] }
 0x650   :  { %v3789_v19 = vmul.f32 %v9293_v35, %v3734_v15  ;;  %v14929_v35 = vld [vmem:[#allocation100_spill] sm:$0xff] }
 0x652   :  { %8771 = vmatprep.mubr.msk.f32.mxu1 %vm1361_vm7, %v3789_v19 }
 0x653   :  { %8772 = vmatmul.mubr.msk.f32.gmra.mrb[76].mxu1 %vm1361_vm7, %v3790_v59 }
 0x656   :  { %v3740_v12 = vpop.permute.xlu0 %3739 }
 0x657   :  { %v3738_v58 = vpop.permute.xlu1 %3737  ;;  %v3792_v63 = vmul.f32 %v9299_v16, %v3740_v12 }
 0x658   :  { %v3791_v1 = vmul.f32 %v9297_v30, %v3738_v58 }
 0x65a   :  { %v3744_v49 = vpop.permute.xlu0 %3743  ;;  %8774 = vmatprep.mubr.msk.f32.mxu1 %vm1361_vm7, %v3791_v1 }
 0x65b   :  { %8775 = vmatmul.mubr.msk.f32.gmra.mrb[78].mxu1 %vm1361_vm7, %v3792_v63  ;;  %v3794_v61 = vmul.f32 %v9303_v21, %v3744_v49 }
 0x65d   :  { %v3742_v62 = vpop.permute.xlu1 %3741 }
 0x65e   :  { %v3793_v28 = vmul.f32 %v9301_v3, %v3742_v62  ;;  %v3748_v32 = vpop.permute.xlu0 %3747  ;;  %v14932_v62 = vld [vmem:[#allocation101_spill] sm:$0xff] }
 0x65f   :  { %v3796_v5 = vmul.f32 %v9307_v7, %v3748_v32  ;;  %v14934_v32 = vld [vmem:[#allocation102_spill] sm:$0xff] }
 0x660   :  { %8777 = vmatprep.mubr.msk.f32.mxu1 %vm1361_vm7, %v3793_v28 }
 0x661   :  { %8778 = vmatmul.mubr.msk.f32.gmra.mrb[80].mxu1 %vm1361_vm7, %v3794_v61  ;;  %v3746_v56 = vpop.permute.xlu1 %3745 }
 0x662   :  { %v3795_v2 = vmul.f32 %v9305_v51, %v3746_v56 }
 0x664   :  { %8780 = vmatprep.mubr.msk.f32.mxu1 %vm1361_vm7, %v3795_v2 }
 0x665   :  { %8781 = vmatmul.mubr.msk.f32.gmra.mrb[82].mxu1 %vm1361_vm7, %v3796_v5 }
 0x66f   :  { %v4520_v52 = vpop.permute.xlu0 %4519 }
 0x670   :  { %vm4588_vm8 = vcmp.eq.s32.totalorder %v4520_v52, 1  ;;  %v14936_v52 = vld [vmem:[#allocation36_spill] sm:$0xff] }
 0x672   :  { %v4517_v23 = vpop.permute.xlu1 %4516 }
 0x673   :  { %v12046_v10 = vpop.permute.xlu0 %4525  ;;  %vm4587_vm0 = vcmp.eq.s32.totalorder %v4517_v23, 1 }
 0x674   :  { %vm4590_vm15 = vcmp.eq.s32.totalorder %v12046_v10, 1 }
 0x676   :  { %v4523_v27 = vpop.permute.xlu1 %4522 }
 0x677   :  { %v12050_v6 = vpop.permute.xlu0 %4531  ;;  %vm4589_vm3 = vcmp.eq.s32.totalorder %v4523_v27, 1 }
 0x678   :  { %vm4592_vm6 = vcmp.eq.s32.totalorder %v12050_v6, 1 }
 0x67a   :  { %v12044_v50 = vpop.permute.xlu1 %4528 }
 0x67b   :  { %v12061_v17 = vpop.permute.xlu0 %4537  ;;  %vm4591_vm14 = vcmp.eq.s32.totalorder %v12044_v50, 1 }
 0x67c   :  { %vm4594_vm2 = vcmp.eq.s32.totalorder %v12061_v17, 1 }
 0x67e   :  { %v12048_v54 = vpop.permute.xlu1 %4534 }
 0x67f   :  { %v12083_v24 = vpop.permute.xlu0 %4543  ;;  %vm4593_vm9 = vcmp.eq.s32.totalorder %v12048_v54, 1  ;;  %v14940_v54 = vld [vmem:[#allocation44_spill] sm:$0xff] }
 0x680   :  { %vm4596_vm5 = vcmp.eq.s32.totalorder %v12083_v24, 1 }
 0x682   :  { %v12055_v48 = vpop.permute.xlu1 %4540 }
 0x683   :  { %v12098_v58 = vpop.permute.xlu0 %4549  ;;  %vm4595_vm12 = vcmp.eq.s32.totalorder %v12055_v48, 1  ;;  %v14946_v48 = vld [vmem:[#allocation49_spill] sm:$0xff] }
 0x686   :  { %v12074_v40 = vpop.permute.xlu1 %4546 }
 0x687   :  { %v12120_v56 = vpop.permute.xlu0 %4555  ;;  %vm4597_vm4 = vcmp.eq.s32.totalorder %v12074_v40, 1  ;;  %v14952_v40 = vld [vmem:[#allocation53_spill] sm:$0xff] }
 0x68a   :  { %v12095_v12 = vpop.permute.xlu1 %4552 }
 0x68b   :  { %v12139_v23 = vpop.permute.xlu0 %4561 }
 0x68e   :  { %v12110_v49 = vpop.permute.xlu1 %4558 }
 0x692   :  { %v12134_v20 = vpop.permute.xlu1 %4564 }
 0x6e6   :  { %v8749_v11 = vpop.f32.mrb[60].mxu1 }
 0x6e7   :  { %v4055_v41 = vadd.f32 %v8749_v11, %v14923_v38  ;;  %v12059_v26 = vadd.f32 %v8749_v11, %v14924_v36  ;;  %v3935_v53 = vpop.f32.mrb[61].mxu1  ;;  %v14938_v38 = vld [vmem:[#allocation39_spill] sm:$0xff] }
 0x6e8   :  { %v12064_v46 = vadd.f32 %v3935_v53, %v14925_v29  ;;  %v12067_v60 = vadd.f32 %v3935_v53, %v14926_v39  ;;  %v12152_v29 = vpop.permute.xlu1 %4570 }
 0x6e9   :  { %v4107_v57 = vrot.slane %v4055_v41, 4  ;;  %4661 = vrot.lane.b32.xlu0 %v4055_v41, %s9551_s12 }
 0x6ea   :  { %v14662_v55 = vrot.slane %v12064_v46, 4  ;;  %4659 = vrot.lane.b32.xlu1 %v12064_v46, %s9551_s12 }
 0x6ec   :  { %v12080_v14 = vsel %vm4130_vm11, %v14662_v55, %v4107_v57  ;;  %v14968_v55 = vld [vmem:[#allocation111_spill] sm:$0xff] }
 0x6ed   :  { %v4611_v42 = vsel %vm4587_vm0, %v12080_v14, 0.0  ;;  %vm4599_vm0 = vcmp.eq.s32.totalorder %v12095_v12, 1  ;;  %v14958_v12 = vld [vmem:[#allocation56_spill] sm:$0xff] }
 0x6ee   :  { %v8752_v4 = vpop.f32.mrb[62].mxu1  ;;  %4755 = vrot.lane.b32.xlu1 %v4611_v42, %s9552_s14 }
 0x6ef   :  { %v4057_v9 = vadd.f32 %v8752_v4, %v11074_v18  ;;  %v12088_v25 = vadd.f32 %v8752_v4, %v14927_v33  ;;  %v3945_v13 = vpop.f32.mrb[63].mxu1 }
 0x6f0   :  { %v4056_v15 = vadd.f32 %v3945_v13, %v14929_v35  ;;  %v12092_v19 = vadd.f32 %v3945_v13, %v14930_v44  ;;  %v14943_v35 = vld [vmem:[#allocation47_spill] sm:$0xff] }
 0x6f1   :  { %14928 = vst [vmem:[#allocation95_spill] sm:$0xff] %v12088_v25  ;;  %v4109_v59 = vrot.slane %v4057_v9, 4  ;;  %4665 = vrot.lane.b32.xlu0 %v4057_v9, %s9551_s12  ;;  %v14941_v9 = vld [vmem:[#allocation41_spill] sm:$0xff]  ;;  %v14944_v44 = vld [vmem:[#allocation103_spill] sm:$0xff] }
 0x6f2   :  { %14931 = vst [vmem:[#allocation33_spill] sm:$0xff] %v12092_v19  ;;  %v4108_v30 = vrot.slane %v4056_v15, 4  ;;  %4663 = vrot.lane.b32.xlu1 %v4056_v15, %s9551_s12 }
 0x6f4   :  { %v12102_v18 = vsel %vm4130_vm11, %v4108_v30, %v4109_v59  ;;  %v12106_v16 = vsel %vm4130_vm11, %v4107_v57, %v4108_v30  ;;  %v12164_v57 = vpop.permute.xlu0 %4567  ;;  %v12177_v30 = vpop.permute.xlu1 %4576 }
 0x6f5   :  { %v4613_v1 = vsel %vm4589_vm3, %v12102_v18, 0.0  ;;  %vm4598_vm3 = vcmp.eq.s32.totalorder %v12098_v58, 1 }
 0x6f6   :  { %4759 = vrot.lane.b32.xlu1 %v4613_v1, %s9552_s14  ;;  %v8755_v63 = vpop.f32.mrb[64].mxu1 }
 0x6f7   :  { %v4059_v3 = vadd.f32 %v8755_v63, %v11101_v31  ;;  %v12114_v21 = vadd.f32 %v8755_v63, %v14932_v62  ;;  %v3955_v28 = vpop.f32.mrb[65].mxu1  ;;  %v4612_v31 = vsel %vm4588_vm8, %v12106_v16, 0.0  ;;  %vm4601_vm8 = vcmp.eq.s32.totalorder %v12110_v49, 1  ;;  %v14964_v49 = vld [vmem:[#allocation59_spill] sm:$0xff] }
 0x6f8   :  { %v4058_v61 = vadd.f32 %v3955_v28, %v11107_v43  ;;  %v12118_v51 = vadd.f32 %v3955_v28, %v14934_v32  ;;  %v12197_v6 = vpop.permute.xlu1 %4582 }
 0x6f9   :  { %14933 = vst [vmem:[#allocation97_spill] sm:$0xff] %v12114_v21  ;;  %v4111_v7 = vrot.slane %v4059_v3, 4  ;;  %4669 = vrot.lane.b32.xlu0 %v4059_v3, %s9551_s12  ;;  %v12182_v3 = vpop.permute.xlu0 %4573 }
 0x6fa   :  { %14935 = vst [vmem:[#allocation96_spill] sm:$0xff] %v12118_v51  ;;  %v4110_v2 = vrot.slane %v4058_v61, 4  ;;  %4667 = vrot.lane.b32.xlu1 %v4058_v61, %s9551_s12 }
 0x6fc   :  { %v12128_v5 = vsel %vm4130_vm11, %v4110_v2, %v4111_v7  ;;  %v12132_v43 = vsel %vm4130_vm11, %v4109_v59, %v4110_v2 }
 0x6fd   :  { %4757 = vrot.lane.b32.xlu0 %v4612_v31, %s9552_s14  ;;  %v4615_v22 = vsel %vm4591_vm14, %v12128_v5, 0.0  ;;  %v14947_v31 = vld [vmem:[#allocation104_spill] sm:$0xff]  ;;  %vm4600_vm14 = vcmp.eq.s32.totalorder %v12120_v56, 1 }
 0x6fe   :  { %v8758_v8 = vpop.f32.mrb[66].mxu1  ;;  %4763 = vrot.lane.b32.xlu1 %v4615_v22, %s9552_s14 }
 0x6ff   :  { %v4061_v27 = vadd.f32 %v8758_v8, %v11131_v0  ;;  %v12143_v50 = vadd.f32 %v8758_v8, %v14936_v52  ;;  %v3965_v47 = vpop.f32.mrb[67].mxu1  ;;  %v4614_v0 = vsel %vm4590_vm15, %v12132_v43, 0.0  ;;  %vm4603_vm15 = vcmp.eq.s32.totalorder %v12134_v20, 1  ;;  %v14970_v20 = vld [vmem:[#allocation63_spill] sm:$0xff] }
 0x700   :  { %v4060_v11 = vadd.f32 %v3965_v47, %v11137_v34  ;;  %v12147_v41 = vadd.f32 %v3965_v47, %v14938_v38  ;;  %v14950_v47 = vld [vmem:[#allocation105_spill] sm:$0xff]  ;;  %v12207_v38 = vpop.permute.xlu0 %4579 }
 0x701   :  { %14937 = vst [vmem:[#allocation98_spill] sm:$0xff] %v12143_v50  ;;  %v4113_v36 = vrot.slane %v4061_v27, 4  ;;  %4673 = vrot.lane.b32.xlu0 %v4061_v27, %s9551_s12  ;;  %v14949_v27 = vld [vmem:[#allocation50_spill] sm:$0xff]  ;;  %v14986_v50 = vld [vmem:[#allocation117_spill] sm:$0xff] }
 0x702   :  { %14939 = vst [vmem:[#allocation100_spill] sm:$0xff] %v12147_v41  ;;  %v4112_v53 = vrot.slane %v4060_v11, 4  ;;  %4671 = vrot.lane.b32.xlu1 %v4060_v11, %s9551_s12  ;;  %v14985_v41 = vld [vmem:[#allocation70_spill] sm:$0xff] }
 0x704   :  { %v12158_v34 = vsel %vm4130_vm11, %v4112_v53, %v4113_v36  ;;  %v12162_v39 = vsel %vm4130_vm11, %v4111_v7, %v4112_v53  ;;  %v12227_v17 = vpop.permute.xlu0 %4585 }
 0x705   :  { %4761 = vrot.lane.b32.xlu0 %v4614_v0, %s9552_s14  ;;  %v4617_v10 = vsel %vm4593_vm9, %v12158_v34, 0.0  ;;  %v4616_v62 = vsel %vm4592_vm6, %v12162_v39, 0.0  ;;  %vm4602_vm9 = vcmp.eq.s32.totalorder %v12139_v23, 1  ;;  %vm4605_vm6 = vcmp.eq.s32.totalorder %v12152_v29, 1  ;;  %v14977_v23 = vld [vmem:[#allocation114_spill] sm:$0xff] }
 0x706   :  { %v8761_v42 = vpop.f32.mrb[68].mxu1  ;;  %4767 = vrot.lane.b32.xlu1 %v4617_v10, %s9552_s14 }
 0x707   :  { %v4063_v4 = vadd.f32 %v8761_v42, %v14940_v54  ;;  %v12171_v33 = vadd.f32 %v8761_v42, %v14941_v9  ;;  %v3975_v13 = vpop.f32.mrb[69].mxu1  ;;  %v12222_v54 = vpop.permute.xlu1 %4276 }
 0x708   :  { %v4062_v15 = vadd.f32 %v3975_v13, %v14943_v35  ;;  %v12175_v59 = vadd.f32 %v3975_v13, %v14944_v44  ;;  %v14953_v35 = vld [vmem:[#allocation106_spill] sm:$0xff] }
 0x709   :  { %14942 = vst [vmem:[#allocation99_spill] sm:$0xff] %v12171_v33  ;;  %v4115_v1 = vrot.slane %v4063_v4, 4  ;;  %4677 = vrot.lane.b32.xlu0 %v4063_v4, %s9551_s12 }
 0x70a   :  { %14945 = vst [vmem:[#allocation101_spill] sm:$0xff] %v12175_v59  ;;  %v4114_v63 = vrot.slane %v4062_v15, 4  ;;  %4675 = vrot.lane.b32.xlu1 %v4062_v15, %s9551_s12 }
 0x70c   :  { %v12188_v28 = vsel %vm4130_vm11, %v4114_v63, %v4115_v1  ;;  %v12192_v61 = vsel %vm4130_vm11, %v4113_v36, %v4114_v63  ;;  %v14955_v63 = vld [vmem:[#allocation54_spill] sm:$0xff] }
 0x70d   :  { %4765 = vrot.lane.b32.xlu0 %v4616_v62, %s9552_s14  ;;  %v4619_v32 = vsel %vm4595_vm12, %v12188_v28, 0.0  ;;  %v4618_v0 = vsel %vm4594_vm2, %v12192_v61, 0.0  ;;  %v14956_v62 = vld [vmem:[#allocation107_spill] sm:$0xff]  ;;  %vm4604_vm12 = vcmp.eq.s32.totalorder %v12164_v57, 1  ;;  %vm4607_vm2 = vcmp.eq.s32.totalorder %v12177_v30, 1 }
 0x70e   :  { %v8764_v7 = vpop.f32.mrb[70].mxu1  ;;  %4771 = vrot.lane.b32.xlu1 %v4619_v32, %s9552_s14 }
 0x70f   :  { %v4065_v2 = vadd.f32 %v8764_v7, %v14946_v48  ;;  %v12201_v22 = vadd.f32 %v8764_v7, %v14947_v31  ;;  %v3985_v8 = vpop.f32.mrb[71].mxu1 }
 0x710   :  { %v4064_v52 = vadd.f32 %v3985_v8, %v14949_v27  ;;  %v12205_v11 = vadd.f32 %v3985_v8, %v14950_v47 }
 0x711   :  { %14948 = vst [vmem:[#allocation102_spill] sm:$0xff] %v12201_v22  ;;  %v4117_v36 = vrot.slane %v4065_v2, 4  ;;  %4681 = vrot.lane.b32.xlu0 %v4065_v2, %s9551_s12  ;;  %v12240_v2 = vpop.permute.xlu1 %4282 }
 0x712   :  { %14951 = vst [vmem:[#allocation36_spill] sm:$0xff] %v12205_v11  ;;  %v4116_v53 = vrot.slane %v4064_v52, 4  ;;  %4679 = vrot.lane.b32.xlu1 %v4064_v52, %s9551_s12  ;;  %v12252_v52 = vpop.permute.xlu0 %4279  ;;  %v14980_v11 = vld [vmem:[#allocation115_spill] sm:$0xff] }
 0x714   :  { %v12216_v10 = vsel %vm4130_vm11, %v4116_v53, %v4117_v36  ;;  %v12220_v42 = vsel %vm4130_vm11, %v4115_v1, %v4116_v53 }
 0x715   :  { %4769 = vrot.lane.b32.xlu0 %v4618_v0, %s9552_s14  ;;  %v4621_v4 = vsel %vm4597_vm4, %v12216_v10, 0.0  ;;  %v4620_v31 = vsel %vm4596_vm5, %v12220_v42, 0.0  ;;  %v14959_v0 = vld [vmem:[#allocation108_spill] sm:$0xff]  ;;  %vm4606_vm4 = vcmp.eq.s32.totalorder %v12182_v3, 1  ;;  %vm4609_vm5 = vcmp.eq.s32.totalorder %v12197_v6, 1 }
 0x716   :  { %v8767_v9 = vpop.f32.mrb[72].mxu1  ;;  %4775 = vrot.lane.b32.xlu1 %v4621_v4, %s9552_s14  ;;  %v14988_v3 = vrot.slane %v12064_v46, 4 }
 0x717   :  { %v4067_v13 = vadd.f32 %v8767_v9, %v14952_v40  ;;  %v12231_v15 = vadd.f32 %v8767_v9, %v14953_v35  ;;  %v3995_v44 = vpop.f32.mrb[73].mxu1  ;;  %v14961_v40 = vld [vmem:[#allocation58_spill] sm:$0xff]  ;;  %v14962_v35 = vld [vmem:[#allocation109_spill] sm:$0xff] }
 0x718   :  { %v4066_v1 = vadd.f32 %v3995_v44, %v14955_v63  ;;  %v12235_v32 = vadd.f32 %v3995_v44, %v14956_v62  ;;  %v12265_v44 = vpop.permute.xlu1 %4288  ;;  %v12270_v62 = vpop.permute.xlu0 %4285 }
 0x719   :  { %14954 = vst [vmem:[#allocation39_spill] sm:$0xff] %v12231_v15  ;;  %v4119_v7 = vrot.slane %v4067_v13, 4  ;;  %4685 = vrot.lane.b32.xlu0 %v4067_v13, %s9551_s12 }
 0x71a   :  { %14957 = vst [vmem:[#allocation44_spill] sm:$0xff] %v12235_v32  ;;  %v4118_v48 = vrot.slane %v4066_v1, 4  ;;  %4683 = vrot.lane.b32.xlu1 %v4066_v1, %s9551_s12 }
 0x71c   :  { %v12246_v8 = vsel %vm4130_vm11, %v4118_v48, %v4119_v7  ;;  %v12250_v27 = vsel %vm4130_vm11, %v4117_v36, %v4118_v48  ;;  %v12285_v58 = vpop.permute.xlu1 %4294 }
 0x71d   :  { %4773 = vrot.lane.b32.xlu0 %v4620_v31, %s9552_s14  ;;  %v4623_v24 = vsel %vm4599_vm0, %v12246_v8, 0.0  ;;  %v4622_v48 = vsel %vm4598_vm3, %v12250_v27, 0.0  ;;  %vm4608_vm0 = vcmp.eq.s32.totalorder %v12207_v38, 1  ;;  %vm4610_vm3 = vcmp.eq.s32.totalorder %v12227_v17, 1  ;;  %v14993_v17 = vld [vmem:[#allocation27_spill] sm:$0xff] }
 0x71e   :  { %v8770_v47 = vpop.f32.mrb[74].mxu1  ;;  %4779 = vrot.lane.b32.xlu1 %v4623_v24, %s9552_s14 }
 0x71f   :  { %v4069_v53 = vadd.f32 %v8770_v47, %v14958_v12  ;;  %v12259_v4 = vadd.f32 %v8770_v47, %v14959_v0  ;;  %v4005_v9 = vpop.f32.mrb[75].mxu1  ;;  %v14965_v0 = vld [vmem:[#allocation110_spill] sm:$0xff] }
 0x720   :  { %v4068_v13 = vadd.f32 %v4005_v9, %v14961_v40  ;;  %v12263_v36 = vadd.f32 %v4005_v9, %v14962_v35 }
 0x721   :  { %14960 = vst [vmem:[#allocation41_spill] sm:$0xff] %v12259_v4  ;;  %v4121_v63 = vrot.slane %v4069_v53, 4  ;;  %4689 = vrot.lane.b32.xlu0 %v4069_v53, %s9551_s12 }
 0x722   :  { %14963 = vst [vmem:[#allocation47_spill] sm:$0xff] %v12263_v36  ;;  %v4120_v1 = vrot.slane %v4068_v13, 4  ;;  %4687 = vrot.lane.b32.xlu1 %v4068_v13, %s9551_s12  ;;  %v14967_v13 = vld [vmem:[#allocation60_spill] sm:$0xff] }
 0x724   :  { %v12276_v31 = vsel %vm4130_vm11, %v4120_v1, %v4121_v63  ;;  %v12280_v24 = vsel %vm4130_vm11, %v4119_v7, %v4120_v1  ;;  %v12295_v1 = vpop.permute.xlu0 %4291 }
 0x725   :  { %4777 = vrot.lane.b32.xlu0 %v4622_v48, %s9552_s14  ;;  %v4625_v47 = vsel %vm4601_vm8, %v12276_v31, 0.0  ;;  %vm4348_vm8 = vcmp.eq.s32.totalorder %v12252_v52, 1 }
 0x726   :  { %v8773_v12 = vpop.f32.mrb[76].mxu1  ;;  %4783 = vrot.lane.b32.xlu1 %v4625_v47, %s9552_s14  ;;  %v4624_v47 = vsel %vm4600_vm14, %v12280_v24, 0.0  ;;  %vm4349_vm14 = vcmp.eq.s32.totalorder %v12240_v2, 1  ;;  %v15007_v2 = vld [vmem:[#allocation10_spill] sm:$0xff] }
 0x727   :  { %v4071_v53 = vadd.f32 %v8773_v12, %v14964_v49  ;;  %v12289_v9 = vadd.f32 %v8773_v12, %v14965_v0  ;;  %v4015_v40 = vpop.f32.mrb[77].mxu1  ;;  %v12310_v49 = vpop.permute.xlu1 %4300 }
 0x728   :  { %v4070_v35 = vadd.f32 %v4015_v40, %v14967_v13  ;;  %v12293_v7 = vadd.f32 %v4015_v40, %v14968_v55  ;;  %v12315_v56 = vpop.permute.xlu0 %4297  ;;  %v14971_v13 = vld [vmem:[#allocation112_spill] sm:$0xff] }
 0x729   :  { %14966 = vst [vmem:[#allocation103_spill] sm:$0xff] %v12289_v9  ;;  %v4123_v48 = vrot.slane %v4071_v53, 4  ;;  %4693 = vrot.lane.b32.xlu0 %v4071_v53, %s9551_s12  ;;  %v14973_v9 = vld [vmem:[#allocation64_spill] sm:$0xff] }
 0x72a   :  { %14969 = vst [vmem:[#allocation49_spill] sm:$0xff] %v12293_v7  ;;  %v4122_v36 = vrot.slane %v4070_v35, 4  ;;  %4691 = vrot.lane.b32.xlu1 %v4070_v35, %s9551_s12 }
 0x72c   :  { %v12304_v12 = vsel %vm4130_vm11, %v4122_v36, %v4123_v48  ;;  %v12308_v55 = vsel %vm4130_vm11, %v4121_v63, %v4122_v36  ;;  %v14974_v63 = vld [vmem:[#allocation113_spill] sm:$0xff] }
 0x72d   :  { %4781 = vrot.lane.b32.xlu0 %v4624_v47, %s9552_s14  ;;  %v4627_v53 = vsel %vm4603_vm15, %v12304_v12, 0.0  ;;  %vm4350_vm15 = vcmp.eq.s32.totalorder %v12270_v62, 1 }
 0x72e   :  { %v8776_v0 = vpop.f32.mrb[78].mxu1  ;;  %4787 = vrot.lane.b32.xlu1 %v4627_v53, %s9552_s14  ;;  %v12328_v53 = vpop.permute.xlu1 %4306 }
 0x72f   :  { %v4073_v40 = vadd.f32 %v8776_v0, %v14970_v20  ;;  %v12319_v35 = vadd.f32 %v8776_v0, %v14971_v13  ;;  %v4025_v7 = vpop.f32.mrb[79].mxu1  ;;  %v4626_v20 = vsel %vm4602_vm9, %v12308_v55, 0.0  ;;  %v14976_v13 = vld [vmem:[#allocation66_spill] sm:$0xff]  ;;  %vm4351_vm9 = vcmp.eq.s32.totalorder %v12265_v44, 1  ;;  %v15011_v44 = vld [vmem:[#allocation17_spill] sm:$0xff] }
 0x730   :  { %v4072_v36 = vadd.f32 %v4025_v7, %v14973_v9  ;;  %v12323_v4 = vadd.f32 %v4025_v7, %v14974_v63 }
 0x731   :  { %14972 = vst [vmem:[#allocation104_spill] sm:$0xff] %v12319_v35  ;;  %v4125_v32 = vrot.slane %v4073_v40, 4  ;;  %4697 = vrot.lane.b32.xlu0 %v4073_v40, %s9551_s12  ;;  %v12340_v40 = vpop.permute.xlu0 %4303  ;;  %v14979_v35 = vld [vmem:[#allocation68_spill] sm:$0xff] }
 0x732   :  { %14975 = vst [vmem:[#allocation50_spill] sm:$0xff] %v12323_v4  ;;  %v4124_v47 = vrot.slane %v4072_v36, 4  ;;  %4695 = vrot.lane.b32.xlu1 %v4072_v36, %s9551_s12  ;;  %v12353_v33 = vpop.permute.xlu1 %4312 }
 0x734   :  { %v8779_v0 = vpop.f32.mrb[80].mxu1  ;;  %v12334_v9 = vsel %vm4130_vm11, %v4124_v47, %v4125_v32  ;;  %v12338_v7 = vsel %vm4130_vm11, %v4123_v48, %v4124_v47 }
 0x735   :  { %v4075_v36 = vadd.f32 %v8779_v0, %v14976_v13  ;;  %v12344_v63 = vadd.f32 %v8779_v0, %v14977_v23  ;;  %v4035_v4 = vpop.f32.mrb[81].mxu1  ;;  %4785 = vrot.lane.b32.xlu0 %v4626_v20, %s9552_s14  ;;  %v4629_v29 = vsel %vm4605_vm6, %v12334_v9, 0.0  ;;  %v14982_v13 = vld [vmem:[#allocation69_spill] sm:$0xff]  ;;  %v14983_v23 = vld [vmem:[#allocation116_spill] sm:$0xff]  ;;  %vm4352_vm6 = vcmp.eq.s32.totalorder %v12295_v1, 1 }
 0x736   :  { %v4074_v15 = vadd.f32 %v4035_v4, %v14979_v35  ;;  %v12350_v22 = vadd.f32 %v4035_v4, %v14980_v11  ;;  %4791 = vrot.lane.b32.xlu1 %v4629_v29, %s9552_s14 }
 0x737   :  { %14978 = vst [vmem:[#allocation105_spill] sm:$0xff] %v12344_v63  ;;  %v4127_v48 = vrot.slane %v4075_v36, 4 }
 0x738   :  { %14981 = vst [vmem:[#allocation53_spill] sm:$0xff] %v12350_v22  ;;  %v4126_v47 = vrot.slane %v4074_v15, 4  ;;  %v8782_v59 = vpop.f32.mrb[82].mxu1  ;;  %v14999_v22 = vld [vmem:[#allocation40_spill] sm:$0xff] }
 0x739   :  { %v4077_v0 = vadd.f32 %v8782_v59, %v14982_v13  ;;  %v12357_v63 = vadd.f32 %v8782_v59, %v14983_v23  ;;  %v4045_v20 = vpop.f32.mrb[83].mxu1  ;;  %4701 = vrot.lane.b32.xlu0 %v4075_v36, %s9551_s12  ;;  %v12374_v59 = vpop.permute.xlu0 %4309 }
 0x73a   :  { %v4076_v35 = vadd.f32 %v4045_v20, %v14985_v41  ;;  %v12362_v11 = vadd.f32 %v4045_v20, %v14986_v50  ;;  %4699 = vrot.lane.b32.xlu1 %v4074_v15, %s9551_s12  ;;  %v12367_v4 = vsel %vm4130_vm11, %v4126_v47, %v4127_v48  ;;  %v12371_v29 = vsel %vm4130_vm11, %v4125_v32, %v4126_v47  ;;  %v12389_v47 = vpop.permute.xlu1 %4318 }
 0x73b   :  { %14984 = vst [vmem:[#allocation106_spill] sm:$0xff] %v12357_v63  ;;  %v4129_v36 = vrot.slane %v4077_v0, 4  ;;  %v4628_v50 = vsel %vm4604_vm12, %v12338_v7, 0.0  ;;  %v4631_v15 = vsel %vm4607_vm2, %v12367_v4, 0.0  ;;  %v4630_v13 = vsel %vm4606_vm4, %v12371_v29, 0.0 }
 0x73c   :  { %14987 = vst [vmem:[#allocation54_spill] sm:$0xff] %v12362_v11  ;;  %v4128_v41 = vrot.slane %v4076_v35, 4  ;;  %vm4353_vm12 = vcmp.eq.s32.totalorder %v12285_v58, 1  ;;  %vm4354_vm2 = vcmp.eq.s32.totalorder %v12315_v56, 1  ;;  %vm4355_vm4 = vcmp.eq.s32.totalorder %v12310_v49, 1 }
 0x73d   :  { %4789 = vrot.lane.b32.xlu0 %v4628_v50, %s9552_s14  ;;  %v12391_v30 = vpop.permute.xlu0 %4315  ;;  %v4154_v6 = vsel %vm4130_vm11, %v4129_v36, %v14988_v3 }
 0x73e   :  { %4795 = vrot.lane.b32.xlu1 %v4631_v15, %s9552_s14  ;;  %v12383_v32 = vsel %vm4130_vm11, %v4128_v41, %v4129_v36  ;;  %v12387_v57 = vsel %vm4130_vm11, %v4127_v48, %v4128_v41  ;;  %v12398_v23 = vpop.permute.xlu1 %4324  ;;  %v4634_v38 = vsel %vm4610_vm3, %v4154_v6, 0.0  ;;  %v14990_v15 = vld [vmem:[#allocation28_spill] sm:$0xff]  ;;  %v14991_v36 = vld [vmem:[#allocation22_spill] sm:$0xff]  ;;  %vm4347_vm11 = vcmp.eq.s32.totalorder %v12222_v54, 1  ;;  %v15000_v54 = vld [vmem:[#allocation5_spill] sm:$0xff] }
 0x73f   :  { %v4633_v48 = vsel %vm4609_vm5, %v12383_v32, 0.0  ;;  %vm4356_vm5 = vcmp.eq.s32.totalorder %v12340_v40, 1  ;;  %vm4358_vm3 = vcmp.eq.s32.totalorder %v12374_v59, 1 }
 0x741   :  { %4705 = vrot.lane.b32.xlu0 %v4077_v0, %s9551_s12  ;;  %v12404_v20 = vpop.permute.xlu0 %4321  ;;  %v4632_v0 = vsel %vm4608_vm0, %v12387_v57, 0.0  ;;  %vm4357_vm0 = vcmp.eq.s32.totalorder %v12328_v53, 1 }
 0x742   :  { %4703 = vrot.lane.b32.xlu1 %v4076_v35, %s9551_s12  ;;  %v14989_v35 = vld [vmem:[#allocation24_spill] sm:$0xff]  ;;  %v12415_v41 = vpop.permute.xlu1 %4330 }
 0x745   :  { %4793 = vrot.lane.b32.xlu0 %v4630_v13, %s9552_s14  ;;  %v12417_v50 = vpop.permute.xlu0 %4327  ;;  %v14992_v13 = vld [vmem:[#allocation32_spill] sm:$0xff] }
 0x746   :  { %4799 = vrot.lane.b32.xlu1 %v4633_v48, %s9552_s14  ;;  %v12422_v46 = vpop.permute.xlu1 %4336 }
 0x749   :  { %4797 = vrot.lane.b32.xlu0 %v4632_v0, %s9552_s14  ;;  %v12428_v48 = vpop.permute.xlu0 %4333  ;;  %v14994_v0 = vld [vmem:[#allocation37_spill] sm:$0xff] }
 0x74a   :  { %4875 = vrot.lane.b32.xlu1 %v14989_v35, %s9555_s29  ;;  %v12434_v3 = vpop.permute.xlu1 %4342 }
 0x74d   :  { %4801 = vrot.lane.b32.xlu0 %v4634_v38, %s9552_s14  ;;  %v12436_v38 = vpop.permute.xlu0 %4339 }
 0x74e   :  { %4879 = vrot.lane.b32.xlu1 %v14990_v15, %s9555_s29  ;;  %v14995_v15 = vld [vmem:[#allocation30_spill] sm:$0xff] }
 0x751   :  { %4877 = vrot.lane.b32.xlu0 %v14991_v36, %s9555_s29  ;;  %v14996_v36 = vld [vmem:[#allocation42_spill] sm:$0xff] }
 0x752   :  { %4883 = vrot.lane.b32.xlu1 %v14992_v13, %s9555_s29  ;;  %v14997_v13 = vld [vmem:[#allocation34_spill] sm:$0xff] }
 0x755   :  { %4881 = vrot.lane.b32.xlu0 %v14993_v17, %s9555_s29  ;;  %v4371_v17 = vsel %vm4347_vm11, %v4154_v6, 0.0  ;;  %vm4359_vm11 = vcmp.eq.s32.totalorder %v12353_v33, 1 }
 0x756   :  { %4887 = vrot.lane.b32.xlu1 %v14994_v0, %s9555_s29  ;;  %v12447_v0 = vpop.permute.xlu0 %4345 }
 0x759   :  { %4885 = vrot.lane.b32.xlu0 %v14995_v15, %s9555_s29 }
 0x75a   :  { %4891 = vrot.lane.b32.xlu1 %v14996_v36, %s9555_s29 }
 0x75b   :  { %v4662_v36 = vpop.permute.xlu0 %4661 }
 0x75c   :  { %v4660_v35 = vpop.permute.xlu1 %4659 }
 0x75d   :  { %4889 = vrot.lane.b32.xlu0 %v14997_v13, %s9555_s29  ;;  %v4827_v11 = vsel %vm1361_vm7, %v4371_v17, %v4660_v35  ;;  %v15001_v13 = vld [vmem:[#allocation45_spill] sm:$0xff] }
 0x75e   :  { %4895 = vrot.lane.b32.xlu1 %v14998_v37, %s9555_s29  ;;  %v15002_v37 = vld [vmem:[#allocation8_spill] sm:$0xff] }
 0x760   :  { %v4756_v63 = vpop.permute.xlu1 %4755 }
 0x761   :  { %v4851_v15 = vsel %vm1386_vm1, %v4827_v11, %v4756_v63  ;;  %4893 = vrot.lane.b32.xlu0 %v14999_v22, %s9555_s29  ;;  %v15003_v63 = vld [vmem:[#allocation4_spill] sm:$0xff]  ;;  %v15004_v11 = vld [vmem:[#allocation11_spill] sm:$0xff] }
 0x762   :  { %8789 = vmatprep.mubr.msk.f32.mxu0 %vm1507_vm10, %v4851_v15  ;;  %4899 = vrot.lane.b32.xlu1 %v15000_v54, %s9555_s29  ;;  %v15005_v54 = vld [vmem:[#allocation7_spill] sm:$0xff] }
 0x763   :  { %v4666_v35 = vpop.permute.xlu0 %4665 }
 0x764   :  { %v4664_v6 = vpop.permute.xlu1 %4663 }
 0x765   :  { %4897 = vrot.lane.b32.xlu0 %v15001_v13, %s9555_s29  ;;  %v4372_v13 = vsel %vm4348_vm8, %v12080_v14, 0.0  ;;  %v15008_v14 = vld [vmem:[#allocation18_spill] sm:$0xff]  ;;  %vm4360_vm8 = vcmp.eq.s32.totalorder %v12391_v30, 1 }
 0x766   :  { %4903 = vrot.lane.b32.xlu1 %v15002_v37, %s9555_s29  ;;  %v15006_v37 = vld [vmem:[#allocation15_spill] sm:$0xff]  ;;  %v4828_v51 = vsel %vm1361_vm7, %v4372_v13, %v4662_v36  ;;  %v15009_v13 = vld [vmem:[#allocation14_spill] sm:$0xff] }
 0x768   :  { %v4760_v17 = vpop.permute.xlu1 %4759 }
 0x769   :  { %4901 = vrot.lane.b32.xlu0 %v15003_v63, %s9555_s29  ;;  %v4373_v63 = vsel %vm4349_vm14, %v12106_v16, 0.0  ;;  %vm4361_vm14 = vcmp.eq.s32.totalorder %v12389_v47, 1 }
 0x76a   :  { %4907 = vrot.lane.b32.xlu1 %v15004_v11, %s9555_s29  ;;  %v4829_v11 = vsel %vm1361_vm7, %v4373_v63, %v4664_v6 }
 0x76b   :  { %v4670_v15 = vpop.permute.xlu0 %4669  ;;  %v4853_v25 = vsel %vm1386_vm1, %v4829_v11, %v4760_v17 }
 0x76c   :  { %v4668_v22 = vpop.permute.xlu1 %4667 }
 0x76d   :  { %4905 = vrot.lane.b32.xlu0 %v15005_v54, %s9555_s29 }
 0x76e   :  { %4911 = vrot.lane.b32.xlu1 %v15006_v37, %s9555_s29 }
 0x76f   :  { %v4758_v21 = vpop.permute.xlu0 %4757 }
 0x770   :  { %v4852_v19 = vsel %vm1386_vm1, %v4828_v51, %v4758_v21  ;;  %v4764_v52 = vpop.permute.xlu1 %4763  ;;  %v4374_v21 = vsel %vm4350_vm15, %v12102_v18, 0.0  ;;  %vm4362_vm15 = vcmp.eq.s32.totalorder %v12404_v20, 1 }
 0x771   :  { %8790 = vmatmul.mubr.msk.f32.vlgmr.msra.gmra.mrb[60].mxu0 %vm1507_vm10, %v4852_v19  ;;  %4909 = vrot.lane.b32.xlu0 %v15007_v2, %s9555_s29  ;;  %v15010_v19 = vld [vmem:[#allocation21_spill] sm:$0xff]  ;;  %v4830_v51 = vsel %vm1361_vm7, %v4374_v21, %v4666_v35 }
 0x772   :  { %8792 = vmatprep.mubr.msk.f32.mxu0 %vm1507_vm10, %v4853_v25  ;;  %4915 = vrot.lane.b32.xlu1 %v15008_v14, %s9555_s29  ;;  %v4375_v25 = vsel %vm4351_vm9, %v12132_v43, 0.0  ;;  %v15012_v43 = vld [vmem:[#allocation20_spill] sm:$0xff]  ;;  %vm4363_vm9 = vcmp.eq.s32.totalorder %v12398_v23, 1 }
 0x773   :  { %v4674_v36 = vpop.permute.xlu0 %4673  ;;  %v4831_v17 = vsel %vm1361_vm7, %v4375_v25, %v4668_v22  ;;  %v4376_v22 = vsel %vm4352_vm6, %v12128_v5, 0.0  ;;  %v4378_v5 = vsel %vm4354_vm2, %v12158_v34, 0.0  ;;  %v4380_v34 = vsel %vm4356_vm5, %v12188_v28, 0.0 }
 0x774   :  { %v4672_v16 = vpop.permute.xlu1 %4671  ;;  %v4855_v11 = vsel %vm1386_vm1, %v4831_v17, %v4764_v52  ;;  %v4832_v35 = vsel %vm1361_vm7, %v4376_v22, %v4670_v15  ;;  %v4377_v52 = vsel %vm4353_vm12, %v12162_v39, 0.0  ;;  %v4834_v39 = vsel %vm1361_vm7, %v4378_v5, %v4674_v36 }
 0x775   :  { %4913 = vrot.lane.b32.xlu0 %v15009_v13, %s9555_s29  ;;  %v4379_v15 = vsel %vm4355_vm4, %v12192_v61, 0.0  ;;  %v4381_v36 = vsel %vm4357_vm0, %v12220_v42, 0.0  ;;  %v4382_v28 = vsel %vm4358_vm3, %v12216_v10, 0.0  ;;  %v4384_v10 = vsel %vm4360_vm8, %v12246_v8, 0.0 }
 0x776   :  { %4919 = vrot.lane.b32.xlu1 %v15010_v19, %s9555_s29  ;;  %v4386_v8 = vsel %vm4362_vm15, %v12276_v31, 0.0  ;;  %vm4364_vm6 = vcmp.eq.s32.totalorder %v12417_v50, 1  ;;  %vm4365_vm12 = vcmp.eq.s32.totalorder %v12415_v41, 1  ;;  %vm4366_vm2 = vcmp.eq.s32.totalorder %v12428_v48, 1 }
 0x777   :  { %v4762_v6 = vpop.permute.xlu0 %4761  ;;  %v4388_v31 = vsel %vm4364_vm6, %v12304_v12, 0.0  ;;  %vm4367_vm4 = vcmp.eq.s32.totalorder %v12422_v46, 1  ;;  %v4390_v12 = vsel %vm4366_vm2, %v12334_v9, 0.0  ;;  %vm4368_vm5 = vcmp.eq.s32.totalorder %v12436_v38, 1 }
 0x778   :  { %v4854_v63 = vsel %vm1386_vm1, %v4830_v51, %v4762_v6  ;;  %v4768_v62 = vpop.permute.xlu1 %4767  ;;  %v4833_v51 = vsel %vm1361_vm7, %v4377_v52, %v4672_v16  ;;  %vm4369_vm0 = vcmp.eq.s32.totalorder %v12434_v3, 1  ;;  %v4392_v46 = vsel %vm4368_vm5, %v12367_v4, 0.0 }
 0x779   :  { %8793 = vmatmul.mubr.msk.f32.gmra.mrb[62].mxu0 %vm1507_vm10, %v4854_v63  ;;  %4917 = vrot.lane.b32.xlu0 %v15011_v44, %s9555_s29  ;;  %v4857_v17 = vsel %vm1386_vm1, %v4833_v51, %v4768_v62  ;;  %v4393_v48 = vsel %vm4369_vm0, %v12387_v57, 0.0  ;;  %vm4370_vm3 = vcmp.eq.s32.totalorder %v12447_v0, 1 }
 0x77a   :  { %8795 = vmatprep.mubr.msk.f32.mxu0 %vm1507_vm10, %v4855_v11  ;;  %v4394_v4 = vsel %vm4370_vm3, %v12383_v32, 0.0 }
 0x77b   :  { %v4678_v18 = vpop.permute.xlu0 %4677 }
 0x77c   :  { %v4676_v19 = vpop.permute.xlu1 %4675  ;;  %v4836_v61 = vsel %vm1361_vm7, %v4380_v34, %v4678_v18  ;;  %v4383_v18 = vsel %vm4359_vm11, %v12250_v27, 0.0 }
 0x77d   :  { %4921 = vrot.lane.b32.xlu0 %v15012_v43, %s9555_s29  ;;  %v4835_v63 = vsel %vm1361_vm7, %v4379_v15, %v4676_v19 }
 0x77f   :  { %v4766_v21 = vpop.permute.xlu0 %4765 }
 0x780   :  { %v4856_v25 = vsel %vm1386_vm1, %v4832_v35, %v4766_v21  ;;  %v4772_v6 = vpop.permute.xlu1 %4771 }
 0x781   :  { %8796 = vmatmul.mubr.msk.f32.gmra.mrb[64].mxu0 %vm1507_vm10, %v4856_v25  ;;  %v4859_v22 = vsel %vm1386_vm1, %v4835_v63, %v4772_v6 }
 0x782   :  { %8798 = vmatprep.mubr.msk.f32.mxu0 %vm1507_vm10, %v4857_v17 }
 0x783   :  { %v4682_v1 = vpop.permute.xlu0 %4681 }
 0x784   :  { %v4680_v58 = vpop.permute.xlu1 %4679  ;;  %v4838_v42 = vsel %vm1361_vm7, %v4382_v28, %v4682_v1  ;;  %v4385_v1 = vsel %vm4361_vm14, %v12280_v24, 0.0 }
 0x785   :  { %v4837_v35 = vsel %vm1361_vm7, %v4381_v36, %v4680_v58  ;;  %v4389_v36 = vsel %vm4365_vm12, %v12338_v7, 0.0 }
 0x787   :  { %v4770_v16 = vpop.permute.xlu0 %4769 }
 0x788   :  { %v4858_v62 = vsel %vm1386_vm1, %v4834_v39, %v4770_v16  ;;  %v4776_v11 = vpop.permute.xlu1 %4775 }
 0x789   :  { %8799 = vmatmul.mubr.msk.f32.gmra.mrb[66].mxu0 %vm1507_vm10, %v4858_v62  ;;  %v4861_v51 = vsel %vm1386_vm1, %v4837_v35, %v4776_v11  ;;  %v4387_v11 = vsel %vm4363_vm9, %v12308_v55, 0.0 }
 0x78a   :  { %8801 = vmatprep.mubr.msk.f32.mxu0 %vm1507_vm10, %v4859_v22 }
 0x78b   :  { %v4686_v56 = vpop.permute.xlu0 %4685 }
 0x78c   :  { %v4684_v49 = vpop.permute.xlu1 %4683  ;;  %v4840_v27 = vsel %vm1361_vm7, %v4384_v10, %v4686_v56 }
 0x78d   :  { %v4839_v6 = vsel %vm1361_vm7, %v4383_v18, %v4684_v49 }
 0x78f   :  { %v4774_v19 = vpop.permute.xlu0 %4773 }
 0x790   :  { %v4860_v52 = vsel %vm1386_vm1, %v4836_v61, %v4774_v19  ;;  %v4780_v21 = vpop.permute.xlu1 %4779 }
 0x791   :  { %8802 = vmatmul.mubr.msk.f32.gmra.mrb[68].mxu0 %vm1507_vm10, %v4860_v52  ;;  %v4863_v5 = vsel %vm1386_vm1, %v4839_v6, %v4780_v21 }
 0x792   :  { %8804 = vmatprep.mubr.msk.f32.mxu0 %vm1507_vm10, %v4861_v51 }
 0x793   :  { %v4690_v40 = vpop.permute.xlu0 %4689 }
 0x794   :  { %v4688_v53 = vpop.permute.xlu1 %4687  ;;  %v4842_v24 = vsel %vm1361_vm7, %v4386_v8, %v4690_v40  ;;  %v4391_v40 = vsel %vm4367_vm4, %v12371_v29, 0.0 }
 0x795   :  { %v4841_v15 = vsel %vm1361_vm7, %v4385_v1, %v4688_v53 }
 0x797   :  { %v4778_v25 = vpop.permute.xlu0 %4777 }
 0x798   :  { %v4862_v17 = vsel %vm1386_vm1, %v4838_v42, %v4778_v25  ;;  %v4784_v58 = vpop.permute.xlu1 %4783 }
 0x799   :  { %8805 = vmatmul.mubr.msk.f32.gmra.mrb[70].mxu0 %vm1507_vm10, %v4862_v17  ;;  %v4865_v62 = vsel %vm1386_vm1, %v4841_v15, %v4784_v58 }
 0x79a   :  { %8807 = vmatprep.mubr.msk.f32.mxu0 %vm1507_vm10, %v4863_v5  ;;  %v4105_v5 = vld [vmem:[%s14385_s1 + $0x60] sm:$0xff] }
 0x79b   :  { %v4694_v59 = vpop.permute.xlu0 %4693  ;;  %8825 = vmatprep.subr.mxu1 %v4105_v5 }
 0x79c   :  { %v4692_v33 = vpop.permute.xlu1 %4691  ;;  %v4844_v55 = vsel %vm1361_vm7, %v4388_v31, %v4694_v59  ;;  %8826 = vmatpush3.msra.mxu1 %v4105_v5 }
 0x79d   :  { %v4843_v56 = vsel %vm1361_vm7, %v4387_v11, %v4692_v33 }
 0x79f   :  { %v4782_v39 = vpop.permute.xlu0 %4781 }
 0x7a0   :  { %v4864_v16 = vsel %vm1386_vm1, %v4840_v27, %v4782_v39  ;;  %v4788_v63 = vpop.permute.xlu1 %4787 }
 0x7a1   :  { %8808 = vmatmul.mubr.msk.f32.gmra.mrb[72].mxu0 %vm1507_vm10, %v4864_v16  ;;  %v4867_v61 = vsel %vm1386_vm1, %v4843_v56, %v4788_v63 }
 0x7a2   :  { %8810 = vmatprep.mubr.msk.f32.mxu0 %vm1507_vm10, %v4865_v62 }
 0x7a3   :  { %v4698_v30 = vpop.permute.xlu0 %4697 }
 0x7a4   :  { %v4696_v47 = vpop.permute.xlu1 %4695  ;;  %v4846_v7 = vsel %vm1361_vm7, %v4390_v12, %v4698_v30 }
 0x7a5   :  { %v4845_v35 = vsel %vm1361_vm7, %v4389_v36, %v4696_v47 }
 0x7a7   :  { %v4786_v22 = vpop.permute.xlu0 %4785 }
 0x7a8   :  { %v4866_v49 = vsel %vm1386_vm1, %v4842_v24, %v4786_v22  ;;  %v4792_v34 = vpop.permute.xlu1 %4791 }
 0x7a9   :  { %8811 = vmatmul.mubr.msk.f32.gmra.mrb[74].mxu0 %vm1507_vm10, %v4866_v49  ;;  %v4869_v51 = vsel %vm1386_vm1, %v4845_v35, %v4792_v34 }
 0x7aa   :  { %8813 = vmatprep.mubr.msk.f32.mxu0 %vm1507_vm10, %v4867_v61 }
 0x7ab   :  { %v4702_v20 = vpop.permute.xlu0 %4701 }
 0x7ac   :  { %v4700_v23 = vpop.permute.xlu1 %4699  ;;  %v4848_v29 = vsel %vm1361_vm7, %v4392_v46, %v4702_v20 }
 0x7ad   :  { %v4847_v28 = vsel %vm1361_vm7, %v4391_v40, %v4700_v23 }
 0x7af   :  { %v4790_v19 = vpop.permute.xlu0 %4789 }
 0x7b0   :  { %v4868_v52 = vsel %vm1386_vm1, %v4844_v55, %v4790_v19  ;;  %v4796_v21 = vpop.permute.xlu1 %4795 }
 0x7b1   :  { %8814 = vmatmul.mubr.msk.f32.gmra.mrb[76].mxu0 %vm1507_vm10, %v4868_v52  ;;  %v4871_v18 = vsel %vm1386_vm1, %v4847_v28, %v4796_v21 }
 0x7b2   :  { %8816 = vmatprep.mubr.msk.f32.mxu0 %vm1507_vm10, %v4869_v51 }
 0x7b3   :  { %v4706_v50 = vpop.permute.xlu0 %4705 }
 0x7b4   :  { %v4704_v41 = vpop.permute.xlu1 %4703  ;;  %v4850_v3 = vsel %vm1361_vm7, %v4394_v4, %v4706_v50 }
 0x7b5   :  { %v4849_v6 = vsel %vm1361_vm7, %v4393_v48, %v4704_v41 }
 0x7b7   :  { %v4794_v53 = vpop.permute.xlu0 %4793 }
 0x7b8   :  { %v4870_v42 = vsel %vm1386_vm1, %v4846_v7, %v4794_v53  ;;  %v4800_v9 = vpop.permute.xlu1 %4799 }
 0x7b9   :  { %8817 = vmatmul.mubr.msk.f32.gmra.mrb[78].mxu0 %vm1507_vm10, %v4870_v42  ;;  %v4873_v17 = vsel %vm1386_vm1, %v4849_v6, %v4800_v9 }
 0x7ba   :  { %8819 = vmatprep.mubr.msk.f32.mxu0 %vm1507_vm10, %v4871_v18 }
 0x7bb   :  { %v4798_v25 = vpop.permute.xlu0 %4797 }
 0x7bc   :  { %v4872_v38 = vsel %vm1386_vm1, %v4848_v29, %v4798_v25  ;;  %v4876_v33 = vpop.permute.xlu1 %4875 }
 0x7bd   :  { %8820 = vmatmul.mubr.msk.f32.gmra.mrb[80].mxu0 %vm1507_vm10, %v4872_v38 }
 0x7be   :  { %8822 = vmatprep.mubr.msk.f32.mxu0 %vm1507_vm10, %v4873_v17 }
 0x7bf   :  { %v4802_v58 = vpop.permute.xlu0 %4801 }
 0x7c0   :  { %v4874_v57 = vsel %vm1386_vm1, %v4850_v3, %v4802_v58  ;;  %v4880_v63 = vpop.permute.xlu1 %4879 }
 0x7c1   :  { %8823 = vmatmul.mubr.msk.f32.gmra.mrb[82].mxu0 %vm1507_vm10, %v4874_v57 }
 0x7c3   :  { %v4878_v0 = vpop.permute.xlu0 %4877 }
 0x7c4   :  { %v4884_v61 = vpop.permute.xlu1 %4883 }
 0x7c7   :  { %v4882_v15 = vpop.permute.xlu0 %4881 }
 0x7c8   :  { %v4888_v41 = vpop.permute.xlu1 %4887 }
 0x7cb   :  { %v4886_v56 = vpop.permute.xlu0 %4885 }
 0x7cc   :  { %v4892_v38 = vpop.permute.xlu1 %4891 }
 0x7cf   :  { %v4890_v21 = vpop.permute.xlu0 %4889 }
 0x7d3   :  { %v4894_v29 = vpop.permute.xlu0 %4893 }
 0x844   :  { %v8791_v59 = vpop.f32.mrb[60].mxu0 }
 0x845   :  { %v12598_v10 = vadd.f32 %v8791_v59, %v4878_v0  ;;  %v5085_v32 = vpop.f32.mrb[61].mxu0 }
 0x846   :  { %v12600_v27 = vadd.f32 %v5085_v32, %v4876_v33  ;;  %v4898_v32 = vpop.permute.xlu0 %4897 }
 0x847   :  { %v8143_v1 = vmul.f32 -1.442695, %v12598_v10 }
 0x848   :  { %v8142_v39 = vmul.f32 -1.442695, %v12600_v27 }
 0x849   :  { %9308 = vpow2.f32 %v8143_v1 }
 0x84a   :  { %9310 = vpow2.f32 %v8142_v39 }
 0x84c   :  { %v8794_v16 = vpop.f32.mrb[62].mxu0 }
 0x84d   :  { %v12604_v62 = vadd.f32 %v8794_v16, %v4882_v15  ;;  %v5095_v30 = vpop.f32.mrb[63].mxu0  ;;  %v4896_v16 = vpop.permute.xlu1 %4895 }
 0x84e   :  { %v12606_v47 = vadd.f32 %v5095_v30, %v4880_v63 }
 0x84f   :  { %v8145_v8 = vmul.f32 -1.442695, %v12604_v62 }
 0x850   :  { %v8144_v24 = vmul.f32 -1.442695, %v12606_v47 }
 0x851   :  { %9312 = vpow2.f32 %v8145_v8 }
 0x852   :  { %9314 = vpow2.f32 %v8144_v24 }
 0x853   :  { %v9309_v11 = vpop.eup %9308 }
 0x854   :  { %v9311_v22 = vpop.eup %9310  ;;  %v5301_v49 = vadd.f32 1.0, %v9309_v11  ;;  %v8797_v34 = vpop.f32.mrb[64].mxu0 }
 0x855   :  { %v5300_v20 = vadd.f32 1.0, %v9311_v22  ;;  %v12610_v23 = vadd.f32 %v8797_v34, %v4886_v56  ;;  %v5105_v31 = vpop.f32.mrb[65].mxu0 }
 0x856   :  { %9316 = vrcp.f32 %v5301_v49  ;;  %v12612_v55 = vadd.f32 %v5105_v31, %v4884_v61  ;;  %v4902_v61 = vpop.permute.xlu0 %4901 }
 0x857   :  { %9318 = vrcp.f32 %v5300_v20  ;;  %v8147_v36 = vmul.f32 -1.442695, %v12610_v23 }
 0x858   :  { %v8146_v19 = vmul.f32 -1.442695, %v12612_v55 }
 0x859   :  { %9320 = vpow2.f32 %v8147_v36 }
 0x85a   :  { %9322 = vpow2.f32 %v8146_v19  ;;  %v4900_v19 = vpop.permute.xlu1 %4899 }
 0x85b   :  { %v9313_v35 = vpop.eup %9312 }
 0x85c   :  { %v9315_v52 = vpop.eup %9314  ;;  %v5303_v51 = vadd.f32 1.0, %v9313_v35  ;;  %v8800_v50 = vpop.f32.mrb[66].mxu0 }
 0x85d   :  { %v5302_v12 = vadd.f32 1.0, %v9315_v52  ;;  %v12616_v7 = vadd.f32 %v8800_v50, %v4890_v21  ;;  %v5115_v40 = vpop.f32.mrb[67].mxu0 }
 0x85e   :  { %9324 = vrcp.f32 %v5303_v51  ;;  %v12618_v53 = vadd.f32 %v5115_v40, %v4888_v41 }
 0x85f   :  { %9326 = vrcp.f32 %v5302_v12  ;;  %v8149_v28 = vmul.f32 -1.442695, %v12616_v7 }
 0x860   :  { %v9317_v42 = vpop.eup %9316  ;;  %v8148_v18 = vmul.f32 -1.442695, %v12618_v53 }
 0x861   :  { %v9319_v46 = vpop.eup %9318  ;;  %9328 = vpow2.f32 %v8149_v28  ;;  %5398 = vrot.lane.b32.xlu0 %v9317_v42, %s9553_s15  ;;  %v4906_v42 = vpop.permute.xlu0 %4905 }
 0x862   :  { %5396 = vrot.lane.b32.xlu1 %v9319_v46, %s9553_s15  ;;  %9330 = vpow2.f32 %v8148_v18 }
 0x863   :  { %v9321_v9 = vpop.eup %9320 }
 0x864   :  { %v5305_v48 = vadd.f32 1.0, %v9321_v9  ;;  %v8803_v25 = vpop.f32.mrb[68].mxu0  ;;  %v9323_v6 = vpop.eup %9322 }
 0x865   :  { %v12624_v17 = vadd.f32 %v8803_v25, %v4894_v29  ;;  %v5125_v4 = vpop.f32.mrb[69].mxu0  ;;  %v5304_v3 = vadd.f32 1.0, %v9323_v6  ;;  %v4904_v29 = vpop.permute.xlu1 %4903 }
 0x866   :  { %9332 = vrcp.f32 %v5305_v48  ;;  %v12626_v58 = vadd.f32 %v5125_v4, %v4892_v38 }
 0x867   :  { %v8151_v57 = vmul.f32 -1.442695, %v12624_v17  ;;  %9334 = vrcp.f32 %v5304_v3 }
 0x868   :  { %v9325_v5 = vpop.eup %9324  ;;  %v8150_v0 = vmul.f32 -1.442695, %v12626_v58 }
 0x869   :  { %v9327_v59 = vpop.eup %9326  ;;  %9336 = vpow2.f32 %v8151_v57  ;;  %5402 = vrot.lane.b32.xlu0 %v9325_v5, %s9553_s15 }
 0x86a   :  { %5400 = vrot.lane.b32.xlu1 %v9327_v59, %s9553_s15  ;;  %9338 = vpow2.f32 %v8150_v0  ;;  %v4910_v0 = vpop.permute.xlu0 %4909 }
 0x86b   :  { %v9329_v33 = vpop.eup %9328 }
 0x86c   :  { %v5307_v1 = vadd.f32 1.0, %v9329_v33  ;;  %v8806_v39 = vpop.f32.mrb[70].mxu0  ;;  %v9331_v15 = vpop.eup %9330 }
 0x86d   :  { %v12632_v63 = vadd.f32 %v8806_v39, %v4898_v32  ;;  %v5135_v30 = vpop.f32.mrb[71].mxu0  ;;  %v5306_v8 = vadd.f32 1.0, %v9331_v15  ;;  %v4908_v33 = vpop.permute.xlu1 %4907 }
 0x86e   :  { %9340 = vrcp.f32 %v5307_v1  ;;  %v12634_v24 = vadd.f32 %v5135_v30, %v4896_v16 }
 0x86f   :  { %v8153_v11 = vmul.f32 -1.442695, %v12632_v63  ;;  %9342 = vrcp.f32 %v5306_v8 }
 0x870   :  { %v9333_v22 = vpop.eup %9332  ;;  %v8152_v56 = vmul.f32 -1.442695, %v12634_v24 }
 0x871   :  { %9344 = vpow2.f32 %v8153_v11  ;;  %5406 = vrot.lane.b32.xlu0 %v9333_v22, %s9553_s15  ;;  %v9335_v49 = vpop.eup %9334 }
 0x872   :  { %9346 = vpow2.f32 %v8152_v56  ;;  %5404 = vrot.lane.b32.xlu1 %v9335_v49, %s9553_s15  ;;  %v4914_v56 = vpop.permute.xlu0 %4913 }
 0x873   :  { %v9337_v34 = vpop.eup %9336 }
 0x874   :  { %v5309_v20 = vadd.f32 1.0, %v9337_v34  ;;  %v8809_v31 = vpop.f32.mrb[72].mxu0  ;;  %v9339_v36 = vpop.eup %9338 }
 0x875   :  { %v12640_v35 = vadd.f32 %v8809_v31, %v4902_v61  ;;  %v5145_v52 = vpop.f32.mrb[73].mxu0  ;;  %v5308_v21 = vadd.f32 1.0, %v9339_v36  ;;  %v4912_v34 = vpop.permute.xlu1 %4911 }
 0x876   :  { %9348 = vrcp.f32 %v5309_v20  ;;  %v12642_v51 = vadd.f32 %v5145_v52, %v4900_v19 }
 0x877   :  { %v8155_v50 = vmul.f32 -1.442695, %v12640_v35  ;;  %9350 = vrcp.f32 %v5308_v21 }
 0x878   :  { %v9341_v41 = vpop.eup %9340  ;;  %v8154_v12 = vmul.f32 -1.442695, %v12642_v51 }
 0x879   :  { %9352 = vpow2.f32 %v8155_v50  ;;  %5410 = vrot.lane.b32.xlu0 %v9341_v41, %s9553_s15  ;;  %v9343_v40 = vpop.eup %9342  ;;  %v4918_v50 = vpop.permute.xlu0 %4917 }
 0x87a   :  { %9354 = vpow2.f32 %v8154_v12  ;;  %5408 = vrot.lane.b32.xlu1 %v9343_v40, %s9553_s15  ;;  %v4916_v40 = vpop.permute.xlu1 %4915 }
 0x87b   :  { %v9345_v28 = vpop.eup %9344 }
 0x87c   :  { %v5311_v18 = vadd.f32 1.0, %v9345_v28  ;;  %v8812_v46 = vpop.f32.mrb[74].mxu0  ;;  %v9347_v9 = vpop.eup %9346 }
 0x87d   :  { %v12648_v48 = vadd.f32 %v8812_v46, %v4906_v42  ;;  %v5155_v25 = vpop.f32.mrb[75].mxu0  ;;  %v5310_v6 = vadd.f32 1.0, %v9347_v9 }
 0x87e   :  { %9356 = vrcp.f32 %v5311_v18  ;;  %v12650_v38 = vadd.f32 %v5155_v25, %v4904_v29 }
 0x87f   :  { %v8157_v4 = vmul.f32 -1.442695, %v12648_v48  ;;  %9358 = vrcp.f32 %v5310_v6 }
 0x880   :  { %v9349_v3 = vpop.eup %9348  ;;  %v8156_v57 = vmul.f32 -1.442695, %v12650_v38 }
 0x881   :  { %9360 = vpow2.f32 %v8157_v4  ;;  %5414 = vrot.lane.b32.xlu0 %v9349_v3, %s9553_s15  ;;  %v9351_v5 = vpop.eup %9350 }
 0x882   :  { %9362 = vpow2.f32 %v8156_v57  ;;  %5412 = vrot.lane.b32.xlu1 %v9351_v5, %s9553_s15  ;;  %v4922_v57 = vpop.permute.xlu0 %4921 }
 0x883   :  { %v9353_v59 = vpop.eup %9352 }
 0x884   :  { %v5313_v32 = vadd.f32 1.0, %v9353_v59  ;;  %v8815_v1 = vpop.f32.mrb[76].mxu0  ;;  %v9355_v39 = vpop.eup %9354 }
 0x885   :  { %v12656_v15 = vadd.f32 %v8815_v1, %v4910_v0  ;;  %v5165_v16 = vpop.f32.mrb[77].mxu0  ;;  %v5312_v30 = vadd.f32 1.0, %v9355_v39 }
 0x886   :  { %9364 = vrcp.f32 %v5313_v32  ;;  %v12658_v8 = vadd.f32 %v5165_v16, %v4908_v33  ;;  %v4920_v33 = vpop.permute.xlu1 %4919 }
 0x887   :  { %v8159_v11 = vmul.f32 -1.442695, %v12656_v15  ;;  %9366 = vrcp.f32 %v5312_v30 }
 0x888   :  { %v9357_v22 = vpop.eup %9356  ;;  %v8158_v49 = vmul.f32 -1.442695, %v12658_v8 }
 0x889   :  { %9368 = vpow2.f32 %v8159_v11  ;;  %5418 = vrot.lane.b32.xlu0 %v9357_v22, %s9553_s15  ;;  %v9359_v61 = vpop.eup %9358 }
 0x88a   :  { %9370 = vpow2.f32 %v8158_v49  ;;  %5416 = vrot.lane.b32.xlu1 %v9359_v61, %s9553_s15 }
 0x88b   :  { %v9361_v20 = vpop.eup %9360 }
 0x88c   :  { %v5315_v31 = vadd.f32 1.0, %v9361_v20  ;;  %v8818_v36 = vpop.f32.mrb[78].mxu0  ;;  %v9363_v19 = vpop.eup %9362 }
 0x88d   :  { %v12664_v52 = vadd.f32 %v8818_v36, %v4914_v56  ;;  %v5175_v21 = vpop.f32.mrb[79].mxu0  ;;  %v5314_v41 = vadd.f32 1.0, %v9363_v19 }
 0x88e   :  { %9372 = vrcp.f32 %v5315_v31  ;;  %v12666_v12 = vadd.f32 %v5175_v21, %v4912_v34 }
 0x88f   :  { %v8161_v28 = vmul.f32 -1.442695, %v12664_v52  ;;  %9374 = vrcp.f32 %v5314_v41 }
 0x890   :  { %v9365_v42 = vpop.eup %9364  ;;  %v8160_v18 = vmul.f32 -1.442695, %v12666_v12  ;;  %v8821_v46 = vpop.f32.mrb[80].mxu0 }
 0x891   :  { %9376 = vpow2.f32 %v8161_v28  ;;  %v12670_v9 = vadd.f32 %v8821_v46, %v4918_v50  ;;  %v5185_v29 = vpop.f32.mrb[81].mxu0  ;;  %5422 = vrot.lane.b32.xlu0 %v9365_v42, %s9553_s15  ;;  %v9367_v25 = vpop.eup %9366 }
 0x892   :  { %v12673_v6 = vadd.f32 %v5185_v29, %v4916_v40  ;;  %9378 = vpow2.f32 %v8160_v18  ;;  %5420 = vrot.lane.b32.xlu1 %v9367_v25, %s9553_s15 }
 0x893   :  { %v9369_v4 = vpop.eup %9368  ;;  %v8163_v3 = vmul.f32 -1.442695, %v12670_v9 }
 0x894   :  { %v5317_v5 = vadd.f32 1.0, %v9369_v4  ;;  %v8824_v0 = vpop.f32.mrb[82].mxu0  ;;  %v9371_v59 = vpop.eup %9370  ;;  %v8162_v32 = vmul.f32 -1.442695, %v12673_v6 }
 0x895   :  { %9380 = vpow2.f32 %v8163_v3  ;;  %v12678_v1 = vadd.f32 %v8824_v0, %v4922_v57  ;;  %v5195_v39 = vpop.f32.mrb[83].mxu0  ;;  %v5316_v16 = vadd.f32 1.0, %v9371_v59  ;;  %v9500_v3 = vld [vmem:[%s14384_s0 + $0x8] sm:$0xff]  ;;  %v9502_v59 = vld [vmem:[%s14384_s0 + $0x18] sm:$0xff] }
 0x896   :  { %9382 = vrcp.f32 %v5317_v5  ;;  %v12680_v30 = vadd.f32 %v5195_v39, %v4920_v33  ;;  %vm5774_vm11 = vcmp.ge.f32.partialorder %v9500_v3, 7.0  ;;  %vm5798_vm8 = vcmp.le.f32.partialorder %v9500_v3, 11.0  ;;  %v9501_v5 = vld [vmem:[%s14384_s0] sm:$0xff]  ;;  %v9503_v39 = vld [vmem:[%s14384_s0 + $0x10] sm:$0xff] }
 0x897   :  { %v8165_v11 = vmul.f32 -1.442695, %v12678_v1  ;;  %9384 = vrcp.f32 %v5316_v16  ;;  %vm5773_vm14 = vcmp.ge.f32.partialorder %v9501_v5, 7.0  ;;  %vm5797_vm15 = vcmp.le.f32.partialorder %v9501_v5, 11.0  ;;  %vm5822_vm9 = vmand %vm5774_vm11, %vm5798_vm8  ;;  %v9516_v5 = vld [vmem:[%s14384_s0 + $0x88] sm:$0xff] }
 0x898   :  { %v9373_v22 = vpop.eup %9372  ;;  %9386 = vpow2.f32 %v8162_v32  ;;  %v8164_v56 = vmul.f32 -1.442695, %v12680_v30  ;;  %vm5776_vm6 = vcmp.ge.f32.partialorder %v9502_v59, 7.0  ;;  %vm5800_vm12 = vcmp.le.f32.partialorder %v9502_v59, 11.0  ;;  %vm5821_vm2 = vmand %vm5773_vm14, %vm5797_vm15 }
 0x899   :  { %5426 = vrot.lane.b32.xlu0 %v9373_v22, %s9553_s15  ;;  %v9375_v49 = vpop.eup %9374  ;;  %9388 = vpow2.f32 %v8165_v11  ;;  %v5877_v32 = vsel %vm5822_vm9, 1, %v14918_v45  ;;  %vm5775_vm4 = vcmp.ge.f32.partialorder %v9503_v39, 7.0  ;;  %vm5799_vm5 = vcmp.le.f32.partialorder %v9503_v39, 11.0  ;;  %vm5824_vm0 = vmand %vm5776_vm6, %vm5800_vm12  ;;  %v9504_v11 = vld [vmem:[%s14384_s0 + $0x28] sm:$0xff] }
 0x89a   :  { %5424 = vrot.lane.b32.xlu1 %v9375_v49, %s9553_s15  ;;  %9390 = vpow2.f32 %v8164_v56  ;;  %v5876_v16 = vsel %vm5821_vm2, 1, %v14918_v45  ;;  %vm5778_vm3 = vcmp.ge.f32.partialorder %v9504_v11, 7.0  ;;  %vm5802_vm11 = vcmp.le.f32.partialorder %v9504_v11, 11.0  ;;  %vm5823_vm8 = vmand %vm5775_vm4, %vm5799_vm5  ;;  %v9505_v56 = vld [vmem:[%s14384_s0 + $0x20] sm:$0xff] }
 0x89b   :  { %v9377_v34 = vpop.eup %9376  ;;  %v5879_v22 = vsel %vm5824_vm0, 1, %v14918_v45  ;;  %vm5777_vm14 = vcmp.ge.f32.partialorder %v9505_v56, 7.0  ;;  %vm5801_vm15 = vcmp.le.f32.partialorder %v9505_v56, 11.0  ;;  %vm5826_vm9 = vmand %vm5778_vm3, %vm5802_vm11  ;;  %v5878_v49 = vsel %vm5823_vm8, 1, %v14918_v45 }
 0x89c   :  { %v5319_v61 = vadd.f32 1.0, %v9377_v34  ;;  %v9379_v20 = vpop.eup %9378  ;;  %v9506_v34 = vld [vmem:[%s14384_s0 + $0x38] sm:$0xff]  ;;  %vm5825_vm2 = vmand %vm5777_vm14, %vm5801_vm15 }
 0x89d   :  { %v5318_v31 = vadd.f32 1.0, %v9379_v20  ;;  %vm5780_vm6 = vcmp.ge.f32.partialorder %v9506_v34, 7.0  ;;  %vm5804_vm12 = vcmp.le.f32.partialorder %v9506_v34, 11.0  ;;  %v9507_v20 = vld [vmem:[%s14384_s0 + $0x30] sm:$0xff]  ;;  %v9520_v34 = vld [vmem:[%s14384_s0 + $0xa8] sm:$0xff] }
 0x89e   :  { %9392 = vrcp.f32 %v5319_v61  ;;  %v5881_v61 = vsel %vm5826_vm9, 1, %v14918_v45  ;;  %vm5779_vm4 = vcmp.ge.f32.partialorder %v9507_v20, 7.0  ;;  %vm5803_vm5 = vcmp.le.f32.partialorder %v9507_v20, 11.0  ;;  %vm5828_vm0 = vmand %vm5780_vm6, %vm5804_vm12  ;;  %v9521_v20 = vld [vmem:[%s14384_s0 + $0xa0] sm:$0xff] }
 0x89f   :  { %v9381_v36 = vpop.eup %9380  ;;  %9394 = vrcp.f32 %v5318_v31  ;;  %v5880_v31 = vsel %vm5825_vm2, 1, %v14918_v45  ;;  %vm5827_vm8 = vmand %vm5779_vm4, %vm5803_vm5 }
 0x8a0   :  { %v9383_v19 = vpop.eup %9382  ;;  %v5321_v21 = vadd.f32 1.0, %v9381_v36  ;;  %v9508_v36 = vld [vmem:[%s14384_s0 + $0x48] sm:$0xff] }
 0x8a1   :  { %5430 = vrot.lane.b32.xlu0 %v9383_v19, %s9553_s15  ;;  %v9385_v50 = vpop.eup %9384  ;;  %vm5782_vm3 = vcmp.ge.f32.partialorder %v9508_v36, 7.0  ;;  %vm5806_vm11 = vcmp.le.f32.partialorder %v9508_v36, 11.0  ;;  %v5883_v19 = vsel %vm5828_vm0, 1, %v14918_v45  ;;  %v9522_v36 = vld [vmem:[%s14384_s0 + $0xb8] sm:$0xff] }
 0x8a2   :  { %9396 = vrcp.f32 %v5321_v21  ;;  %v9387_v41 = vpop.eup %9386  ;;  %5428 = vrot.lane.b32.xlu1 %v9385_v50, %s9553_s15  ;;  %v9509_v21 = vld [vmem:[%s14384_s0 + $0x40] sm:$0xff]  ;;  %vm5830_vm9 = vmand %vm5782_vm3, %vm5806_vm11  ;;  %v5882_v50 = vsel %vm5827_vm8, 1, %v14918_v45 }
 0x8a3   :  { %v5320_v40 = vadd.f32 1.0, %v9387_v41  ;;  %v9389_v28 = vpop.eup %9388  ;;  %vm5781_vm14 = vcmp.ge.f32.partialorder %v9509_v21, 7.0  ;;  %vm5805_vm15 = vcmp.le.f32.partialorder %v9509_v21, 11.0  ;;  %v9510_v41 = vld [vmem:[%s14384_s0 + $0x58] sm:$0xff] }
 0x8a4   :  { %v5323_v42 = vadd.f32 1.0, %v9389_v28  ;;  %v9391_v18 = vpop.eup %9390  ;;  %vm5784_vm6 = vcmp.ge.f32.partialorder %v9510_v41, 7.0  ;;  %vm5808_vm12 = vcmp.le.f32.partialorder %v9510_v41, 11.0  ;;  %vm5829_vm2 = vmand %vm5781_vm14, %vm5805_vm15  ;;  %v9511_v28 = vld [vmem:[%s14384_s0 + $0x50] sm:$0xff] }
 0x8a5   :  { %9398 = vrcp.f32 %v5320_v40  ;;  %v5322_v29 = vadd.f32 1.0, %v9391_v18  ;;  %v5885_v40 = vsel %vm5830_vm9, 1, %v14918_v45  ;;  %vm5783_vm4 = vcmp.ge.f32.partialorder %v9511_v28, 7.0  ;;  %vm5832_vm0 = vmand %vm5784_vm6, %vm5808_vm12  ;;  %v9512_v18 = vld [vmem:[%s14384_s0 + $0x68] sm:$0xff] }
 0x8a6   :  { %9400 = vrcp.f32 %v5323_v42  ;;  %vm5807_vm5 = vcmp.le.f32.partialorder %v9511_v28, 11.0  ;;  %v5884_v42 = vsel %vm5829_vm2, 1, %v14918_v45  ;;  %vm5786_vm3 = vcmp.ge.f32.partialorder %v9512_v18, 7.0 }
 0x8a7   :  { %9402 = vrcp.f32 %v5322_v29  ;;  %vm5810_vm11 = vcmp.le.f32.partialorder %v9512_v18, 11.0  ;;  %vm5831_vm8 = vmand %vm5783_vm4, %vm5807_vm5  ;;  %v9513_v29 = vld [vmem:[%s14384_s0 + $0x60] sm:$0xff] }
 0x8a8   :  { %v9393_v46 = vpop.eup %9392  ;;  %vm5785_vm14 = vcmp.ge.f32.partialorder %v9513_v29, 7.0  ;;  %vm5809_vm15 = vcmp.le.f32.partialorder %v9513_v29, 11.0  ;;  %vm5834_vm9 = vmand %vm5786_vm3, %vm5810_vm11  ;;  %9404 = vtanh.f32 %v12600_v27  ;;  %vm5790_vm3 = vcmp.ge.f32.partialorder %v9516_v5, 7.0 }
 0x8a9   :  { %5434 = vrot.lane.b32.xlu0 %v9393_v46, %s9553_s15  ;;  %v9395_v25 = vpop.eup %9394  ;;  %v5887_v46 = vsel %vm5832_vm0, 1, %v14918_v45  ;;  %9406 = vtanh.f32 %v12598_v10  ;;  %vm5833_vm2 = vmand %vm5785_vm14, %vm5809_vm15  ;;  %v5889_v3 = vsel %vm5834_vm9, 1, %v14918_v45  ;;  %vm5814_vm11 = vcmp.le.f32.partialorder %v9516_v5, 11.0 }
 0x8aa   :  { %5432 = vrot.lane.b32.xlu1 %v9395_v25, %s9553_s15  ;;  %v5886_v25 = vsel %vm5831_vm8, 1, %v14918_v45  ;;  %v5888_v27 = vsel %vm5833_vm2, 1, %v14918_v45  ;;  %vm5838_vm9 = vmand %vm5790_vm3, %vm5814_vm11  ;;  %9408 = vtanh.f32 %v12606_v47  ;;  %v9519_v47 = vld [vmem:[%s14384_s0 + $0x90] sm:$0xff]  ;;  %vm5794_vm3 = vcmp.ge.f32.partialorder %v9520_v34, 7.0 }
 0x8ab   :  { %9410 = vtanh.f32 %v12604_v62  ;;  %v5893_v11 = vsel %vm5838_vm9, 1, %v14918_v45  ;;  %vm5818_vm11 = vcmp.le.f32.partialorder %v9520_v34, 11.0 }
 0x8ac   :  { %v9397_v4 = vpop.eup %9396  ;;  %vm5842_vm9 = vmand %vm5794_vm3, %vm5818_vm11  ;;  %9412 = vtanh.f32 %v12612_v55 }
 0x8ad   :  { %5438 = vrot.lane.b32.xlu0 %v9397_v4, %s9553_s15  ;;  %v9514_v4 = vld [vmem:[%s14384_s0 + $0x78] sm:$0xff]  ;;  %9414 = vtanh.f32 %v12610_v23  ;;  %v5897_v41 = vsel %vm5842_vm9, 1, %v14918_v45 }
 0x8ae   :  { %vm5788_vm6 = vcmp.ge.f32.partialorder %v9514_v4, 7.0  ;;  %vm5812_vm12 = vcmp.le.f32.partialorder %v9514_v4, 11.0  ;;  %9416 = vtanh.f32 %v12618_v53 }
 0x8af   :  { %v9399_v57 = vpop.eup %9398  ;;  %vm5836_vm0 = vmand %vm5788_vm6, %vm5812_vm12  ;;  %9418 = vtanh.f32 %v12616_v7 }
 0x8b0   :  { %5436 = vrot.lane.b32.xlu1 %v9399_v57, %s9553_s15  ;;  %v9401_v0 = vpop.eup %9400  ;;  %v9515_v57 = vld [vmem:[%s14384_s0 + $0x70] sm:$0xff]  ;;  %v5891_v10 = vsel %vm5836_vm0, 1, %v14918_v45  ;;  %9420 = vtanh.f32 %v12626_v58 }
 0x8b1   :  { %5442 = vrot.lane.b32.xlu0 %v9401_v0, %s9553_s15  ;;  %v9403_v33 = vpop.eup %9402  ;;  %vm5787_vm4 = vcmp.ge.f32.partialorder %v9515_v57, 7.0  ;;  %vm5811_vm5 = vcmp.le.f32.partialorder %v9515_v57, 11.0  ;;  %v9517_v0 = vld [vmem:[%s14384_s0 + $0x80] sm:$0xff]  ;;  %9422 = vtanh.f32 %v12624_v17 }
 0x8b2   :  { %vm5835_vm8 = vmand %vm5787_vm4, %vm5811_vm5  ;;  %vm5789_vm14 = vcmp.ge.f32.partialorder %v9517_v0, 7.0  ;;  %vm5813_vm15 = vcmp.le.f32.partialorder %v9517_v0, 11.0  ;;  %v9405_v39 = vpop.eup %9404  ;;  %vm5791_vm4 = vcmp.ge.f32.partialorder %v9519_v47, 7.0  ;;  %vm5815_vm5 = vcmp.le.f32.partialorder %v9519_v47, 11.0 }
 0x8b3   :  { %v5890_v59 = vsel %vm5835_vm8, 1, %v14918_v45  ;;  %vm5837_vm2 = vmand %vm5789_vm14, %vm5813_vm15  ;;  %vm5793_vm14 = vcmp.ge.f32.partialorder %v9521_v20, 7.0  ;;  %vm5817_vm15 = vcmp.le.f32.partialorder %v9521_v20, 11.0  ;;  %9424 = vtanh.f32 %v12634_v24 }
 0x8b4   :  { %5440 = vrot.lane.b32.xlu1 %v9403_v33, %s9553_s15  ;;  %v9518_v33 = vld [vmem:[%s14384_s0 + $0x98] sm:$0xff]  ;;  %v5892_v62 = vsel %vm5837_vm2, 1, %v14918_v45  ;;  %vm5839_vm8 = vmand %vm5791_vm4, %vm5815_vm5  ;;  %9426 = vtanh.f32 %v12632_v63 }
 0x8b5   :  { %5904 = vperm.xlu0 %9018, %v5877_v32   ;;  %vm5792_vm6 = vcmp.ge.f32.partialorder %v9518_v33, 7.0  ;;  %vm5816_vm12 = vcmp.le.f32.partialorder %v9518_v33, 11.0  ;;  %vm5841_vm2 = vmand %vm5793_vm14, %vm5817_vm15  ;;  %9428 = vtanh.f32 %v12642_v51 }
 0x8b6   :  { %vm5840_vm0 = vmand %vm5792_vm6, %vm5816_vm12  ;;  %vm5796_vm6 = vcmp.ge.f32.partialorder %v9522_v36, 7.0  ;;  %vm5820_vm12 = vcmp.le.f32.partialorder %v9522_v36, 11.0  ;;  %v5896_v18 = vsel %vm5841_vm2, 1, %v14918_v45  ;;  %9430 = vtanh.f32 %v12640_v35 }
 0x8b7   :  { %9432 = vtanh.f32 %v12650_v38 }
 0x8b8   :  { %5901 = vperm.xlu1 %9019, %v5876_v16   ;;  %9434 = vtanh.f32 %v12648_v48 }
 0x8b9   :  { %5910 = vperm.xlu0 %9018, %v5879_v22   ;;  %v9407_v22 = vpop.eup %9406  ;;  %9436 = vtanh.f32 %v12658_v8 }
 0x8ba   :  { %v9409_v21 = vpop.eup %9408  ;;  %9438 = vtanh.f32 %v12656_v15 }
 0x8bb   :  { %v9411_v28 = vpop.eup %9410  ;;  %9440 = vtanh.f32 %v12666_v12 }
 0x8bc   :  { %5907 = vperm.xlu1 %9019, %v5878_v49   ;;  %9442 = vtanh.f32 %v12664_v52 }
 0x8bd   :  { %5916 = vperm.xlu0 %9018, %v5881_v61   ;;  %v5895_v61 = vsel %vm5840_vm0, 1, %v14918_v45  ;;  %vm5844_vm0 = vmand %vm5796_vm6, %vm5820_vm12 }
 0x8be   :  { %v5899_v23 = vsel %vm5844_vm0, 1, %v14918_v45 }
 0x8c0   :  { %5913 = vperm.xlu1 %9019, %v5880_v31   ;;  %v5894_v31 = vsel %vm5839_vm8, 1, %v14918_v45 }
 0x8c1   :  { %5922 = vperm.xlu0 %9018, %v5883_v19  }
 0x8c4   :  { %5919 = vperm.xlu1 %9019, %v5882_v50  }
 0x8c5   :  { %5928 = vperm.xlu0 %9018, %v5885_v40   ;;  %v9523_v40 = vld [vmem:[%s14384_s0 + $0xb0] sm:$0xff] }
 0x8c6   :  { %vm5795_vm4 = vcmp.ge.f32.partialorder %v9523_v40, 7.0  ;;  %vm5819_vm5 = vcmp.le.f32.partialorder %v9523_v40, 11.0 }
 0x8c7   :  { %vm5843_vm3 = vmand %vm5795_vm4, %vm5819_vm5 }
 0x8c8   :  { %5925 = vperm.xlu1 %9019, %v5884_v42  }
 0x8c9   :  { %5934 = vperm.xlu0 %9018, %v5887_v46   ;;  %v5898_v46 = vsel %vm5843_vm3, 1, %v14918_v45 }
 0x8cc   :  { %5931 = vperm.xlu1 %9019, %v5886_v25   ;;  %v9413_v25 = vpop.eup %9412  ;;  %9444 = vtanh.f32 %v12673_v6 }
 0x8cd   :  { %5940 = vperm.xlu0 %9018, %v5889_v3   ;;  %v9415_v3 = vpop.eup %9414  ;;  %9446 = vtanh.f32 %v12670_v9 }
 0x8ce   :  { %v9417_v53 = vpop.eup %9416  ;;  %9448 = vtanh.f32 %v12680_v30 }
 0x8d0   :  { %5937 = vperm.xlu1 %9019, %v5888_v27  }
 0x8d1   :  { %5946 = vperm.xlu0 %9018, %v5891_v10   ;;  %v9419_v10 = vpop.eup %9418  ;;  %9450 = vtanh.f32 %v12678_v1 }
 0x8d2   :  { %v9421_v33 = vpop.eup %9420 }
 0x8d3   :  { %v5399_v32 = vpop.permute.xlu0 %5398  ;;  %v9423_v58 = vpop.eup %9422 }
 0x8d4   :  { %v5397_v16 = vpop.permute.xlu1 %5396  ;;  %5943 = vperm.xlu1 %9019, %v5890_v59   ;;  %v5469_v49 = vmul.f32 %v9407_v22, %v5399_v32 }
 0x8d5   :  { %v5468_v56 = vmul.f32 %v9405_v39, %v5397_v16  ;;  %5952 = vperm.xlu0 %9018, %v5893_v11   ;;  %v9425_v11 = vpop.eup %9424 }
 0x8d6   :  { %v9427_v24 = vpop.eup %9426 }
 0x8d7   :  { %8827 = vmatprep.mubr.msk.f32.mxu1 %vm1361_vm7, %v5468_v56 }
 0x8d8   :  { %8828 = vmatmul.mubr.msk.f32.vlgmr.msra.gmra.mrb[84].mxu1 %vm1361_vm7, %v5469_v49  ;;  %5949 = vperm.xlu1 %9019, %v5892_v62   ;;  %v9429_v49 = vpop.eup %9428 }
 0x8d9   :  { %5958 = vperm.xlu0 %9018, %v5895_v61   ;;  %v9431_v51 = vpop.eup %9430 }
 0x8da   :  { %v9433_v20 = vpop.eup %9432 }
 0x8db   :  { %v5403_v19 = vpop.permute.xlu0 %5402  ;;  %v9435_v38 = vpop.eup %9434 }
 0x8dc   :  { %v5401_v50 = vpop.permute.xlu1 %5400  ;;  %5955 = vperm.xlu1 %9019, %v5894_v31   ;;  %v5471_v55 = vmul.f32 %v9411_v28, %v5403_v19 }
 0x8dd   :  { %v5470_v42 = vmul.f32 %v9409_v21, %v5401_v50  ;;  %5964 = vperm.xlu0 %9018, %v5897_v41   ;;  %v9437_v21 = vpop.eup %9436 }
 0x8de   :  { %v9439_v8 = vpop.eup %9438 }
 0x8df   :  { %8830 = vmatprep.mubr.msk.f32.mxu1 %vm1361_vm7, %v5470_v42  ;;  %v9441_v28 = vpop.eup %9440 }
 0x8e0   :  { %8831 = vmatmul.mubr.msk.f32.gmra.mrb[86].mxu1 %vm1361_vm7, %v5471_v55  ;;  %5961 = vperm.xlu1 %9019, %v5896_v18   ;;  %v9443_v52 = vpop.eup %9442 }
 0x8e1   :  { %5970 = vperm.xlu0 %9018, %v5899_v23   ;;  %v9445_v6 = vpop.eup %9444 }
 0x8e3   :  { %v5407_v29 = vpop.permute.xlu0 %5406 }
 0x8e4   :  { %5967 = vperm.xlu1 %9019, %v5898_v46   ;;  %v5405_v4 = vpop.permute.xlu1 %5404  ;;  %v5473_v27 = vmul.f32 %v9415_v3, %v5407_v29  ;;  %v9447_v46 = vpop.eup %9446 }
 0x8e5   :  { %v5472_v57 = vmul.f32 %v9413_v25, %v5405_v4  ;;  %v9449_v30 = vpop.eup %9448 }
 0x8e6   :  { %v9451_v1 = vpop.eup %9450 }
 0x8e7   :  { %8833 = vmatprep.mubr.msk.f32.mxu1 %vm1361_vm7, %v5472_v57 }
 0x8e8   :  { %8834 = vmatmul.mubr.msk.f32.gmra.mrb[88].mxu1 %vm1361_vm7, %v5473_v27 }
 0x8eb   :  { %v5411_v45 = vpop.permute.xlu0 %5410 }
 0x8ec   :  { %v5409_v5 = vpop.permute.xlu1 %5408  ;;  %v5475_v0 = vmul.f32 %v9419_v10, %v5411_v45 }
 0x8ed   :  { %v5474_v7 = vmul.f32 %v9417_v53, %v5409_v5 }
 0x8ef   :  { %8836 = vmatprep.mubr.msk.f32.mxu1 %vm1361_vm7, %v5474_v7 }
 0x8f0   :  { %8837 = vmatmul.mubr.msk.f32.gmra.mrb[90].mxu1 %vm1361_vm7, %v5475_v0 }
 0x8f3   :  { %v5415_v59 = vpop.permute.xlu0 %5414 }
 0x8f4   :  { %v5413_v32 = vpop.permute.xlu1 %5412  ;;  %v5477_v17 = vmul.f32 %v9423_v58, %v5415_v59  ;;  %v15016_v58 = vld [vmem:[#allocation95_spill] sm:$0xff] }
 0x8f5   :  { %v5476_v39 = vmul.f32 %v9421_v33, %v5413_v32 }
 0x8f7   :  { %8839 = vmatprep.mubr.msk.f32.mxu1 %vm1361_vm7, %v5476_v39 }
 0x8f8   :  { %8840 = vmatmul.mubr.msk.f32.gmra.mrb[92].mxu1 %vm1361_vm7, %v5477_v17 }
 0x8fb   :  { %v5419_v16 = vpop.permute.xlu0 %5418 }
 0x8fc   :  { %v5417_v47 = vpop.permute.xlu1 %5416  ;;  %v5479_v63 = vmul.f32 %v9427_v24, %v5419_v16 }
 0x8fd   :  { %v5478_v22 = vmul.f32 %v9425_v11, %v5417_v47  ;;  %v15018_v11 = vld [vmem:[#allocation33_spill] sm:$0xff] }
 0x8ff   :  { %8842 = vmatprep.mubr.msk.f32.mxu1 %vm1361_vm7, %v5478_v22 }
 0x900   :  { %8843 = vmatmul.mubr.msk.f32.gmra.mrb[94].mxu1 %vm1361_vm7, %v5479_v63 }
 0x903   :  { %v5423_v56 = vpop.permute.xlu0 %5422 }
 0x904   :  { %v5421_v62 = vpop.permute.xlu1 %5420  ;;  %v5481_v35 = vmul.f32 %v9431_v51, %v5423_v56  ;;  %v15020_v51 = vld [vmem:[#allocation97_spill] sm:$0xff] }
 0x905   :  { %v5480_v34 = vmul.f32 %v9429_v49, %v5421_v62 }
 0x907   :  { %8845 = vmatprep.mubr.msk.f32.mxu1 %vm1361_vm7, %v5480_v34 }
 0x908   :  { %8846 = vmatmul.mubr.msk.f32.gmra.mrb[96].mxu1 %vm1361_vm7, %v5481_v35 }
 0x90b   :  { %v5427_v61 = vpop.permute.xlu0 %5426 }
 0x90c   :  { %v5425_v31 = vpop.permute.xlu1 %5424  ;;  %v5483_v48 = vmul.f32 %v9435_v38, %v5427_v61 }
 0x90d   :  { %v5482_v36 = vmul.f32 %v9433_v20, %v5425_v31  ;;  %v15022_v20 = vld [vmem:[#allocation96_spill] sm:$0xff] }
 0x90f   :  { %8848 = vmatprep.mubr.msk.f32.mxu1 %vm1361_vm7, %v5482_v36 }
 0x910   :  { %8849 = vmatmul.mubr.msk.f32.gmra.mrb[98].mxu1 %vm1361_vm7, %v5483_v48 }
 0x913   :  { %v5431_v19 = vpop.permute.xlu0 %5430 }
 0x914   :  { %v5429_v50 = vpop.permute.xlu1 %5428  ;;  %v5485_v15 = vmul.f32 %v9439_v8, %v5431_v19  ;;  %v15024_v8 = vld [vmem:[#allocation98_spill] sm:$0xff] }
 0x915   :  { %v5484_v41 = vmul.f32 %v9437_v21, %v5429_v50 }
 0x917   :  { %8851 = vmatprep.mubr.msk.f32.mxu1 %vm1361_vm7, %v5484_v41 }
 0x918   :  { %8852 = vmatmul.mubr.msk.f32.gmra.mrb[100].mxu1 %vm1361_vm7, %v5485_v15 }
 0x91b   :  { %v5435_v40 = vpop.permute.xlu0 %5434 }
 0x91c   :  { %v5433_v12 = vpop.permute.xlu1 %5432  ;;  %v5487_v55 = vmul.f32 %v9443_v52, %v5435_v40 }
 0x91d   :  { %v5486_v42 = vmul.f32 %v9441_v28, %v5433_v12  ;;  %v15026_v28 = vld [vmem:[#allocation100_spill] sm:$0xff] }
 0x91f   :  { %v5439_v18 = vpop.permute.xlu0 %5438  ;;  %8854 = vmatprep.mubr.msk.f32.mxu1 %vm1361_vm7, %v5486_v42 }
 0x920   :  { %8855 = vmatmul.mubr.msk.f32.gmra.mrb[102].mxu1 %vm1361_vm7, %v5487_v55  ;;  %v5489_v9 = vmul.f32 %v9447_v46, %v5439_v18  ;;  %v15028_v46 = vld [vmem:[#allocation99_spill] sm:$0xff] }
 0x922   :  { %v5437_v23 = vpop.permute.xlu1 %5436 }
 0x923   :  { %v5488_v29 = vmul.f32 %v9445_v6, %v5437_v23  ;;  %v5443_v25 = vpop.permute.xlu0 %5442 }
 0x924   :  { %v5491_v57 = vmul.f32 %v9451_v1, %v5443_v25 }
 0x925   :  { %8857 = vmatprep.mubr.msk.f32.mxu1 %vm1361_vm7, %v5488_v29 }
 0x926   :  { %8858 = vmatmul.mubr.msk.f32.gmra.mrb[104].mxu1 %vm1361_vm7, %v5489_v9  ;;  %v5441_v4 = vpop.permute.xlu1 %5440 }
 0x927   :  { %v5490_v3 = vmul.f32 %v9449_v30, %v5441_v4  ;;  %v15030_v30 = vld [vmem:[#allocation101_spill] sm:$0xff] }
 0x929   :  { %8860 = vmatprep.mubr.msk.f32.mxu1 %vm1361_vm7, %v5490_v3 }
 0x92a   :  { %8861 = vmatmul.mubr.msk.f32.gmra.mrb[106].mxu1 %vm1361_vm7, %v5491_v57 }
 0x934   :  { %v12841_v45 = vpop.permute.xlu0 %5904 }
 0x935   :  { %15013 = vst [vmem:[#allocation107_spill] sm:$0xff] %v12841_v45  ;;  %vm5973_vm11 = vcmp.eq.s32.totalorder %v12841_v45, 1 }
 0x937   :  { %v12844_v10 = vpop.permute.xlu1 %5901 }
 0x938   :  { %15014 = vst [vmem:[#allocation56_spill] sm:$0xff] %v12844_v10  ;;  %vm5972_vm8 = vcmp.eq.s32.totalorder %v12844_v10, 1 }
 0x93b   :  { %v12864_v16 = vpop.permute.xlu1 %5907 }
 0x93c   :  { %15017 = vst [vmem:[#allocation58_spill] sm:$0xff] %v12864_v16  ;;  %vm5974_vm15 = vcmp.eq.s32.totalorder %v12864_v16, 1 }
 0x93f   :  { %v12884_v61 = vpop.permute.xlu1 %5913 }
 0x940   :  { %15021 = vst [vmem:[#allocation59_spill] sm:$0xff] %v12884_v61  ;;  %vm5976_vm6 = vcmp.eq.s32.totalorder %v12884_v61, 1 }
 0x943   :  { %v12904_v40 = vpop.permute.xlu1 %5919 }
 0x944   :  { %15025 = vst [vmem:[#allocation60_spill] sm:$0xff] %v12904_v40  ;;  %vm14713_vm2 = vcmp.eq.s32.totalorder %v12904_v40, 1 }
 0x947   :  { %v12924_v25 = vpop.permute.xlu1 %5925 }
 0x948   :  { %15029 = vst [vmem:[#allocation63_spill] sm:$0xff] %v12924_v25  ;;  %vm14676_vm5 = vcmp.eq.s32.totalorder %v12924_v25, 1 }
 0x9ab   :  { %v8829_v27 = vpop.f32.mrb[84].mxu1 }
 0x9ac   :  { %v5750_v53 = vadd.f32 %v8829_v27, %v12059_v26  ;;  %v5630_v5 = vpop.f32.mrb[85].mxu1 }
 0x9ad   :  { %v5749_v7 = vadd.f32 %v5630_v5, %v12067_v60  ;;  %v12861_v60 = vpop.permute.xlu0 %5910 }
 0x9ae   :  { %v5853_v0 = vmax.f32 %v5750_v53, 0.0  ;;  %15015 = vst [vmem:[#allocation108_spill] sm:$0xff] %v12861_v60  ;;  %vm5975_vm14 = vcmp.eq.s32.totalorder %v12861_v60, 1 }
 0x9af   :  { %v5852_v59 = vmax.f32 %v5749_v7, 0.0  ;;  %v15032_v7 = vld [vmem:[#allocation102_spill] sm:$0xff] }
 0x9b0   :  { %v12851_v33 = vsel %vm5973_vm11, %v5853_v0, 0.0 }
 0x9b1   :  { %v12855_v32 = vsel %vm5972_vm8, %v5852_v59, 0.0  ;;  %6046 = vrot.lane.b32.xlu0 %v12851_v33, %s9553_s15  ;;  %v12881_v62 = vpop.permute.xlu0 %5916 }
 0x9b2   :  { %6044 = vrot.lane.b32.xlu1 %v12855_v32, %s9553_s15  ;;  %15019 = vst [vmem:[#allocation109_spill] sm:$0xff] %v12881_v62  ;;  %vm5977_vm9 = vcmp.eq.s32.totalorder %v12881_v62, 1 }
 0x9b3   :  { %v8832_v26 = vpop.f32.mrb[86].mxu1 }
 0x9b4   :  { %v5752_v39 = vadd.f32 %v8832_v26, %v15016_v58  ;;  %v5640_v17 = vpop.f32.mrb[87].mxu1  ;;  %v12944_v26 = vpop.permute.xlu1 %5931  ;;  %v15034_v58 = vld [vmem:[#allocation36_spill] sm:$0xff] }
 0x9b5   :  { %v5751_v47 = vadd.f32 %v5640_v17, %v15018_v11  ;;  %v12901_v50 = vpop.permute.xlu0 %5922  ;;  %15033 = vst [vmem:[#allocation64_spill] sm:$0xff] %v12944_v26  ;;  %vm14665_vm3 = vcmp.eq.s32.totalorder %v12944_v26, 1 }
 0x9b6   :  { %v5855_v24 = vmax.f32 %v5752_v39, 0.0  ;;  %15023 = vst [vmem:[#allocation110_spill] sm:$0xff] %v12901_v50  ;;  %vm5979_vm12 = vcmp.eq.s32.totalorder %v12901_v50, 1 }
 0x9b7   :  { %v5854_v22 = vmax.f32 %v5751_v47, 0.0 }
 0x9b8   :  { %v12871_v63 = vsel %vm5975_vm14, %v5855_v24, 0.0 }
 0x9b9   :  { %v12875_v56 = vsel %vm5974_vm15, %v5854_v22, 0.0  ;;  %6050 = vrot.lane.b32.xlu0 %v12871_v63, %s9553_s15  ;;  %v12921_v23 = vpop.permute.xlu0 %5928 }
 0x9ba   :  { %6048 = vrot.lane.b32.xlu1 %v12875_v56, %s9553_s15  ;;  %15027 = vst [vmem:[#allocation111_spill] sm:$0xff] %v12921_v23  ;;  %vm14711_vm4 = vcmp.eq.s32.totalorder %v12921_v23, 1 }
 0x9bb   :  { %v8835_v49 = vpop.f32.mrb[88].mxu1 }
 0x9bc   :  { %v5754_v34 = vadd.f32 %v8835_v49, %v15020_v51  ;;  %v5650_v35 = vpop.f32.mrb[89].mxu1  ;;  %v15036_v51 = vld [vmem:[#allocation39_spill] sm:$0xff] }
 0x9bd   :  { %v5753_v31 = vadd.f32 %v5650_v35, %v15022_v20  ;;  %v12941_v5 = vpop.permute.xlu0 %5934  ;;  %v12964_v20 = vpop.permute.xlu1 %5937 }
 0x9be   :  { %v5857_v38 = vmax.f32 %v5754_v34, 0.0  ;;  %15031 = vst [vmem:[#allocation112_spill] sm:$0xff] %v12941_v5  ;;  %vm14666_vm0 = vcmp.eq.s32.totalorder %v12941_v5, 1  ;;  %15037 = vst [vmem:[#allocation66_spill] sm:$0xff] %v12964_v20  ;;  %v15075_v5 = vld [vmem:[#allocation12_spill] sm:$0xff] }
 0x9bf   :  { %v5856_v36 = vmax.f32 %v5753_v31, 0.0  ;;  %v15038_v31 = vld [vmem:[#allocation44_spill] sm:$0xff] }
 0x9c0   :  { %v12891_v48 = vsel %vm5977_vm9, %v5857_v38, 0.0 }
 0x9c1   :  { %v12895_v19 = vsel %vm5976_vm6, %v5856_v36, 0.0  ;;  %6054 = vrot.lane.b32.xlu0 %v12891_v48, %s9553_s15  ;;  %v12961_v49 = vpop.permute.xlu0 %5940 }
 0x9c2   :  { %6052 = vrot.lane.b32.xlu1 %v12895_v19, %s9553_s15  ;;  %15035 = vst [vmem:[#allocation113_spill] sm:$0xff] %v12961_v49 }
 0x9c3   :  { %v8838_v21 = vpop.f32.mrb[90].mxu1 }
 0x9c4   :  { %v5756_v41 = vadd.f32 %v8838_v21, %v15024_v8  ;;  %v5660_v15 = vpop.f32.mrb[91].mxu1 }
 0x9c5   :  { %v5755_v12 = vadd.f32 %v5660_v15, %v15026_v28  ;;  %v12981_v28 = vpop.permute.xlu0 %5946 }
 0x9c6   :  { %v5859_v52 = vmax.f32 %v5756_v41, 0.0  ;;  %15039 = vst [vmem:[#allocation114_spill] sm:$0xff] %v12981_v28 }
 0x9c7   :  { %v5858_v42 = vmax.f32 %v5755_v12, 0.0  ;;  %v15040_v12 = vld [vmem:[#allocation41_spill] sm:$0xff] }
 0x9c8   :  { %v12911_v55 = vsel %vm5979_vm12, %v5859_v52, 0.0 }
 0x9c9   :  { %v12915_v18 = vsel %vm14713_vm2, %v5858_v42, 0.0  ;;  %6058 = vrot.lane.b32.xlu0 %v12911_v55, %s9553_s15 }
 0x9ca   :  { %6056 = vrot.lane.b32.xlu1 %v12915_v18, %s9553_s15 }
 0x9cb   :  { %v8841_v6 = vpop.f32.mrb[92].mxu1 }
 0x9cc   :  { %v5758_v29 = vadd.f32 %v8841_v6, %v15028_v46  ;;  %v5670_v9 = vpop.f32.mrb[93].mxu1  ;;  %v12984_v6 = vpop.permute.xlu1 %5943  ;;  %v15042_v46 = vld [vmem:[#allocation47_spill] sm:$0xff] }
 0x9cd   :  { %v5757_v4 = vadd.f32 %v5670_v9, %v15030_v30  ;;  %15041 = vst [vmem:[#allocation68_spill] sm:$0xff] %v12984_v6 }
 0x9ce   :  { %v5861_v1 = vmax.f32 %v5758_v29, 0.0 }
 0x9cf   :  { %v5860_v3 = vmax.f32 %v5757_v4, 0.0 }
 0x9d0   :  { %v12931_v57 = vsel %vm14711_vm4, %v5861_v1, 0.0 }
 0x9d1   :  { %v12935_v27 = vsel %vm14676_vm5, %v5860_v3, 0.0  ;;  %6062 = vrot.lane.b32.xlu0 %v12931_v57, %s9553_s15 }
 0x9d2   :  { %6060 = vrot.lane.b32.xlu1 %v12935_v27, %s9553_s15 }
 0x9d3   :  { %v8844_v53 = vpop.f32.mrb[94].mxu1 }
 0x9d4   :  { %v5760_v0 = vadd.f32 %v8844_v53, %v15032_v7  ;;  %v5680_v59 = vpop.f32.mrb[95].mxu1  ;;  %v13001_v53 = vpop.permute.xlu0 %5952  ;;  %v15044_v7 = vld [vmem:[#allocation103_spill] sm:$0xff] }
 0x9d5   :  { %v5759_v39 = vadd.f32 %v5680_v59, %v15034_v58  ;;  %15043 = vst [vmem:[#allocation115_spill] sm:$0xff] %v13001_v53  ;;  %v13004_v58 = vpop.permute.xlu1 %5949 }
 0x9d6   :  { %v5863_v17 = vmax.f32 %v5760_v0, 0.0  ;;  %15045 = vst [vmem:[#allocation69_spill] sm:$0xff] %v13004_v58 }
 0x9d7   :  { %v5862_v11 = vmax.f32 %v5759_v39, 0.0  ;;  %v15046_v39 = vld [vmem:[#allocation49_spill] sm:$0xff] }
 0x9d8   :  { %v12951_v47 = vsel %vm14666_vm0, %v5863_v17, 0.0  ;;  %vm14667_vm0 = vcmp.eq.s32.totalorder %v12964_v20, 1 }
 0x9d9   :  { %v12955_v24 = vsel %vm14665_vm3, %v5862_v11, 0.0  ;;  %6066 = vrot.lane.b32.xlu0 %v12951_v47, %s9553_s15  ;;  %vm14668_vm3 = vcmp.eq.s32.totalorder %v12961_v49, 1 }
 0x9da   :  { %6064 = vrot.lane.b32.xlu1 %v12955_v24, %s9553_s15 }
 0x9db   :  { %v8847_v22 = vpop.f32.mrb[96].mxu1 }
 0x9dc   :  { %v5762_v34 = vadd.f32 %v8847_v22, %v15036_v51  ;;  %v5690_v35 = vpop.f32.mrb[97].mxu1 }
 0x9dd   :  { %v5761_v38 = vadd.f32 %v5690_v35, %v15038_v31  ;;  %v13019_v35 = vpop.permute.xlu0 %5958  ;;  %v13023_v31 = vpop.permute.xlu1 %5955 }
 0x9de   :  { %v5865_v36 = vmax.f32 %v5762_v34, 0.0  ;;  %15047 = vst [vmem:[#allocation116_spill] sm:$0xff] %v13019_v35  ;;  %15048 = vst [vmem:[#allocation70_spill] sm:$0xff] %v13023_v31 }
 0x9df   :  { %v5864_v21 = vmax.f32 %v5761_v38, 0.0 }
 0x9e0   :  { %v12971_v8 = vsel %vm14668_vm3, %v5865_v36, 0.0  ;;  %vm14669_vm3 = vcmp.eq.s32.totalorder %v12984_v6, 1  ;;  %v15049_v36 = vld [vmem:[#allocation104_spill] sm:$0xff] }
 0x9e1   :  { %v12975_v41 = vsel %vm14667_vm0, %v5864_v21, 0.0  ;;  %6070 = vrot.lane.b32.xlu0 %v12971_v8, %s9553_s15  ;;  %vm14670_vm0 = vcmp.eq.s32.totalorder %v12981_v28, 1  ;;  %v15071_v28 = vld [vmem:[#allocation6_spill] sm:$0xff] }
 0x9e2   :  { %6068 = vrot.lane.b32.xlu1 %v12975_v41, %s9553_s15 }
 0x9e3   :  { %v8850_v15 = vpop.f32.mrb[98].mxu1 }
 0x9e4   :  { %v5764_v52 = vadd.f32 %v8850_v15, %v15040_v12  ;;  %v5700_v42 = vpop.f32.mrb[99].mxu1  ;;  %v15050_v12 = vld [vmem:[#allocation50_spill] sm:$0xff] }
 0x9e5   :  { %v5763_v29 = vadd.f32 %v5700_v42, %v15042_v46 }
 0x9e6   :  { %v5867_v9 = vmax.f32 %v5764_v52, 0.0 }
 0x9e7   :  { %v5866_v30 = vmax.f32 %v5763_v29, 0.0  ;;  %v13029_v29 = vpop.permute.xlu0 %5964 }
 0x9e8   :  { %v12991_v4 = vsel %vm14670_vm0, %v5867_v9, 0.0  ;;  %vm14671_vm0 = vcmp.eq.s32.totalorder %v13004_v58, 1  ;;  %15051 = vst [vmem:[#allocation117_spill] sm:$0xff] %v13029_v29 }
 0x9e9   :  { %v12995_v1 = vsel %vm14669_vm3, %v5866_v30, 0.0  ;;  %6074 = vrot.lane.b32.xlu0 %v12991_v4, %s9553_s15  ;;  %vm14672_vm3 = vcmp.eq.s32.totalorder %v13001_v53, 1  ;;  %v13035_v30 = vpop.permute.xlu1 %5961 }
 0x9ea   :  { %6072 = vrot.lane.b32.xlu1 %v12995_v1, %s9553_s15  ;;  %15053 = vst [vmem:[#allocation10_spill] sm:$0xff] %v13035_v30 }
 0x9eb   :  { %v8853_v3 = vpop.f32.mrb[100].mxu1 }
 0x9ec   :  { %v5766_v0 = vadd.f32 %v8853_v3, %v15044_v7  ;;  %v5710_v59 = vpop.f32.mrb[101].mxu1 }
 0x9ed   :  { %v5765_v17 = vadd.f32 %v5710_v59, %v15046_v39 }
 0x9ee   :  { %v5869_v11 = vmax.f32 %v5766_v0, 0.0  ;;  %v15054_v0 = vld [vmem:[#allocation105_spill] sm:$0xff] }
 0x9ef   :  { %v5868_v22 = vmax.f32 %v5765_v17, 0.0  ;;  %v15055_v17 = vld [vmem:[#allocation53_spill] sm:$0xff] }
 0x9f0   :  { %v13011_v51 = vsel %vm14672_vm3, %v5869_v11, 0.0  ;;  %vm14673_vm3 = vcmp.eq.s32.totalorder %v13023_v31, 1 }
 0x9f1   :  { %v13015_v34 = vsel %vm14671_vm0, %v5868_v22, 0.0  ;;  %6078 = vrot.lane.b32.xlu0 %v13011_v51, %s9553_s15  ;;  %vm14674_vm0 = vcmp.eq.s32.totalorder %v13019_v35, 1  ;;  %v5845_v22 = vld [vmem:[%s14385_s1 + $0x68] sm:$0xff] }
 0x9f2   :  { %6076 = vrot.lane.b32.xlu1 %v13015_v34, %s9553_s15 }
 0x9f3   :  { %v8856_v38 = vpop.f32.mrb[102].mxu1 }
 0x9f4   :  { %v5768_v21 = vadd.f32 %v8856_v38, %v15049_v36  ;;  %v5720_v15 = vpop.f32.mrb[103].mxu1  ;;  %v5846_v38 = vld [vmem:[%s14385_s1 + $0x70] sm:$0xff] }
 0x9f5   :  { %v5767_v52 = vadd.f32 %v5720_v15, %v15050_v12 }
 0x9f6   :  { %v5871_v42 = vmax.f32 %v5768_v21, 0.0  ;;  %v8997_v21 = vpack.c.bf16 %v5846_v38, %v5845_v22 }
 0x9f7   :  { %v5870_v46 = vmax.f32 %v5767_v52, 0.0  ;;  %v13055_v52 = vpop.permute.xlu0 %5970 }
 0x9f8   :  { %v13033_v9 = vsel %vm14674_vm0, %v5871_v42, 0.0  ;;  %vm14708_vm0 = vcmp.eq.s32.totalorder %v13035_v30, 1  ;;  %15056 = vst [vmem:[#allocation18_spill] sm:$0xff] %v13055_v52  ;;  %8998 = vmatprep.subr.bf16.mxu0 %v8997_v21 }
 0x9f9   :  { %15052 = vst [vmem:[#allocation15_spill] sm:$0xff] %v13033_v9  ;;  %v13039_v3 = vsel %vm14673_vm3, %v5870_v46, 0.0  ;;  %v8859_v7 = vpop.f32.mrb[104].mxu1  ;;  %6082 = vrot.lane.b32.xlu0 %v13033_v9, %s9553_s15  ;;  %vm14675_vm3 = vcmp.eq.s32.totalorder %v13029_v29, 1  ;;  %v15058_v46 = vld [vmem:[#allocation106_spill] sm:$0xff]  ;;  %9000 = vmatpush3.bf16.msra.mxu0 %v8997_v21  ;;  %v5847_v21 = vld [vmem:[%s14385_s1 + $0x78] sm:$0xff] }
 0x9fa   :  { %v5770_v59 = vadd.f32 %v8859_v7, %v15054_v0  ;;  %v5730_v39 = vpop.f32.mrb[105].mxu1  ;;  %6080 = vrot.lane.b32.xlu1 %v13039_v3, %s9553_s15  ;;  %8867 = vmatprep.subr.mxu0 %v5847_v21 }
 0x9fb   :  { %v5769_v11 = vadd.f32 %v5730_v39, %v15055_v17  ;;  %v13062_v39 = vpop.permute.xlu1 %5967  ;;  %v15061_v17 = vld [vmem:[#allocation54_spill] sm:$0xff] }
 0x9fc   :  { %v5873_v36 = vmax.f32 %v5770_v59, 0.0  ;;  %15059 = vst [vmem:[#allocation17_spill] sm:$0xff] %v13062_v39  ;;  %vm14677_vm5 = vcmp.eq.s32.totalorder %v13062_v39, 1 }
 0x9fd   :  { %v5872_v15 = vmax.f32 %v5769_v11, 0.0  ;;  %v8862_v12 = vpop.f32.mrb[106].mxu1  ;;  %8868 = vmatpush3.msra.mxu0 %v5847_v21 }
 0x9fe   :  { %v13059_v42 = vsel %vm14675_vm3, %v5873_v36, 0.0  ;;  %v5772_v7 = vadd.f32 %v8862_v12, %v15058_v46  ;;  %v5740_v0 = vpop.f32.mrb[107].mxu1  ;;  %vm14684_vm3 = vcmp.eq.s32.totalorder %v13055_v52, 1 }
 0x9ff   :  { %15057 = vst [vmem:[#allocation14_spill] sm:$0xff] %v13059_v42  ;;  %v13066_v59 = vsel %vm14708_vm0, %v5872_v15, 0.0  ;;  %v5771_v11 = vadd.f32 %v5740_v0, %v15061_v17  ;;  %6086 = vrot.lane.b32.xlu0 %v13059_v42, %s9553_s15  ;;  %v15064_v17 = vld [vmem:[#allocation25_spill] sm:$0xff] }
 0xa00   :  { %15060 = vst [vmem:[#allocation20_spill] sm:$0xff] %v13066_v59  ;;  %v5875_v22 = vmax.f32 %v5772_v7, 0.0  ;;  %6084 = vrot.lane.b32.xlu1 %v13066_v59, %s9553_s15  ;;  %v15107_v59 = vld [vmem:[#allocation61_spill] sm:$0xff] }
 0xa01   :  { %v5874_v38 = vmax.f32 %v5771_v11, 0.0  ;;  %vm15108_vm0 = vcmp.eq.s32.totalorder %v15107_v59, 1  ;;  %v15130_v59 = vld [vmem:[#allocation4_spill] sm:$0xff] }
 0xa02   :  { %v13077_v36 = vsel %vm14684_vm3, %v5875_v22, 0.0  ;;  %v15065_v22 = vld [vmem:[#allocation2_spill] sm:$0xff] }
 0xa03   :  { %15062 = vst [vmem:[#allocation95_spill] sm:$0xff] %v13077_v36  ;;  %v13081_v15 = vsel %vm14677_vm5, %v5874_v38, 0.0  ;;  %6090 = vrot.lane.b32.xlu0 %v13077_v36, %s9553_s15  ;;  %vm15066_vm5 = vcmp.eq.s32.totalorder %v15065_v22, 1 }
 0xa04   :  { %15063 = vst [vmem:[#allocation33_spill] sm:$0xff] %v13081_v15  ;;  %6088 = vrot.lane.b32.xlu1 %v13081_v15, %s9553_s15  ;;  %s9556_s15 = smov 72  }
 0xa23   :  { %v13090_v12 = vpop.permute.xlu0 %6046 }
 0xa24   :  { %v6189_v46 = vrot.slane %v13090_v12, 1  ;;  %v13093_v7 = vpop.permute.xlu1 %6044 }
 0xa25   :  { %v14683_v0 = vrot.slane %v13093_v7, 1 }
 0xa27   :  { %v6234_v11 = vsel %vm904_vm13, %v14683_v0, %v6189_v46  ;;  %v15067_v0 = vld [vmem:[#allocation3_spill] sm:$0xff] }
 0xa28   :  { %v6236_v38 = vsel %vm15066_vm5, %v6234_v11, 0.0  ;;  %vm15068_vm3 = vcmp.eq.s32.totalorder %v15067_v0, 1  ;;  %v15069_v11 = vld [vmem:[#allocation9_spill] sm:$0xff] }
 0xa29   :  { %6284 = vrot.lane.b32.xlu1 %v6236_v38, %s9552_s14  ;;  %vm15070_vm5 = vcmp.eq.s32.totalorder %v15069_v11, 1 }
 0xa2b   :  { %v13103_v39 = vpop.permute.xlu0 %6050 }
 0xa2c   :  { %v6191_v21 = vrot.slane %v13103_v39, 1  ;;  %v13106_v52 = vpop.permute.xlu1 %6048 }
 0xa2d   :  { %v6190_v30 = vrot.slane %v13106_v52, 1 }
 0xa2f   :  { %v6233_v29 = vsel %vm904_vm13, %v6189_v46, %v6190_v30  ;;  %v6232_v31 = vsel %vm904_vm13, %v6190_v30, %v6191_v21 }
 0xa30   :  { %v6237_v35 = vsel %vm15068_vm3, %v6233_v29, 0.0  ;;  %v6238_v38 = vsel %vm15070_vm5, %v6232_v31, 0.0  ;;  %vm15072_vm3 = vcmp.eq.s32.totalorder %v15071_v28, 1 }
 0xa31   :  { %6286 = vrot.lane.b32.xlu0 %v6237_v35, %s9552_s14  ;;  %6288 = vrot.lane.b32.xlu1 %v6238_v38, %s9552_s14  ;;  %v15073_v35 = vld [vmem:[#allocation13_spill] sm:$0xff] }
 0xa32   :  { %vm15074_vm5 = vcmp.eq.s32.totalorder %v15073_v35, 1 }
 0xa33   :  { %v13119_v58 = vpop.permute.xlu0 %6054 }
 0xa34   :  { %v6193_v53 = vrot.slane %v13119_v58, 1  ;;  %v13122_v6 = vpop.permute.xlu1 %6052 }
 0xa35   :  { %v6192_v46 = vrot.slane %v13122_v6, 1 }
 0xa37   :  { %v6231_v30 = vsel %vm904_vm13, %v6191_v21, %v6192_v46  ;;  %v6230_v29 = vsel %vm904_vm13, %v6192_v46, %v6193_v53 }
 0xa38   :  { %v6239_v31 = vsel %vm15072_vm3, %v6231_v30, 0.0  ;;  %v6240_v38 = vsel %vm15074_vm5, %v6230_v29, 0.0  ;;  %vm15076_vm3 = vcmp.eq.s32.totalorder %v15075_v5, 1  ;;  %v15079_v5 = vld [vmem:[#allocation16_spill] sm:$0xff] }
 0xa39   :  { %6290 = vrot.lane.b32.xlu0 %v6239_v31, %s9552_s14  ;;  %6292 = vrot.lane.b32.xlu1 %v6240_v38, %s9552_s14  ;;  %v15077_v31 = vld [vmem:[#allocation19_spill] sm:$0xff] }
 0xa3a   :  { %vm15078_vm5 = vcmp.eq.s32.totalorder %v15077_v31, 1 }
 0xa3b   :  { %v13135_v20 = vpop.permute.xlu0 %6058 }
 0xa3c   :  { %v6195_v49 = vrot.slane %v13135_v20, 1  ;;  %v13138_v26 = vpop.permute.xlu1 %6056 }
 0xa3d   :  { %v6194_v21 = vrot.slane %v13138_v26, 1 }
 0xa3f   :  { %v6229_v46 = vsel %vm904_vm13, %v6193_v53, %v6194_v21  ;;  %v6228_v30 = vsel %vm904_vm13, %v6194_v21, %v6195_v49 }
 0xa40   :  { %v6241_v29 = vsel %vm15076_vm3, %v6229_v46, 0.0  ;;  %v6242_v38 = vsel %vm15078_vm5, %v6228_v30, 0.0  ;;  %vm15080_vm3 = vcmp.eq.s32.totalorder %v15079_v5, 1  ;;  %v15083_v5 = vld [vmem:[#allocation23_spill] sm:$0xff] }
 0xa41   :  { %6294 = vrot.lane.b32.xlu0 %v6241_v29, %s9552_s14  ;;  %6296 = vrot.lane.b32.xlu1 %v6242_v38, %s9552_s14  ;;  %v15081_v29 = vld [vmem:[#allocation26_spill] sm:$0xff] }
 0xa42   :  { %vm15082_vm5 = vcmp.eq.s32.totalorder %v15081_v29, 1 }
 0xa43   :  { %v13151_v25 = vpop.permute.xlu0 %6062 }
 0xa44   :  { %v6197_v23 = vrot.slane %v13151_v25, 1  ;;  %v13154_v28 = vpop.permute.xlu1 %6060 }
 0xa45   :  { %v6196_v53 = vrot.slane %v13154_v28, 1 }
 0xa47   :  { %v6227_v21 = vsel %vm904_vm13, %v6195_v49, %v6196_v53  ;;  %v6226_v46 = vsel %vm904_vm13, %v6196_v53, %v6197_v23 }
 0xa48   :  { %v6243_v30 = vsel %vm15080_vm3, %v6227_v21, 0.0  ;;  %v6244_v38 = vsel %vm15082_vm5, %v6226_v46, 0.0  ;;  %vm15084_vm3 = vcmp.eq.s32.totalorder %v15083_v5, 1  ;;  %v15087_v5 = vld [vmem:[#allocation29_spill] sm:$0xff] }
 0xa49   :  { %6298 = vrot.lane.b32.xlu0 %v6243_v30, %s9552_s14  ;;  %6300 = vrot.lane.b32.xlu1 %v6244_v38, %s9552_s14  ;;  %v15085_v30 = vld [vmem:[#allocation31_spill] sm:$0xff] }
 0xa4a   :  { %vm15086_vm5 = vcmp.eq.s32.totalorder %v15085_v30, 1 }
 0xa4b   :  { %v13167_v31 = vpop.permute.xlu0 %6066 }
 0xa4c   :  { %v6199_v40 = vrot.slane %v13167_v31, 1  ;;  %v13170_v50 = vpop.permute.xlu1 %6064 }
 0xa4d   :  { %v6198_v49 = vrot.slane %v13170_v50, 1 }
 0xa4f   :  { %v6225_v53 = vsel %vm904_vm13, %v6197_v23, %v6198_v49  ;;  %v6224_v21 = vsel %vm904_vm13, %v6198_v49, %v6199_v40 }
 0xa50   :  { %v6245_v46 = vsel %vm15084_vm3, %v6225_v53, 0.0  ;;  %v6246_v38 = vsel %vm15086_vm5, %v6224_v21, 0.0  ;;  %vm15088_vm3 = vcmp.eq.s32.totalorder %v15087_v5, 1  ;;  %v15091_v5 = vld [vmem:[#allocation35_spill] sm:$0xff] }
 0xa51   :  { %6302 = vrot.lane.b32.xlu0 %v6245_v46, %s9552_s14  ;;  %6304 = vrot.lane.b32.xlu1 %v6246_v38, %s9552_s14  ;;  %v15089_v46 = vld [vmem:[#allocation38_spill] sm:$0xff] }
 0xa52   :  { %vm15090_vm5 = vcmp.eq.s32.totalorder %v15089_v46, 1 }
 0xa53   :  { %v13183_v29 = vpop.permute.xlu0 %6070 }
 0xa54   :  { %v6201_v35 = vrot.slane %v13183_v29, 1  ;;  %v13186_v0 = vpop.permute.xlu1 %6068 }
 0xa55   :  { %v6200_v23 = vrot.slane %v13186_v0, 1 }
 0xa57   :  { %v6223_v49 = vsel %vm904_vm13, %v6199_v40, %v6200_v23  ;;  %v6222_v53 = vsel %vm904_vm13, %v6200_v23, %v6201_v35 }
 0xa58   :  { %v6247_v21 = vsel %vm15088_vm3, %v6223_v49, 0.0  ;;  %v6248_v38 = vsel %vm15090_vm5, %v6222_v53, 0.0  ;;  %vm15092_vm3 = vcmp.eq.s32.totalorder %v15091_v5, 1  ;;  %v15095_v5 = vld [vmem:[#allocation43_spill] sm:$0xff] }
 0xa59   :  { %6306 = vrot.lane.b32.xlu0 %v6247_v21, %s9552_s14  ;;  %6308 = vrot.lane.b32.xlu1 %v6248_v38, %s9552_s14  ;;  %v15093_v21 = vld [vmem:[#allocation46_spill] sm:$0xff] }
 0xa5a   :  { %vm15094_vm5 = vcmp.eq.s32.totalorder %v15093_v21, 1 }
 0xa5b   :  { %v13199_v30 = vpop.permute.xlu0 %6074 }
 0xa5c   :  { %v6203_v61 = vrot.slane %v13199_v30, 1  ;;  %v13202_v62 = vpop.permute.xlu1 %6072 }
 0xa5d   :  { %v6202_v40 = vrot.slane %v13202_v62, 1 }
 0xa5f   :  { %v6221_v23 = vsel %vm904_vm13, %v6201_v35, %v6202_v40  ;;  %v6220_v49 = vsel %vm904_vm13, %v6202_v40, %v6203_v61 }
 0xa60   :  { %v6249_v53 = vsel %vm15092_vm3, %v6221_v23, 0.0  ;;  %v6250_v38 = vsel %vm15094_vm5, %v6220_v49, 0.0  ;;  %vm15096_vm3 = vcmp.eq.s32.totalorder %v15095_v5, 1  ;;  %v15099_v5 = vld [vmem:[#allocation51_spill] sm:$0xff] }
 0xa61   :  { %6310 = vrot.lane.b32.xlu0 %v6249_v53, %s9552_s14  ;;  %6312 = vrot.lane.b32.xlu1 %v6250_v38, %s9552_s14  ;;  %v15097_v53 = vld [vmem:[#allocation52_spill] sm:$0xff] }
 0xa62   :  { %vm15098_vm5 = vcmp.eq.s32.totalorder %v15097_v53, 1 }
 0xa63   :  { %v13215_v46 = vpop.permute.xlu0 %6078 }
 0xa64   :  { %v6205_v11 = vrot.slane %v13215_v46, 1  ;;  %v13218_v16 = vpop.permute.xlu1 %6076 }
 0xa65   :  { %v6204_v35 = vrot.slane %v13218_v16, 1 }
 0xa67   :  { %v6219_v40 = vsel %vm904_vm13, %v6203_v61, %v6204_v35  ;;  %v6218_v23 = vsel %vm904_vm13, %v6204_v35, %v6205_v11 }
 0xa68   :  { %v6251_v49 = vsel %vm15096_vm3, %v6219_v40, 0.0  ;;  %v6252_v38 = vsel %vm15098_vm5, %v6218_v23, 0.0  ;;  %vm15100_vm3 = vcmp.eq.s32.totalorder %v15099_v5, 1 }
 0xa69   :  { %6314 = vrot.lane.b32.xlu0 %v6251_v49, %s9552_s14  ;;  %6316 = vrot.lane.b32.xlu1 %v6252_v38, %s9552_s14  ;;  %v15101_v49 = vld [vmem:[#allocation57_spill] sm:$0xff] }
 0xa6a   :  { %vm15102_vm5 = vcmp.eq.s32.totalorder %v15101_v49, 1  ;;  %v15105_v49 = vld [vmem:[#allocation62_spill] sm:$0xff] }
 0xa6b   :  { %v13231_v21 = vpop.permute.xlu0 %6082 }
 0xa6c   :  { %v6207_v60 = vrot.slane %v13231_v21, 1  ;;  %v13234_v22 = vpop.permute.xlu1 %6080 }
 0xa6d   :  { %v6206_v61 = vrot.slane %v13234_v22, 1 }
 0xa6f   :  { %v6217_v35 = vsel %vm904_vm13, %v6205_v11, %v6206_v61  ;;  %v6216_v40 = vsel %vm904_vm13, %v6206_v61, %v6207_v60 }
 0xa70   :  { %v6253_v23 = vsel %vm15100_vm3, %v6217_v35, 0.0  ;;  %v6254_v38 = vsel %vm15102_vm5, %v6216_v40, 0.0  ;;  %vm15106_vm5 = vcmp.eq.s32.totalorder %v15105_v49, 1 }
 0xa71   :  { %v13245_v53 = vpop.permute.xlu0 %6086  ;;  %6318 = vrot.lane.b32.xlu0 %v6253_v23, %s9552_s14  ;;  %6320 = vrot.lane.b32.xlu1 %v6254_v38, %s9552_s14  ;;  %v15103_v23 = vld [vmem:[#allocation55_spill] sm:$0xff] }
 0xa72   :  { %v6209_v10 = vrot.slane %v13245_v53, 1  ;;  %v13250_v45 = vpop.permute.xlu1 %6084  ;;  %vm15104_vm3 = vcmp.eq.s32.totalorder %v15103_v23, 1  ;;  %v15109_v23 = vld [vmem:[#allocation67_spill] sm:$0xff] }
 0xa73   :  { %v6208_v11 = vrot.slane %v13250_v45, 1 }
 0xa75   :  { %v13253_v36 = vpop.permute.xlu0 %6090  ;;  %v6215_v61 = vsel %vm904_vm13, %v6207_v60, %v6208_v11  ;;  %v6214_v35 = vsel %vm904_vm13, %v6208_v11, %v6209_v10 }
 0xa76   :  { %v6211_v40 = vrot.slane %v13253_v36, 1  ;;  %v13260_v5 = vpop.permute.xlu1 %6088  ;;  %v6255_v38 = vsel %vm15104_vm3, %v6215_v61, 0.0  ;;  %v6256_v15 = vsel %vm15106_vm5, %v6214_v35, 0.0  ;;  %vm15110_vm3 = vcmp.eq.s32.totalorder %v15109_v23, 1 }
 0xa77   :  { %v6210_v42 = vrot.slane %v13260_v5, 1  ;;  %6322 = vrot.lane.b32.xlu0 %v6255_v38, %s9552_s14  ;;  %6324 = vrot.lane.b32.xlu1 %v6256_v15, %s9552_s14  ;;  %v15111_v35 = vrot.slane %v13093_v7, 1  ;;  %v15112_v38 = vld [vmem:[#allocation65_spill] sm:$0xff] }
 0xa78   :  { %vm15113_vm5 = vcmp.eq.s32.totalorder %v15112_v38, 1  ;;  %v6117_v38 = vrot.slane %v13090_v12, 7  ;;  %v15134_v12 = vld [vmem:[#allocation71_spill] sm:$0xff] }
 0xa79   :  { %v6213_v60 = vsel %vm904_vm13, %v6209_v10, %v6210_v42  ;;  %v6212_v11 = vsel %vm904_vm13, %v6210_v42, %v6211_v40  ;;  %v6235_v15 = vsel %vm904_vm13, %v6211_v40, %v15111_v35  ;;  %v15114_v42 = vld [vmem:[#allocation24_spill] sm:$0xff]  ;;  %v15120_v35 = vld [vmem:[#allocation37_spill] sm:$0xff] }
 0xa7a   :  { %v6257_v9 = vsel %vm15108_vm0, %v6213_v60, 0.0  ;;  %v6258_v61 = vsel %vm15110_vm3, %v6212_v11, 0.0  ;;  %v6259_v10 = vsel %vm15113_vm5, %v6235_v15, 0.0  ;;  %v15115_v60 = vld [vmem:[#allocation22_spill] sm:$0xff]  ;;  %v15117_v11 = vld [vmem:[#allocation27_spill] sm:$0xff]  ;;  %v15118_v40 = vld [vmem:[#allocation32_spill] sm:$0xff] }
 0xa7b   :  { %6326 = vrot.lane.b32.xlu0 %v6257_v9, %s9552_s14  ;;  %6328 = vrot.lane.b32.xlu1 %v6258_v61, %s9552_s14  ;;  %v15116_v9 = vld [vmem:[#allocation28_spill] sm:$0xff]  ;;  %v15119_v61 = vld [vmem:[#allocation30_spill] sm:$0xff]  ;;  %vm15125_vm0 = vcmp.lt.s32.totalorder %v15064_v17, 1  ;;  %v15317_v17 = vld [vmem:[#allocation27_spill] sm:$0xff] }
 0xa7c   :  { %v15121_v15 = vld [vmem:[#allocation34_spill] sm:$0xff]  ;;  %vm15132_vm5 = vmmov %vm15125_vm0 }
 0xa7f   :  { %6330 = vrot.lane.b32.xlu0 %v6259_v10, %s9552_s14  ;;  %6404 = vrot.lane.b32.xlu1 %v15114_v42, %s9556_s15  ;;  %v15122_v10 = vld [vmem:[#allocation42_spill] sm:$0xff] }
 0xa83   :  { %6406 = vrot.lane.b32.xlu0 %v15115_v60, %s9556_s15  ;;  %6408 = vrot.lane.b32.xlu1 %v15116_v9, %s9556_s15  ;;  %v14710_v60 = vrot.slane %v13253_v36, 7  ;;  %v6116_v9 = vrot.slane %v13093_v7, 7 }
 0xa87   :  { %6410 = vrot.lane.b32.xlu0 %v15117_v11, %s9556_s15  ;;  %6412 = vrot.lane.b32.xlu1 %v15118_v40, %s9556_s15  ;;  %v15123_v11 = vld [vmem:[#allocation40_spill] sm:$0xff] }
 0xa88   :  { %v15124_v40 = vld [vmem:[#allocation48_spill] sm:$0xff] }
 0xa8b   :  { %6414 = vrot.lane.b32.xlu0 %v15119_v61, %s9556_s15  ;;  %6416 = vrot.lane.b32.xlu1 %v15120_v35, %s9556_s15  ;;  %v6163_v61 = vsel %vm15125_vm0, %v14710_v60, %v6116_v9  ;;  %v15128_v35 = vld [vmem:[#allocation72_spill] sm:$0xff] }
 0xa8c   :  { %vm15129_vm3 = vcmp.eq.s32.totalorder %v15128_v35, 1  ;;  %v15131_v60 = vld [vmem:[#allocation8_spill] sm:$0xff] }
 0xa8d   :  { %v6164_v7 = vsel %vm15129_vm3, %v6163_v61, 0.0  ;;  %v6162_v61 = vsel %vm15132_vm5, %v6116_v9, %v6117_v38  ;;  %vm15135_vm3 = vcmp.eq.s32.totalorder %v15134_v12, 1  ;;  %vm15139_vm5 = vmmov %vm15125_vm0 }
 0xa8f   :  { %6418 = vrot.lane.b32.xlu0 %v15121_v15, %s9556_s15  ;;  %6420 = vrot.lane.b32.xlu1 %v15122_v10, %s9556_s15  ;;  %v15126_v15 = vld [vmem:[#allocation45_spill] sm:$0xff] }
 0xa90   :  { %v15127_v10 = vld [vmem:[#allocation5_spill] sm:$0xff] }
 0xa93   :  { %6422 = vrot.lane.b32.xlu0 %v15123_v11, %s9556_s15  ;;  %6424 = vrot.lane.b32.xlu1 %v15124_v40, %s9556_s15  ;;  %v6118_v11 = vrot.slane %v13106_v52, 7  ;;  %v6356_v40 = vsel %vm1361_vm7, %v6164_v7, %v12855_v32  ;;  %v15133_v32 = vld [vmem:[#allocation11_spill] sm:$0xff]  ;;  %v6165_v7 = vsel %vm15135_vm3, %v6162_v61, 0.0 }
 0xa94   :  { %v6357_v9 = vsel %vm1361_vm7, %v6165_v7, %v12851_v33  ;;  %v6121_v7 = vrot.slane %v13119_v58, 7 }
 0xa95   :  { %v6161_v52 = vsel %vm15125_vm0, %v6117_v38, %v6118_v11 }
 0xa97   :  { %6426 = vrot.lane.b32.xlu0 %v15126_v15, %s9556_s15  ;;  %6428 = vrot.lane.b32.xlu1 %v15127_v10, %s9556_s15 }
 0xa9b   :  { %v6285_v42 = vpop.permute.xlu1 %6284  ;;  %6430 = vrot.lane.b32.xlu0 %v15130_v59, %s9556_s15  ;;  %6432 = vrot.lane.b32.xlu1 %v15131_v60, %s9556_s15  ;;  %v15136_v59 = vld [vmem:[#allocation74_spill] sm:$0xff] }
 0xa9c   :  { %v6380_v15 = vsel %vm1386_vm1, %v6356_v40, %v6285_v42  ;;  %vm15137_vm4 = vcmp.eq.s32.totalorder %v15136_v59, 1  ;;  %v6119_v40 = vrot.slane %v13103_v39, 7 }
 0xa9d   :  { %8869 = vmatprep.mubr.msk.f32.mxu0 %vm1507_vm10, %v6380_v15  ;;  %v6166_v42 = vsel %vm15137_vm4, %v6161_v52, 0.0  ;;  %v6120_v15 = vrot.slane %v13122_v6, 7  ;;  %vm15138_vm4 = vmmov %vm15125_vm0  ;;  %v15140_v6 = vld [vmem:[#allocation73_spill] sm:$0xff] }
 0xa9e   :  { %v6160_v33 = vsel %vm15138_vm4, %v6118_v11, %v6119_v40  ;;  %vm15141_vm0 = vcmp.eq.s32.totalorder %v15140_v6, 1  ;;  %v15144_v11 = vld [vmem:[#allocation21_spill] sm:$0xff]  ;;  %vm15185_vm2 = vmmov %vm15138_vm4 }
 0xa9f   :  { %6434 = vrot.lane.b32.xlu0 %v15005_v54, %s9556_s15  ;;  %6436 = vrot.lane.b32.xlu1 %v15133_v32, %s9556_s15  ;;  %v6358_v54 = vsel %vm1361_vm7, %v6166_v42, %v12875_v56  ;;  %v6159_v56 = vsel %vm15139_vm5, %v6119_v40, %v6120_v15  ;;  %v6167_v52 = vsel %vm15141_vm0, %v6160_v33, 0.0  ;;  %v6122_v42 = vrot.slane %v13138_v26, 7  ;;  %vm15145_vm5 = vmmov %vm15138_vm4 }
 0xaa0   :  { %v6359_v40 = vsel %vm1361_vm7, %v6167_v52, %v12871_v63  ;;  %v6158_v26 = vsel %vm15138_vm4, %v6120_v15, %v6121_v7  ;;  %v15146_v63 = vld [vmem:[#allocation75_spill] sm:$0xff] }
 0xaa1   :  { %v6157_v33 = vsel %vm15145_vm5, %v6121_v7, %v6122_v42  ;;  %vm15147_vm0 = vcmp.eq.s32.totalorder %v15146_v63, 1  ;;  %vm15150_vm5 = vmmov %vm15138_vm4 }
 0xaa3   :  { %v6287_v38 = vpop.permute.xlu0 %6286  ;;  %v6289_v60 = vpop.permute.xlu1 %6288  ;;  %6438 = vrot.lane.b32.xlu0 %v15007_v2, %s9556_s15  ;;  %6440 = vrot.lane.b32.xlu1 %v15006_v37, %s9556_s15 }
 0xaa4   :  { %v6381_v61 = vsel %vm1386_vm1, %v6357_v9, %v6287_v38  ;;  %v6382_v39 = vsel %vm1386_vm1, %v6358_v54, %v6289_v60  ;;  %v15142_v54 = vld [vmem:[#allocation76_spill] sm:$0xff] }
 0xaa5   :  { %8870 = vmatmul.mubr.msk.f32.vlgmr.msra.gmra.mrb[84].mxu0 %vm1507_vm10, %v6381_v61  ;;  %vm15143_vm3 = vcmp.eq.s32.totalorder %v15142_v54, 1 }
 0xaa6   :  { %8872 = vmatprep.mubr.msk.f32.mxu0 %vm1507_vm10, %v6382_v39  ;;  %v6168_v60 = vsel %vm15143_vm3, %v6159_v56, 0.0  ;;  %v15148_v56 = vld [vmem:[#allocation78_spill] sm:$0xff] }
 0xaa7   :  { %6442 = vrot.lane.b32.xlu0 %v15009_v13, %s9556_s15  ;;  %6444 = vrot.lane.b32.xlu1 %v15008_v14, %s9556_s15  ;;  %v6360_v38 = vsel %vm1361_vm7, %v6168_v60, %v12895_v19  ;;  %v6169_v19 = vsel %vm15147_vm0, %v6158_v26, 0.0  ;;  %vm15149_vm3 = vcmp.eq.s32.totalorder %v15148_v56, 1  ;;  %v6123_v60 = vrot.slane %v13135_v20, 7  ;;  %v15153_v26 = vld [vmem:[#allocation80_spill] sm:$0xff] }
 0xaa8   :  { %v6170_v52 = vsel %vm15149_vm3, %v6157_v33, 0.0  ;;  %v6361_v15 = vsel %vm1361_vm7, %v6169_v19, %v12891_v48  ;;  %v15151_v48 = vld [vmem:[#allocation77_spill] sm:$0xff]  ;;  %vm15154_vm3 = vcmp.eq.s32.totalorder %v15153_v26, 1  ;;  %v6125_v33 = vrot.slane %v13151_v25, 7 }
 0xaa9   :  { %v6362_v7 = vsel %vm1361_vm7, %v6170_v52, %v12915_v18  ;;  %vm15152_vm0 = vcmp.eq.s32.totalorder %v15151_v48, 1  ;;  %v6126_v19 = vrot.slane %v13170_v50, 7 }
 0xaab   :  { %6446 = vrot.lane.b32.xlu0 %v15011_v44, %s9556_s15  ;;  %6448 = vrot.lane.b32.xlu1 %v15144_v11, %s9556_s15  ;;  %v6291_v9 = vpop.permute.xlu0 %6290  ;;  %v6293_v61 = vpop.permute.xlu1 %6292 }
 0xaac   :  { %v6383_v39 = vsel %vm1386_vm1, %v6359_v40, %v6291_v9  ;;  %v6384_v58 = vsel %vm1386_vm1, %v6360_v38, %v6293_v61  ;;  %v6124_v40 = vrot.slane %v13154_v28, 7 }
 0xaad   :  { %8873 = vmatmul.mubr.msk.f32.gmra.mrb[86].mxu0 %vm1507_vm10, %v6383_v39 }
 0xaae   :  { %8875 = vmatprep.mubr.msk.f32.mxu0 %vm1507_vm10, %v6384_v58  ;;  %v6156_v58 = vsel %vm15138_vm4, %v6122_v42, %v6123_v60  ;;  %v6155_v20 = vsel %vm15150_vm5, %v6123_v60, %v6124_v40  ;;  %vm15155_vm5 = vmmov %vm15138_vm4 }
 0xaaf   :  { %6450 = vrot.lane.b32.xlu0 %v15012_v43, %s9556_s15  ;;  %v6171_v28 = vsel %vm15152_vm0, %v6156_v58, 0.0  ;;  %v6172_v18 = vsel %vm15154_vm3, %v6155_v20, 0.0  ;;  %v6153_v50 = vsel %vm15155_vm5, %v6125_v33, %v6126_v19  ;;  %v6128_v58 = vrot.slane %v13186_v0, 7  ;;  %vm15160_vm5 = vmmov %vm15138_vm4 }
 0xab0   :  { %v6363_v52 = vsel %vm1361_vm7, %v6171_v28, %v12911_v55  ;;  %v6364_v42 = vsel %vm1361_vm7, %v6172_v18, %v12935_v27  ;;  %v15156_v55 = vld [vmem:[#allocation79_spill] sm:$0xff] }
 0xab1   :  { %vm15157_vm0 = vcmp.eq.s32.totalorder %v15156_v55, 1 }
 0xab3   :  { %v6295_v9 = vpop.permute.xlu0 %6294  ;;  %v6297_v38 = vpop.permute.xlu1 %6296 }
 0xab4   :  { %v6385_v61 = vsel %vm1386_vm1, %v6361_v15, %v6295_v9  ;;  %v6386_v39 = vsel %vm1386_vm1, %v6362_v7, %v6297_v38  ;;  %v6154_v38 = vsel %vm15138_vm4, %v6124_v40, %v6125_v33 }
 0xab5   :  { %8876 = vmatmul.mubr.msk.f32.gmra.mrb[88].mxu0 %vm1507_vm10, %v6385_v61  ;;  %v6173_v25 = vsel %vm15157_vm0, %v6154_v38, 0.0  ;;  %v15158_v61 = vld [vmem:[#allocation82_spill] sm:$0xff] }
 0xab6   :  { %8878 = vmatprep.mubr.msk.f32.mxu0 %vm1507_vm10, %v6386_v39  ;;  %vm15159_vm3 = vcmp.eq.s32.totalorder %v15158_v61, 1  ;;  %v6127_v39 = vrot.slane %v13167_v31, 7  ;;  %v6365_v20 = vsel %vm1361_vm7, %v6173_v25, %v12931_v57  ;;  %v15161_v57 = vld [vmem:[#allocation81_spill] sm:$0xff] }
 0xab7   :  { %v6174_v27 = vsel %vm15159_vm3, %v6153_v50, 0.0  ;;  %vm15162_vm0 = vcmp.eq.s32.totalorder %v15161_v57, 1 }
 0xab8   :  { %v6366_v40 = vsel %vm1361_vm7, %v6174_v27, %v12955_v24  ;;  %v6151_v0 = vsel %vm15160_vm5, %v6127_v39, %v6128_v58  ;;  %vm15165_vm5 = vmmov %vm15138_vm4 }
 0xabb   :  { %v6299_v15 = vpop.permute.xlu0 %6298  ;;  %v6301_v60 = vpop.permute.xlu1 %6300 }
 0xabc   :  { %v6387_v9 = vsel %vm1386_vm1, %v6363_v52, %v6299_v15  ;;  %v6388_v7 = vsel %vm1386_vm1, %v6364_v42, %v6301_v60  ;;  %v6152_v15 = vsel %vm15138_vm4, %v6126_v19, %v6127_v39  ;;  %v15163_v42 = vld [vmem:[#allocation84_spill] sm:$0xff]  ;;  %v6129_v60 = vrot.slane %v13183_v29, 7 }
 0xabd   :  { %8879 = vmatmul.mubr.msk.f32.gmra.mrb[90].mxu0 %vm1507_vm10, %v6387_v9  ;;  %v6175_v31 = vsel %vm15162_vm0, %v6152_v15, 0.0  ;;  %vm15164_vm3 = vcmp.eq.s32.totalorder %v15163_v42, 1  ;;  %v6130_v9 = vrot.slane %v13202_v62, 7 }
 0xabe   :  { %8881 = vmatprep.mubr.msk.f32.mxu0 %vm1507_vm10, %v6388_v7  ;;  %v6176_v24 = vsel %vm15164_vm3, %v6151_v0, 0.0  ;;  %v6367_v7 = vsel %vm1361_vm7, %v6175_v31, %v12951_v47  ;;  %v6150_v39 = vsel %vm15138_vm4, %v6128_v58, %v6129_v60  ;;  %v15166_v47 = vld [vmem:[#allocation83_spill] sm:$0xff] }
 0xabf   :  { %v6368_v19 = vsel %vm1361_vm7, %v6176_v24, %v12975_v41  ;;  %v6149_v62 = vsel %vm15165_vm5, %v6129_v60, %v6130_v9  ;;  %vm15167_vm0 = vcmp.eq.s32.totalorder %v15166_v47, 1  ;;  %vm15170_vm5 = vmmov %vm15138_vm4  ;;  %v15173_v24 = vld [vmem:[#allocation88_spill] sm:$0xff] }
 0xac0   :  { %v6177_v29 = vsel %vm15167_vm0, %v6150_v39, 0.0  ;;  %v6135_v39 = vrot.slane %v13231_v21, 7  ;;  %v6138_v21 = vrot.slane %v13260_v5, 7  ;;  %v15183_v5 = vld [vmem:[#allocation92_spill] sm:$0xff] }
 0xac3   :  { %v6303_v28 = vpop.permute.xlu0 %6302  ;;  %v6305_v18 = vpop.permute.xlu1 %6304 }
 0xac4   :  { %v6389_v33 = vsel %vm1386_vm1, %v6365_v20, %v6303_v28  ;;  %v6390_v52 = vsel %vm1386_vm1, %v6366_v40, %v6305_v18  ;;  %v15168_v20 = vld [vmem:[#allocation86_spill] sm:$0xff]  ;;  %v6131_v28 = vrot.slane %v13199_v30, 7  ;;  %v6132_v40 = vrot.slane %v13218_v16, 7  ;;  %v15171_v30 = vld [vmem:[#allocation85_spill] sm:$0xff] }
 0xac5   :  { %8882 = vmatmul.mubr.msk.f32.gmra.mrb[92].mxu0 %vm1507_vm10, %v6389_v33  ;;  %vm15169_vm3 = vcmp.eq.s32.totalorder %v15168_v20, 1  ;;  %v6369_v18 = vsel %vm1361_vm7, %v6177_v29, %v12971_v8  ;;  %v6133_v8 = vrot.slane %v13215_v46, 7  ;;  %vm15172_vm0 = vcmp.eq.s32.totalorder %v15171_v30, 1  ;;  %v15178_v29 = vld [vmem:[#allocation90_spill] sm:$0xff] }
 0xac6   :  { %8884 = vmatprep.mubr.msk.f32.mxu0 %vm1507_vm10, %v6390_v52  ;;  %v6178_v41 = vsel %vm15169_vm3, %v6149_v62, 0.0  ;;  %v6148_v31 = vsel %vm15138_vm4, %v6130_v9, %v6131_v28  ;;  %v6147_v16 = vsel %vm15170_vm5, %v6131_v28, %v6132_v40  ;;  %vm15174_vm3 = vcmp.eq.s32.totalorder %v15173_v24, 1  ;;  %vm15175_vm5 = vmmov %vm15138_vm4 }
 0xac7   :  { %v6370_v58 = vsel %vm1361_vm7, %v6178_v41, %v12995_v1  ;;  %v6179_v1 = vsel %vm15172_vm0, %v6148_v31, 0.0  ;;  %v6180_v60 = vsel %vm15174_vm3, %v6147_v16, 0.0  ;;  %vm15179_vm3 = vcmp.eq.s32.totalorder %v15178_v29, 1 }
 0xac8   :  { %v6372_v9 = vsel %vm1361_vm7, %v6180_v60, %v13015_v34  ;;  %v15176_v34 = vld [vmem:[#allocation87_spill] sm:$0xff] }
 0xac9   :  { %vm15177_vm0 = vcmp.eq.s32.totalorder %v15176_v34, 1 }
 0xacb   :  { %v6307_v38 = vpop.permute.xlu0 %6306  ;;  %v6309_v50 = vpop.permute.xlu1 %6308 }
 0xacc   :  { %v6391_v25 = vsel %vm1386_vm1, %v6367_v7, %v6307_v38  ;;  %v6392_v27 = vsel %vm1386_vm1, %v6368_v19, %v6309_v50  ;;  %v6134_v7 = vrot.slane %v13234_v22, 7  ;;  %v6371_v38 = vsel %vm1361_vm7, %v6179_v1, %v12991_v4 }
 0xacd   :  { %8885 = vmatmul.mubr.msk.f32.gmra.mrb[94].mxu0 %vm1507_vm10, %v6391_v25  ;;  %v6136_v4 = vrot.slane %v13250_v45, 7 }
 0xace   :  { %8887 = vmatprep.mubr.msk.f32.mxu0 %vm1507_vm10, %v6392_v27  ;;  %v6146_v27 = vsel %vm15138_vm4, %v6132_v40, %v6133_v8  ;;  %v6145_v22 = vsel %vm15175_vm5, %v6133_v8, %v6134_v7  ;;  %v6144_v40 = vsel %vm15138_vm4, %v6134_v7, %v6135_v39  ;;  %vm15180_vm5 = vmmov %vm15138_vm4  ;;  %v15186_v8 = vld [vmem:[#allocation15_spill] sm:$0xff]  ;;  %v15187_v7 = vld [vmem:[#allocation20_spill] sm:$0xff] }
 0xacf   :  { %v6181_v62 = vsel %vm15177_vm0, %v6146_v27, 0.0  ;;  %v6182_v41 = vsel %vm15179_vm3, %v6145_v22, 0.0  ;;  %vm15184_vm3 = vcmp.eq.s32.totalorder %v15183_v5, 1  ;;  %v15190_v27 = vld [vmem:[#allocation94_spill] sm:$0xff] }
 0xad0   :  { %v6373_v28 = vsel %vm1361_vm7, %v6181_v62, %v13011_v51  ;;  %v6374_v45 = vsel %vm1361_vm7, %v6182_v41, %v13039_v3  ;;  %v15181_v51 = vld [vmem:[#allocation89_spill] sm:$0xff]  ;;  %v15193_v62 = vld [vmem:[#allocation14_spill] sm:$0xff] }
 0xad1   :  { %vm15182_vm0 = vcmp.eq.s32.totalorder %v15181_v51, 1 }
 0xad3   :  { %v6311_v33 = vpop.permute.xlu0 %6310  ;;  %v6313_v52 = vpop.permute.xlu1 %6312 }
 0xad4   :  { %v6393_v15 = vsel %vm1386_vm1, %v6369_v18, %v6311_v33  ;;  %v6394_v0 = vsel %vm1386_vm1, %v6370_v58, %v6313_v52  ;;  %v6137_v18 = vrot.slane %v13245_v53, 7  ;;  %v6143_v52 = vsel %vm15180_vm5, %v6135_v39, %v6136_v4 }
 0xad5   :  { %8888 = vmatmul.mubr.msk.f32.gmra.mrb[96].mxu0 %vm1507_vm10, %v6393_v15  ;;  %v6183_v53 = vsel %vm15182_vm0, %v6144_v40, 0.0  ;;  %v6184_v31 = vsel %vm15184_vm3, %v6143_v52, 0.0  ;;  %vm15191_vm0 = vcmp.eq.s32.totalorder %v15190_v27, 1  ;;  %v15192_v39 = vrot.slane %v13253_v36, 7  ;;  %v15194_v40 = vld [vmem:[#allocation33_spill] sm:$0xff]  ;;  %v15238_v27 = vld [vmem:[#allocation64_spill] sm:$0xff] }
 0xad6   :  { %8890 = vmatprep.mubr.msk.f32.mxu0 %vm1507_vm10, %v6394_v0  ;;  %v6142_v3 = vsel %vm15138_vm4, %v6136_v4, %v6137_v18  ;;  %v6141_v16 = vsel %vm15185_vm2, %v6137_v18, %v6138_v21  ;;  %v6375_v1 = vsel %vm1361_vm7, %v6183_v53, %v15186_v8  ;;  %v15195_v52 = vld [vmem:[#allocation93_spill] sm:$0xff]  ;;  %vm15208_vm4 = vmmov %vm15185_vm2 }
 0xad7   :  { %v6186_v22 = vsel %vm15191_vm0, %v6141_v16, 0.0  ;;  %v6140_v4 = vsel %vm15185_vm2, %v6138_v21, %v15192_v39  ;;  %vm15196_vm3 = vcmp.eq.s32.totalorder %v15195_v52, 1  ;;  %vm15216_vm0 = vmmov %vm15185_vm2 }
 0xad8   :  { %v6378_v18 = vsel %vm1361_vm7, %v6186_v22, %v15194_v40  ;;  %v6187_v36 = vsel %vm15196_vm3, %v6140_v4, 0.0 }
 0xadb   :  { %v6315_v19 = vpop.permute.xlu0 %6314  ;;  %v6317_v50 = vpop.permute.xlu1 %6316 }
 0xadc   :  { %v6395_v25 = vsel %vm1386_vm1, %v6371_v38, %v6315_v19  ;;  %v6396_v46 = vsel %vm1386_vm1, %v6372_v9, %v6317_v50  ;;  %v6376_v38 = vsel %vm1361_vm7, %v6184_v31, %v15187_v7  ;;  %v5848_v7 = vld [vmem:[%s14385_s1 + $0x80] sm:$0xff] }
 0xadd   :  { %8891 = vmatmul.mubr.msk.f32.gmra.mrb[98].mxu0 %vm1507_vm10, %v6395_v25  ;;  %v15188_v25 = vld [vmem:[#allocation91_spill] sm:$0xff] }
 0xade   :  { %8893 = vmatprep.mubr.msk.f32.mxu0 %vm1507_vm10, %v6396_v46  ;;  %vm15189_vm5 = vcmp.eq.s32.totalorder %v15188_v25, 1 }
 0xadf   :  { %v6185_v46 = vsel %vm15189_vm5, %v6142_v3, 0.0 }
 0xae0   :  { %v6377_v41 = vsel %vm1361_vm7, %v6185_v46, %v15193_v62 }
 0xae3   :  { %v6319_v33 = vpop.permute.xlu0 %6318  ;;  %v6321_v58 = vpop.permute.xlu1 %6320 }
 0xae4   :  { %v6397_v15 = vsel %vm1386_vm1, %v6373_v28, %v6319_v33  ;;  %v6398_v0 = vsel %vm1386_vm1, %v6374_v45, %v6321_v58 }
 0xae5   :  { %8894 = vmatmul.mubr.msk.f32.gmra.mrb[100].mxu0 %vm1507_vm10, %v6397_v15  ;;  %v15197_v15 = vld [vmem:[#allocation95_spill] sm:$0xff] }
 0xae6   :  { %8896 = vmatprep.mubr.msk.f32.mxu0 %vm1507_vm10, %v6398_v0  ;;  %v6379_v0 = vsel %vm1361_vm7, %v6187_v36, %v15197_v15 }
 0xae9   :  { %v6323_v60 = vpop.permute.xlu0 %6322  ;;  %v6325_v19 = vpop.permute.xlu1 %6324 }
 0xaea   :  { %v6399_v9 = vsel %vm1386_vm1, %v6375_v1, %v6323_v60  ;;  %v6400_v50 = vsel %vm1386_vm1, %v6376_v38, %v6325_v19  ;;  %v5849_v38 = vld [vmem:[%s14385_s1 + $0x88] sm:$0xff] }
 0xaeb   :  { %8897 = vmatmul.mubr.msk.f32.gmra.mrb[102].mxu0 %vm1507_vm10, %v6399_v9  ;;  %v9001_v9 = vpack.c.bf16 %v5849_v38, %v5848_v7 }
 0xaec   :  { %8899 = vmatprep.mubr.msk.f32.mxu0 %vm1507_vm10, %v6400_v50 }
 0xaed   :  { %v6327_v28 = vpop.permute.xlu0 %6326  ;;  %v6329_v33 = vpop.permute.xlu1 %6328  ;;  %9002 = vmatprep.subr.bf16.mxu1 %v9001_v9 }
 0xaee   :  { %v6401_v45 = vsel %vm1386_vm1, %v6377_v41, %v6327_v28  ;;  %v6402_v58 = vsel %vm1386_vm1, %v6378_v18, %v6329_v33  ;;  %9004 = vmatpush3.bf16.msra.mxu1 %v9001_v9 }
 0xaef   :  { %8900 = vmatmul.mubr.msk.f32.gmra.mrb[104].mxu0 %vm1507_vm10, %v6401_v45 }
 0xaf0   :  { %8902 = vmatprep.mubr.msk.f32.mxu0 %vm1507_vm10, %v6402_v58 }
 0xaf1   :  { %v6331_v21 = vpop.permute.xlu0 %6330  ;;  %v6405_v16 = vpop.permute.xlu1 %6404 }
 0xaf2   :  { %v6403_v53 = vsel %vm1386_vm1, %v6379_v0, %v6331_v21  ;;  %v15201_v0 = vld [vmem:[#allocation2_spill] sm:$0xff] }
 0xaf3   :  { %8903 = vmatmul.mubr.msk.f32.gmra.mrb[106].mxu0 %vm1507_vm10, %v6403_v53 }
 0xaf5   :  { %v6407_v31 = vpop.permute.xlu0 %6406  ;;  %v6409_v36 = vpop.permute.xlu1 %6408 }
 0xaf9   :  { %v6411_v18 = vpop.permute.xlu0 %6410 }
 0xb78   :  { %v8871_v3 = vpop.f32.mrb[84].mxu0 }
 0xb79   :  { %v6620_v8 = vadd.f32 %v8871_v3, %v6407_v31  ;;  %v6614_v1 = vpop.f32.mrb[85].mxu0 }
 0xb7a   :  { %v6615_v60 = vadd.f32 %v6614_v1, %v6405_v16  ;;  %v5850_v16 = vld [vmem:[%s14385_s1 + $0x90] sm:$0xff]  ;;  %v15214_v1 = vld [vmem:[#allocation13_spill] sm:$0xff] }
 0xb7b   :  { %v6734_v19 = vmax.f32 %v6620_v8, 0.0  ;;  %8909 = vmatprep.subr.mxu1 %v5850_v16 }
 0xb7c   :  { %v6733_v50 = vmax.f32 %v6615_v60, 0.0  ;;  %8910 = vmatpush3.msra.mxu1 %v5850_v16 }
 0xb7d   :  { %v6758_v22 = vsel %vm5973_vm11, %v6734_v19, 0.0  ;;  %vm15200_vm11 = vmmov %vm15185_vm2 }
 0xb7e   :  { %v6782_v39 = vrot.slane %v6758_v22, 7  ;;  %v6854_v4 = vrot.slane %v6758_v22, 1  ;;  %v13564_v41 = vsel %vm5972_vm8, %v6733_v50, 0.0  ;;  %6951 = vrot.lane.b32.xlu0 %v6758_v22, %s9551_s12  ;;  %vm15202_vm8 = vcmp.eq.s32.totalorder %v15201_v0, 1  ;;  %v6415_v22 = vpop.permute.xlu0 %6414 }
 0xb7f   :  { %v14715_v28 = vrot.slane %v13564_v41, 7  ;;  %v14714_v40 = vrot.slane %v13564_v41, 1  ;;  %6949 = vrot.lane.b32.xlu1 %v13564_v41, %s9551_s12 }
 0xb80   :  { %v8874_v33 = vpop.f32.mrb[86].mxu0 }
 0xb81   :  { %v6899_v45 = vsel %vm904_vm13, %v14714_v40, %v6854_v4  ;;  %v13579_v58 = vsel %vm15200_vm11, %v14715_v28, %v6782_v39  ;;  %v6630_v21 = vadd.f32 %v8874_v33, %v6411_v18  ;;  %v6624_v15 = vpop.f32.mrb[87].mxu0  ;;  %v6413_v18 = vpop.permute.xlu1 %6412  ;;  %v15228_v28 = vld [vmem:[#allocation63_spill] sm:$0xff] }
 0xb82   :  { %v6901_v53 = vsel %vm15202_vm8, %v6899_v45, 0.0  ;;  %v6625_v31 = vadd.f32 %v6624_v15, %v6409_v36  ;;  %vm15225_vm8 = vmmov %vm15216_vm0 }
 0xb83   :  { %7045 = vrot.lane.b32.xlu1 %v6901_v53, %s9552_s14  ;;  %v6736_v3 = vmax.f32 %v6630_v21, 0.0  ;;  %v15206_v53 = vld [vmem:[#allocation9_spill] sm:$0xff] }
 0xb84   :  { %v6735_v8 = vmax.f32 %v6625_v31, 0.0 }
 0xb85   :  { %v6760_v60 = vsel %vm5975_vm14, %v6736_v3, 0.0  ;;  %vm15205_vm14 = vmmov %vm15185_vm2 }
 0xb86   :  { %v6784_v7 = vrot.slane %v6760_v60, 7  ;;  %v6856_v38 = vrot.slane %v6760_v60, 1  ;;  %v6759_v9 = vsel %vm5974_vm15, %v6735_v8, 0.0  ;;  %6955 = vrot.lane.b32.xlu0 %v6760_v60, %s9551_s12  ;;  %vm15207_vm15 = vcmp.eq.s32.totalorder %v15206_v53, 1 }
 0xb87   :  { %v6783_v50 = vrot.slane %v6759_v9, 7  ;;  %v6855_v46 = vrot.slane %v6759_v9, 1  ;;  %6953 = vrot.lane.b32.xlu1 %v6759_v9, %s9551_s12 }
 0xb88   :  { %v8877_v62 = vpop.f32.mrb[88].mxu0 }
 0xb89   :  { %v6640_v33 = vadd.f32 %v8877_v62, %v6415_v22  ;;  %v6634_v45 = vpop.f32.mrb[89].mxu0  ;;  %v6897_v36 = vsel %vm904_vm13, %v6855_v46, %v6856_v38  ;;  %v6898_v21 = vsel %vm904_vm13, %v6854_v4, %v6855_v46  ;;  %v13599_v15 = vsel %vm15205_vm14, %v6783_v50, %v6784_v7 }
 0xb8a   :  { %v6635_v0 = vadd.f32 %v6634_v45, %v6413_v18  ;;  %v6903_v31 = vsel %vm15207_vm15, %v6897_v36, 0.0  ;;  %v13606_v16 = vsel %vm15208_vm4, %v6782_v39, %v6783_v50  ;;  %v6419_v18 = vpop.permute.xlu0 %6418  ;;  %v15211_v45 = vld [vmem:[#allocation3_spill] sm:$0xff]  ;;  %v6417_v50 = vpop.permute.xlu1 %6416  ;;  %vm15229_vm15 = vcmp.eq.s32.totalorder %v15228_v28, 1 }
 0xb8b   :  { %v6738_v3 = vmax.f32 %v6640_v33, 0.0  ;;  %7049 = vrot.lane.b32.xlu1 %v6903_v31, %s9552_s14  ;;  %vm15212_vm5 = vcmp.eq.s32.totalorder %v15211_v45, 1  ;;  %v15218_v45 = vld [vmem:[#allocation60_spill] sm:$0xff] }
 0xb8c   :  { %v6737_v8 = vmax.f32 %v6635_v0, 0.0  ;;  %v6902_v39 = vsel %vm15212_vm5, %v6898_v21, 0.0  ;;  %vm15232_vm5 = vmmov %vm15216_vm0 }
 0xb8d   :  { %v6762_v60 = vsel %vm5977_vm9, %v6738_v3, 0.0  ;;  %vm15213_vm9 = vmmov %vm15185_vm2  ;;  %vm15219_vm2 = vcmp.eq.s32.totalorder %v15218_v45, 1  ;;  %v15223_v45 = vld [vmem:[#allocation19_spill] sm:$0xff] }
 0xb8e   :  { %v6786_v4 = vrot.slane %v6762_v60, 7  ;;  %v6858_v19 = vrot.slane %v6762_v60, 1  ;;  %v6761_v46 = vsel %vm5976_vm6, %v6737_v8, 0.0  ;;  %6959 = vrot.lane.b32.xlu0 %v6762_v60, %s9551_s12  ;;  %vm15215_vm6 = vcmp.eq.s32.totalorder %v15214_v1, 1  ;;  %v15220_v1 = vld [vmem:[#allocation6_spill] sm:$0xff] }
 0xb8f   :  { %v6785_v22 = vrot.slane %v6761_v46, 7  ;;  %v6857_v62 = vrot.slane %v6761_v46, 1  ;;  %6957 = vrot.lane.b32.xlu1 %v6761_v46, %s9551_s12  ;;  %vm15221_vm3 = vcmp.eq.s32.totalorder %v15220_v1, 1  ;;  %vm15224_vm11 = vcmp.eq.s32.totalorder %v15223_v45, 1  ;;  %v15226_v1 = vld [vmem:[#allocation111_spill] sm:$0xff]  ;;  %v15230_v45 = vld [vmem:[#allocation12_spill] sm:$0xff] }
 0xb90   :  { %v8880_v33 = vpop.f32.mrb[90].mxu0  ;;  %vm15227_vm14 = vcmp.eq.s32.totalorder %v15226_v1, 1  ;;  %vm15231_vm4 = vcmp.eq.s32.totalorder %v15230_v45, 1  ;;  %v15236_v45 = vld [vmem:[#allocation112_spill] sm:$0xff] }
 0xb91   :  { %v6650_v36 = vadd.f32 %v8880_v33, %v6419_v18  ;;  %v6644_v0 = vpop.f32.mrb[91].mxu0  ;;  %v6895_v53 = vsel %vm904_vm13, %v6857_v62, %v6858_v19  ;;  %v6896_v31 = vsel %vm904_vm13, %v6856_v38, %v6857_v62  ;;  %v13622_v3 = vsel %vm15213_vm9, %v6785_v22, %v6786_v4 }
 0xb92   :  { %v6645_v8 = vadd.f32 %v6644_v0, %v6417_v50  ;;  %7047 = vrot.lane.b32.xlu0 %v6902_v39, %s9552_s14  ;;  %v6905_v60 = vsel %vm15215_vm6, %v6895_v53, 0.0  ;;  %v13630_v9 = vsel %vm15216_vm0, %v6784_v7, %v6785_v22  ;;  %v6904_v7 = vsel %vm15221_vm3, %v6896_v31, 0.0  ;;  %v6421_v22 = vpop.permute.xlu1 %6420  ;;  %vm15235_vm6 = vmmov %vm15216_vm0 }
 0xb93   :  { %v6740_v21 = vmax.f32 %v6650_v36, 0.0  ;;  %7053 = vrot.lane.b32.xlu1 %v6905_v60, %s9552_s14  ;;  %v6423_v36 = vpop.permute.xlu0 %6422 }
 0xb94   :  { %v6739_v46 = vmax.f32 %v6645_v8, 0.0 }
 0xb95   :  { %v6764_v38 = vsel %vm5979_vm12, %v6740_v21, 0.0  ;;  %vm15222_vm12 = vmmov %vm15216_vm0  ;;  %vm15237_vm0 = vcmp.eq.s32.totalorder %v15236_v45, 1 }
 0xb96   :  { %v6788_v62 = vrot.slane %v6764_v38, 7  ;;  %v6860_v33 = vrot.slane %v6764_v38, 1  ;;  %v6763_v50 = vsel %vm15219_vm2, %v6739_v46, 0.0  ;;  %6963 = vrot.lane.b32.xlu0 %v6764_v38, %s9551_s12  ;;  %vm15239_vm2 = vcmp.eq.s32.totalorder %v15238_v27, 1 }
 0xb97   :  { %v6787_v39 = vrot.slane %v6763_v50, 7  ;;  %v6859_v0 = vrot.slane %v6763_v50, 1  ;;  %6961 = vrot.lane.b32.xlu1 %v6763_v50, %s9551_s12 }
 0xb98   :  { %v8883_v53 = vpop.f32.mrb[92].mxu0 }
 0xb99   :  { %v6660_v8 = vadd.f32 %v8883_v53, %v6423_v36  ;;  %v6654_v60 = vpop.f32.mrb[93].mxu0  ;;  %v6893_v21 = vsel %vm904_vm13, %v6859_v0, %v6860_v33  ;;  %v6894_v46 = vsel %vm904_vm13, %v6858_v19, %v6859_v0  ;;  %v13646_v18 = vsel %vm15222_vm12, %v6787_v39, %v6788_v62  ;;  %vm15242_vm12 = vmmov %vm15232_vm5 }
 0xb9a   :  { %v6655_v38 = vadd.f32 %v6654_v60, %v6421_v22  ;;  %7051 = vrot.lane.b32.xlu0 %v6904_v7, %s9552_s14  ;;  %v6907_v50 = vsel %vm15224_vm11, %v6893_v21, 0.0  ;;  %v13654_v36 = vsel %vm15225_vm8, %v6786_v4, %v6787_v39  ;;  %v6906_v4 = vsel %vm15231_vm4, %v6894_v46, 0.0  ;;  %v6425_v39 = vpop.permute.xlu1 %6424  ;;  %vm15245_vm8 = vmmov %vm15232_vm5 }
 0xb9b   :  { %v6742_v31 = vmax.f32 %v6660_v8, 0.0  ;;  %7057 = vrot.lane.b32.xlu1 %v6907_v50, %s9552_s14  ;;  %v6427_v8 = vpop.permute.xlu0 %6426 }
 0xb9c   :  { %v6741_v53 = vmax.f32 %v6655_v38, 0.0 }
 0xb9d   :  { %v6766_v19 = vsel %vm15227_vm14, %v6742_v31, 0.0 }
 0xb9e   :  { %v6790_v0 = vrot.slane %v6766_v19, 7  ;;  %v6862_v40 = vrot.slane %v6766_v19, 1  ;;  %v6765_v22 = vsel %vm15229_vm15, %v6741_v53, 0.0  ;;  %6967 = vrot.lane.b32.xlu0 %v6766_v19, %s9551_s12  ;;  %v15233_v19 = vld [vmem:[#allocation26_spill] sm:$0xff] }
 0xb9f   :  { %v6789_v7 = vrot.slane %v6765_v22, 7  ;;  %v6861_v60 = vrot.slane %v6765_v22, 1  ;;  %6965 = vrot.lane.b32.xlu1 %v6765_v22, %s9551_s12  ;;  %vm15234_vm9 = vcmp.eq.s32.totalorder %v15233_v19, 1  ;;  %v15240_v19 = vld [vmem:[#allocation16_spill] sm:$0xff] }
 0xba0   :  { %v8886_v21 = vpop.f32.mrb[94].mxu0  ;;  %vm15241_vm3 = vcmp.eq.s32.totalorder %v15240_v19, 1  ;;  %v15246_v19 = vld [vmem:[#allocation113_spill] sm:$0xff] }
 0xba1   :  { %v6670_v38 = vadd.f32 %v8886_v21, %v6427_v8  ;;  %v6664_v50 = vpop.f32.mrb[95].mxu0  ;;  %v6891_v31 = vsel %vm904_vm13, %v6861_v60, %v6862_v40  ;;  %v6892_v28 = vsel %vm904_vm13, %v6860_v33, %v6861_v60  ;;  %v13670_v53 = vsel %vm15232_vm5, %v6789_v7, %v6790_v0 }
 0xba2   :  { %v6665_v1 = vadd.f32 %v6664_v50, %v6425_v39  ;;  %7055 = vrot.lane.b32.xlu0 %v6906_v4, %s9552_s14  ;;  %v6909_v22 = vsel %vm15234_vm9, %v6891_v31, 0.0  ;;  %v13678_v8 = vsel %vm15235_vm6, %v6788_v62, %v6789_v7  ;;  %v6908_v62 = vsel %vm15241_vm3, %v6892_v28, 0.0  ;;  %v6429_v7 = vpop.permute.xlu1 %6428  ;;  %vm15255_vm6 = vmmov %vm15232_vm5 }
 0xba3   :  { %v6744_v46 = vmax.f32 %v6670_v38, 0.0  ;;  %7061 = vrot.lane.b32.xlu1 %v6909_v22, %s9552_s14  ;;  %v6431_v38 = vpop.permute.xlu0 %6430  ;;  %vm15247_vm14 = vcmp.eq.s32.totalorder %v15246_v19, 1 }
 0xba4   :  { %v6743_v21 = vmax.f32 %v6665_v1, 0.0 }
 0xba5   :  { %v6768_v33 = vsel %vm15237_vm0, %v6744_v46, 0.0 }
 0xba6   :  { %v6792_v60 = vrot.slane %v6768_v33, 7  ;;  %v6864_v52 = vrot.slane %v6768_v33, 1  ;;  %v6767_v39 = vsel %vm15239_vm2, %v6743_v21, 0.0  ;;  %6971 = vrot.lane.b32.xlu0 %v6768_v33, %s9551_s12  ;;  %v15243_v33 = vld [vmem:[#allocation31_spill] sm:$0xff] }
 0xba7   :  { %v6791_v4 = vrot.slane %v6767_v39, 7  ;;  %v6863_v50 = vrot.slane %v6767_v39, 1  ;;  %6969 = vrot.lane.b32.xlu1 %v6767_v39, %s9551_s12  ;;  %vm15244_vm11 = vcmp.eq.s32.totalorder %v15243_v33, 1 }
 0xba8   :  { %v8889_v31 = vpop.f32.mrb[96].mxu0 }
 0xba9   :  { %v6680_v1 = vadd.f32 %v8889_v31, %v6431_v38  ;;  %v6674_v22 = vpop.f32.mrb[97].mxu0  ;;  %v6889_v46 = vsel %vm904_vm13, %v6863_v50, %v6864_v52  ;;  %v6890_v27 = vsel %vm904_vm13, %v6862_v40, %v6863_v50  ;;  %v13694_v21 = vsel %vm15242_vm12, %v6791_v4, %v6792_v60  ;;  %v6435_v50 = vpop.permute.xlu0 %6434  ;;  %vm15262_vm12 = vmmov %vm15232_vm5 }
 0xbaa   :  { %v6675_v45 = vadd.f32 %v6674_v22, %v6429_v7  ;;  %7059 = vrot.lane.b32.xlu0 %v6908_v62, %s9552_s14  ;;  %v6911_v39 = vsel %vm15244_vm11, %v6889_v46, 0.0  ;;  %v13702_v38 = vsel %vm15245_vm8, %v6790_v0, %v6791_v4  ;;  %v15248_v7 = vld [vmem:[#allocation66_spill] sm:$0xff]  ;;  %v6433_v22 = vpop.permute.xlu1 %6432  ;;  %v15250_v0 = vld [vmem:[#allocation23_spill] sm:$0xff]  ;;  %vm15266_vm8 = vmmov %vm15232_vm5 }
 0xbab   :  { %v6746_v28 = vmax.f32 %v6680_v1, 0.0  ;;  %7065 = vrot.lane.b32.xlu1 %v6911_v39, %s9552_s14  ;;  %vm15249_vm15 = vcmp.eq.s32.totalorder %v15248_v7, 1  ;;  %vm15251_vm4 = vcmp.eq.s32.totalorder %v15250_v0, 1  ;;  %v15253_v7 = vld [vmem:[#allocation38_spill] sm:$0xff] }
 0xbac   :  { %v6745_v31 = vmax.f32 %v6675_v45, 0.0  ;;  %v6910_v4 = vsel %vm15251_vm4, %v6890_v27, 0.0  ;;  %vm15254_vm9 = vcmp.eq.s32.totalorder %v15253_v7, 1 }
 0xbad   :  { %v6770_v40 = vsel %vm15247_vm14, %v6746_v28, 0.0 }
 0xbae   :  { %v6794_v25 = vrot.slane %v6770_v40, 7  ;;  %v6866_v5 = vrot.slane %v6770_v40, 1  ;;  %v6769_v62 = vsel %vm15249_vm15, %v6745_v31, 0.0  ;;  %6975 = vrot.lane.b32.xlu0 %v6770_v40, %s9551_s12 }
 0xbaf   :  { %v6793_v1 = vrot.slane %v6769_v62, 7  ;;  %v6865_v46 = vrot.slane %v6769_v62, 1  ;;  %6973 = vrot.lane.b32.xlu1 %v6769_v62, %s9551_s12 }
 0xbb0   :  { %v8892_v33 = vpop.f32.mrb[98].mxu0 }
 0xbb1   :  { %v6690_v45 = vadd.f32 %v8892_v33, %v6435_v50  ;;  %v6684_v39 = vpop.f32.mrb[99].mxu0  ;;  %v6887_v28 = vsel %vm904_vm13, %v6865_v46, %v6866_v5  ;;  %v6888_v19 = vsel %vm904_vm13, %v6864_v52, %v6865_v46  ;;  %v13718_v31 = vsel %vm15232_vm5, %v6793_v1, %v6794_v25  ;;  %v6439_v50 = vpop.permute.xlu0 %6438  ;;  %v15256_v46 = vld [vmem:[#allocation114_spill] sm:$0xff] }
 0xbb2   :  { %15252 = vst [vmem:[#allocation97_spill] sm:$0xff] %v13718_v31  ;;  %v6685_v40 = vadd.f32 %v6684_v39, %v6433_v22  ;;  %7063 = vrot.lane.b32.xlu0 %v6910_v4, %s9552_s14  ;;  %v6913_v62 = vsel %vm15254_vm9, %v6887_v28, 0.0  ;;  %v13726_v27 = vsel %vm15255_vm6, %v6792_v60, %v6793_v1  ;;  %v6437_v52 = vpop.permute.xlu1 %6436  ;;  %vm15257_vm0 = vcmp.eq.s32.totalorder %v15256_v46, 1  ;;  %v15258_v39 = vld [vmem:[#allocation68_spill] sm:$0xff]  ;;  %v15260_v60 = vld [vmem:[#allocation29_spill] sm:$0xff] }
 0xbb3   :  { %v6748_v0 = vmax.f32 %v6690_v45, 0.0  ;;  %7069 = vrot.lane.b32.xlu1 %v6913_v62, %s9552_s14  ;;  %vm15259_vm2 = vcmp.eq.s32.totalorder %v15258_v39, 1  ;;  %vm15261_vm3 = vcmp.eq.s32.totalorder %v15260_v60, 1 }
 0xbb4   :  { %v6747_v33 = vmax.f32 %v6685_v40, 0.0  ;;  %v6912_v1 = vsel %vm15261_vm3, %v6888_v19, 0.0 }
 0xbb5   :  { %v6772_v51 = vsel %vm15257_vm0, %v6748_v0, 0.0  ;;  %vm15279_vm0 = vmmov %vm15232_vm5 }
 0xbb6   :  { %v6796_v29 = vrot.slane %v6772_v51, 7  ;;  %v6868_v22 = vrot.slane %v6772_v51, 1  ;;  %v6771_v4 = vsel %vm15259_vm2, %v6747_v33, 0.0  ;;  %6979 = vrot.lane.b32.xlu0 %v6772_v51, %s9551_s12  ;;  %v6443_v51 = vpop.permute.xlu0 %6442  ;;  %v6441_v19 = vpop.permute.xlu1 %6440 }
 0xbb7   :  { %v6795_v45 = vrot.slane %v6771_v4, 7  ;;  %v6867_v28 = vrot.slane %v6771_v4, 1  ;;  %6977 = vrot.lane.b32.xlu1 %v6771_v4, %s9551_s12  ;;  %v15264_v4 = vld [vmem:[#allocation46_spill] sm:$0xff] }
 0xbb8   :  { %v8895_v7 = vpop.f32.mrb[100].mxu0  ;;  %vm15265_vm11 = vcmp.eq.s32.totalorder %v15264_v4, 1 }
 0xbb9   :  { %v6700_v40 = vadd.f32 %v8895_v7, %v6439_v50  ;;  %v6694_v62 = vpop.f32.mrb[101].mxu0  ;;  %v6885_v0 = vsel %vm904_vm13, %v6867_v28, %v6868_v22  ;;  %v6886_v46 = vsel %vm904_vm13, %v6866_v5, %v6867_v28  ;;  %v13742_v33 = vsel %vm15262_vm12, %v6795_v45, %v6796_v29  ;;  %v15268_v28 = vld [vmem:[#allocation115_spill] sm:$0xff] }
 0xbba   :  { %15263 = vst [vmem:[#allocation96_spill] sm:$0xff] %v13742_v33  ;;  %v6695_v39 = vadd.f32 %v6694_v62, %v6437_v52  ;;  %7067 = vrot.lane.b32.xlu0 %v6912_v1, %s9552_s14  ;;  %v6915_v60 = vsel %vm15265_vm11, %v6885_v0, 0.0  ;;  %v13750_v7 = vsel %vm15266_vm8, %v6794_v25, %v6795_v45  ;;  %vm15269_vm14 = vcmp.eq.s32.totalorder %v15268_v28, 1  ;;  %v15270_v52 = vld [vmem:[#allocation69_spill] sm:$0xff]  ;;  %v6447_v25 = vpop.permute.xlu0 %6446 }
 0xbbb   :  { %v6750_v50 = vmax.f32 %v6700_v40, 0.0  ;;  %7073 = vrot.lane.b32.xlu1 %v6915_v60, %s9552_s14  ;;  %15267 = vst [vmem:[#allocation98_spill] sm:$0xff] %v13750_v7  ;;  %vm15271_vm15 = vcmp.eq.s32.totalorder %v15270_v52, 1 }
 0xbbc   :  { %v6749_v5 = vmax.f32 %v6695_v39, 0.0  ;;  %v15272_v39 = vld [vmem:[#allocation35_spill] sm:$0xff] }
 0xbbd   :  { %v6774_v34 = vsel %vm15269_vm14, %v6750_v50, 0.0  ;;  %vm15273_vm4 = vcmp.eq.s32.totalorder %v15272_v39, 1  ;;  %v6445_v50 = vpop.permute.xlu1 %6444  ;;  %vm15291_vm14 = vmmov %vm15279_vm0 }
 0xbbe   :  { %v6798_v24 = vrot.slane %v6774_v34, 7  ;;  %v6870_v30 = vrot.slane %v6774_v34, 1  ;;  %v6773_v1 = vsel %vm15271_vm15, %v6749_v5, 0.0  ;;  %v8898_v62 = vpop.f32.mrb[102].mxu0  ;;  %6983 = vrot.lane.b32.xlu0 %v6774_v34, %s9551_s12  ;;  %v6914_v28 = vsel %vm15273_vm4, %v6886_v46, 0.0  ;;  %v15277_v46 = vld [vmem:[#allocation116_spill] sm:$0xff]  ;;  %vm15292_vm15 = vmmov %vm15279_vm0 }
 0xbbf   :  { %v6797_v0 = vrot.slane %v6773_v1, 7  ;;  %v6869_v40 = vrot.slane %v6773_v1, 1  ;;  %v6710_v4 = vadd.f32 %v8898_v62, %v6443_v51  ;;  %v6704_v60 = vpop.f32.mrb[103].mxu0  ;;  %6981 = vrot.lane.b32.xlu1 %v6773_v1, %s9551_s12  ;;  %vm15278_vm6 = vcmp.eq.s32.totalorder %v15277_v46, 1 }
 0xbc0   :  { %v6705_v45 = vadd.f32 %v6704_v60, %v6441_v19  ;;  %v15275_v19 = vld [vmem:[#allocation52_spill] sm:$0xff] }
 0xbc1   :  { %v6752_v33 = vmax.f32 %v6710_v4, 0.0  ;;  %v6883_v52 = vsel %vm904_vm13, %v6869_v40, %v6870_v30  ;;  %v6884_v5 = vsel %vm904_vm13, %v6868_v22, %v6869_v40  ;;  %v13766_v34 = vsel %vm15232_vm5, %v6797_v0, %v6798_v24 }
 0xbc2   :  { %15274 = vst [vmem:[#allocation100_spill] sm:$0xff] %v13766_v34  ;;  %v6751_v51 = vmax.f32 %v6705_v45, 0.0  ;;  %v8901_v62 = vpop.f32.mrb[104].mxu0  ;;  %7071 = vrot.lane.b32.xlu0 %v6914_v28, %s9552_s14  ;;  %vm15276_vm9 = vcmp.eq.s32.totalorder %v15275_v19, 1  ;;  %v13776_v22 = vsel %vm15279_vm0, %v6796_v29, %v6797_v0  ;;  %v15281_v34 = vld [vmem:[#allocation70_spill] sm:$0xff]  ;;  %v6451_v19 = vpop.permute.xlu0 %6450 }
 0xbc3   :  { %v6917_v1 = vsel %vm15276_vm9, %v6883_v52, 0.0  ;;  %v6776_v4 = vsel %vm15278_vm6, %v6752_v33, 0.0  ;;  %v6720_v60 = vadd.f32 %v8901_v62, %v6447_v25  ;;  %v6714_v39 = vpop.f32.mrb[105].mxu0  ;;  %15280 = vst [vmem:[#allocation99_spill] sm:$0xff] %v13776_v22  ;;  %vm15282_vm2 = vcmp.eq.s32.totalorder %v15281_v34, 1  ;;  %v6449_v25 = vpop.permute.xlu1 %6448  ;;  %v15283_v62 = vld [vmem:[#allocation117_spill] sm:$0xff]  ;;  %vm15298_vm9 = vmmov %vm15279_vm0 }
 0xbc4   :  { %7077 = vrot.lane.b32.xlu1 %v6917_v1, %s9552_s14  ;;  %v6872_v40 = vrot.slane %v6776_v4, 1  ;;  %v6775_v45 = vsel %vm15282_vm2, %v6751_v51, 0.0  ;;  %v6715_v20 = vadd.f32 %v6714_v39, %v6445_v50  ;;  %v6800_v52 = vrot.slane %v6776_v4, 7  ;;  %vm15299_vm6 = vmmov %vm15279_vm0 }
 0xbc5   :  { %v6871_v28 = vrot.slane %v6775_v45, 1  ;;  %v6754_v7 = vmax.f32 %v6720_v60, 0.0  ;;  %v6799_v47 = vrot.slane %v6775_v45, 7  ;;  %vm15284_vm3 = vcmp.eq.s32.totalorder %v15283_v62, 1  ;;  %v15285_v60 = vld [vmem:[#allocation10_spill] sm:$0xff] }
 0xbc6   :  { %v6753_v46 = vmax.f32 %v6715_v20, 0.0  ;;  %v8904_v33 = vpop.f32.mrb[106].mxu0  ;;  %6987 = vrot.lane.b32.xlu0 %v6776_v4, %s9551_s12  ;;  %vm15286_vm12 = vcmp.eq.s32.totalorder %v15285_v60, 1  ;;  %v15287_v4 = vld [vmem:[#allocation43_spill] sm:$0xff] }
 0xbc7   :  { %v6778_v1 = vsel %vm15284_vm3, %v6754_v7, 0.0  ;;  %v6730_v29 = vadd.f32 %v8904_v33, %v6451_v19  ;;  %v6724_v0 = vpop.f32.mrb[107].mxu0  ;;  %v6881_v50 = vsel %vm904_vm13, %v6871_v28, %v6872_v40  ;;  %v6882_v34 = vsel %vm904_vm13, %v6870_v30, %v6871_v28  ;;  %vm15302_vm3 = vmmov %vm15279_vm0 }
 0xbc8   :  { %6985 = vrot.lane.b32.xlu1 %v6775_v45, %s9551_s12  ;;  %v6874_v51 = vrot.slane %v6778_v1, 1  ;;  %v6777_v20 = vsel %vm15286_vm12, %v6753_v46, 0.0  ;;  %v6725_v39 = vadd.f32 %v6724_v0, %v6449_v25  ;;  %vm15288_vm11 = vcmp.eq.s32.totalorder %v15287_v4, 1  ;;  %v15289_v45 = vld [vmem:[#allocation57_spill] sm:$0xff]  ;;  %v15293_v46 = vld [vmem:[#allocation18_spill] sm:$0xff]  ;;  %vm15303_vm12 = vmmov %vm15279_vm0 }
 0xbc9   :  { %v6916_v22 = vsel %vm15288_vm11, %v6884_v5, 0.0  ;;  %v6802_v62 = vrot.slane %v6778_v1, 7  ;;  %v6801_v7 = vrot.slane %v6777_v20, 7  ;;  %v6873_v19 = vrot.slane %v6777_v20, 1 }
 0xbca   :  { %v6756_v33 = vmax.f32 %v6730_v29, 0.0  ;;  %v6755_v31 = vmax.f32 %v6725_v39, 0.0  ;;  %7075 = vrot.lane.b32.xlu0 %v6916_v22, %s9552_s14  ;;  %vm15290_vm8 = vcmp.eq.s32.totalorder %v15289_v45, 1  ;;  %v13797_v30 = vsel %vm15291_vm14, %v6799_v47, %v6800_v52 }
 0xbcb   :  { %v6919_v42 = vsel %vm15290_vm8, %v6881_v50, 0.0  ;;  %v13801_v28 = vsel %vm15292_vm15, %v6798_v24, %v6799_v47  ;;  %vm15294_vm4 = vcmp.eq.s32.totalorder %v15293_v46, 1  ;;  %v6879_v25 = vsel %vm904_vm13, %v6873_v19, %v6874_v51  ;;  %v15295_v50 = vld [vmem:[#allocation17_spill] sm:$0xff] }
 0xbcc   :  { %v6780_v5 = vsel %vm15294_vm4, %v6756_v33, 0.0  ;;  %7081 = vrot.lane.b32.xlu1 %v6919_v42, %s9552_s14  ;;  %v6880_v22 = vsel %vm904_vm13, %v6872_v40, %v6873_v19  ;;  %vm15296_vm5 = vcmp.eq.s32.totalorder %v15295_v50, 1  ;;  %v15297_v47 = vrot.slane %v13564_v41, 7  ;;  %v15300_v19 = vld [vmem:[#allocation51_spill] sm:$0xff]  ;;  %v15315_v50 = vld [vmem:[#allocation22_spill] sm:$0xff] }
 0xbcd   :  { %v6804_v29 = vrot.slane %v6780_v5, 7  ;;  %v6876_v0 = vrot.slane %v6780_v5, 1  ;;  %v6779_v60 = vsel %vm15296_vm5, %v6755_v31, 0.0  ;;  %v13819_v24 = vsel %vm15299_vm6, %v6801_v7, %v6802_v62 }
 0xbce   :  { %v6803_v39 = vrot.slane %v6779_v60, 7  ;;  %v6875_v4 = vrot.slane %v6779_v60, 1  ;;  %6991 = vrot.lane.b32.xlu0 %v6778_v1, %s9551_s12  ;;  %v13823_v40 = vsel %vm15279_vm0, %v6800_v52, %v6801_v7  ;;  %vm15301_vm2 = vcmp.eq.s32.totalorder %v15300_v19, 1 }
 0xbcf   :  { %v6828_v42 = vsel %vm15298_vm9, %v6804_v29, %v15297_v47  ;;  %v6918_v33 = vsel %vm15301_vm2, %v6882_v34, 0.0  ;;  %vm15304_vm11 = vcmp.eq.s32.totalorder %v15105_v49, 1  ;;  %v15305_v34 = vld [vmem:[#allocation55_spill] sm:$0xff]  ;;  %vm15307_vm14 = vcmp.eq.s32.totalorder %v15109_v23, 1  ;;  %v15321_v47 = vld [vmem:[#allocation34_spill] sm:$0xff] }
 0xbd0   :  { %6989 = vrot.lane.b32.xlu1 %v6777_v20, %s9551_s12  ;;  %v6877_v31 = vsel %vm904_vm13, %v6875_v4, %v6876_v0  ;;  %v6878_v1 = vsel %vm904_vm13, %v6874_v51, %v6875_v4  ;;  %v13834_v45 = vsel %vm15302_vm3, %v6803_v39, %v6804_v29  ;;  %v13838_v46 = vsel %vm15303_vm12, %v6802_v62, %v6803_v39  ;;  %v15308_v62 = vld [vmem:[#allocation61_spill] sm:$0xff]  ;;  %v15314_v29 = vld [vmem:[#allocation28_spill] sm:$0xff]  ;;  %v15320_v39 = vld [vmem:[#allocation42_spill] sm:$0xff] }
 0xbd1   :  { %v6921_v52 = vsel %vm15304_vm11, %v6879_v25, 0.0  ;;  %vm15306_vm8 = vcmp.eq.s32.totalorder %v15305_v34, 1  ;;  %v6923_v20 = vsel %vm15307_vm14, %v6877_v31, 0.0  ;;  %vm15309_vm15 = vcmp.eq.s32.totalorder %v15308_v62, 1  ;;  %v15311_v25 = vld [vmem:[#allocation24_spill] sm:$0xff] }
 0xbd2   :  { %7079 = vrot.lane.b32.xlu0 %v6918_v33, %s9552_s14  ;;  %v6920_v51 = vsel %vm15306_vm8, %v6880_v22, 0.0  ;;  %v6922_v49 = vsel %vm15309_vm15, %v6878_v1, 0.0  ;;  %v15310_v7 = vrot.slane %v13564_v41, 1  ;;  %v15312_v22 = vld [vmem:[#allocation65_spill] sm:$0xff]  ;;  %v15316_v41 = vld [vmem:[#allocation32_spill] sm:$0xff]  ;;  %vm15329_vm5 = vcmp.eq.s32.totalorder %v15134_v12, 1 }
 0xbd3   :  { %vm15313_vm4 = vcmp.eq.s32.totalorder %v15312_v22, 1  ;;  %v15323_v1 = vld [vmem:[#allocation48_spill] sm:$0xff]  ;;  %v6830_v22 = vsel %vm15329_vm5, %v13579_v58, 0.0  ;;  %vm15330_vm9 = vcmp.eq.s32.totalorder %v15136_v59, 1  ;;  %vm15331_vm6 = vcmp.eq.s32.totalorder %v15140_v6, 1 }
 0xbd4   :  { %7085 = vrot.lane.b32.xlu1 %v6921_v52, %s9552_s14  ;;  %v15324_v34 = vld [vmem:[#allocation40_spill] sm:$0xff]  ;;  %vm15332_vm0 = vcmp.eq.s32.totalorder %v15142_v54, 1  ;;  %vm15333_vm2 = vcmp.eq.s32.totalorder %v15146_v63, 1  ;;  %vm15334_vm3 = vcmp.eq.s32.totalorder %v15148_v56, 1  ;;  %vm15335_vm12 = vcmp.eq.s32.totalorder %v15151_v48, 1 }
 0xbd5   :  { %v6834_v54 = vsel %vm15333_vm2, %v13622_v3, 0.0  ;;  %v6836_v3 = vsel %vm15335_vm12, %v13646_v18, 0.0  ;;  %vm15336_vm11 = vcmp.eq.s32.totalorder %v15153_v26, 1  ;;  %vm15337_vm8 = vcmp.eq.s32.totalorder %v15156_v55, 1 }
 0xbd6   :  { %6995 = vrot.lane.b32.xlu0 %v6780_v5, %s9551_s12  ;;  %v6900_v5 = vsel %vm904_vm13, %v6876_v0, %v15310_v7  ;;  %v15318_v0 = vld [vmem:[#allocation37_spill] sm:$0xff]  ;;  %vm15322_vm13 = vcmp.eq.s32.totalorder %v15128_v35, 1  ;;  %v15327_v7 = vld [vmem:[#allocation4_spill] sm:$0xff]  ;;  %vm15338_vm14 = vcmp.eq.s32.totalorder %v15158_v61, 1  ;;  %vm15339_vm15 = vcmp.eq.s32.totalorder %v15161_v57, 1 }
 0xbd7   :  { %v6924_v23 = vsel %vm15313_vm4, %v6900_v5, 0.0  ;;  %v6829_v31 = vsel %vm15322_vm13, %v6828_v42, 0.0  ;;  %v15325_v35 = vld [vmem:[#allocation45_spill] sm:$0xff]  ;;  %v15326_v42 = vld [vmem:[#allocation8_spill] sm:$0xff] }
 0xbd8   :  { %6993 = vrot.lane.b32.xlu1 %v6779_v60, %s9551_s12  ;;  %s9557_s12 = smov 64   ;;  %v15319_v60 = vld [vmem:[#allocation30_spill] sm:$0xff] }
 0xbda   :  { %7083 = vrot.lane.b32.xlu0 %v6920_v51, %s9552_s14 }
 0xbdc   :  { %7089 = vrot.lane.b32.xlu1 %v6923_v20, %s9552_s14 }
 0xbde   :  { %7087 = vrot.lane.b32.xlu0 %v6922_v49, %s9552_s14 }
 0xbe0   :  { %7165 = vrot.lane.b32.xlu1 %v15311_v25, %s9557_s12 }
 0xbe2   :  { %7091 = vrot.lane.b32.xlu0 %v6924_v23, %s9552_s14 }
 0xbe4   :  { %7169 = vrot.lane.b32.xlu1 %v15314_v29, %s9557_s12  ;;  %v6831_v29 = vsel %vm15330_vm9, %v13606_v16, 0.0  ;;  %v6832_v16 = vsel %vm15331_vm6, %v13599_v15, 0.0 }
 0xbe6   :  { %7167 = vrot.lane.b32.xlu0 %v15315_v50, %s9557_s12 }
 0xbe8   :  { %7173 = vrot.lane.b32.xlu1 %v15316_v41, %s9557_s12 }
 0xbea   :  { %7171 = vrot.lane.b32.xlu0 %v15317_v17, %s9557_s12 }
 0xbec   :  { %7177 = vrot.lane.b32.xlu1 %v15318_v0, %s9557_s12 }
 0xbee   :  { %7175 = vrot.lane.b32.xlu0 %v15319_v60, %s9557_s12 }
 0xbf0   :  { %7181 = vrot.lane.b32.xlu1 %v15320_v39, %s9557_s12  ;;  %v6952_v51 = vpop.permute.xlu0 %6951 }
 0xbf1   :  { %v6950_v4 = vpop.permute.xlu1 %6949  ;;  %v7118_v23 = vsel %vm1361_vm7, %v6830_v22, %v6952_v51 }
 0xbf2   :  { %7179 = vrot.lane.b32.xlu0 %v15321_v47, %s9557_s12  ;;  %v7117_v19 = vsel %vm1361_vm7, %v6829_v31, %v6950_v4 }
 0xbf4   :  { %7185 = vrot.lane.b32.xlu1 %v15323_v1, %s9557_s12 }
 0xbf5   :  { %v7046_v33 = vpop.permute.xlu1 %7045 }
 0xbf6   :  { %v7141_v52 = vsel %vm1386_vm1, %v7117_v19, %v7046_v33  ;;  %7183 = vrot.lane.b32.xlu0 %v15324_v34, %s9557_s12 }
 0xbf7   :  { %8911 = vmatprep.mubr.msk.f32.mxu1 %vm1507_vm10, %v7141_v52 }
 0xbf8   :  { %7189 = vrot.lane.b32.xlu1 %v15127_v10, %s9557_s12  ;;  %v6956_v62 = vpop.permute.xlu0 %6955  ;;  %v15328_v10 = vld [vmem:[#allocation7_spill] sm:$0xff] }
 0xbf9   :  { %v6954_v20 = vpop.permute.xlu1 %6953 }
 0xbfa   :  { %7187 = vrot.lane.b32.xlu0 %v15325_v35, %s9557_s12  ;;  %v7119_v41 = vsel %vm1361_vm7, %v6831_v29, %v6954_v20  ;;  %v6838_v35 = vsel %vm15337_vm8, %v13670_v53, 0.0 }
 0xbfc   :  { %7193 = vrot.lane.b32.xlu1 %v15326_v42, %s9557_s12 }
 0xbfd   :  { %v7050_v49 = vpop.permute.xlu1 %7049 }
 0xbfe   :  { %7191 = vrot.lane.b32.xlu0 %v15327_v7, %s9557_s12  ;;  %v7143_v58 = vsel %vm1386_vm1, %v7119_v41, %v7050_v49  ;;  %v15342_v41 = vld [vmem:[#allocation97_spill] sm:$0xff] }
 0xc00   :  { %7197 = vrot.lane.b32.xlu1 %v15133_v32, %s9557_s12  ;;  %v6960_v5 = vpop.permute.xlu0 %6959  ;;  %v5851_v32 = vld [vmem:[%s14385_s1 + $0x98] sm:$0xff]  ;;  %s9558_s1 = smov 1  }
 0xc01   :  { %v6958_v25 = vpop.permute.xlu1 %6957  ;;  %8947 = vmatprep.subr.mxu0 %v5851_v32  ;;  %v7122_v15 = vsel %vm1361_vm7, %v6834_v54, %v6960_v5 }
 0xc02   :  { %7195 = vrot.lane.b32.xlu0 %v15328_v10, %s9557_s12  ;;  %8948 = vmatpush3.msra.mxu0 %v5851_v32 }
 0xc04   :  { %7201 = vrot.lane.b32.xlu1 %v15006_v37, %s9557_s12  ;;  %v7048_v50 = vpop.permute.xlu0 %7047 }
 0xc05   :  { %v7142_v17 = vsel %vm1386_vm1, %v7118_v23, %v7048_v50  ;;  %v7054_v12 = vpop.permute.xlu1 %7053 }
 0xc06   :  { %7199 = vrot.lane.b32.xlu0 %v15007_v2, %s9557_s12  ;;  %8912 = vmatmul.mubr.msk.f32.vlgmr.msra.gmra.mrb[108].mxu1 %vm1507_vm10, %v7142_v17  ;;  %v7120_v2 = vsel %vm1361_vm7, %v6832_v16, %v6956_v62  ;;  %v15343_v17 = vld [vmem:[#allocation83_spill] sm:$0xff] }
 0xc07   :  { %8914 = vmatprep.mubr.msk.f32.mxu1 %vm1507_vm10, %v7143_v58  ;;  %vm15344_vm13 = vcmp.eq.s32.totalorder %v15343_v17, 1  ;;  %v15345_v58 = vld [vmem:[#allocation98_spill] sm:$0xff] }
 0xc08   :  { %7205 = vrot.lane.b32.xlu1 %v15008_v14, %s9557_s12  ;;  %v6964_v37 = vpop.permute.xlu0 %6963  ;;  %v6833_v14 = vsel %vm15332_vm0, %v13630_v9, 0.0  ;;  %v6835_v9 = vsel %vm15334_vm3, %v13654_v36, 0.0  ;;  %v6837_v36 = vsel %vm15336_vm11, %v13678_v8, 0.0  ;;  %v6839_v8 = vsel %vm15338_vm14, %v13702_v38, 0.0  ;;  %v15340_v38 = vld [vmem:[#allocation84_spill] sm:$0xff] }
 0xc09   :  { %v6962_v59 = vpop.permute.xlu1 %6961  ;;  %v7121_v60 = vsel %vm1361_vm7, %v6833_v14, %v6958_v25  ;;  %v7124_v56 = vsel %vm1361_vm7, %v6836_v3, %v6964_v37  ;;  %v6840_v25 = vsel %vm15339_vm15, %v13694_v21, 0.0  ;;  %vm15341_vm4 = vcmp.eq.s32.totalorder %v15340_v38, 1  ;;  %v15346_v37 = vld [vmem:[#allocation86_spill] sm:$0xff]  ;;  %v15363_v38 = vld [vmem:[#allocation91_spill] sm:$0xff] }
 0xc0a   :  { %7203 = vrot.lane.b32.xlu0 %v15009_v13, %s9557_s12  ;;  %v7145_v13 = vsel %vm1386_vm1, %v7121_v60, %v7054_v12  ;;  %v7123_v47 = vsel %vm1361_vm7, %v6835_v9, %v6962_v59  ;;  %v6841_v10 = vsel %vm15341_vm4, %v13726_v27, 0.0  ;;  %v6842_v12 = vsel %vm15344_vm13, %v15342_v41, 0.0  ;;  %v15352_v9 = vld [vmem:[#allocation88_spill] sm:$0xff] }
 0xc0b   :  { %vm15347_vm5 = vcmp.eq.s32.totalorder %v15346_v37, 1  ;;  %vm15353_vm6 = vcmp.eq.s32.totalorder %v15352_v9, 1  ;;  %vm15364_vm11 = vcmp.eq.s32.totalorder %v15363_v38, 1 }
 0xc0c   :  { %7209 = vrot.lane.b32.xlu1 %v15144_v11, %s9557_s12  ;;  %v7052_v0 = vpop.permute.xlu0 %7051  ;;  %v6843_v59 = vsel %vm15347_vm5, %v15345_v58, 0.0 }
 0xc0d   :  { %v7144_v39 = vsel %vm1386_vm1, %v7120_v2, %v7052_v0  ;;  %v7058_v4 = vpop.permute.xlu1 %7057 }
 0xc0e   :  { %7207 = vrot.lane.b32.xlu0 %v15011_v44, %s9557_s12  ;;  %8915 = vmatmul.mubr.msk.f32.gmra.mrb[110].mxu1 %vm1507_vm10, %v7144_v39  ;;  %v7147_v19 = vsel %vm1386_vm1, %v7123_v47, %v7058_v4 }
 0xc0f   :  { %8917 = vmatprep.mubr.msk.f32.mxu1 %vm1507_vm10, %v7145_v13  ;;  %v15348_v13 = vld [vmem:[#allocation96_spill] sm:$0xff] }
 0xc10   :  { %v6968_v6 = vpop.permute.xlu0 %6967 }
 0xc11   :  { %v6966_v11 = vpop.permute.xlu1 %6965  ;;  %v7126_v26 = vsel %vm1361_vm7, %v6838_v35, %v6968_v6  ;;  %v15349_v6 = vld [vmem:[#allocation85_spill] sm:$0xff] }
 0xc12   :  { %7211 = vrot.lane.b32.xlu0 %v15012_v43, %s9557_s12  ;;  %v7125_v52 = vsel %vm1361_vm7, %v6837_v36, %v6966_v11  ;;  %vm15350_vm9 = vcmp.eq.s32.totalorder %v15349_v6, 1  ;;  %v15355_v36 = vld [vmem:[#allocation87_spill] sm:$0xff] }
 0xc13   :  { %v6844_v11 = vsel %vm15350_vm9, %v15348_v13, 0.0  ;;  %vm15356_vm0 = vcmp.eq.s32.totalorder %v15355_v36, 1 }
 0xc14   :  { %v7056_v44 = vpop.permute.xlu0 %7055 }
 0xc15   :  { %v7146_v31 = vsel %vm1386_vm1, %v7122_v15, %v7056_v44  ;;  %v7062_v1 = vpop.permute.xlu1 %7061  ;;  %v15351_v15 = vld [vmem:[#allocation99_spill] sm:$0xff] }
 0xc16   :  { %8918 = vmatmul.mubr.msk.f32.gmra.mrb[112].mxu1 %vm1507_vm10, %v7146_v31  ;;  %v7149_v20 = vsel %vm1386_vm1, %v7125_v52, %v7062_v1  ;;  %v6845_v44 = vsel %vm15353_vm6, %v15351_v15, 0.0 }
 0xc17   :  { %8920 = vmatprep.mubr.msk.f32.mxu1 %vm1507_vm10, %v7147_v19 }
 0xc18   :  { %v6972_v43 = vpop.permute.xlu0 %6971 }
 0xc19   :  { %v6970_v63 = vpop.permute.xlu1 %6969  ;;  %v7128_v61 = vsel %vm1361_vm7, %v6840_v25, %v6972_v43 }
 0xc1a   :  { %v7127_v62 = vsel %vm1361_vm7, %v6839_v8, %v6970_v63 }
 0xc1c   :  { %v7060_v33 = vpop.permute.xlu0 %7059 }
 0xc1d   :  { %v7148_v34 = vsel %vm1386_vm1, %v7124_v56, %v7060_v33  ;;  %v7066_v51 = vpop.permute.xlu1 %7065  ;;  %v15354_v56 = vld [vmem:[#allocation100_spill] sm:$0xff] }
 0xc1e   :  { %8921 = vmatmul.mubr.msk.f32.gmra.mrb[114].mxu1 %vm1507_vm10, %v7148_v34  ;;  %v7151_v5 = vsel %vm1386_vm1, %v7127_v62, %v7066_v51  ;;  %v6846_v33 = vsel %vm15356_vm0, %v15354_v56, 0.0  ;;  %v15357_v34 = vld [vmem:[#allocation90_spill] sm:$0xff]  ;;  %v15359_v62 = vld [vmem:[#allocation89_spill] sm:$0xff] }
 0xc1f   :  { %8923 = vmatprep.mubr.msk.f32.mxu1 %vm1507_vm10, %v7149_v20  ;;  %vm15358_vm2 = vcmp.eq.s32.totalorder %v15357_v34, 1  ;;  %vm15360_vm3 = vcmp.eq.s32.totalorder %v15359_v62, 1 }
 0xc20   :  { %v6976_v48 = vpop.permute.xlu0 %6975  ;;  %v6847_v51 = vsel %vm15358_vm2, %v13801_v28, 0.0 }
 0xc21   :  { %v6974_v18 = vpop.permute.xlu1 %6973  ;;  %v7130_v27 = vsel %vm1361_vm7, %v6842_v12, %v6976_v48 }
 0xc22   :  { %v7129_v23 = vsel %vm1361_vm7, %v6841_v10, %v6974_v18  ;;  %v6850_v10 = vsel %vm15364_vm11, %v13819_v24, 0.0  ;;  %v15367_v24 = vld [vmem:[#allocation93_spill] sm:$0xff] }
 0xc23   :  { %vm15368_vm14 = vcmp.eq.s32.totalorder %v15367_v24, 1 }
 0xc24   :  { %v7064_v42 = vpop.permute.xlu0 %7063 }
 0xc25   :  { %v7150_v49 = vsel %vm1386_vm1, %v7126_v26, %v7064_v42  ;;  %v7070_v7 = vpop.permute.xlu1 %7069 }
 0xc26   :  { %8924 = vmatmul.mubr.msk.f32.gmra.mrb[116].mxu1 %vm1507_vm10, %v7150_v49  ;;  %v7153_v32 = vsel %vm1386_vm1, %v7129_v23, %v7070_v7  ;;  %v6848_v49 = vsel %vm15360_vm3, %v13797_v30, 0.0  ;;  %v15361_v7 = vld [vmem:[#allocation92_spill] sm:$0xff] }
 0xc27   :  { %8926 = vmatprep.mubr.msk.f32.mxu1 %vm1507_vm10, %v7151_v5  ;;  %vm15362_vm12 = vcmp.eq.s32.totalorder %v15361_v7, 1 }
 0xc28   :  { %v6980_v55 = vpop.permute.xlu0 %6979  ;;  %v6849_v5 = vsel %vm15362_vm12, %v13823_v40, 0.0  ;;  %v15365_v40 = vld [vmem:[#allocation94_spill] sm:$0xff] }
 0xc29   :  { %v6978_v53 = vpop.permute.xlu1 %6977  ;;  %v7132_v54 = vsel %vm1361_vm7, %v6844_v11, %v6980_v55  ;;  %vm15366_vm8 = vcmp.eq.s32.totalorder %v15365_v40, 1 }
 0xc2a   :  { %v7131_v2 = vsel %vm1361_vm7, %v6843_v59, %v6978_v53  ;;  %v6851_v23 = vsel %vm15366_vm8, %v13838_v46, 0.0 }
 0xc2c   :  { %v7068_v22 = vpop.permute.xlu0 %7067 }
 0xc2d   :  { %v7152_v29 = vsel %vm1386_vm1, %v7128_v61, %v7068_v22  ;;  %v7074_v50 = vpop.permute.xlu1 %7073 }
 0xc2e   :  { %8927 = vmatmul.mubr.msk.f32.gmra.mrb[118].mxu1 %vm1507_vm10, %v7152_v29  ;;  %v7155_v60 = vsel %vm1386_vm1, %v7131_v2, %v7074_v50 }
 0xc2f   :  { %8929 = vmatprep.mubr.msk.f32.mxu1 %vm1507_vm10, %v7153_v32 }
 0xc30   :  { %v6984_v57 = vpop.permute.xlu0 %6983 }
 0xc31   :  { %v6982_v21 = vpop.permute.xlu1 %6981  ;;  %v7134_v52 = vsel %vm1361_vm7, %v6846_v33, %v6984_v57 }
 0xc32   :  { %v7133_v31 = vsel %vm1361_vm7, %v6845_v44, %v6982_v21  ;;  %v6852_v21 = vsel %vm15368_vm14, %v13834_v45, 0.0 }
 0xc34   :  { %v7072_v16 = vpop.permute.xlu0 %7071 }
 0xc35   :  { %v7154_v14 = vsel %vm1386_vm1, %v7130_v27, %v7072_v16 }
 0xc36   :  { %v7078_v0 = vpop.permute.xlu1 %7077  ;;  %8930 = vmatmul.mubr.msk.f32.gmra.mrb[120].mxu1 %vm1507_vm10, %v7154_v14 }
 0xc37   :  { %8932 = vmatprep.mubr.msk.f32.mxu1 %vm1507_vm10, %v7155_v60  ;;  %v7157_v43 = vsel %vm1386_vm1, %v7133_v31, %v7078_v0 }
 0xc38   :  { %v6988_v39 = vpop.permute.xlu0 %6987 }
 0xc39   :  { %v7136_v28 = vsel %vm1361_vm7, %v6848_v49, %v6988_v39 }
 0xc3a   :  { %v6986_v4 = vpop.permute.xlu1 %6985 }
 0xc3b   :  { %v7135_v48 = vsel %vm1361_vm7, %v6847_v51, %v6986_v4 }
 0xc3c   :  { %v7076_v47 = vpop.permute.xlu0 %7075 }
 0xc3d   :  { %v7156_v1 = vsel %vm1386_vm1, %v7132_v54, %v7076_v47 }
 0xc3e   :  { %v7082_v19 = vpop.permute.xlu1 %7081  ;;  %8933 = vmatmul.mubr.msk.f32.gmra.mrb[122].mxu1 %vm1507_vm10, %v7156_v1 }
 0xc3f   :  { %8935 = vmatprep.mubr.msk.f32.mxu1 %vm1507_vm10, %v7157_v43  ;;  %v7159_v26 = vsel %vm1386_vm1, %v7135_v48, %v7082_v19 }
 0xc40   :  { %v6992_v63 = vpop.permute.xlu0 %6991 }
 0xc41   :  { %v7138_v22 = vsel %vm1361_vm7, %v6850_v10, %v6992_v63 }
 0xc42   :  { %v6990_v3 = vpop.permute.xlu1 %6989 }
 0xc43   :  { %v7137_v53 = vsel %vm1361_vm7, %v6849_v5, %v6990_v3 }
 0xc44   :  { %v7080_v20 = vpop.permute.xlu0 %7079 }
 0xc45   :  { %v7158_v18 = vsel %vm1386_vm1, %v7134_v52, %v7080_v20 }
 0xc46   :  { %v7086_v35 = vpop.permute.xlu1 %7085  ;;  %8936 = vmatmul.mubr.msk.f32.gmra.mrb[124].mxu1 %vm1507_vm10, %v7158_v18 }
 0xc47   :  { %8938 = vmatprep.mubr.msk.f32.mxu1 %vm1507_vm10, %v7159_v26  ;;  %v7161_v61 = vsel %vm1386_vm1, %v7137_v53, %v7086_v35 }
 0xc48   :  { %v6996_v8 = vpop.permute.xlu0 %6995 }
 0xc49   :  { %v7140_v41 = vsel %vm1361_vm7, %v6852_v21, %v6996_v8 }
 0xc4a   :  { %v6994_v42 = vpop.permute.xlu1 %6993 }
 0xc4b   :  { %v7139_v50 = vsel %vm1361_vm7, %v6851_v23, %v6994_v42 }
 0xc4c   :  { %v7084_v55 = vpop.permute.xlu0 %7083 }
 0xc4d   :  { %v7160_v25 = vsel %vm1386_vm1, %v7136_v28, %v7084_v55 }
 0xc4e   :  { %8939 = vmatmul.mubr.msk.f32.gmra.mrb[126].mxu1 %vm1507_vm10, %v7160_v25  ;;  %v7090_v30 = vpop.permute.xlu1 %7089 }
 0xc4f   :  { %8941 = vmatprep.mubr.msk.f32.mxu1 %vm1507_vm10, %v7161_v61  ;;  %v7163_v57 = vsel %vm1386_vm1, %v7139_v50, %v7090_v30 }
 0xc50   :  { %v7088_v29 = vpop.permute.xlu0 %7087 }
 0xc51   :  { %v7162_v32 = vsel %vm1386_vm1, %v7138_v22, %v7088_v29 }
 0xc52   :  { %8942 = vmatmul.mubr.msk.f32.gmra.mrb[128].mxu1 %vm1507_vm10, %v7162_v32  ;;  %v7166_v27 = vpop.permute.xlu1 %7165 }
 0xc53   :  { %8944 = vmatprep.mubr.msk.f32.mxu1 %vm1507_vm10, %v7163_v57 }
 0xc54   :  { %v7092_v17 = vpop.permute.xlu0 %7091 }
 0xc55   :  { %v7164_v46 = vsel %vm1386_vm1, %v7140_v41, %v7092_v17 }
 0xc56   :  { %8945 = vmatmul.mubr.msk.f32.gmra.mrb[130].mxu1 %vm1507_vm10, %v7164_v46  ;;  %v7170_v2 = vpop.permute.xlu1 %7169  ;;  %vm15369_vm10 = vcmask 15360  }
 0xc57   :  { %vm15370_vm1 = vmmov %vm15369_vm10 }
 0xc58   :  { %v7168_v37 = vpop.permute.xlu0 %7167  ;;  %vm15371_vm15 = vmmov %vm15370_vm1 }
 0xc59   :  { %vm15372_vm4 = vmmov %vm15370_vm1 }
 0xc5a   :  { %v7174_v13 = vpop.permute.xlu1 %7173  ;;  %vm15373_vm13 = vmmov %vm15370_vm1 }
 0xc5b   :  { %vm15374_vm5 = vmmov %vm15370_vm1 }
 0xc5c   :  { %v7172_v0 = vpop.permute.xlu0 %7171  ;;  %vm15375_vm9 = vmmov %vm15370_vm1 }
 0xc5d   :  { %vm15376_vm6 = vmmov %vm15370_vm1 }
 0xc5e   :  { %v7178_v44 = vpop.permute.xlu1 %7177  ;;  %vm15377_vm0 = vmmov %vm15370_vm1 }
 0xc5f   :  { %vm15378_vm2 = vmmov %vm15377_vm0 }
 0xc60   :  { %v7176_v11 = vpop.permute.xlu0 %7175  ;;  %vm15379_vm3 = vmmov %vm15377_vm0 }
 0xc61   :  { %vm15380_vm12 = vmmov %vm15377_vm0 }
 0xc62   :  { %v7182_v63 = vpop.permute.xlu1 %7181  ;;  %vm15381_vm11 = vmmov %vm15377_vm0 }
 0xc63   :  { %vm15382_vm8 = vmmov %vm15377_vm0 }
 0xc64   :  { %v7180_v31 = vpop.permute.xlu0 %7179  ;;  %vm15383_vm14 = vmmov %vm15377_vm0 }
 0xc66   :  { %v7186_v34 = vpop.permute.xlu1 %7185 }
 0xc68   :  { %v7184_v56 = vpop.permute.xlu0 %7183 }
 0xc6a   :  { %v7190_v26 = vpop.permute.xlu1 %7189 }
 0xc6c   :  { %v7188_v20 = vpop.permute.xlu0 %7187 }
 0xc6e   :  { %v7194_v7 = vpop.permute.xlu1 %7193 }
 0xc70   :  { %v7192_v42 = vpop.permute.xlu0 %7191 }
 0xc72   :  { %v7198_v61 = vpop.permute.xlu1 %7197 }
 0xc74   :  { %v7196_v55 = vpop.permute.xlu0 %7195 }
 0xc76   :  { %v7202_v23 = vpop.permute.xlu1 %7201 }
 0xc78   :  { %v7200_v38 = vpop.permute.xlu0 %7199 }
 0xc7a   :  { %v7206_v24 = vpop.permute.xlu1 %7205 }
 0xc7c   :  { %v7204_v29 = vpop.permute.xlu0 %7203 }
 0xc80   :  { %v7208_v41 = vpop.permute.xlu0 %7207 }
 0xcd9   :  { %v8913_v12 = vpop.f32.mrb[108].mxu1 }
 0xcda   :  { %v7375_v58 = vpop.f32.mrb[109].mxu1  ;;  %v7381_v16 = vadd.f32 %v8913_v12, %v7168_v37  ;;  %v7210_v37 = vpop.permute.xlu1 %7209 }
 0xcdb   :  { %v7376_v59 = vadd.f32 %v7375_v58, %v7166_v27 }
 0xcdd   :  { %8949 = vmatprep.mubr.msk.f32.mxu0 %vm1361_vm7, %v7376_v59 }
 0xcde   :  { %8950 = vmatmul.mubr.msk.f32.vlgmr.msra.gmra.mrb[108].mxu0 %vm1361_vm7, %v7381_v16  ;;  %v7212_v16 = vpop.permute.xlu0 %7211 }
 0xce1   :  { %v8916_v45 = vpop.f32.mrb[110].mxu1 }
 0xce2   :  { %v7385_v14 = vpop.f32.mrb[111].mxu1  ;;  %v7391_v39 = vadd.f32 %v8916_v45, %v7172_v0 }
 0xce3   :  { %v7386_v60 = vadd.f32 %v7385_v14, %v7170_v2 }
 0xce5   :  { %8952 = vmatprep.mubr.msk.f32.mxu0 %vm1361_vm7, %v7386_v60 }
 0xce6   :  { %8953 = vmatmul.mubr.msk.f32.gmra.mrb[110].mxu0 %vm1361_vm7, %v7391_v39 }
 0xce9   :  { %v8919_v4 = vpop.f32.mrb[112].mxu1 }
 0xcea   :  { %v7395_v6 = vpop.f32.mrb[113].mxu1  ;;  %v7401_v15 = vadd.f32 %v8919_v4, %v7176_v11 }
 0xceb   :  { %v7396_v54 = vadd.f32 %v7395_v6, %v7174_v13 }
 0xced   :  { %8955 = vmatprep.mubr.msk.f32.mxu0 %vm1361_vm7, %v7396_v54 }
 0xcee   :  { %8956 = vmatmul.mubr.msk.f32.gmra.mrb[112].mxu0 %vm1361_vm7, %v7401_v15 }
 0xcf1   :  { %v8922_v9 = vpop.f32.mrb[114].mxu1 }
 0xcf2   :  { %v7405_v47 = vpop.f32.mrb[115].mxu1  ;;  %v7411_v19 = vadd.f32 %v8922_v9, %v7180_v31 }
 0xcf3   :  { %v7406_v1 = vadd.f32 %v7405_v47, %v7178_v44 }
 0xcf5   :  { %8958 = vmatprep.mubr.msk.f32.mxu0 %vm1361_vm7, %v7406_v1 }
 0xcf6   :  { %8959 = vmatmul.mubr.msk.f32.gmra.mrb[114].mxu0 %vm1361_vm7, %v7411_v19 }
 0xcf9   :  { %v8925_v43 = vpop.f32.mrb[116].mxu1 }
 0xcfa   :  { %v7415_v3 = vpop.f32.mrb[117].mxu1  ;;  %v7421_v33 = vadd.f32 %v8925_v43, %v7184_v56 }
 0xcfb   :  { %v7416_v36 = vadd.f32 %v7415_v3, %v7182_v63 }
 0xcfd   :  { %8961 = vmatprep.mubr.msk.f32.mxu0 %vm1361_vm7, %v7416_v36 }
 0xcfe   :  { %8962 = vmatmul.mubr.msk.f32.gmra.mrb[116].mxu0 %vm1361_vm7, %v7421_v33 }
 0xd01   :  { %v8928_v52 = vpop.f32.mrb[118].mxu1 }
 0xd02   :  { %v7425_v51 = vpop.f32.mrb[119].mxu1  ;;  %v7431_v18 = vadd.f32 %v8928_v52, %v7188_v20  ;;  %v9524_v20 = vld [vmem:[%s14384_s0 + $0x8] sm:$0xff] }
 0xd03   :  { %v7426_v48 = vadd.f32 %v7425_v51, %v7186_v34 }
 0xd05   :  { %8964 = vmatprep.mubr.msk.f32.mxu0 %vm1361_vm7, %v7426_v48 }
 0xd06   :  { %8965 = vmatmul.mubr.msk.f32.gmra.mrb[118].mxu0 %vm1361_vm7, %v7431_v18 }
 0xd09   :  { %v8931_v35 = vpop.f32.mrb[120].mxu1 }
 0xd0a   :  { %v7435_v8 = vpop.f32.mrb[121].mxu1  ;;  %v7441_v49 = vadd.f32 %v8931_v35, %v7192_v42  ;;  %v9525_v35 = vld [vmem:[%s14384_s0] sm:$0xff] }
 0xd0b   :  { %v7436_v62 = vadd.f32 %v7435_v8, %v7190_v26 }
 0xd0d   :  { %8967 = vmatprep.mubr.msk.f32.mxu0 %vm1361_vm7, %v7436_v62 }
 0xd0e   :  { %8968 = vmatmul.mubr.msk.f32.gmra.mrb[120].mxu0 %vm1361_vm7, %v7441_v49  ;;  %v9526_v49 = vld [vmem:[%s14384_s0 + $0x18] sm:$0xff] }
 0xd11   :  { %v8934_v28 = vpop.f32.mrb[122].mxu1 }
 0xd12   :  { %v7445_v5 = vpop.f32.mrb[123].mxu1  ;;  %v7451_v25 = vadd.f32 %v8934_v28, %v7196_v55 }
 0xd13   :  { %v7446_v53 = vadd.f32 %v7445_v5, %v7194_v7  ;;  %v9527_v5 = vld [vmem:[%s14384_s0 + $0x10] sm:$0xff] }
 0xd15   :  { %8970 = vmatprep.mubr.msk.f32.mxu0 %vm1361_vm7, %v7446_v53 }
 0xd16   :  { %8971 = vmatmul.mubr.msk.f32.gmra.mrb[122].mxu0 %vm1361_vm7, %v7451_v25 }
 0xd19   :  { %v8937_v10 = vpop.f32.mrb[124].mxu1 }
 0xd1a   :  { %v7455_v30 = vpop.f32.mrb[125].mxu1  ;;  %v7461_v40 = vadd.f32 %v8937_v10, %v7200_v38  ;;  %v9528_v38 = vld [vmem:[%s14384_s0 + $0x28] sm:$0xff] }
 0xd1b   :  { %v7456_v22 = vadd.f32 %v7455_v30, %v7198_v61 }
 0xd1d   :  { %8973 = vmatprep.mubr.msk.f32.mxu0 %vm1361_vm7, %v7456_v22  ;;  %v9529_v22 = vld [vmem:[%s14384_s0 + $0x20] sm:$0xff] }
 0xd1e   :  { %8974 = vmatmul.mubr.msk.f32.gmra.mrb[124].mxu0 %vm1361_vm7, %v7461_v40 }
 0xd21   :  { %v8940_v50 = vpop.f32.mrb[126].mxu1 }
 0xd22   :  { %v7465_v32 = vpop.f32.mrb[127].mxu1  ;;  %v7471_v21 = vadd.f32 %v8940_v50, %v7204_v29 }
 0xd23   :  { %v7466_v57 = vadd.f32 %v7465_v32, %v7202_v23  ;;  %v9530_v32 = vld [vmem:[%s14384_s0 + $0x38] sm:$0xff] }
 0xd25   :  { %v8943_v17 = vpop.f32.mrb[128].mxu1  ;;  %8976 = vmatprep.mubr.msk.f32.mxu0 %vm1361_vm7, %v7466_v57 }
 0xd26   :  { %v7475_v46 = vpop.f32.mrb[129].mxu1  ;;  %8977 = vmatmul.mubr.msk.f32.gmra.mrb[126].mxu0 %vm1361_vm7, %v7471_v21  ;;  %v7481_v27 = vadd.f32 %v8943_v17, %v7208_v41  ;;  %v9531_v21 = vld [vmem:[%s14384_s0 + $0x30] sm:$0xff] }
 0xd27   :  { %v7476_v12 = vadd.f32 %v7475_v46, %v7206_v24 }
 0xd29   :  { %v8946_v58 = vpop.f32.mrb[130].mxu1  ;;  %8979 = vmatprep.mubr.msk.f32.mxu0 %vm1361_vm7, %v7476_v12 }
 0xd2a   :  { %v7485_v59 = vpop.f32.mrb[131].mxu1  ;;  %8980 = vmatmul.mubr.msk.f32.gmra.mrb[128].mxu0 %vm1361_vm7, %v7481_v27  ;;  %v7491_v2 = vadd.f32 %v8946_v58, %v7212_v16  ;;  %v9532_v27 = vld [vmem:[%s14384_s0 + $0x48] sm:$0xff] }
 0xd2b   :  { %v7486_v45 = vadd.f32 %v7485_v59, %v7210_v37  ;;  %v9533_v59 = vld [vmem:[%s14384_s0 + $0x40] sm:$0xff] }
 0xd2d   :  { %8982 = vmatprep.mubr.msk.f32.mxu0 %vm1361_vm7, %v7486_v45 }
 0xd2e   :  { %8983 = vmatmul.mubr.msk.f32.gmra.mrb[130].mxu0 %vm1361_vm7, %v7491_v2  ;;  %vm7871_vm7 = vcmask 7168  }
 0xdb1   :  { %v8951_v14 = vpop.f32.mrb[108].mxu0 }
 0xdb2   :  { %7777 = vrot.lane.b32.xlu0 %v8951_v14, %s9558_s1  ;;  %v7632_v0 = vpop.f32.mrb[109].mxu0 }
 0xdb3   :  { %7775 = vrot.lane.b32.xlu1 %v7632_v0, %s9558_s1 }
 0xdb9   :  { %v14082_v60 = vpop.f32.mrb[110].mxu0 }
 0xdba   :  { %7781 = vrot.lane.b32.xlu0 %v14082_v60, %s9558_s1  ;;  %v14086_v39 = vpop.f32.mrb[111].mxu0 }
 0xdbb   :  { %7779 = vrot.lane.b32.xlu1 %v14086_v39, %s9558_s1 }
 0xdc1   :  { %v14090_v4 = vpop.f32.mrb[112].mxu0 }
 0xdc2   :  { %7785 = vrot.lane.b32.xlu0 %v14090_v4, %s9558_s1  ;;  %v14094_v13 = vpop.f32.mrb[113].mxu0 }
 0xdc3   :  { %7783 = vrot.lane.b32.xlu1 %v14094_v13, %s9558_s1 }
 0xdc9   :  { %v14098_v6 = vpop.f32.mrb[114].mxu0 }
 0xdca   :  { %7789 = vrot.lane.b32.xlu0 %v14098_v6, %s9558_s1  ;;  %v14102_v11 = vpop.f32.mrb[115].mxu0 }
 0xdcb   :  { %7787 = vrot.lane.b32.xlu1 %v14102_v11, %s9558_s1 }
 0xdd1   :  { %v14106_v54 = vpop.f32.mrb[116].mxu0 }
 0xdd2   :  { %7793 = vrot.lane.b32.xlu0 %v14106_v54, %s9558_s1  ;;  %v14110_v15 = vpop.f32.mrb[117].mxu0 }
 0xdd3   :  { %7791 = vrot.lane.b32.xlu1 %v14110_v15, %s9558_s1 }
 0xdd9   :  { %v14114_v9 = vpop.f32.mrb[118].mxu0 }
 0xdda   :  { %7797 = vrot.lane.b32.xlu0 %v14114_v9, %s9558_s1  ;;  %v14118_v44 = vpop.f32.mrb[119].mxu0 }
 0xddb   :  { %7795 = vrot.lane.b32.xlu1 %v14118_v44, %s9558_s1 }
 0xde1   :  { %v14122_v47 = vpop.f32.mrb[120].mxu0 }
 0xde2   :  { %7801 = vrot.lane.b32.xlu0 %v14122_v47, %s9558_s1  ;;  %v14126_v31 = vpop.f32.mrb[121].mxu0 }
 0xde3   :  { %7799 = vrot.lane.b32.xlu1 %v14126_v31, %s9558_s1 }
 0xde9   :  { %v14130_v1 = vpop.f32.mrb[122].mxu0 }
 0xdea   :  { %7805 = vrot.lane.b32.xlu0 %v14130_v1, %s9558_s1  ;;  %v14134_v19 = vpop.f32.mrb[123].mxu0 }
 0xdeb   :  { %7803 = vrot.lane.b32.xlu1 %v14134_v19, %s9558_s1 }
 0xdf1   :  { %v14138_v43 = vpop.f32.mrb[124].mxu0 }
 0xdf2   :  { %7809 = vrot.lane.b32.xlu0 %v14138_v43, %s9558_s1  ;;  %v14142_v63 = vpop.f32.mrb[125].mxu0 }
 0xdf3   :  { %7807 = vrot.lane.b32.xlu1 %v14142_v63, %s9558_s1 }
 0xdf9   :  { %v14146_v3 = vpop.f32.mrb[126].mxu0 }
 0xdfa   :  { %7813 = vrot.lane.b32.xlu0 %v14146_v3, %s9558_s1  ;;  %v14150_v56 = vpop.f32.mrb[127].mxu0 }
 0xdfb   :  { %7811 = vrot.lane.b32.xlu1 %v14150_v56, %s9558_s1 }
 0xdfd   :  { %v14154_v36 = vpop.f32.mrb[128].mxu0 }
 0xdfe   :  { %7817 = vrot.lane.b32.xlu0 %v14154_v36, %s9558_s1  ;;  %v14158_v33 = vpop.f32.mrb[129].mxu0 }
 0xdff   :  { %7815 = vrot.lane.b32.xlu1 %v14158_v33, %s9558_s1 }
 0xe01   :  { %v14162_v52 = vpop.f32.mrb[130].mxu0 }
 0xe02   :  { %7821 = vrot.lane.b32.xlu0 %v14162_v52, %s9558_s1  ;;  %v14166_v34 = vpop.f32.mrb[131].mxu0 }
 0xe03   :  { %7819 = vrot.lane.b32.xlu1 %v14166_v34, %s9558_s1 }
 0xe24   :  { %v7778_v51 = vpop.permute.xlu0 %7777 }
 0xe25   :  { %v7848_v48 = vsub.f32 %v9524_v20, %v7778_v51  ;;  %v7776_v18 = vpop.permute.xlu1 %7775  ;;  %v9537_v20 = vld [vmem:[%s14384_s0 + $0x60] sm:$0xff] }
 0xe26   :  { %v7847_v26 = vsub.f32 %v9525_v35, %v7776_v18 }
 0xe27   :  { %v7873_v8 = vsel %vm7871_vm7, %v8951_v14, %v7848_v48 }
 0xe28   :  { %7897 = vst.msk [vmem:[%s14386_s2 + $0x8] sm:$0xff] %vm15369_vm10, %v7873_v8  ;;  %v7872_v42 = vsel %vm7871_vm7, %v7632_v0, %v7847_v26  ;;  %v9534_v0 = vld [vmem:[%s14384_s0 + $0x58] sm:$0xff]  ;;  %vm15384_vm10 = vmmov %vm15377_vm0 }
 0xe29   :  { %7896 = vst.msk [vmem:[%s14386_s2] sm:$0xff] %vm15370_vm1, %v7872_v42  ;;  %v9538_v26 = vld [vmem:[%s14384_s0 + $0x78] sm:$0xff]  ;;  %v9539_v42 = vld [vmem:[%s14384_s0 + $0x70] sm:$0xff]  ;;  %vm15385_vm1 = vmmov %vm15377_vm0 }
 0xe2c   :  { %v7782_v62 = vpop.permute.xlu0 %7781 }
 0xe2d   :  { %v7850_v28 = vsub.f32 %v9526_v49, %v7782_v62  ;;  %v7780_v7 = vpop.permute.xlu1 %7779 }
 0xe2e   :  { %v7849_v55 = vsub.f32 %v9527_v5, %v7780_v7  ;;  %v9540_v7 = vld [vmem:[%s14384_s0 + $0x88] sm:$0xff] }
 0xe2f   :  { %v7875_v53 = vsel %vm7871_vm7, %v14082_v60, %v7850_v28 }
 0xe30   :  { %7899 = vst.msk [vmem:[%s14386_s2 + $0x18] sm:$0xff] %vm15371_vm15, %v7875_v53  ;;  %v7874_v25 = vsel %vm7871_vm7, %v14086_v39, %v7849_v55  ;;  %v9541_v55 = vld [vmem:[%s14384_s0 + $0x80] sm:$0xff]  ;;  %vm15386_vm15 = vmmov %vm15377_vm0 }
 0xe31   :  { %7898 = vst.msk [vmem:[%s14386_s2 + $0x10] sm:$0xff] %vm15372_vm4, %v7874_v25  ;;  %vm15387_vm4 = vmmov %vm15377_vm0 }
 0xe34   :  { %v7786_v61 = vpop.permute.xlu0 %7785 }
 0xe35   :  { %v7852_v10 = vsub.f32 %v9528_v38, %v7786_v61  ;;  %v7784_v30 = vpop.permute.xlu1 %7783  ;;  %v9542_v38 = vld [vmem:[%s14384_s0 + $0x98] sm:$0xff] }
 0xe36   :  { %v7851_v40 = vsub.f32 %v9529_v22, %v7784_v30  ;;  %v9543_v30 = vld [vmem:[%s14384_s0 + $0x90] sm:$0xff] }
 0xe37   :  { %v7877_v23 = vsel %vm7871_vm7, %v14090_v4, %v7852_v10  ;;  %v9535_v4 = vld [vmem:[%s14384_s0 + $0x50] sm:$0xff] }
 0xe38   :  { %7901 = vst.msk [vmem:[%s14386_s2 + $0x28] sm:$0xff] %vm15373_vm13, %v7877_v23  ;;  %v7876_v29 = vsel %vm7871_vm7, %v14094_v13, %v7851_v40  ;;  %vm15388_vm13 = vmmov %vm15377_vm0 }
 0xe39   :  { %7900 = vst.msk [vmem:[%s14386_s2 + $0x20] sm:$0xff] %vm15374_vm5, %v7876_v29  ;;  %v9544_v29 = vld [vmem:[%s14384_s0 + $0xa8] sm:$0xff]  ;;  %vm15389_vm5 = vmmov %vm15377_vm0 }
 0xe3c   :  { %v7790_v50 = vpop.permute.xlu0 %7789 }
 0xe3d   :  { %v7854_v57 = vsub.f32 %v9530_v32, %v7790_v50  ;;  %v7788_v24 = vpop.permute.xlu1 %7787  ;;  %v9545_v32 = vld [vmem:[%s14384_s0 + $0xa0] sm:$0xff] }
 0xe3e   :  { %v7853_v41 = vsub.f32 %v9531_v21, %v7788_v24 }
 0xe3f   :  { %v7879_v17 = vsel %vm7871_vm7, %v14098_v6, %v7854_v57 }
 0xe40   :  { %7903 = vst.msk [vmem:[%s14386_s2 + $0x38] sm:$0xff] %vm15375_vm9, %v7879_v17  ;;  %v7878_v46 = vsel %vm7871_vm7, %v14102_v11, %v7853_v41  ;;  %vm15390_vm9 = vmmov %vm15377_vm0  ;;  %v9546_v41 = vld [vmem:[%s14384_s0 + $0xb8] sm:$0xff] }
 0xe41   :  { %7902 = vst.msk [vmem:[%s14386_s2 + $0x30] sm:$0xff] %vm15376_vm6, %v7878_v46  ;;  %v9547_v46 = vld [vmem:[%s14384_s0 + $0xb0] sm:$0xff]  ;;  %vm15391_vm6 = vmmov %vm15377_vm0 }
 0xe44   :  { %v7794_v12 = vpop.permute.xlu0 %7793 }
 0xe45   :  { %v7856_v58 = vsub.f32 %v9532_v27, %v7794_v12  ;;  %v7792_v37 = vpop.permute.xlu1 %7791 }
 0xe46   :  { %v7855_v16 = vsub.f32 %v9533_v59, %v7792_v37 }
 0xe47   :  { %v7881_v45 = vsel %vm7871_vm7, %v14106_v54, %v7856_v58 }
 0xe48   :  { %7905 = vst.msk [vmem:[%s14386_s2 + $0x48] sm:$0xff] %vm15377_vm0, %v7881_v45  ;;  %v7880_v2 = vsel %vm7871_vm7, %v14110_v15, %v7855_v16  ;;  %v9536_v15 = vld [vmem:[%s14384_s0 + $0x68] sm:$0xff] }
 0xe49   :  { %7904 = vst.msk [vmem:[%s14386_s2 + $0x40] sm:$0xff] %vm15378_vm2, %v7880_v2 }
 0xe4c   :  { %v7798_v14 = vpop.permute.xlu0 %7797 }
 0xe4d   :  { %v7858_v60 = vsub.f32 %v9534_v0, %v7798_v14  ;;  %v7796_v39 = vpop.permute.xlu1 %7795 }
 0xe4e   :  { %v7857_v13 = vsub.f32 %v9535_v4, %v7796_v39 }
 0xe4f   :  { %v7883_v6 = vsel %vm7871_vm7, %v14114_v9, %v7858_v60 }
 0xe50   :  { %7907 = vst.msk [vmem:[%s14386_s2 + $0x58] sm:$0xff] %vm15379_vm3, %v7883_v6  ;;  %v7882_v11 = vsel %vm7871_vm7, %v14118_v44, %v7857_v13 }
 0xe51   :  { %7906 = vst.msk [vmem:[%s14386_s2 + $0x50] sm:$0xff] %vm15380_vm12, %v7882_v11 }
 0xe54   :  { %v7802_v54 = vpop.permute.xlu0 %7801 }
 0xe55   :  { %v7860_v51 = vsub.f32 %v9536_v15, %v7802_v54  ;;  %v7800_v9 = vpop.permute.xlu1 %7799 }
 0xe56   :  { %v7859_v48 = vsub.f32 %v9537_v20, %v7800_v9 }
 0xe57   :  { %v7885_v44 = vsel %vm7871_vm7, %v14122_v47, %v7860_v51 }
 0xe58   :  { %7909 = vst.msk [vmem:[%s14386_s2 + $0x68] sm:$0xff] %vm15381_vm11, %v7885_v44  ;;  %v7884_v18 = vsel %vm7871_vm7, %v14126_v31, %v7859_v48 }
 0xe59   :  { %7908 = vst.msk [vmem:[%s14386_s2 + $0x60] sm:$0xff] %vm15382_vm8, %v7884_v18 }
 0xe5c   :  { %v7806_v35 = vpop.permute.xlu0 %7805 }
 0xe5d   :  { %v7862_v8 = vsub.f32 %v9538_v26, %v7806_v35  ;;  %v7804_v47 = vpop.permute.xlu1 %7803 }
 0xe5e   :  { %v7861_v62 = vsub.f32 %v9539_v42, %v7804_v47 }
 0xe5f   :  { %v7887_v31 = vsel %vm7871_vm7, %v14130_v1, %v7862_v8 }
 0xe60   :  { %7911 = vst.msk [vmem:[%s14386_s2 + $0x78] sm:$0xff] %vm15383_vm14, %v7887_v31  ;;  %v7886_v49 = vsel %vm7871_vm7, %v14134_v19, %v7861_v62 }
 0xe61   :  { %7910 = vst.msk [vmem:[%s14386_s2 + $0x70] sm:$0xff] %vm15384_vm10, %v7886_v49 }
 0xe64   :  { %v7810_v28 = vpop.permute.xlu0 %7809 }
 0xe65   :  { %v7864_v5 = vsub.f32 %v9540_v7, %v7810_v28  ;;  %v7808_v1 = vpop.permute.xlu1 %7807 }
 0xe66   :  { %v7863_v53 = vsub.f32 %v9541_v55, %v7808_v1 }
 0xe67   :  { %v7889_v19 = vsel %vm7871_vm7, %v14138_v43, %v7864_v5 }
 0xe68   :  { %7913 = vst.msk [vmem:[%s14386_s2 + $0x88] sm:$0xff] %vm15385_vm1, %v7889_v19  ;;  %v7888_v25 = vsel %vm7871_vm7, %v14142_v63, %v7863_v53 }
 0xe69   :  { %7912 = vst.msk [vmem:[%s14386_s2 + $0x80] sm:$0xff] %vm15386_vm15, %v7888_v25 }
 0xe6c   :  { %v7814_v61 = vpop.permute.xlu0 %7813 }
 0xe6d   :  { %v7866_v10 = vsub.f32 %v9542_v38, %v7814_v61  ;;  %v7812_v43 = vpop.permute.xlu1 %7811 }
 0xe6e   :  { %v7865_v22 = vsub.f32 %v9543_v30, %v7812_v43 }
 0xe6f   :  { %v7891_v63 = vsel %vm7871_vm7, %v14146_v3, %v7866_v10 }
 0xe70   :  { %7915 = vst.msk [vmem:[%s14386_s2 + $0x98] sm:$0xff] %vm15387_vm4, %v7891_v63  ;;  %v7890_v40 = vsel %vm7871_vm7, %v14150_v56, %v7865_v22  ;;  %v7818_v23 = vpop.permute.xlu0 %7817 }
 0xe71   :  { %7914 = vst.msk [vmem:[%s14386_s2 + $0x90] sm:$0xff] %vm15388_vm13, %v7890_v40  ;;  %v7868_v50 = vsub.f32 %v9544_v29, %v7818_v23  ;;  %v7816_v3 = vpop.permute.xlu1 %7815 }
 0xe72   :  { %v7867_v57 = vsub.f32 %v9545_v32, %v7816_v3 }
 0xe73   :  { %v7893_v56 = vsel %vm7871_vm7, %v14154_v36, %v7868_v50 }
 0xe74   :  { %7917 = vst.msk [vmem:[%s14386_s2 + $0xa8] sm:$0xff] %vm15389_vm5, %v7893_v56  ;;  %v7892_v24 = vsel %vm7871_vm7, %v14158_v33, %v7867_v57  ;;  %v7822_v21 = vpop.permute.xlu0 %7821 }
 0xe75   :  { %7916 = vst.msk [vmem:[%s14386_s2 + $0xa0] sm:$0xff] %vm15390_vm9, %v7892_v24  ;;  %v7870_v17 = vsub.f32 %v9546_v41, %v7822_v21  ;;  %v7820_v36 = vpop.permute.xlu1 %7819 }
 0xe76   :  { %v7869_v12 = vsub.f32 %v9547_v46, %v7820_v36 }
 0xe77   :  { %v7895_v33 = vsel %vm7871_vm7, %v14162_v52, %v7870_v17 }
 0xe78   :  { %7919 = vst.msk [vmem:[%s14386_s2 + $0xb8] sm:$0xff] %vm15391_vm6, %v7895_v33  ;;  %v7894_v27 = vsel %vm7871_vm7, %v14166_v34, %v7869_v12 }
 0xe79   :  { %7918 = vst.msk [vmem:[%s14386_s2 + $0xb0] sm:$0xff] %vm15377_vm0, %v7894_v27 }

</bundles_post_ra>
